<compile_context>
chip_gen: v7x
topology: tpu7x:2x2x1
jax: 0.10.0
libtpu: 0.0.40
codegen_flags: <defaults>
</compile_context>

<pallas_src>
import functools

import jax
import jax.numpy as jnp
import numpy as np
from jax.experimental import pallas as pl
from jax.experimental.pallas import tpu as pltpu


def _mia_kernel(x_ref, ctx_ref, w_ref, b_ref, out_ref, attn_ref):
    """One batch-block of fused MultiplicativeImageAttention.

    x_ref    : (BT, F, S)  raw image features, natural channels-first layout
    ctx_ref  : (BT, C)     context vectors
    w_ref    : (C, F)      fused projection weight  W_comb = lin_w.T @ conv_w  (VMEM resident)
    b_ref    : (1, F)      fused projection bias    b_comb = lin_b @ conv_w     (VMEM resident)
    out_ref  : (BT, F)     attention-pooled features
    attn_ref : (BT, S)     softmax attention weights
    """
    x = x_ref[...].astype(jnp.float32)                         # (BT, F, S)

    # Fused context+feature projection: a single lane-dense (BT,C)@(C,F) MXU matmul.
    v = jnp.dot(ctx_ref[...], w_ref[...], preferred_element_type=jnp.float32)
    v = v + b_ref[...].astype(jnp.float32)                     # (BT, F)

    # scores[b, s] = sum_F v[b, f] * x[b, f, s]   (VPU multiply + reduce over F;
    # the kernel is HBM-bound so this VPU/XLU work hides under the feature DMA).
    scores = jnp.sum(v[:, :, None] * x, axis=1)                # (BT, S) f32

    # Softmax over spatial positions, all f32, exact division (attn sums to 1).
    m = jnp.max(scores, axis=-1, keepdims=True)
    e = jnp.exp(scores - m)
    probs = e / jnp.sum(e, axis=-1, keepdims=True)             # (BT, S) f32

    # Attention pooling of the *raw* features: out[b, f] = sum_S probs[b, s] * x[b, f, s].
    # Reduce over the minor axis -> lane reduce; output (BT, F) is lane-dense.
    out_ref[...] = jnp.sum(probs[:, None, :] * x, axis=-1).astype(out_ref.dtype)
    attn_ref[...] = probs.astype(attn_ref.dtype)


@functools.partial(jax.jit, static_argnames=("batch_block",))
def multiplicative_image_attention(feature, context, conv_w, conv_b,
                                   lin_w, lin_b, *, batch_block=32):
    """Pallas forward pass matching MultiplicativeImageAttention.forward.

    feature : (B, F, Hh, Ww)
    context : (B, C)
    conv_w  : (Hd, F) or (Hd, F, 1, 1)   fc1_feature 1x1-conv weight
    conv_b  : (Hd,)                      (dropped: softmax is shift-invariant per batch)
    lin_w   : (Hd, C)                    fc1_context weight
    lin_b   : (Hd,)
    Returns (out (B, F), attn (B, Hh*Ww)).
    """
    b, fd, hh, ww = feature.shape
    s = hh * ww
    hd, c = lin_w.shape
    del conv_b  # only shifts each batch's scores uniformly; softmax is shift-invariant

    # --- Wrapper-side algebra (tiny, done once; no pass over `feature`). -----------
    conv_w2 = conv_w.reshape(hd, fd).astype(jnp.float32)             # (Hd, F)
    w_comb = lin_w.astype(jnp.float32).T @ conv_w2                    # (C, F)
    b_comb = (lin_b.astype(jnp.float32) @ conv_w2).reshape(1, fd)     # (1, F)

    # Free view only (no transpose / copy): channels-first (B, F, S).
    x = feature.reshape(b, fd, s)
    # TODO(synk): optionally stream `feature` as bf16 (halves HBM read on v6e/v7x); kept
    # in the caller's dtype here for bit-fidelity with the f32 test.

    # Batch tile: whole batch if small, else a multiple of 8 (sublane constraint on the
    # (bt, C) / (bt, F) blocks).  Ragged edge handled by Pallas block clipping (no pad).
    # Per-batch padded VMEM footprint of the feature block is F * 128 lanes * 4 B
    # (S < 128 pads to a full lane tile); batch_block is sized so the double-buffered
    # block + in-kernel temporaries stay well under v7x's 64 MiB physical VMEM.  Raise
    # batch_block (and vmem_limit_bytes) on v5e/v6e (128 MiB VMEM) for bigger DMAs.
    if b <= batch_block:
        bt = b
    else:
        bt = max(8, (batch_block // 8) * 8)
    grid = (pl.cdiv(b, bt),)

    # Advisory cost estimate (fused matmul + two feature contractions + softmax).
    flops = 2.0 * b * c * fd + 4.0 * b * fd * s + 6.0 * b * s
    bytes_accessed = 4.0 * (b * fd * s + b * c + c * fd + fd + b * fd + b * s)
    cost = pl.CostEstimate(flops=int(flops),
                           transcendentals=int(b * s),
                           bytes_accessed=int(bytes_accessed))

    out, attn = pl.pallas_call(
        _mia_kernel,
        out_shape=(
            jax.ShapeDtypeStruct((b, fd), feature.dtype),
            jax.ShapeDtypeStruct((b, s), jnp.float32),
        ),
        grid_spec=pltpu.PrefetchScalarGridSpec(
            num_scalar_prefetch=0,
            grid=grid,
            in_specs=[
                pl.BlockSpec((bt, fd, s), lambda i: (i, 0, 0)),   # features (natural layout)
                pl.BlockSpec((bt, c), lambda i: (i, 0)),          # context
                pl.BlockSpec((c, fd), lambda i: (0, 0)),          # W_comb (VMEM resident)
                pl.BlockSpec((1, fd), lambda i: (0, 0)),          # b_comb (VMEM resident)
            ],
            out_specs=[
                pl.BlockSpec((bt, fd), lambda i: (i, 0)),         # pooled features (lane-dense)
                pl.BlockSpec((bt, s), lambda i: (i, 0)),          # attention weights
            ],
        ),
        compiler_params=pltpu.CompilerParams(
            dimension_semantics=("parallel",),      # batch blocks are independent (megacore)
            vmem_limit_bytes=48 * 1024 * 1024,      # headroom under v7x's 64 MiB physical
        ),
        cost_estimate=cost,
    )(x, context, w_comb, b_comb)

    return out, attn


def _reference(feature, context, conv_w, conv_b, lin_w, lin_b):
    """Pure-JAX reference following the PyTorch forward() exactly (via the Hd path)."""
    b, fd, hh, ww = feature.shape
    s = hh * ww
    feat2 = feature.reshape(b, fd, s)                                   # (B, F, S)
    fh = jnp.einsum('hf,bfs->bhs', conv_w, feat2) + conv_b[None, :, None]
    ch = context @ lin_w.T + lin_b                                      # (B, Hd)
    scores = jnp.einsum('bh,bhs->bs', ch, fh)                           # (B, S)
    attn = jax.nn.softmax(scores, axis=1)
    out = jnp.einsum('bfs,bs->bf', feat2, attn)                         # (B, F)
    return out, attn


if __name__ == "__main__":
    # Small shapes consistent with the module:
    # B=12, image_feature_size=256, hidden_size=32, context_size=64, 4x4 spatial.
    B, FD, HD, C, HH, WW = 12, 256, 32, 64, 4, 4

    key = jax.random.PRNGKey(0)
    k1, k2, k3, k4, k5, k6 = jax.random.split(key, 6)
    feature = jax.random.normal(k1, (B, FD, HH, WW), dtype=jnp.float32)
    context = jax.random.normal(k2, (B, C), dtype=jnp.float32)
    conv_w = 0.02 * jax.random.normal(k3, (HD, FD), dtype=jnp.float32)
    conv_b = 0.02 * jax.random.normal(k4, (HD,), dtype=jnp.float32)
    lin_w = 0.02 * jax.random.normal(k5, (HD, C), dtype=jnp.float32)
    lin_b = 0.02 * jax.random.normal(k6, (HD,), dtype=jnp.float32)

    out, attn = multiplicative_image_attention(
        feature, context, conv_w, conv_b, lin_w, lin_b, batch_block=32)
    out, attn = jax.block_until_ready((out, attn))

    out_ref, attn_ref = _reference(feature, context, conv_w, conv_b, lin_w, lin_b)
    np.testing.assert_allclose(np.asarray(out), np.asarray(out_ref),
                               atol=2e-2, rtol=2e-2)
    np.testing.assert_allclose(np.asarray(attn), np.asarray(attn_ref),
                               atol=2e-2, rtol=2e-2)
    # Attention rows must sum to 1 (exact softmax division, per the review).
    np.testing.assert_allclose(np.asarray(attn).sum(axis=1), np.ones(B),
                               atol=1e-5, rtol=1e-5)

    print("KERNEL_OK")
</pallas_src>

<mosaic_0001>
module attributes {stable_mosaic.version = 11 : i64} {
  func.func @_mia_kernel(%arg0: i32, %arg1: memref<12x256x16xf32, #tpu.memory_space<vmem>>, %arg2: memref<12x64xf32, #tpu.memory_space<vmem>>, %arg3: memref<64x256xf32, #tpu.memory_space<vmem>>, %arg4: memref<1x256xf32, #tpu.memory_space<vmem>>, %arg5: memref<12x256xf32, #tpu.memory_space<vmem>>, %arg6: memref<12x16xf32, #tpu.memory_space<vmem>>) attributes {dimension_semantics = [#tpu.dimension_semantics<parallel>], iteration_bounds = array<i64: 1>, scalar_prefetch = 0 : i64, scratch_operands = 0 : i64, tpu.core_type = #tpu.core_type<tc>, window_params = [{transform_indices = @transform_0, window_bounds = array<i64: 12, 256, 16>}, {transform_indices = @transform_1, window_bounds = array<i64: 12, 64>}, {pipeline_mode = #tpu.pipeline_mode<synchronous>, transform_indices = @transform_2, window_bounds = array<i64: 64, 256>}, {pipeline_mode = #tpu.pipeline_mode<synchronous>, transform_indices = @transform_3, window_bounds = array<i64: 1, 256>}, {transform_indices = @transform_4, window_bounds = array<i64: 12, 256>}, {transform_indices = @transform_5, window_bounds = array<i64: 12, 16>}]} {
    %c0 = arith.constant 0 : index
    %c0_0 = arith.constant 0 : index
    %c0_1 = arith.constant 0 : index
    %0 = vector.load %arg1[%c0, %c0_0, %c0_1] : memref<12x256x16xf32, #tpu.memory_space<vmem>>, vector<12x256x16xf32>
    %c0_2 = arith.constant 0 : index
    %c0_3 = arith.constant 0 : index
    %1 = vector.load %arg2[%c0_2, %c0_3] : memref<12x64xf32, #tpu.memory_space<vmem>>, vector<12x64xf32>
    %c0_4 = arith.constant 0 : index
    %c0_5 = arith.constant 0 : index
    %2 = vector.load %arg3[%c0_4, %c0_5] : memref<64x256xf32, #tpu.memory_space<vmem>>, vector<64x256xf32>
    %cst = arith.constant dense<0.000000e+00> : vector<12x256xf32>
    %3 = tpu.matmul %1, %2, %cst {dimension_numbers = #tpu.dot_dimension_numbers<[1], [0], [0], [1], [0, 0, 1, 1], [], []>} : vector<12x64xf32>, vector<64x256xf32>, vector<12x256xf32> -> vector<12x256xf32>
    %c0_6 = arith.constant 0 : index
    %c0_7 = arith.constant 0 : index
    %4 = vector.load %arg4[%c0_6, %c0_7] : memref<1x256xf32, #tpu.memory_space<vmem>>, vector<1x256xf32>
    %5 = vector.broadcast %4 : vector<1x256xf32> to vector<12x256xf32>
    %6 = arith.addf %3, %5 : vector<12x256xf32>
    %7 = vector.shape_cast %6 : vector<12x256xf32> to vector<12x256x1xf32>
    %8 = vector.broadcast %7 : vector<12x256x1xf32> to vector<12x256x16xf32>
    %9 = arith.mulf %8, %0 : vector<12x256x16xf32>
    %cst_8 = arith.constant dense<0.000000e+00> : vector<12x16xf32>
    %10 = vector.multi_reduction <add>, %9, %cst_8 [1] : vector<12x256x16xf32> to vector<12x16xf32>
    %cst_9 = arith.constant dense<0xFF800000> : vector<12xf32>
    %11 = vector.multi_reduction <maximumf>, %10, %cst_9 [1] : vector<12x16xf32> to vector<12xf32>
    %12 = vector.shape_cast %11 : vector<12xf32> to vector<12x1xf32>
    %13 = vector.broadcast %12 : vector<12x1xf32> to vector<12x16xf32>
    %14 = arith.subf %10, %13 : vector<12x16xf32>
    %15 = math.exp %14 : vector<12x16xf32>
    %cst_10 = arith.constant dense<0.000000e+00> : vector<12xf32>
    %16 = vector.multi_reduction <add>, %15, %cst_10 [1] : vector<12x16xf32> to vector<12xf32>
    %17 = vector.shape_cast %16 : vector<12xf32> to vector<12x1xf32>
    %18 = vector.broadcast %17 : vector<12x1xf32> to vector<12x16xf32>
    %19 = arith.divf %15, %18 : vector<12x16xf32>
    %20 = vector.shape_cast %19 : vector<12x16xf32> to vector<12x1x16xf32>
    %21 = vector.broadcast %20 : vector<12x1x16xf32> to vector<12x256x16xf32>
    %22 = arith.mulf %21, %0 : vector<12x256x16xf32>
    %cst_11 = arith.constant dense<0.000000e+00> : vector<12x256xf32>
    %23 = vector.multi_reduction <add>, %22, %cst_11 [2] : vector<12x256x16xf32> to vector<12x256xf32>
    %c0_12 = arith.constant 0 : index
    %c0_13 = arith.constant 0 : index
    %24 = vector.load %arg5[%c0_12, %c0_13] : memref<12x256xf32, #tpu.memory_space<vmem>>, vector<12x256xf32>
    tpu.vector_store %arg5[%c0_12, %c0_13], %23 {strides = array<i32>} : memref<12x256xf32, #tpu.memory_space<vmem>>, vector<12x256xf32>,
    %c0_14 = arith.constant 0 : index
    %c0_15 = arith.constant 0 : index
    %25 = vector.load %arg6[%c0_14, %c0_15] : memref<12x16xf32, #tpu.memory_space<vmem>>, vector<12x16xf32>
    tpu.vector_store %arg6[%c0_14, %c0_15], %19 {strides = array<i32>} : memref<12x16xf32, #tpu.memory_space<vmem>>, vector<12x16xf32>,
    return
  }
  func.func @transform_0(%arg0: i32) -> (i32, i32, i32) {
    %c0_i32 = arith.constant 0 : i32
    %c0_i32_0 = arith.constant 0 : i32
    %c0_i32_1 = arith.constant 0 : i32
    return %arg0, %c0_i32, %c0_i32_0 : i32, i32, i32
  }
  func.func @transform_1(%arg0: i32) -> (i32, i32) {
    %c0_i32 = arith.constant 0 : i32
    %c0_i32_0 = arith.constant 0 : i32
    return %arg0, %c0_i32 : i32, i32
  }
  func.func @transform_2(%arg0: i32) -> (i32, i32) {
    %c0_i32 = arith.constant 0 : i32
    %c0_i32_0 = arith.constant 0 : i32
    %c0_i32_1 = arith.constant 0 : i32
    return %c0_i32, %c0_i32_0 : i32, i32
  }
  func.func @transform_3(%arg0: i32) -> (i32, i32) {
    %c0_i32 = arith.constant 0 : i32
    %c0_i32_0 = arith.constant 0 : i32
    %c0_i32_1 = arith.constant 0 : i32
    return %c0_i32, %c0_i32_0 : i32, i32
  }
  func.func @transform_4(%arg0: i32) -> (i32, i32) {
    %c0_i32 = arith.constant 0 : i32
    %c0_i32_0 = arith.constant 0 : i32
    return %arg0, %c0_i32 : i32, i32
  }
  func.func @transform_5(%arg0: i32) -> (i32, i32) {
    %c0_i32 = arith.constant 0 : i32
    %c0_i32_0 = arith.constant 0 : i32
    return %arg0, %c0_i32 : i32, i32
  }
}

</mosaic_0001>

<bundles_post_ra>
// kernel: multiplicative_image_attention.1
= control target key start
LH: loop header
LB: loop body
LE: loop exit
PB: predicated region body
PF: predicated region fallthrough
CT: control target
= control target key end

     0   :  { %11 = vsyncpa [#allocation3], 0  ;;  %v8031_v7 = vmov 0.0   ;;  %s14071_s0 = inlined_call_operand.vmem [shape: f32[12,256,16], index: 0, kind: input, shape index: {}]   ;;  %s14072_s1 = inlined_call_operand.vmem [shape: f32[12,64], index: 1, kind: input, shape index: {}]   ;;  %s14073_s2 = inlined_call_operand.vmem [shape: f32[64,256], index: 2, kind: input, shape index: {}]   ;;  %s14074_s3 = inlined_call_operand.vmem [shape: f32[1,256], index: 3, kind: input, shape index: {}]   ;;  %s14075_s4 = inlined_call_operand.hbm [shape: f32[12,256], index: 4, kind: output, shape index: {0}]   ;;  %s14076_s5 = inlined_call_operand.hbm [shape: f32[12,16], index: 5, kind: output, shape index: {1}]  }
   0x1   :  { %v408_v0 = vld [vmem:[%s14073_s2 + $0x8] sm:$0xff]  ;;  %v410_v1 = vld [vmem:[%s14073_s2 + $0x18] sm:$0xff]  ;;  %v407_v2 = vld [vmem:[%s14073_s2] sm:$0xff]  ;;  %506 = vmatprep.mubr.f32.mxu0 %v8031_v7  ;;  %512 = vmatprep.mubr.f32.mxu1 %v8031_v7 }
   0x2   :  { %v7520_v3 = vpack.c.bf16 %v410_v1, %v408_v0  ;;  %v409_v4 = vld [vmem:[%s14073_s2 + $0x10] sm:$0xff]  ;;  %v412_v5 = vld [vmem:[%s14073_s2 + $0x28] sm:$0xff]  ;;  %v414_v6 = vld [vmem:[%s14073_s2 + $0x38] sm:$0xff] }
   0x3   :  { %v7522_v8 = vpack.c.bf16 %v409_v4, %v407_v2  ;;  %v7524_v9 = vpack.c.bf16 %v414_v6, %v412_v5  ;;  %v411_v10 = vld [vmem:[%s14073_s2 + $0x20] sm:$0xff]  ;;  %v413_v11 = vld [vmem:[%s14073_s2 + $0x30] sm:$0xff]  ;;  %v416_v12 = vld [vmem:[%s14073_s2 + $0x48] sm:$0xff] }
   0x4   :  { %7521 = vmatprep.subr.bf16.mxu0 %v7520_v3  ;;  %v418_v13 = vld [vmem:[%s14073_s2 + $0x58] sm:$0xff]  ;;  %7536 = vmatprep.subr.bf16.mxu1 %v7520_v3  ;;  %v7526_v14 = vpack.c.bf16 %v413_v11, %v411_v10  ;;  %v415_v16 = vld [vmem:[%s14073_s2 + $0x40] sm:$0xff]  ;;  %v417_v17 = vld [vmem:[%s14073_s2 + $0x50] sm:$0xff] }
   0x5   :  { %7523 = vmatpush1.bf16.msra.mxu0 %v7522_v8  ;;  %7540 = vmatpush1.bf16.msra.mxu1 %v7522_v8  ;;  %v7528_v15 = vpack.c.bf16 %v418_v13, %v416_v12  ;;  %v420_v18 = vld [vmem:[%s14073_s2 + $0x68] sm:$0xff]  ;;  %v422_v19 = vld [vmem:[%s14073_s2 + $0x78] sm:$0xff] }
   0x6   :  { %7525 = vmatprep.subr.bf16.mxu0 %v7524_v9  ;;  %7537 = vmatprep.subr.bf16.mxu1 %v7524_v9 }
   0x7   :  { %12 = vsyncpa [#allocation5], 0  ;;  %v7530_v20 = vpack.c.bf16 %v417_v17, %v415_v16  ;;  %v7532_v21 = vpack.c.bf16 %v422_v19, %v420_v18  ;;  %v419_v22 = vld [vmem:[%s14073_s2 + $0x60] sm:$0xff]  ;;  %v421_v23 = vld [vmem:[%s14073_s2 + $0x70] sm:$0xff]  ;;  %vm435_vm0 = vcmask 523264   ;;  %v14077_v26 = vlaneseq }
   0x8   :  { %v7534_v24 = vpack.c.bf16 %v421_v23, %v419_v22  ;;  %v405_v25 = vld [vmem:[%s14072_s1] sm:$0xff]  ;;  %v406_v9 = vld [vmem:[%s14072_s1 + $0x8] sm:$0xf]  ;;  %vm2511_vm1 = vcmask 130048   ;;  %vm14096_vm2 = vcmask 1041409   ;;  %vm14095_vm3 = vcmask 1042434  }
   0x9   :  { %7527 = vmatpush1.bf16.msra.mxu0 %v7526_v14  ;;  %7541 = vmatpush1.bf16.msra.mxu1 %v7526_v14  ;;  %v8121_v27 = vshrl.u32 %v14077_v26, 7  ;;  %v8129_v29 = vld [vmem:[%s14074_s3] sm:$0x3]  ;;  %vm14094_vm4 = vcmask 1043459   ;;  %vm14093_vm5 = vcmask 1044484   ;;  %vm14091_vm6 = vcmask 1045509  }
   0xa   :  { %7529 = vmatprep.subr.bf16.mxu0 %v7528_v15  ;;  %7538 = vmatprep.subr.bf16.mxu1 %v7528_v15  ;;  %vm14090_vm7 = vcmask 1046534   ;;  %vm14089_vm8 = vcmask 1047559   ;;  %vm14092_vm9 = vcmask 125952   ;;  %vm5505_vm10 = vcmask 130112  }
   0xb   :  { %14102 = vst [vmem:[#allocation8_spill] sm:$0xff] %v8121_v27  ;;  %v8124_v28 = vsub.s32 0, %v8121_v27  ;;  %v8143_v35 = vsub.s32 1, %v8121_v27  ;;  %v8148_v37 = vsub.s32 2, %v8121_v27  ;;  %v8153_v39 = vsub.s32 3, %v8121_v27 }
   0xc   :  { %vm5512_vm11 = vcmask 195712   ;;  %vm5519_vm12 = vcmask 261312   ;;  %vm5526_vm13 = vcmask 326912   ;;  %vm5533_vm14 = vcmask 392512  }
   0xd   :  { %7531 = vmatpush1.bf16.msra.mxu0 %v7530_v20  ;;  %7542 = vmatpush1.bf16.msra.mxu1 %v7530_v20  ;;  %14103 = vst [vmem:[#allocation9_spill] sm:$0xff] %v8124_v28  ;;  %v8133_v30 = vrot.slane %v8129_v29, %v8124_v28  ;;  %14104 = vst [vmem:[#allocation10_spill] sm:$0xff] %v8143_v35  ;;  %v8163_v43 = vrot.slane %v8129_v29, %v8143_v35  ;;  %vm5540_vm15 = vcmask 458112  }
   0xe   :  { %7533 = vmatprep.subr.bf16.mxu0 %v7532_v21  ;;  %7539 = vmatprep.subr.bf16.mxu1 %v7532_v21  ;;  %14105 = vst [vmem:[#allocation11_spill] sm:$0xff] %v8148_v37  ;;  %14106 = vst [vmem:[#allocation12_spill] sm:$0xff] %v8153_v39 }
  0x11   :  { %7535 = vmatpush1.bf16.msra.mxu0 %v7534_v24  ;;  %7543 = vmatpush1.bf16.msra.mxu1 %v7534_v24 }
  0x14   :  { %7518 = vmatmul.mubr.msk.f32.vlgmr.msra.gmra.mrb[0].mxu0 %vm435_vm0, %v405_v25  ;;  %7519 = vmatmul.mubr.msk.f32.vlgmr.msra.gmra.mrb[0].mxu1 %vm435_vm0, %v406_v9  ;;  %vm5547_vm0 = vcmask 523712  }
  0xe7   :  { %v508_v31 = vpop.f32.mrb[0].mxu0 }
  0xe8   :  { %v8136_v32 = vadd.f32 %v508_v31, %v8133_v30  ;;  %v8138_v33 = vpop.f32.mrb[1].mxu0 }
  0xe9   :  { %v8171_v46 = vadd.f32 %v8138_v33, %v8163_v43 }
  0xea   :  { %v522_v34 = vrot.slane %v8136_v32, %v8124_v28  ;;  %v656_v36 = vrot.slane %v8136_v32, %v8143_v35  ;;  %v790_v38 = vrot.slane %v8136_v32, %v8148_v37  ;;  %v924_v40 = vrot.slane %v8136_v32, %v8153_v39 }
  0xeb   :  { %v589_v49 = vrot.slane %v8171_v46, %v8124_v28  ;;  %v723_v2 = vrot.slane %v8171_v46, %v8143_v35  ;;  %v857_v20 = vrot.slane %v8171_v46, %v8148_v37  ;;  %v991_v37 = vrot.slane %v8171_v46, %v8153_v39 }
  0xec   :  { %532 = vbcast.lane.b32.xlu1 %v522_v34, 272  ;;  %524 = vbcast.lane.b32.xlu0 %v522_v34, 256 }
  0xf0   :  { %536 = vbcast.lane.b32.xlu1 %v522_v34, 280  ;;  %528 = vbcast.lane.b32.xlu0 %v522_v34, 264 }
  0xf4   :  { %544 = vbcast.lane.b32.xlu1 %v522_v34, 296  ;;  %540 = vbcast.lane.b32.xlu0 %v522_v34, 288 }
  0xf8   :  { %552 = vbcast.lane.b32.xlu1 %v522_v34, 312  ;;  %548 = vbcast.lane.b32.xlu0 %v522_v34, 304 }
  0xfc   :  { %560 = vbcast.lane.b32.xlu1 %v522_v34, 328  ;;  %556 = vbcast.lane.b32.xlu0 %v522_v34, 320 }
 0x100   :  { %568 = vbcast.lane.b32.xlu1 %v522_v34, 344  ;;  %564 = vbcast.lane.b32.xlu0 %v522_v34, 336 }
 0x104   :  { %576 = vbcast.lane.b32.xlu1 %v522_v34, 360  ;;  %572 = vbcast.lane.b32.xlu0 %v522_v34, 352 }
 0x108   :  { %584 = vbcast.lane.b32.xlu1 %v522_v34, 376  ;;  %580 = vbcast.lane.b32.xlu0 %v522_v34, 368 }
 0x10c   :  { %662 = vbcast.lane.b32.xlu1 %v656_v36, 264  ;;  %658 = vbcast.lane.b32.xlu0 %v656_v36, 256 }
 0x110   :  { %670 = vbcast.lane.b32.xlu1 %v656_v36, 280  ;;  %666 = vbcast.lane.b32.xlu0 %v656_v36, 272 }
 0x114   :  { %678 = vbcast.lane.b32.xlu1 %v656_v36, 296  ;;  %674 = vbcast.lane.b32.xlu0 %v656_v36, 288 }
 0x118   :  { %686 = vbcast.lane.b32.xlu1 %v656_v36, 312  ;;  %682 = vbcast.lane.b32.xlu0 %v656_v36, 304 }
 0x11c   :  { %694 = vbcast.lane.b32.xlu1 %v656_v36, 328  ;;  %690 = vbcast.lane.b32.xlu0 %v656_v36, 320 }
 0x120   :  { %702 = vbcast.lane.b32.xlu1 %v656_v36, 344  ;;  %698 = vbcast.lane.b32.xlu0 %v656_v36, 336 }
 0x124   :  { %710 = vbcast.lane.b32.xlu1 %v656_v36, 360  ;;  %706 = vbcast.lane.b32.xlu0 %v656_v36, 352 }
 0x128   :  { %718 = vbcast.lane.b32.xlu1 %v656_v36, 376  ;;  %714 = vbcast.lane.b32.xlu0 %v656_v36, 368 }
 0x12c   :  { %796 = vbcast.lane.b32.xlu1 %v790_v38, 264  ;;  %792 = vbcast.lane.b32.xlu0 %v790_v38, 256 }
 0x130   :  { %804 = vbcast.lane.b32.xlu1 %v790_v38, 280  ;;  %800 = vbcast.lane.b32.xlu0 %v790_v38, 272 }
 0x134   :  { %812 = vbcast.lane.b32.xlu1 %v790_v38, 296  ;;  %808 = vbcast.lane.b32.xlu0 %v790_v38, 288 }
 0x138   :  { %820 = vbcast.lane.b32.xlu1 %v790_v38, 312  ;;  %816 = vbcast.lane.b32.xlu0 %v790_v38, 304 }
 0x13c   :  { %828 = vbcast.lane.b32.xlu1 %v790_v38, 328  ;;  %824 = vbcast.lane.b32.xlu0 %v790_v38, 320 }
 0x140   :  { %836 = vbcast.lane.b32.xlu1 %v790_v38, 344  ;;  %832 = vbcast.lane.b32.xlu0 %v790_v38, 336 }
 0x144   :  { %844 = vbcast.lane.b32.xlu1 %v790_v38, 360  ;;  %840 = vbcast.lane.b32.xlu0 %v790_v38, 352 }
 0x148   :  { %852 = vbcast.lane.b32.xlu1 %v790_v38, 376  ;;  %848 = vbcast.lane.b32.xlu0 %v790_v38, 368 }
 0x14c   :  { %930 = vbcast.lane.b32.xlu1 %v924_v40, 264  ;;  %926 = vbcast.lane.b32.xlu0 %v924_v40, 256 }
 0x150   :  { %938 = vbcast.lane.b32.xlu1 %v924_v40, 280  ;;  %934 = vbcast.lane.b32.xlu0 %v924_v40, 272 }
 0x154   :  { %946 = vbcast.lane.b32.xlu1 %v924_v40, 296  ;;  %942 = vbcast.lane.b32.xlu0 %v924_v40, 288 }
 0x158   :  { %954 = vbcast.lane.b32.xlu1 %v924_v40, 312  ;;  %950 = vbcast.lane.b32.xlu0 %v924_v40, 304 }
 0x15c   :  { %962 = vbcast.lane.b32.xlu1 %v924_v40, 328  ;;  %958 = vbcast.lane.b32.xlu0 %v924_v40, 320 }
 0x15e   :  { %v8157_v41 = vpop.permute.xlu1 %532  ;;  %v8159_v42 = vpop.permute.xlu0 %524 }
 0x160   :  { %970 = vbcast.lane.b32.xlu1 %v924_v40, 344  ;;  %966 = vbcast.lane.b32.xlu0 %v924_v40, 336 }
 0x162   :  { %v8165_v44 = vpop.permute.xlu1 %536  ;;  %v8167_v45 = vpop.permute.xlu0 %528 }
 0x164   :  { %978 = vbcast.lane.b32.xlu1 %v924_v40, 360  ;;  %974 = vbcast.lane.b32.xlu0 %v924_v40, 352 }
 0x166   :  { %v8173_v47 = vpop.permute.xlu1 %544  ;;  %v8175_v48 = vpop.permute.xlu0 %540 }
 0x168   :  { %986 = vbcast.lane.b32.xlu1 %v924_v40, 376  ;;  %982 = vbcast.lane.b32.xlu0 %v924_v40, 368 }
 0x16a   :  { %v8179_v50 = vpop.permute.xlu1 %552  ;;  %v8181_v51 = vpop.permute.xlu0 %548 }
 0x16c   :  { %595 = vbcast.lane.b32.xlu1 %v589_v49, 264  ;;  %591 = vbcast.lane.b32.xlu0 %v589_v49, 256 }
 0x16e   :  { %v8183_v52 = vpop.permute.xlu1 %560  ;;  %v8185_v53 = vpop.permute.xlu0 %556 }
 0x170   :  { %603 = vbcast.lane.b32.xlu1 %v589_v49, 280  ;;  %599 = vbcast.lane.b32.xlu0 %v589_v49, 272 }
 0x172   :  { %v8187_v54 = vpop.permute.xlu1 %568  ;;  %v8189_v55 = vpop.permute.xlu0 %564 }
 0x174   :  { %611 = vbcast.lane.b32.xlu1 %v589_v49, 296  ;;  %607 = vbcast.lane.b32.xlu0 %v589_v49, 288 }
 0x176   :  { %v8191_v56 = vpop.permute.xlu1 %576  ;;  %v8193_v57 = vpop.permute.xlu0 %572 }
 0x178   :  { %619 = vbcast.lane.b32.xlu1 %v589_v49, 312  ;;  %615 = vbcast.lane.b32.xlu0 %v589_v49, 304 }
 0x17a   :  { %v8195_v58 = vpop.permute.xlu1 %584  ;;  %v8197_v59 = vpop.permute.xlu0 %580 }
 0x17c   :  { %627 = vbcast.lane.b32.xlu1 %v589_v49, 328  ;;  %623 = vbcast.lane.b32.xlu0 %v589_v49, 320 }
 0x17e   :  { %v8199_v60 = vpop.permute.xlu1 %662  ;;  %v8201_v61 = vpop.permute.xlu0 %658 }
 0x180   :  { %635 = vbcast.lane.b32.xlu1 %v589_v49, 344  ;;  %631 = vbcast.lane.b32.xlu0 %v589_v49, 336 }
 0x182   :  { %v8203_v62 = vpop.permute.xlu1 %670  ;;  %v8205_v63 = vpop.permute.xlu0 %666 }
 0x184   :  { %643 = vbcast.lane.b32.xlu1 %v589_v49, 360  ;;  %639 = vbcast.lane.b32.xlu0 %v589_v49, 352 }
 0x186   :  { %v8207_v0 = vpop.permute.xlu1 %678  ;;  %v8209_v1 = vpop.permute.xlu0 %674 }
 0x188   :  { %651 = vbcast.lane.b32.xlu1 %v589_v49, 376  ;;  %647 = vbcast.lane.b32.xlu0 %v589_v49, 368 }
 0x18a   :  { %v8213_v3 = vpop.permute.xlu1 %686  ;;  %v8215_v4 = vpop.permute.xlu0 %682 }
 0x18c   :  { %729 = vbcast.lane.b32.xlu1 %v723_v2, 264  ;;  %725 = vbcast.lane.b32.xlu0 %v723_v2, 256 }
 0x18e   :  { %v8217_v5 = vpop.permute.xlu1 %694  ;;  %v8219_v6 = vpop.permute.xlu0 %690 }
 0x190   :  { %737 = vbcast.lane.b32.xlu1 %v723_v2, 280  ;;  %733 = vbcast.lane.b32.xlu0 %v723_v2, 272 }
 0x192   :  { %v8221_v7 = vpop.permute.xlu1 %702  ;;  %v8223_v8 = vpop.permute.xlu0 %698 }
 0x194   :  { %745 = vbcast.lane.b32.xlu1 %v723_v2, 296  ;;  %741 = vbcast.lane.b32.xlu0 %v723_v2, 288 }
 0x196   :  { %v8229_v10 = vpop.permute.xlu1 %710  ;;  %v8231_v11 = vpop.permute.xlu0 %706 }
 0x198   :  { %753 = vbcast.lane.b32.xlu1 %v723_v2, 312  ;;  %749 = vbcast.lane.b32.xlu0 %v723_v2, 304 }
 0x19a   :  { %v8233_v12 = vpop.permute.xlu1 %718  ;;  %v8235_v13 = vpop.permute.xlu0 %714 }
 0x19b   :  { %14107 = vst [vmem:[#allocation13_spill] sm:$0xff] %v8233_v12 }
 0x19c   :  { %761 = vbcast.lane.b32.xlu1 %v723_v2, 328  ;;  %757 = vbcast.lane.b32.xlu0 %v723_v2, 320 }
 0x19e   :  { %v8237_v14 = vpop.permute.xlu1 %796  ;;  %v8239_v15 = vpop.permute.xlu0 %792 }
 0x1a0   :  { %769 = vbcast.lane.b32.xlu1 %v723_v2, 344  ;;  %765 = vbcast.lane.b32.xlu0 %v723_v2, 336 }
 0x1a2   :  { %v8241_v16 = vpop.permute.xlu1 %804  ;;  %v8243_v17 = vpop.permute.xlu0 %800 }
 0x1a4   :  { %777 = vbcast.lane.b32.xlu1 %v723_v2, 360  ;;  %773 = vbcast.lane.b32.xlu0 %v723_v2, 352 }
 0x1a6   :  { %v8245_v18 = vpop.permute.xlu1 %812  ;;  %v8247_v19 = vpop.permute.xlu0 %808 }
 0x1a7   :  { %14108 = vst [vmem:[#allocation14_spill] sm:$0xff] %v8245_v18 }
 0x1a8   :  { %785 = vbcast.lane.b32.xlu1 %v723_v2, 376  ;;  %781 = vbcast.lane.b32.xlu0 %v723_v2, 368 }
 0x1aa   :  { %v8251_v21 = vpop.permute.xlu1 %820  ;;  %v8253_v22 = vpop.permute.xlu0 %816 }
 0x1ab   :  { %14109 = vst [vmem:[#allocation15_spill] sm:$0xff] %v8251_v21  ;;  %14110 = vst [vmem:[#allocation16_spill] sm:$0xff] %v8253_v22 }
 0x1ac   :  { %863 = vbcast.lane.b32.xlu1 %v857_v20, 264  ;;  %859 = vbcast.lane.b32.xlu0 %v857_v20, 256 }
 0x1ae   :  { %v8255_v23 = vpop.permute.xlu1 %828  ;;  %v8257_v24 = vpop.permute.xlu0 %824 }
 0x1af   :  { %14111 = vst [vmem:[#allocation17_spill] sm:$0xff] %v8255_v23  ;;  %14112 = vst [vmem:[#allocation18_spill] sm:$0xff] %v8257_v24 }
 0x1b0   :  { %871 = vbcast.lane.b32.xlu1 %v857_v20, 280  ;;  %867 = vbcast.lane.b32.xlu0 %v857_v20, 272 }
 0x1b2   :  { %v8259_v25 = vpop.permute.xlu1 %836  ;;  %v8261_v29 = vpop.permute.xlu0 %832 }
 0x1b3   :  { %14113 = vst [vmem:[#allocation19_spill] sm:$0xff] %v8259_v25  ;;  %14114 = vst [vmem:[#allocation20_spill] sm:$0xff] %v8261_v29 }
 0x1b4   :  { %879 = vbcast.lane.b32.xlu1 %v857_v20, 296  ;;  %875 = vbcast.lane.b32.xlu0 %v857_v20, 288 }
 0x1b6   :  { %v8263_v31 = vpop.permute.xlu1 %844  ;;  %v8265_v33 = vpop.permute.xlu0 %840 }
 0x1b7   :  { %14115 = vst [vmem:[#allocation21_spill] sm:$0xff] %v8263_v31  ;;  %14116 = vst [vmem:[#allocation22_spill] sm:$0xff] %v8265_v33 }
 0x1b8   :  { %887 = vbcast.lane.b32.xlu1 %v857_v20, 312  ;;  %883 = vbcast.lane.b32.xlu0 %v857_v20, 304 }
 0x1ba   :  { %v8267_v34 = vpop.permute.xlu1 %852  ;;  %v8269_v36 = vpop.permute.xlu0 %848 }
 0x1bb   :  { %14117 = vst [vmem:[#allocation23_spill] sm:$0xff] %v8267_v34  ;;  %14118 = vst [vmem:[#allocation24_spill] sm:$0xff] %v8269_v36 }
 0x1bc   :  { %895 = vbcast.lane.b32.xlu1 %v857_v20, 328  ;;  %891 = vbcast.lane.b32.xlu0 %v857_v20, 320 }
 0x1be   :  { %v8271_v38 = vpop.permute.xlu1 %930  ;;  %v8273_v40 = vpop.permute.xlu0 %926 }
 0x1c0   :  { %903 = vbcast.lane.b32.xlu1 %v857_v20, 344  ;;  %899 = vbcast.lane.b32.xlu0 %v857_v20, 336 }
 0x1c2   :  { %v8275_v49 = vpop.permute.xlu1 %938  ;;  %v8277_v2 = vpop.permute.xlu0 %934 }
 0x1c3   :  { %14119 = vst [vmem:[#allocation25_spill] sm:$0xff] %v8275_v49 }
 0x1c4   :  { %911 = vbcast.lane.b32.xlu1 %v857_v20, 360  ;;  %907 = vbcast.lane.b32.xlu0 %v857_v20, 352 }
 0x1c6   :  { %v8279_v9 = vpop.permute.xlu1 %946  ;;  %v8281_v26 = vpop.permute.xlu0 %942 }
 0x1c7   :  { %14120 = vst [vmem:[#allocation26_spill] sm:$0xff] %v8279_v9  ;;  %14121 = vst [vmem:[#allocation27_spill] sm:$0xff] %v8281_v26 }
 0x1c8   :  { %919 = vbcast.lane.b32.xlu1 %v857_v20, 376  ;;  %915 = vbcast.lane.b32.xlu0 %v857_v20, 368 }
 0x1ca   :  { %v8285_v34 = vpop.permute.xlu1 %954  ;;  %v8287_v36 = vpop.permute.xlu0 %950 }
 0x1cb   :  { %14122 = vst [vmem:[#allocation28_spill] sm:$0xff] %v8285_v34  ;;  %14123 = vst [vmem:[#allocation29_spill] sm:$0xff] %v8287_v36 }
 0x1cc   :  { %997 = vbcast.lane.b32.xlu1 %v991_v37, 264  ;;  %993 = vbcast.lane.b32.xlu0 %v991_v37, 256 }
 0x1ce   :  { %v8289_v31 = vpop.permute.xlu1 %962  ;;  %v8291_v33 = vpop.permute.xlu0 %958 }
 0x1cf   :  { %14124 = vst [vmem:[#allocation30_spill] sm:$0xff] %v8289_v31  ;;  %14125 = vst [vmem:[#allocation31_spill] sm:$0xff] %v8291_v33 }
 0x1d0   :  { %1005 = vbcast.lane.b32.xlu1 %v991_v37, 280  ;;  %1001 = vbcast.lane.b32.xlu0 %v991_v37, 272 }
 0x1d2   :  { %v8293_v25 = vpop.permute.xlu1 %970  ;;  %v8295_v29 = vpop.permute.xlu0 %966 }
 0x1d3   :  { %14126 = vst [vmem:[#allocation32_spill] sm:$0xff] %v8293_v25  ;;  %14127 = vst [vmem:[#allocation33_spill] sm:$0xff] %v8295_v29 }
 0x1d4   :  { %1013 = vbcast.lane.b32.xlu1 %v991_v37, 296  ;;  %1009 = vbcast.lane.b32.xlu0 %v991_v37, 288 }
 0x1d6   :  { %v8297_v20 = vpop.permute.xlu1 %978  ;;  %v8299_v39 = vpop.permute.xlu0 %974 }
 0x1d7   :  { %14128 = vst [vmem:[#allocation34_spill] sm:$0xff] %v8297_v20  ;;  %14129 = vst [vmem:[#allocation35_spill] sm:$0xff] %v8299_v39  ;;  %v1057_v20 = vsub.s32 4, %v8121_v27 }
 0x1d8   :  { %1021 = vbcast.lane.b32.xlu1 %v991_v37, 312  ;;  %1017 = vbcast.lane.b32.xlu0 %v991_v37, 304 }
 0x1da   :  { %v8301_v34 = vpop.permute.xlu1 %986  ;;  %v8303_v23 = vpop.permute.xlu0 %982 }
 0x1db   :  { %14130 = vst [vmem:[#allocation36_spill] sm:$0xff] %v8301_v34  ;;  %14131 = vst [vmem:[#allocation37_spill] sm:$0xff] %v8303_v23  ;;  %v1058_v23 = vrot.slane %v8136_v32, %v1057_v20 }
 0x1dc   :  { %1029 = vbcast.lane.b32.xlu1 %v991_v37, 328  ;;  %1025 = vbcast.lane.b32.xlu0 %v991_v37, 320 }
 0x1de   :  { %v8305_v31 = vpop.permute.xlu1 %595  ;;  %v8307_v33 = vpop.permute.xlu0 %591 }
 0x1e0   :  { %1037 = vbcast.lane.b32.xlu1 %v991_v37, 344  ;;  %1033 = vbcast.lane.b32.xlu0 %v991_v37, 336 }
 0x1e2   :  { %v8309_v25 = vpop.permute.xlu1 %603  ;;  %v8311_v29 = vpop.permute.xlu0 %599 }
 0x1e4   :  { %1045 = vbcast.lane.b32.xlu1 %v991_v37, 360  ;;  %1041 = vbcast.lane.b32.xlu0 %v991_v37, 352 }
 0x1e6   :  { %v8314_v39 = vpop.permute.xlu1 %611  ;;  %v8316_v34 = vpop.permute.xlu0 %607 }
 0x1e8   :  { %1053 = vbcast.lane.b32.xlu1 %v991_v37, 376  ;;  %1049 = vbcast.lane.b32.xlu0 %v991_v37, 368 }
 0x1ea   :  { %v8319_v36 = vpop.permute.xlu1 %619  ;;  %v8321_v24 = vpop.permute.xlu0 %615 }
 0x1eb   :  { %14132 = vst [vmem:[#allocation38_spill] sm:$0xff] %v8319_v36 }
 0x1ec   :  { %1064 = vbcast.lane.b32.xlu1 %v1058_v23, 264  ;;  %1060 = vbcast.lane.b32.xlu0 %v1058_v23, 256 }
 0x1ee   :  { %v8323_v9 = vpop.permute.xlu1 %627  ;;  %v8325_v21 = vpop.permute.xlu0 %623 }
 0x1ef   :  { %14133 = vst [vmem:[#allocation39_spill] sm:$0xff] %v8323_v9  ;;  %14134 = vst [vmem:[#allocation40_spill] sm:$0xff] %v8325_v21 }
 0x1f0   :  { %1072 = vbcast.lane.b32.xlu1 %v1058_v23, 280  ;;  %1068 = vbcast.lane.b32.xlu0 %v1058_v23, 272 }
 0x1f2   :  { %v8327_v26 = vpop.permute.xlu1 %635  ;;  %v8329_v22 = vpop.permute.xlu0 %631 }
 0x1f3   :  { %14135 = vst [vmem:[#allocation41_spill] sm:$0xff] %v8327_v26  ;;  %14136 = vst [vmem:[#allocation42_spill] sm:$0xff] %v8329_v22 }
 0x1f4   :  { %1080 = vbcast.lane.b32.xlu1 %v1058_v23, 296  ;;  %1076 = vbcast.lane.b32.xlu0 %v1058_v23, 288 }
 0x1f6   :  { %v8331_v37 = vpop.permute.xlu1 %643  ;;  %v8333_v49 = vpop.permute.xlu0 %639 }
 0x1f7   :  { %14137 = vst [vmem:[#allocation43_spill] sm:$0xff] %v8331_v37  ;;  %14138 = vst [vmem:[#allocation44_spill] sm:$0xff] %v8333_v49 }
 0x1f8   :  { %1088 = vbcast.lane.b32.xlu1 %v1058_v23, 312  ;;  %1084 = vbcast.lane.b32.xlu0 %v1058_v23, 304 }
 0x1fa   :  { %v8335_v36 = vpop.permute.xlu1 %651  ;;  %v8337_v18 = vpop.permute.xlu0 %647 }
 0x1fb   :  { %14139 = vst [vmem:[#allocation45_spill] sm:$0xff] %v8335_v36  ;;  %14140 = vst [vmem:[#allocation46_spill] sm:$0xff] %v8337_v18  ;;  %v1125_v36 = vrot.slane %v8171_v46, %v1057_v20 }
 0x1fc   :  { %1096 = vbcast.lane.b32.xlu1 %v1058_v23, 328  ;;  %1092 = vbcast.lane.b32.xlu0 %v1058_v23, 320 }
 0x1fe   :  { %v8339_v9 = vpop.permute.xlu1 %729  ;;  %v8341_v21 = vpop.permute.xlu0 %725 }
 0x1ff   :  { %14141 = vst [vmem:[#allocation47_spill] sm:$0xff] %v8339_v9  ;;  %14142 = vst [vmem:[#allocation48_spill] sm:$0xff] %v8341_v21 }
 0x200   :  { %1104 = vbcast.lane.b32.xlu1 %v1058_v23, 344  ;;  %1100 = vbcast.lane.b32.xlu0 %v1058_v23, 336 }
 0x202   :  { %v8343_v26 = vpop.permute.xlu1 %737  ;;  %v8345_v22 = vpop.permute.xlu0 %733 }
 0x203   :  { %14143 = vst [vmem:[#allocation49_spill] sm:$0xff] %v8343_v26  ;;  %14144 = vst [vmem:[#allocation50_spill] sm:$0xff] %v8345_v22 }
 0x204   :  { %1112 = vbcast.lane.b32.xlu1 %v1058_v23, 360  ;;  %1108 = vbcast.lane.b32.xlu0 %v1058_v23, 352 }
 0x206   :  { %v8347_v37 = vpop.permute.xlu1 %745  ;;  %v8349_v49 = vpop.permute.xlu0 %741 }
 0x207   :  { %14145 = vst [vmem:[#allocation51_spill] sm:$0xff] %v8347_v37  ;;  %14146 = vst [vmem:[#allocation52_spill] sm:$0xff] %v8349_v49 }
 0x208   :  { %1120 = vbcast.lane.b32.xlu1 %v1058_v23, 376  ;;  %1116 = vbcast.lane.b32.xlu0 %v1058_v23, 368 }
 0x20a   :  { %v8352_v18 = vpop.permute.xlu1 %753  ;;  %v8354_v9 = vpop.permute.xlu0 %749 }
 0x20b   :  { %14147 = vst [vmem:[#allocation53_spill] sm:$0xff] %v8352_v18  ;;  %14148 = vst [vmem:[#allocation54_spill] sm:$0xff] %v8354_v9 }
 0x20c   :  { %1131 = vbcast.lane.b32.xlu1 %v1125_v36, 264  ;;  %1127 = vbcast.lane.b32.xlu0 %v1125_v36, 256 }
 0x20e   :  { %v8356_v21 = vpop.permute.xlu1 %761  ;;  %v8358_v26 = vpop.permute.xlu0 %757 }
 0x20f   :  { %14149 = vst [vmem:[#allocation55_spill] sm:$0xff] %v8356_v21  ;;  %14150 = vst [vmem:[#allocation56_spill] sm:$0xff] %v8358_v26 }
 0x210   :  { %1139 = vbcast.lane.b32.xlu1 %v1125_v36, 280  ;;  %1135 = vbcast.lane.b32.xlu0 %v1125_v36, 272 }
 0x212   :  { %v8360_v22 = vpop.permute.xlu1 %769  ;;  %v8362_v37 = vpop.permute.xlu0 %765 }
 0x213   :  { %14151 = vst [vmem:[#allocation57_spill] sm:$0xff] %v8360_v22  ;;  %14152 = vst [vmem:[#allocation58_spill] sm:$0xff] %v8362_v37 }
 0x214   :  { %1147 = vbcast.lane.b32.xlu1 %v1125_v36, 296  ;;  %1143 = vbcast.lane.b32.xlu0 %v1125_v36, 288 }
 0x216   :  { %v8364_v23 = vpop.permute.xlu1 %777  ;;  %v8366_v20 = vpop.permute.xlu0 %773 }
 0x217   :  { %14153 = vst [vmem:[#allocation59_spill] sm:$0xff] %v8364_v23  ;;  %14154 = vst [vmem:[#allocation60_spill] sm:$0xff] %v8366_v20  ;;  %v1191_v23 = vsub.s32 5, %v8121_v27 }
 0x218   :  { %1155 = vbcast.lane.b32.xlu1 %v1125_v36, 312  ;;  %1151 = vbcast.lane.b32.xlu0 %v1125_v36, 304 }
 0x21a   :  { %v8368_v18 = vpop.permute.xlu1 %785  ;;  %v8370_v9 = vpop.permute.xlu0 %781 }
 0x21b   :  { %14155 = vst [vmem:[#allocation61_spill] sm:$0xff] %v8368_v18  ;;  %14156 = vst [vmem:[#allocation62_spill] sm:$0xff] %v8370_v9  ;;  %v1192_v9 = vrot.slane %v8136_v32, %v1191_v23 }
 0x21c   :  { %1163 = vbcast.lane.b32.xlu1 %v1125_v36, 328  ;;  %1159 = vbcast.lane.b32.xlu0 %v1125_v36, 320 }
 0x21e   :  { %v8372_v21 = vpop.permute.xlu1 %863  ;;  %v8374_v26 = vpop.permute.xlu0 %859 }
 0x21f   :  { %14157 = vst [vmem:[#allocation63_spill] sm:$0xff] %v8372_v21  ;;  %14158 = vst [vmem:[#allocation64_spill] sm:$0xff] %v8374_v26 }
 0x220   :  { %1171 = vbcast.lane.b32.xlu1 %v1125_v36, 344  ;;  %1167 = vbcast.lane.b32.xlu0 %v1125_v36, 336 }
 0x222   :  { %v8376_v22 = vpop.permute.xlu1 %871  ;;  %v8378_v37 = vpop.permute.xlu0 %867 }
 0x223   :  { %14159 = vst [vmem:[#allocation65_spill] sm:$0xff] %v8376_v22  ;;  %14160 = vst [vmem:[#allocation66_spill] sm:$0xff] %v8378_v37 }
 0x224   :  { %1179 = vbcast.lane.b32.xlu1 %v1125_v36, 360  ;;  %1175 = vbcast.lane.b32.xlu0 %v1125_v36, 352 }
 0x226   :  { %v8381_v20 = vpop.permute.xlu1 %879  ;;  %v8383_v18 = vpop.permute.xlu0 %875 }
 0x227   :  { %14161 = vst [vmem:[#allocation67_spill] sm:$0xff] %v8381_v20  ;;  %14162 = vst [vmem:[#allocation68_spill] sm:$0xff] %v8383_v18 }
 0x228   :  { %1187 = vbcast.lane.b32.xlu1 %v1125_v36, 376  ;;  %1183 = vbcast.lane.b32.xlu0 %v1125_v36, 368 }
 0x22a   :  { %v8386_v21 = vpop.permute.xlu1 %887  ;;  %v8388_v26 = vpop.permute.xlu0 %883 }
 0x22b   :  { %14163 = vst [vmem:[#allocation69_spill] sm:$0xff] %v8386_v21  ;;  %14164 = vst [vmem:[#allocation70_spill] sm:$0xff] %v8388_v26 }
 0x22c   :  { %1198 = vbcast.lane.b32.xlu1 %v1192_v9, 264  ;;  %1194 = vbcast.lane.b32.xlu0 %v1192_v9, 256 }
 0x22e   :  { %v8390_v22 = vpop.permute.xlu1 %895  ;;  %v8392_v37 = vpop.permute.xlu0 %891 }
 0x22f   :  { %14165 = vst [vmem:[#allocation71_spill] sm:$0xff] %v8390_v22  ;;  %14166 = vst [vmem:[#allocation72_spill] sm:$0xff] %v8392_v37 }
 0x230   :  { %1206 = vbcast.lane.b32.xlu1 %v1192_v9, 280  ;;  %1202 = vbcast.lane.b32.xlu0 %v1192_v9, 272 }
 0x232   :  { %v8394_v49 = vpop.permute.xlu1 %903  ;;  %v8396_v20 = vpop.permute.xlu0 %899 }
 0x233   :  { %14167 = vst [vmem:[#allocation73_spill] sm:$0xff] %v8394_v49  ;;  %14168 = vst [vmem:[#allocation74_spill] sm:$0xff] %v8396_v20 }
 0x234   :  { %1214 = vbcast.lane.b32.xlu1 %v1192_v9, 296  ;;  %1210 = vbcast.lane.b32.xlu0 %v1192_v9, 288 }
 0x236   :  { %v8398_v36 = vpop.permute.xlu1 %911  ;;  %v8400_v18 = vpop.permute.xlu0 %907 }
 0x237   :  { %14169 = vst [vmem:[#allocation75_spill] sm:$0xff] %v8398_v36  ;;  %14170 = vst [vmem:[#allocation76_spill] sm:$0xff] %v8400_v18 }
 0x238   :  { %1222 = vbcast.lane.b32.xlu1 %v1192_v9, 312  ;;  %1218 = vbcast.lane.b32.xlu0 %v1192_v9, 304 }
 0x23a   :  { %v8402_v21 = vpop.permute.xlu1 %919  ;;  %v8404_v26 = vpop.permute.xlu0 %915 }
 0x23b   :  { %14171 = vst [vmem:[#allocation77_spill] sm:$0xff] %v8402_v21  ;;  %14172 = vst [vmem:[#allocation78_spill] sm:$0xff] %v8404_v26  ;;  %v1259_v26 = vrot.slane %v8171_v46, %v1191_v23 }
 0x23c   :  { %1230 = vbcast.lane.b32.xlu1 %v1192_v9, 328  ;;  %1226 = vbcast.lane.b32.xlu0 %v1192_v9, 320 }
 0x23e   :  { %v8406_v22 = vpop.permute.xlu1 %997  ;;  %v8408_v37 = vpop.permute.xlu0 %993 }
 0x23f   :  { %14173 = vst [vmem:[#allocation79_spill] sm:$0xff] %v8406_v22  ;;  %14174 = vst [vmem:[#allocation80_spill] sm:$0xff] %v8408_v37 }
 0x240   :  { %1238 = vbcast.lane.b32.xlu1 %v1192_v9, 344  ;;  %1234 = vbcast.lane.b32.xlu0 %v1192_v9, 336 }
 0x242   :  { %v8410_v20 = vpop.permute.xlu1 %1005  ;;  %v8412_v49 = vpop.permute.xlu0 %1001 }
 0x243   :  { %14175 = vst [vmem:[#allocation81_spill] sm:$0xff] %v8410_v20  ;;  %14176 = vst [vmem:[#allocation82_spill] sm:$0xff] %v8412_v49 }
 0x244   :  { %1246 = vbcast.lane.b32.xlu1 %v1192_v9, 360  ;;  %1242 = vbcast.lane.b32.xlu0 %v1192_v9, 352 }
 0x246   :  { %v8414_v18 = vpop.permute.xlu1 %1013  ;;  %v8416_v36 = vpop.permute.xlu0 %1009 }
 0x247   :  { %14177 = vst [vmem:[#allocation83_spill] sm:$0xff] %v8414_v18  ;;  %14178 = vst [vmem:[#allocation84_spill] sm:$0xff] %v8416_v36 }
 0x248   :  { %1254 = vbcast.lane.b32.xlu1 %v1192_v9, 376  ;;  %1250 = vbcast.lane.b32.xlu0 %v1192_v9, 368 }
 0x24a   :  { %v8419_v21 = vpop.permute.xlu1 %1021  ;;  %v8421_v22 = vpop.permute.xlu0 %1017 }
 0x24b   :  { %14179 = vst [vmem:[#allocation85_spill] sm:$0xff] %v8419_v21  ;;  %14180 = vst [vmem:[#allocation86_spill] sm:$0xff] %v8421_v22 }
 0x24c   :  { %1265 = vbcast.lane.b32.xlu1 %v1259_v26, 264  ;;  %1261 = vbcast.lane.b32.xlu0 %v1259_v26, 256 }
 0x24e   :  { %v8423_v37 = vpop.permute.xlu1 %1029  ;;  %v8425_v20 = vpop.permute.xlu0 %1025 }
 0x24f   :  { %14181 = vst [vmem:[#allocation87_spill] sm:$0xff] %v8423_v37  ;;  %14182 = vst [vmem:[#allocation88_spill] sm:$0xff] %v8425_v20 }
 0x250   :  { %1273 = vbcast.lane.b32.xlu1 %v1259_v26, 280  ;;  %1269 = vbcast.lane.b32.xlu0 %v1259_v26, 272 }
 0x252   :  { %v8427_v49 = vpop.permute.xlu1 %1037  ;;  %v8429_v18 = vpop.permute.xlu0 %1033 }
 0x253   :  { %14183 = vst [vmem:[#allocation89_spill] sm:$0xff] %v8427_v49  ;;  %14184 = vst [vmem:[#allocation90_spill] sm:$0xff] %v8429_v18 }
 0x254   :  { %1281 = vbcast.lane.b32.xlu1 %v1259_v26, 296  ;;  %1277 = vbcast.lane.b32.xlu0 %v1259_v26, 288 }
 0x256   :  { %v8431_v9 = vpop.permute.xlu1 %1045  ;;  %v8433_v23 = vpop.permute.xlu0 %1041 }
 0x257   :  { %14185 = vst [vmem:[#allocation91_spill] sm:$0xff] %v8431_v9  ;;  %14186 = vst [vmem:[#allocation92_spill] sm:$0xff] %v8433_v23  ;;  %v1325_v9 = vsub.s32 6, %v8121_v27 }
 0x258   :  { %1289 = vbcast.lane.b32.xlu1 %v1259_v26, 312  ;;  %1285 = vbcast.lane.b32.xlu0 %v1259_v26, 304 }
 0x25a   :  { %v8435_v21 = vpop.permute.xlu1 %1053  ;;  %v8437_v22 = vpop.permute.xlu0 %1049 }
 0x25b   :  { %14187 = vst [vmem:[#allocation93_spill] sm:$0xff] %v8435_v21  ;;  %14188 = vst [vmem:[#allocation94_spill] sm:$0xff] %v8437_v22  ;;  %v8452_v22 = vpop.f32.mrb[0].mxu1 }
 0x25c   :  { %1297 = vbcast.lane.b32.xlu1 %v1259_v26, 328  ;;  %1293 = vbcast.lane.b32.xlu0 %v1259_v26, 320  ;;  %v8454_v36 = vpop.f32.mrb[1].mxu1 }
 0x25e   :  { %v8439_v37 = vpop.permute.xlu1 %1064  ;;  %v8441_v20 = vpop.permute.xlu0 %1060 }
 0x25f   :  { %14189 = vst [vmem:[#allocation95_spill] sm:$0xff] %v8439_v37  ;;  %14190 = vst [vmem:[#allocation96_spill] sm:$0xff] %v8441_v20  ;;  %v1326_v20 = vrot.slane %v8136_v32, %v1325_v9 }
 0x260   :  { %1305 = vbcast.lane.b32.xlu1 %v1259_v26, 344  ;;  %1301 = vbcast.lane.b32.xlu0 %v1259_v26, 336 }
 0x262   :  { %v8443_v49 = vpop.permute.xlu1 %1072  ;;  %v8445_v18 = vpop.permute.xlu0 %1068 }
 0x263   :  { %14191 = vst [vmem:[#allocation97_spill] sm:$0xff] %v8443_v49  ;;  %14192 = vst [vmem:[#allocation98_spill] sm:$0xff] %v8445_v18 }
 0x264   :  { %1313 = vbcast.lane.b32.xlu1 %v1259_v26, 360  ;;  %1309 = vbcast.lane.b32.xlu0 %v1259_v26, 352 }
 0x266   :  { %v8448_v23 = vpop.permute.xlu1 %1080  ;;  %v8450_v21 = vpop.permute.xlu0 %1076 }
 0x267   :  { %14193 = vst [vmem:[#allocation99_spill] sm:$0xff] %v8448_v23  ;;  %14194 = vst [vmem:[#allocation100_spill] sm:$0xff] %v8450_v21 }
 0x268   :  { %1321 = vbcast.lane.b32.xlu1 %v1259_v26, 376  ;;  %1317 = vbcast.lane.b32.xlu0 %v1259_v26, 368 }
 0x26a   :  { %v8457_v37 = vpop.permute.xlu1 %1088  ;;  %v8459_v49 = vpop.permute.xlu0 %1084 }
 0x26b   :  { %14195 = vst [vmem:[#allocation101_spill] sm:$0xff] %v8457_v37  ;;  %14196 = vst [vmem:[#allocation102_spill] sm:$0xff] %v8459_v49 }
 0x26c   :  { %1332 = vbcast.lane.b32.xlu1 %v1326_v20, 264  ;;  %1328 = vbcast.lane.b32.xlu0 %v1326_v20, 256 }
 0x26e   :  { %v8461_v18 = vpop.permute.xlu1 %1096  ;;  %v8463_v12 = vpop.permute.xlu0 %1092 }
 0x26f   :  { %14197 = vst [vmem:[#allocation103_spill] sm:$0xff] %v8461_v18  ;;  %14198 = vst [vmem:[#allocation104_spill] sm:$0xff] %v8463_v12 }
 0x270   :  { %1340 = vbcast.lane.b32.xlu1 %v1326_v20, 280  ;;  %1336 = vbcast.lane.b32.xlu0 %v1326_v20, 272 }
 0x272   :  { %v8465_v23 = vpop.permute.xlu1 %1104  ;;  %v8467_v21 = vpop.permute.xlu0 %1100 }
 0x273   :  { %14199 = vst [vmem:[#allocation105_spill] sm:$0xff] %v8465_v23  ;;  %14200 = vst [vmem:[#allocation106_spill] sm:$0xff] %v8467_v21 }
 0x274   :  { %1348 = vbcast.lane.b32.xlu1 %v1326_v20, 296  ;;  %1344 = vbcast.lane.b32.xlu0 %v1326_v20, 288 }
 0x276   :  { %v8469_v26 = vpop.permute.xlu1 %1112  ;;  %v8471_v35 = vpop.permute.xlu0 %1108 }
 0x277   :  { %14201 = vst [vmem:[#allocation107_spill] sm:$0xff] %v8469_v26  ;;  %14202 = vst [vmem:[#allocation108_spill] sm:$0xff] %v8471_v35 }
 0x278   :  { %1356 = vbcast.lane.b32.xlu1 %v1326_v20, 312  ;;  %1352 = vbcast.lane.b32.xlu0 %v1326_v20, 304 }
 0x27a   :  { %v8473_v37 = vpop.permute.xlu1 %1120  ;;  %v8475_v49 = vpop.permute.xlu0 %1116 }
 0x27b   :  { %14203 = vst [vmem:[#allocation109_spill] sm:$0xff] %v8473_v37  ;;  %14204 = vst [vmem:[#allocation110_spill] sm:$0xff] %v8475_v49  ;;  %v1393_v37 = vrot.slane %v8171_v46, %v1325_v9 }
 0x27c   :  { %1364 = vbcast.lane.b32.xlu1 %v1326_v20, 328  ;;  %1360 = vbcast.lane.b32.xlu0 %v1326_v20, 320 }
 0x27e   :  { %v8477_v18 = vpop.permute.xlu1 %1131  ;;  %v8479_v12 = vpop.permute.xlu0 %1127 }
 0x27f   :  { %14205 = vst [vmem:[#allocation111_spill] sm:$0xff] %v8477_v18  ;;  %14206 = vst [vmem:[#allocation112_spill] sm:$0xff] %v8479_v12 }
 0x280   :  { %1372 = vbcast.lane.b32.xlu1 %v1326_v20, 344  ;;  %1368 = vbcast.lane.b32.xlu0 %v1326_v20, 336 }
 0x282   :  { %v8481_v23 = vpop.permute.xlu1 %1139  ;;  %v8483_v21 = vpop.permute.xlu0 %1135 }
 0x283   :  { %14207 = vst [vmem:[#allocation113_spill] sm:$0xff] %v8481_v23  ;;  %14208 = vst [vmem:[#allocation114_spill] sm:$0xff] %v8483_v21 }
 0x284   :  { %1380 = vbcast.lane.b32.xlu1 %v1326_v20, 360  ;;  %1376 = vbcast.lane.b32.xlu0 %v1326_v20, 352 }
 0x286   :  { %v8485_v26 = vpop.permute.xlu1 %1147  ;;  %v8487_v35 = vpop.permute.xlu0 %1143 }
 0x287   :  { %14209 = vst [vmem:[#allocation115_spill] sm:$0xff] %v8485_v26  ;;  %14210 = vst [vmem:[#allocation116_spill] sm:$0xff] %v8487_v35 }
 0x288   :  { %1388 = vbcast.lane.b32.xlu1 %v1326_v20, 376  ;;  %1384 = vbcast.lane.b32.xlu0 %v1326_v20, 368 }
 0x28a   :  { %v8490_v49 = vpop.permute.xlu1 %1155  ;;  %v8492_v18 = vpop.permute.xlu0 %1151 }
 0x28b   :  { %14211 = vst [vmem:[#allocation117_spill] sm:$0xff] %v8490_v49  ;;  %14212 = vst [vmem:[#allocation118_spill] sm:$0xff] %v8492_v18 }
 0x28c   :  { %1399 = vbcast.lane.b32.xlu1 %v1393_v37, 264  ;;  %1395 = vbcast.lane.b32.xlu0 %v1393_v37, 256 }
 0x28e   :  { %v8494_v12 = vpop.permute.xlu1 %1163  ;;  %v8496_v23 = vpop.permute.xlu0 %1159 }
 0x28f   :  { %14213 = vst [vmem:[#allocation119_spill] sm:$0xff] %v8494_v12  ;;  %14214 = vst [vmem:[#allocation120_spill] sm:$0xff] %v8496_v23 }
 0x290   :  { %1407 = vbcast.lane.b32.xlu1 %v1393_v37, 280  ;;  %1403 = vbcast.lane.b32.xlu0 %v1393_v37, 272 }
 0x292   :  { %v8498_v21 = vpop.permute.xlu1 %1171  ;;  %v8500_v26 = vpop.permute.xlu0 %1167 }
 0x293   :  { %14215 = vst [vmem:[#allocation121_spill] sm:$0xff] %v8498_v21  ;;  %14216 = vst [vmem:[#allocation122_spill] sm:$0xff] %v8500_v26 }
 0x294   :  { %1415 = vbcast.lane.b32.xlu1 %v1393_v37, 296  ;;  %1411 = vbcast.lane.b32.xlu0 %v1393_v37, 288 }
 0x296   :  { %v8502_v20 = vpop.permute.xlu1 %1179  ;;  %v8504_v9 = vpop.permute.xlu0 %1175 }
 0x297   :  { %14217 = vst [vmem:[#allocation123_spill] sm:$0xff] %v8502_v20  ;;  %14218 = vst [vmem:[#allocation124_spill] sm:$0xff] %v8504_v9  ;;  %v1459_v20 = vsub.s32 7, %v8121_v27 }
 0x298   :  { %1423 = vbcast.lane.b32.xlu1 %v1393_v37, 312  ;;  %1419 = vbcast.lane.b32.xlu0 %v1393_v37, 304 }
 0x29a   :  { %v8506_v49 = vpop.permute.xlu1 %1187  ;;  %v8508_v18 = vpop.permute.xlu0 %1183 }
 0x29b   :  { %14219 = vst [vmem:[#allocation125_spill] sm:$0xff] %v8506_v49  ;;  %14220 = vst [vmem:[#allocation126_spill] sm:$0xff] %v8508_v18  ;;  %v1460_v18 = vrot.slane %v8136_v32, %v1459_v20 }
 0x29c   :  { %1431 = vbcast.lane.b32.xlu1 %v1393_v37, 328  ;;  %1427 = vbcast.lane.b32.xlu0 %v1393_v37, 320 }
 0x29e   :  { %v8510_v12 = vpop.permute.xlu1 %1198  ;;  %v8512_v23 = vpop.permute.xlu0 %1194 }
 0x29f   :  { %14221 = vst [vmem:[#allocation127_spill] sm:$0xff] %v8512_v23 }
 0x2a0   :  { %1439 = vbcast.lane.b32.xlu1 %v1393_v37, 344  ;;  %1435 = vbcast.lane.b32.xlu0 %v1393_v37, 336 }
 0x2a2   :  { %v8514_v21 = vpop.permute.xlu1 %1206  ;;  %v8516_v26 = vpop.permute.xlu0 %1202 }
 0x2a3   :  { %14222 = vst [vmem:[#allocation128_spill] sm:$0xff] %v8514_v21  ;;  %14223 = vst [vmem:[#allocation129_spill] sm:$0xff] %v8516_v26 }
 0x2a4   :  { %1447 = vbcast.lane.b32.xlu1 %v1393_v37, 360  ;;  %1443 = vbcast.lane.b32.xlu0 %v1393_v37, 352 }
 0x2a6   :  { %v8519_v9 = vpop.permute.xlu1 %1214  ;;  %v8521_v49 = vpop.permute.xlu0 %1210 }
 0x2a7   :  { %14224 = vst [vmem:[#allocation130_spill] sm:$0xff] %v8519_v9 }
 0x2a8   :  { %1455 = vbcast.lane.b32.xlu1 %v1393_v37, 376  ;;  %1451 = vbcast.lane.b32.xlu0 %v1393_v37, 368 }
 0x2aa   :  { %v8524_v35 = vpop.permute.xlu1 %1222  ;;  %v8526_v23 = vpop.permute.xlu0 %1218 }
 0x2ab   :  { %14225 = vst [vmem:[#allocation131_spill] sm:$0xff] %v8524_v35  ;;  %14226 = vst [vmem:[#allocation132_spill] sm:$0xff] %v8526_v23 }
 0x2ac   :  { %1466 = vbcast.lane.b32.xlu1 %v1460_v18, 264  ;;  %1462 = vbcast.lane.b32.xlu0 %v1460_v18, 256 }
 0x2ae   :  { %v8528_v21 = vpop.permute.xlu1 %1230  ;;  %v8530_v26 = vpop.permute.xlu0 %1226 }
 0x2af   :  { %14227 = vst [vmem:[#allocation133_spill] sm:$0xff] %v8528_v21  ;;  %14228 = vst [vmem:[#allocation134_spill] sm:$0xff] %v8530_v26 }
 0x2b0   :  { %1474 = vbcast.lane.b32.xlu1 %v1460_v18, 280  ;;  %1470 = vbcast.lane.b32.xlu0 %v1460_v18, 272 }
 0x2b2   :  { %v8532_v27 = vpop.permute.xlu1 %1238  ;;  %v8534_v9 = vpop.permute.xlu0 %1234 }
 0x2b3   :  { %14229 = vst [vmem:[#allocation135_spill] sm:$0xff] %v8532_v27  ;;  %14230 = vst [vmem:[#allocation136_spill] sm:$0xff] %v8534_v9 }
 0x2b4   :  { %1482 = vbcast.lane.b32.xlu1 %v1460_v18, 296  ;;  %1478 = vbcast.lane.b32.xlu0 %v1460_v18, 288 }
 0x2b6   :  { %v8536_v37 = vpop.permute.xlu1 %1246  ;;  %v8538_v32 = vpop.permute.xlu0 %1242 }
 0x2b7   :  { %14231 = vst [vmem:[#allocation137_spill] sm:$0xff] %v8536_v37  ;;  %14232 = vst [vmem:[#allocation138_spill] sm:$0xff] %v8538_v32 }
 0x2b8   :  { %1490 = vbcast.lane.b32.xlu1 %v1460_v18, 312  ;;  %1486 = vbcast.lane.b32.xlu0 %v1460_v18, 304 }
 0x2ba   :  { %v8540_v35 = vpop.permute.xlu1 %1254  ;;  %v8542_v23 = vpop.permute.xlu0 %1250 }
 0x2bb   :  { %14233 = vst [vmem:[#allocation139_spill] sm:$0xff] %v8540_v35  ;;  %14234 = vst [vmem:[#allocation140_spill] sm:$0xff] %v8542_v23  ;;  %v1527_v35 = vrot.slane %v8171_v46, %v1459_v20  ;;  %v22_v46 = vld [vmem:[%s14071_s0 + $0x8] sm:$0xff]  ;;  %v21_v20 = vld [vmem:[%s14071_s0] sm:$0xff] }
 0x2bc   :  { %1498 = vbcast.lane.b32.xlu1 %v1460_v18, 328  ;;  %1494 = vbcast.lane.b32.xlu0 %v1460_v18, 320 }
 0x2be   :  { %v8544_v21 = vpop.permute.xlu1 %1265  ;;  %v8546_v26 = vpop.permute.xlu0 %1261 }
 0x2bf   :  { %14235 = vst [vmem:[#allocation141_spill] sm:$0xff] %v8544_v21  ;;  %14236 = vst [vmem:[#allocation142_spill] sm:$0xff] %v8546_v26 }
 0x2c0   :  { %1506 = vbcast.lane.b32.xlu1 %v1460_v18, 344  ;;  %1502 = vbcast.lane.b32.xlu0 %v1460_v18, 336 }
 0x2c2   :  { %v8548_v27 = vpop.permute.xlu1 %1273  ;;  %v8550_v9 = vpop.permute.xlu0 %1269 }
 0x2c3   :  { %14237 = vst [vmem:[#allocation143_spill] sm:$0xff] %v8548_v27  ;;  %14238 = vst [vmem:[#allocation144_spill] sm:$0xff] %v8550_v9 }
 0x2c4   :  { %1514 = vbcast.lane.b32.xlu1 %v1460_v18, 360  ;;  %1510 = vbcast.lane.b32.xlu0 %v1460_v18, 352 }
 0x2c6   :  { %v8552_v37 = vpop.permute.xlu1 %1281  ;;  %v8554_v32 = vpop.permute.xlu0 %1277 }
 0x2c7   :  { %14239 = vst [vmem:[#allocation145_spill] sm:$0xff] %v8552_v37  ;;  %14240 = vst [vmem:[#allocation146_spill] sm:$0xff] %v8554_v32 }
 0x2c8   :  { %1522 = vbcast.lane.b32.xlu1 %v1460_v18, 376  ;;  %1518 = vbcast.lane.b32.xlu0 %v1460_v18, 368 }
 0x2ca   :  { %v8557_v23 = vpop.permute.xlu1 %1289  ;;  %v8559_v21 = vpop.permute.xlu0 %1285 }
 0x2cb   :  { %14241 = vst [vmem:[#allocation147_spill] sm:$0xff] %v8557_v23  ;;  %14242 = vst [vmem:[#allocation148_spill] sm:$0xff] %v8559_v21  ;;  %v23_v23 = vld [vmem:[%s14071_s0 + $0x10] sm:$0xff] }
 0x2cc   :  { %1533 = vbcast.lane.b32.xlu1 %v1527_v35, 264  ;;  %1529 = vbcast.lane.b32.xlu0 %v1527_v35, 256 }
 0x2ce   :  { %v8561_v26 = vpop.permute.xlu1 %1297  ;;  %v8563_v27 = vpop.permute.xlu0 %1293 }
 0x2cf   :  { %14243 = vst [vmem:[#allocation149_spill] sm:$0xff] %v8561_v26  ;;  %14244 = vst [vmem:[#allocation150_spill] sm:$0xff] %v8563_v27  ;;  %v2128_v27 = vmul.f32 %v8167_v45, %v22_v46 }
 0x2d0   :  { %1541 = vbcast.lane.b32.xlu1 %v1527_v35, 280  ;;  %1537 = vbcast.lane.b32.xlu0 %v1527_v35, 272 }
 0x2d1   :  { %v2513_v21 = vsel %vm2511_vm1, %v2128_v27, 0.0 }
 0x2d2   :  { %v8565_v9 = vpop.permute.xlu1 %1305  ;;  %v8567_v37 = vpop.permute.xlu0 %1301 }
 0x2d3   :  { %14245 = vst [vmem:[#allocation151_spill] sm:$0xff] %v8565_v9  ;;  %14246 = vst [vmem:[#allocation152_spill] sm:$0xff] %v8567_v37  ;;  %v2127_v9 = vmul.f32 %v8159_v42, %v21_v20  ;;  %v24_v42 = vld [vmem:[%s14071_s0 + $0x18] sm:$0xff] }
 0x2d4   :  { %1549 = vbcast.lane.b32.xlu1 %v1527_v35, 296  ;;  %1545 = vbcast.lane.b32.xlu0 %v1527_v35, 288  ;;  %v2130_v27 = vmul.f32 %v8165_v44, %v24_v42 }
 0x2d5   :  { %v2512_v45 = vsel %vm2511_vm1, %v2127_v9, 0.0 }
 0x2d6   :  { %v8572_v18 = vpop.permute.xlu1 %1313  ;;  %v8577_v26 = vpop.permute.xlu0 %1309  ;;  %v2514_v20 = vadd.f32 %v2513_v21, %v2512_v45  ;;  %v8609_v21 = vadd.f32 %v8452_v22, %v8133_v30  ;;  %v2517_v45 = vsel %vm2511_vm1, %v2130_v27, 0.0 }
 0x2d7   :  { %14247 = vst [vmem:[#allocation153_spill] sm:$0xff] %v8572_v18  ;;  %14248 = vst [vmem:[#allocation154_spill] sm:$0xff] %v8577_v26  ;;  %v2129_v26 = vmul.f32 %v8157_v41, %v23_v23  ;;  %v25_v23 = vld [vmem:[%s14071_s0 + $0x20] sm:$0xff] }
 0x2d8   :  { %1557 = vbcast.lane.b32.xlu1 %v1527_v35, 312  ;;  %1553 = vbcast.lane.b32.xlu0 %v1527_v35, 304 }
 0x2da   :  { %v8581_v37 = vpop.permute.xlu1 %1321  ;;  %v8586_v18 = vpop.permute.xlu0 %1317 }
 0x2db   :  { %14249 = vst [vmem:[#allocation155_spill] sm:$0xff] %v8581_v37  ;;  %14250 = vst [vmem:[#allocation156_spill] sm:$0xff] %v8586_v18  ;;  %v2515_v18 = vsel %vm2511_vm1, %v2129_v26, 0.0  ;;  %v2131_v26 = vmul.f32 %v8175_v48, %v25_v23  ;;  %v27_v23 = vld [vmem:[%s14071_s0 + $0x30] sm:$0xff] }
 0x2dc   :  { %1565 = vbcast.lane.b32.xlu1 %v1527_v35, 328  ;;  %1561 = vbcast.lane.b32.xlu0 %v1527_v35, 320  ;;  %v2516_v41 = vadd.f32 %v2515_v18, %v2514_v20  ;;  %v26_v18 = vld [vmem:[%s14071_s0 + $0x28] sm:$0xff] }
 0x2dd   :  { %v2132_v30 = vmul.f32 %v8173_v47, %v26_v18  ;;  %v2519_v22 = vsel %vm2511_vm1, %v2131_v26, 0.0  ;;  %v28_v26 = vld [vmem:[%s14071_s0 + $0x38] sm:$0xff] }
 0x2de   :  { %v8591_v46 = vpop.permute.xlu1 %1332  ;;  %v8596_v37 = vpop.permute.xlu0 %1328  ;;  %v2518_v42 = vadd.f32 %v2517_v45, %v2516_v41 }
 0x2df   :  { %v2521_v45 = vsel %vm2511_vm1, %v2132_v30, 0.0  ;;  %v2134_v30 = vmul.f32 %v8179_v50, %v28_v26 }
 0x2e0   :  { %1573 = vbcast.lane.b32.xlu1 %v1527_v35, 344  ;;  %1569 = vbcast.lane.b32.xlu0 %v1527_v35, 336  ;;  %v2520_v27 = vadd.f32 %v2519_v22, %v2518_v42  ;;  %v54_v42 = vld [vmem:[%s14071_s0 + $0x108] sm:$0xff]  ;;  %v53_v22 = vld [vmem:[%s14071_s0 + $0x100] sm:$0xff] }
 0x2e1   :  { %v2525_v50 = vsel %vm2511_vm1, %v2134_v30, 0.0 }
 0x2e2   :  { %v8600_v32 = vpop.permute.xlu1 %1340  ;;  %v8605_v9 = vpop.permute.xlu0 %1336  ;;  %v2522_v18 = vadd.f32 %v2521_v45, %v2520_v27  ;;  %v2159_v45 = vmul.f32 %v8201_v61, %v53_v22 }
 0x2e3   :  { %14251 = vst [vmem:[#allocation157_spill] sm:$0xff] %v8600_v32  ;;  %v8622_v32 = vrot.slane %v8609_v21, %v8124_v28 }
 0x2e4   :  { %1581 = vbcast.lane.b32.xlu1 %v1527_v35, 360  ;;  %1577 = vbcast.lane.b32.xlu0 %v1527_v35, 352 }
 0x2e6   :  { %v8613_v44 = vpop.permute.xlu1 %1348  ;;  %v8618_v20 = vpop.permute.xlu0 %1344 }
 0x2e7   :  { %14252 = vst [vmem:[#allocation158_spill] sm:$0xff] %v8613_v44  ;;  %14253 = vst [vmem:[#allocation159_spill] sm:$0xff] %v8618_v20 }
 0x2e8   :  { %1589 = vbcast.lane.b32.xlu1 %v1527_v35, 376  ;;  %1585 = vbcast.lane.b32.xlu0 %v1527_v35, 368  ;;  %v2133_v35 = vmul.f32 %v8181_v51, %v27_v23  ;;  %v55_v51 = vld [vmem:[%s14071_s0 + $0x110] sm:$0xff]  ;;  %v2160_v23 = vmul.f32 %v8199_v60, %v54_v42 }
 0x2e9   :  { %v2161_v20 = vmul.f32 %v8205_v63, %v55_v51  ;;  %v56_v63 = vld [vmem:[%s14071_s0 + $0x118] sm:$0xff] }
 0x2ea   :  { %v8626_v48 = vpop.permute.xlu1 %1356  ;;  %v8631_v41 = vpop.permute.xlu0 %1352  ;;  %v2523_v27 = vsel %vm2511_vm1, %v2133_v35, 0.0  ;;  %v2582_v61 = vsel %vm2511_vm1, %v2160_v23, 0.0  ;;  %v2581_v35 = vsel %vm2511_vm1, %v2159_v45, 0.0 }
 0x2eb   :  { %14254 = vst [vmem:[#allocation160_spill] sm:$0xff] %v8626_v48  ;;  %14255 = vst [vmem:[#allocation161_spill] sm:$0xff] %v8631_v41  ;;  %v2524_v41 = vadd.f32 %v2523_v27, %v2522_v18  ;;  %v30_v18 = vld [vmem:[%s14071_s0 + $0x48] sm:$0xff]  ;;  %v2584_v51 = vsel %vm2511_vm1, %v2161_v20, 0.0  ;;  %v2162_v27 = vmul.f32 %v8203_v62, %v56_v63  ;;  %v31_v20 = vld [vmem:[%s14071_s0 + $0x50] sm:$0xff] }
 0x2ec   :  { %1600 = vbcast.lane.b32.xlu1 %v8622_v32, 264  ;;  %1596 = vbcast.lane.b32.xlu0 %v8622_v32, 256  ;;  %v2136_v30 = vmul.f32 %v8183_v52, %v30_v18  ;;  %v2137_v62 = vmul.f32 %v8189_v55, %v31_v20  ;;  %v59_v55 = vld [vmem:[%s14071_s0 + $0x130] sm:$0xff] }
 0x2ed   :  { %v2526_v42 = vadd.f32 %v2525_v50, %v2524_v41 }
 0x2ee   :  { %v8637_v47 = vpop.permute.xlu1 %1364  ;;  %v8648_v48 = vpop.permute.xlu0 %1360  ;;  %v2529_v52 = vsel %vm2511_vm1, %v2136_v30, 0.0 }
 0x2ef   :  { %14256 = vst [vmem:[#allocation162_spill] sm:$0xff] %v8637_v47  ;;  %14257 = vst [vmem:[#allocation163_spill] sm:$0xff] %v8648_v48  ;;  %v29_v48 = vld [vmem:[%s14071_s0 + $0x40] sm:$0xff] }
 0x2f0   :  { %1608 = vbcast.lane.b32.xlu1 %v8622_v32, 280  ;;  %1604 = vbcast.lane.b32.xlu0 %v8622_v32, 272  ;;  %v2135_v60 = vmul.f32 %v8185_v53, %v29_v48  ;;  %v2583_v53 = vadd.f32 %v2582_v61, %v2581_v35  ;;  %v57_v48 = vld [vmem:[%s14071_s0 + $0x120] sm:$0xff] }
 0x2f1   :  { %v2163_v35 = vmul.f32 %v8209_v1, %v57_v48  ;;  %v58_v1 = vld [vmem:[%s14071_s0 + $0x128] sm:$0xff] }
 0x2f2   :  { %v8659_v47 = vpop.permute.xlu1 %1372  ;;  %v8664_v44 = vpop.permute.xlu0 %1368  ;;  %v2527_v41 = vsel %vm2511_vm1, %v2135_v60, 0.0  ;;  %v2585_v50 = vadd.f32 %v2584_v51, %v2583_v53  ;;  %v2586_v60 = vsel %vm2511_vm1, %v2162_v27, 0.0  ;;  %v2164_v27 = vmul.f32 %v8207_v0, %v58_v1 }
 0x2f3   :  { %v2528_v45 = vadd.f32 %v2527_v41, %v2526_v42  ;;  %v32_v42 = vld [vmem:[%s14071_s0 + $0x58] sm:$0xff]  ;;  %v2588_v48 = vsel %vm2511_vm1, %v2163_v35, 0.0  ;;  %v2531_v41 = vsel %vm2511_vm1, %v2137_v62, 0.0 }
 0x2f4   :  { %1616 = vbcast.lane.b32.xlu1 %v8622_v32, 296  ;;  %1612 = vbcast.lane.b32.xlu0 %v8622_v32, 288  ;;  %v2587_v51 = vadd.f32 %v2586_v60, %v2585_v50  ;;  %v2138_v30 = vmul.f32 %v8187_v54, %v32_v42  ;;  %v33_v50 = vld [vmem:[%s14071_s0 + $0x60] sm:$0xff]  ;;  %v2165_v60 = vmul.f32 %v8215_v4, %v59_v55  ;;  %v2590_v62 = vsel %vm2511_vm1, %v2164_v27, 0.0  ;;  %v34_v4 = vld [vmem:[%s14071_s0 + $0x68] sm:$0xff] }
 0x2f5   :  { %v2530_v63 = vadd.f32 %v2529_v52, %v2528_v45  ;;  %v2139_v0 = vmul.f32 %v8193_v57, %v33_v50  ;;  %v8739_v42 = vadd.f32 %v8454_v36, %v8163_v43  ;;  %v61_v43 = vld [vmem:[%s14071_s0 + $0x140] sm:$0xff]  ;;  %v2140_v36 = vmul.f32 %v8191_v56, %v34_v4  ;;  %v36_v4 = vld [vmem:[%s14071_s0 + $0x78] sm:$0xff] }
 0x2f6   :  { %v8673_v26 = vpop.permute.xlu1 %1380  ;;  %v8681_v22 = vpop.permute.xlu0 %1376  ;;  %v2589_v35 = vadd.f32 %v2588_v48, %v2587_v51  ;;  %v2533_v54 = vsel %vm2511_vm1, %v2138_v30, 0.0  ;;  %v60_v51 = vld [vmem:[%s14071_s0 + $0x138] sm:$0xff]  ;;  %v2592_v57 = vsel %vm2511_vm1, %v2165_v60, 0.0  ;;  %v2167_v56 = vmul.f32 %v8219_v6, %v61_v43  ;;  %v62_v6 = vld [vmem:[%s14071_s0 + $0x148] sm:$0xff]  ;;  %v63_v43 = vld [vmem:[%s14071_s0 + $0x150] sm:$0xff] }
 0x2f7   :  { %v2532_v20 = vadd.f32 %v2531_v41, %v2530_v63  ;;  %v2535_v30 = vsel %vm2511_vm1, %v2139_v0, 0.0  ;;  %v2166_v41 = vmul.f32 %v8213_v3, %v60_v51  ;;  %v8762_v27 = vrot.slane %v8739_v42, %v8124_v28 }
 0x2f8   :  { %1624 = vbcast.lane.b32.xlu1 %v8622_v32, 312  ;;  %1620 = vbcast.lane.b32.xlu0 %v8622_v32, 304  ;;  %v2591_v48 = vadd.f32 %v2590_v62, %v2589_v35  ;;  %v35_v35 = vld [vmem:[%s14071_s0 + $0x70] sm:$0xff]  ;;  %v2537_v3 = vsel %vm2511_vm1, %v2140_v36, 0.0  ;;  %v2142_v36 = vmul.f32 %v8195_v58, %v36_v4  ;;  %v38_v58 = vld [vmem:[%s14071_s0 + $0x88] sm:$0xff] }
 0x2f9   :  { %v2534_v1 = vadd.f32 %v2533_v54, %v2532_v20  ;;  %v2594_v0 = vsel %vm2511_vm1, %v2166_v41, 0.0  ;;  %v2168_v41 = vmul.f32 %v8217_v5, %v62_v6 }
 0x2fa   :  { %v8692_v23 = vpop.permute.xlu1 %1388  ;;  %v8697_v61 = vpop.permute.xlu0 %1384  ;;  %v2593_v60 = vadd.f32 %v2592_v57, %v2591_v48  ;;  %v37_v48 = vld [vmem:[%s14071_s0 + $0x80] sm:$0xff]  ;;  %v2541_v5 = vsel %vm2511_vm1, %v2142_v36, 0.0 }
 0x2fb   :  { %v2536_v50 = vadd.f32 %v2535_v30, %v2534_v1  ;;  %v65_v36 = vld [vmem:[%s14071_s0 + $0x160] sm:$0xff] }
 0x2fc   :  { %1632 = vbcast.lane.b32.xlu1 %v8622_v32, 328  ;;  %1628 = vbcast.lane.b32.xlu0 %v8622_v32, 320  ;;  %v2595_v51 = vadd.f32 %v2594_v0, %v2593_v60  ;;  %v2169_v0 = vmul.f32 %v8223_v8, %v63_v43  ;;  %v64_v8 = vld [vmem:[%s14071_s0 + $0x158] sm:$0xff]  ;;  %v2144_v43 = vmul.f32 %v8305_v31, %v38_v58  ;;  %v85_v58 = vld [vmem:[%s14071_s0 + $0x200] sm:$0xff] }
 0x2fd   :  { %v2538_v1 = vadd.f32 %v2537_v3, %v2536_v50  ;;  %v2143_v50 = vmul.f32 %v8307_v33, %v37_v48  ;;  %v2598_v33 = vsel %vm2511_vm1, %v2168_v41, 0.0  ;;  %v2170_v41 = vmul.f32 %v8221_v7, %v64_v8  ;;  %v40_v7 = vld [vmem:[%s14071_s0 + $0x98] sm:$0xff] }
 0x2fe   :  { %v8705_v18 = vpop.permute.xlu1 %1399  ;;  %v8713_v53 = vpop.permute.xlu0 %1395  ;;  %v2171_v31 = vmul.f32 %v8231_v11, %v65_v36  ;;  %v41_v36 = vld [vmem:[%s14071_s0 + $0xa0] sm:$0xff] }
 0x2ff   :  { %14258 = vst [vmem:[#allocation164_spill] sm:$0xff] %v8705_v18  ;;  %v2602_v11 = vsel %vm2511_vm1, %v2170_v41, 0.0 }
 0x300   :  { %1640 = vbcast.lane.b32.xlu1 %v8622_v32, 344  ;;  %1636 = vbcast.lane.b32.xlu0 %v8622_v32, 336  ;;  %v2604_v41 = vsel %vm2511_vm1, %v2171_v31, 0.0 }
 0x302   :  { %v8724_v45 = vpop.permute.xlu1 %1407  ;;  %v8729_v52 = vpop.permute.xlu0 %1403 }
 0x303   :  { %14259 = vst [vmem:[#allocation165_spill] sm:$0xff] %v8724_v45  ;;  %14260 = vst [vmem:[#allocation166_spill] sm:$0xff] %v8729_v52 }
 0x304   :  { %1648 = vbcast.lane.b32.xlu1 %v8622_v32, 360  ;;  %1644 = vbcast.lane.b32.xlu0 %v8622_v32, 352 }
 0x306   :  { %v8741_v63 = vpop.permute.xlu1 %1415  ;;  %v8749_v55 = vpop.permute.xlu0 %1411 }
 0x307   :  { %14261 = vst [vmem:[#allocation167_spill] sm:$0xff] %v8741_v63  ;;  %14262 = vst [vmem:[#allocation168_spill] sm:$0xff] %v8749_v55 }
 0x308   :  { %1656 = vbcast.lane.b32.xlu1 %v8622_v32, 376  ;;  %1652 = vbcast.lane.b32.xlu0 %v8622_v32, 368  ;;  %v2141_v32 = vmul.f32 %v8197_v59, %v35_v35  ;;  %v2596_v59 = vsel %vm2511_vm1, %v2167_v56, 0.0 }
 0x309   :  { %v2597_v56 = vadd.f32 %v2596_v59, %v2595_v51  ;;  %v39_v51 = vld [vmem:[%s14071_s0 + $0x90] sm:$0xff]  ;;  %v2600_v59 = vsel %vm2511_vm1, %v2169_v0, 0.0  ;;  %v86_v0 = vld [vmem:[%s14071_s0 + $0x208] sm:$0xff] }
 0x30a   :  { %v8764_v20 = vpop.permute.xlu1 %1423  ;;  %v8769_v54 = vpop.permute.xlu0 %1419  ;;  %v2539_v30 = vsel %vm2511_vm1, %v2141_v32, 0.0  ;;  %v2543_v32 = vsel %vm2511_vm1, %v2143_v50, 0.0  ;;  %v2145_v50 = vmul.f32 %v8311_v29, %v39_v51 }
 0x30b   :  { %14263 = vst [vmem:[#allocation169_spill] sm:$0xff] %v8764_v20  ;;  %14264 = vst [vmem:[#allocation170_spill] sm:$0xff] %v8769_v54  ;;  %v2540_v60 = vadd.f32 %v2539_v30, %v2538_v1  ;;  %v2599_v1 = vadd.f32 %v2598_v33, %v2597_v56  ;;  %v2545_v33 = vsel %vm2511_vm1, %v2144_v43, 0.0  ;;  %v2191_v43 = vmul.f32 %v8239_v15, %v85_v58  ;;  %v14291_v54 = vld [vmem:[#allocation52_spill] sm:$0xff] }
 0x30c   :  { %1667 = vbcast.lane.b32.xlu1 %v8762_v27, 264  ;;  %1663 = vbcast.lane.b32.xlu0 %v8762_v27, 256  ;;  %v2547_v8 = vsel %vm2511_vm1, %v2145_v50, 0.0  ;;  %v67_v50 = vld [vmem:[%s14071_s0 + $0x170] sm:$0xff] }
 0x30d   :  { %v2542_v6 = vadd.f32 %v2541_v5, %v2540_v60  ;;  %v2601_v56 = vadd.f32 %v2600_v59, %v2599_v1  ;;  %v2192_v59 = vmul.f32 %v8237_v14, %v86_v0  ;;  %v2147_v0 = vmul.f32 %v8316_v34, %v41_v36  ;;  %v117_v34 = vld [vmem:[%s14071_s0 + $0x300] sm:$0xff] }
 0x30e   :  { %v8777_v62 = vpop.permute.xlu1 %1431  ;;  %v8788_v57 = vpop.permute.xlu0 %1427 }
 0x30f   :  { %14265 = vst [vmem:[#allocation171_spill] sm:$0xff] %v8777_v62  ;;  %14266 = vst [vmem:[#allocation172_spill] sm:$0xff] %v8788_v57  ;;  %v2544_v30 = vadd.f32 %v2543_v32, %v2542_v6  ;;  %v87_v32 = vld [vmem:[%s14071_s0 + $0x210] sm:$0xff]  ;;  %v66_v6 = vld [vmem:[%s14071_s0 + $0x168] sm:$0xff]  ;;  %v2603_v51 = vadd.f32 %v2602_v11, %v2601_v56  ;;  %v2173_v11 = vmul.f32 %v8235_v13, %v67_v50  ;;  %v2651_v28 = vsel %vm2511_vm1, %v2192_v59, 0.0 }
 0x310   :  { %1675 = vbcast.lane.b32.xlu1 %v8762_v27, 280  ;;  %1671 = vbcast.lane.b32.xlu0 %v8762_v27, 272  ;;  %v2193_v14 = vmul.f32 %v8243_v17, %v87_v32  ;;  %v2172_v15 = vmul.f32 %v8229_v10, %v66_v6  ;;  %v88_v17 = vld [vmem:[%s14071_s0 + $0x218] sm:$0xff]  ;;  %v118_v13 = vld [vmem:[%s14071_s0 + $0x308] sm:$0xff]  ;;  %v89_v59 = vld [vmem:[%s14071_s0 + $0x220] sm:$0xff] }
 0x311   :  { %v2546_v29 = vadd.f32 %v2545_v33, %v2544_v30  ;;  %v2146_v33 = vmul.f32 %v8309_v25, %v40_v7  ;;  %v2605_v31 = vadd.f32 %v2604_v41, %v2603_v51  ;;  %v2650_v25 = vsel %vm2511_vm1, %v2191_v43, 0.0  ;;  %v42_v32 = vld [vmem:[%s14071_s0 + $0xa8] sm:$0xff] }
 0x312   :  { %v8800_v35 = vpop.permute.xlu1 %1439  ;;  %v8802_v3 = vpop.permute.xlu0 %1435  ;;  %v2653_v10 = vsel %vm2511_vm1, %v2193_v14, 0.0  ;;  %v2606_v6 = vsel %vm2511_vm1, %v2172_v15, 0.0  ;;  %v2652_v51 = vadd.f32 %v2651_v28, %v2650_v25  ;;  %v2551_v43 = vsel %vm2511_vm1, %v2147_v0, 0.0  ;;  %v119_v14 = vld [vmem:[%s14071_s0 + $0x310] sm:$0xff]  ;;  %v68_v15 = vld [vmem:[%s14071_s0 + $0x178] sm:$0xff]  ;;  %v69_v25 = vld [vmem:[%s14071_s0 + $0x180] sm:$0xff] }
 0x313   :  { %14267 = vst [vmem:[#allocation173_spill] sm:$0xff] %v8800_v35  ;;  %14268 = vst [vmem:[#allocation174_spill] sm:$0xff] %v8802_v3  ;;  %v2548_v56 = vadd.f32 %v2547_v8, %v2546_v29  ;;  %v2549_v29 = vsel %vm2511_vm1, %v2146_v33, 0.0  ;;  %v2607_v41 = vadd.f32 %v2606_v6, %v2605_v31  ;;  %v2608_v50 = vsel %vm2511_vm1, %v2173_v11, 0.0  ;;  %v43_v28 = vld [vmem:[%s14071_s0 + $0xb0] sm:$0xff]  ;;  %v14280_v3 = vld [vmem:[#allocation47_spill] sm:$0xff] }
 0x314   :  { %1683 = vbcast.lane.b32.xlu1 %v8762_v27, 296  ;;  %1679 = vbcast.lane.b32.xlu0 %v8762_v27, 288  ;;  %v2194_v33 = vmul.f32 %v8241_v16, %v88_v17  ;;  %v2654_v0 = vadd.f32 %v2653_v10, %v2652_v51  ;;  %v2224_v31 = vmul.f32 %v8271_v38, %v118_v13  ;;  %v14273_v38 = vld [vmem:[#allocation10_spill] sm:$0xff]  ;;  %v14274_v13 = vld [vmem:[#allocation13_spill] sm:$0xff] }
 0x315   :  { %v2550_v8 = vadd.f32 %v2549_v29, %v2548_v56  ;;  %v2223_v11 = vmul.f32 %v8273_v40, %v117_v34  ;;  %v2148_v16 = vmul.f32 %v8314_v39, %v42_v32  ;;  %v2195_v17 = vmul.f32 %v8247_v19, %v89_v59 }
 0x316   :  { %v8813_v4 = vpop.permute.xlu1 %1447  ;;  %v8821_v48 = vpop.permute.xlu0 %1443  ;;  %v2225_v6 = vmul.f32 %v8277_v2, %v119_v14  ;;  %v2149_v10 = vmul.f32 %v8321_v24, %v43_v28  ;;  %v8932_v40 = vrot.slane %v8609_v21, %v14273_v38  ;;  %v2174_v34 = vmul.f32 %v14274_v13, %v68_v15  ;;  %v90_v2 = vld [vmem:[%s14071_s0 + $0x228] sm:$0xff]  ;;  %v91_v14 = vld [vmem:[%s14071_s0 + $0x230] sm:$0xff] }
 0x317   :  { %14269 = vst [vmem:[#allocation175_spill] sm:$0xff] %v8813_v4  ;;  %14270 = vst [vmem:[#allocation176_spill] sm:$0xff] %v8821_v48  ;;  %v2552_v29 = vadd.f32 %v2551_v43, %v2550_v8  ;;  %v2609_v32 = vadd.f32 %v2608_v50, %v2607_v41  ;;  %v2655_v51 = vsel %vm2511_vm1, %v2194_v33, 0.0  ;;  %v2719_v59 = vsel %vm2511_vm1, %v2223_v11, 0.0  ;;  %v44_v50 = vld [vmem:[%s14071_s0 + $0xb8] sm:$0xff]  ;;  %v14278_v4 = vld [vmem:[#allocation38_spill] sm:$0xff] }
 0x318   :  { %1691 = vbcast.lane.b32.xlu1 %v8762_v27, 312  ;;  %1687 = vbcast.lane.b32.xlu0 %v8762_v27, 304  ;;  %v2656_v24 = vadd.f32 %v2655_v51, %v2654_v0  ;;  %v2553_v43 = vsel %vm2511_vm1, %v2148_v16, 0.0  ;;  %v2657_v41 = vsel %vm2511_vm1, %v2195_v17, 0.0  ;;  %v2722_v28 = vsel %vm2511_vm1, %v2225_v6, 0.0  ;;  %v70_v0 = vld [vmem:[%s14071_s0 + $0x188] sm:$0xff] }
 0x319   :  { %v2554_v33 = vadd.f32 %v2553_v43, %v2552_v29  ;;  %v2555_v15 = vsel %vm2511_vm1, %v2149_v10, 0.0  ;;  %v2610_v11 = vsel %vm2511_vm1, %v2174_v34, 0.0  ;;  %v14276_v16 = vld [vmem:[#allocation14_spill] sm:$0xff]  ;;  %v14277_v43 = vld [vmem:[#allocation25_spill] sm:$0xff]  ;;  %v2150_v34 = vmul.f32 %v14278_v4, %v44_v50 }
 0x31a   :  { %v8832_v60 = vpop.permute.xlu1 %1455  ;;  %v8834_v5 = vpop.permute.xlu0 %1451  ;;  %v121_v29 = vld [vmem:[%s14071_s0 + $0x320] sm:$0xff]  ;;  %v2658_v51 = vadd.f32 %v2657_v41, %v2656_v24  ;;  %v2611_v48 = vadd.f32 %v2610_v11, %v2609_v32  ;;  %v14281_v24 = vld [vmem:[#allocation27_spill] sm:$0xff] }
 0x31b   :  { %14271 = vst [vmem:[#allocation177_spill] sm:$0xff] %v8832_v60  ;;  %14272 = vst [vmem:[#allocation178_spill] sm:$0xff] %v8834_v5  ;;  %v14275_v60 = vld [vmem:[#allocation48_spill] sm:$0xff]  ;;  %v45_v6 = vld [vmem:[%s14071_s0 + $0xc0] sm:$0xff]  ;;  %v2556_v35 = vadd.f32 %v2555_v15, %v2554_v33  ;;  %v2227_v41 = vmul.f32 %v14281_v24, %v121_v29 }
 0x31c   :  { %1699 = vbcast.lane.b32.xlu1 %v8762_v27, 328  ;;  %1695 = vbcast.lane.b32.xlu0 %v8762_v27, 320  ;;  %v2175_v19 = vmul.f32 %v14275_v60, %v69_v25  ;;  %v120_v60 = vld [vmem:[%s14071_s0 + $0x318] sm:$0xff]  ;;  %v2196_v25 = vmul.f32 %v14276_v16, %v90_v2  ;;  %v71_v2 = vld [vmem:[%s14071_s0 + $0x190] sm:$0xff]  ;;  %v14283_v11 = vld [vmem:[#allocation50_spill] sm:$0xff] }
 0x31d   :  { %v2226_v5 = vmul.f32 %v14277_v43, %v120_v60  ;;  %v14282_v60 = vld [vmem:[#allocation40_spill] sm:$0xff]  ;;  %v2177_v62 = vmul.f32 %v14283_v11, %v71_v2  ;;  %v92_v33 = vld [vmem:[%s14071_s0 + $0x238] sm:$0xff]  ;;  %v122_v15 = vld [vmem:[%s14071_s0 + $0x328] sm:$0xff] }
 0x31e   :  { %v8854_v1 = vpop.permute.xlu1 %1466  ;;  %v8864_v30 = vpop.permute.xlu0 %1462  ;;  %v2612_v10 = vsel %vm2511_vm1, %v2175_v19, 0.0  ;;  %v2176_v19 = vmul.f32 %v14280_v3, %v70_v0  ;;  %v2151_v43 = vmul.f32 %v14282_v60, %v45_v6  ;;  %v2659_v50 = vsel %vm2511_vm1, %v2196_v25, 0.0  ;;  %v46_v25 = vld [vmem:[%s14071_s0 + $0xc8] sm:$0xff]  ;;  %v14285_v60 = vld [vmem:[#allocation26_spill] sm:$0xff] }
 0x31f   :  { %v2613_v4 = vadd.f32 %v2612_v10, %v2611_v48  ;;  %v2660_v3 = vadd.f32 %v2659_v50, %v2658_v51  ;;  %v2726_v6 = vsel %vm2511_vm1, %v2227_v41, 0.0  ;;  %v72_v51 = vld [vmem:[%s14071_s0 + $0x198] sm:$0xff]  ;;  %v73_v11 = vld [vmem:[%s14071_s0 + $0x1a0] sm:$0xff] }
 0x320   :  { %1707 = vbcast.lane.b32.xlu1 %v8762_v27, 344  ;;  %1703 = vbcast.lane.b32.xlu0 %v8762_v27, 336  ;;  %v2614_v29 = vsel %vm2511_vm1, %v2176_v19, 0.0  ;;  %v2559_v10 = vsel %vm2511_vm1, %v2151_v43, 0.0  ;;  %v2616_v19 = vsel %vm2511_vm1, %v2177_v62, 0.0  ;;  %v2228_v43 = vmul.f32 %v14285_v60, %v122_v15  ;;  %v14289_v62 = vld [vmem:[#allocation29_spill] sm:$0xff] }
 0x321   :  { %v2179_v63 = vmul.f32 %v14291_v54, %v73_v11 }
 0x322   :  { %v8876_v58 = vpop.permute.xlu1 %1474  ;;  %v8881_v7 = vpop.permute.xlu0 %1470 }
 0x324   :  { %1715 = vbcast.lane.b32.xlu1 %v8762_v27, 360  ;;  %1711 = vbcast.lane.b32.xlu0 %v8762_v27, 352 }
 0x326   :  { %v8904_v36 = vpop.permute.xlu1 %1482  ;;  %v8914_v56 = vpop.permute.xlu0 %1478 }
 0x328   :  { %1723 = vbcast.lane.b32.xlu1 %v8762_v27, 376  ;;  %1719 = vbcast.lane.b32.xlu0 %v8762_v27, 368  ;;  %v2720_v27 = vsel %vm2511_vm1, %v2224_v31, 0.0 }
 0x329   :  { %v2721_v17 = vadd.f32 %v2720_v27, %v2719_v59  ;;  %v14279_v27 = vld [vmem:[#allocation16_spill] sm:$0xff] }
 0x32a   :  { %v8934_v39 = vpop.permute.xlu1 %1490  ;;  %v8939_v8 = vpop.permute.xlu0 %1486  ;;  %v2197_v59 = vmul.f32 %v14279_v27, %v91_v14  ;;  %v2724_v14 = vsel %vm2511_vm1, %v2226_v5, 0.0  ;;  %v93_v5 = vld [vmem:[%s14071_s0 + $0x240] sm:$0xff] }
 0x32b   :  { %v2723_v16 = vadd.f32 %v2722_v28, %v2721_v17  ;;  %v2557_v28 = vsel %vm2511_vm1, %v2150_v34, 0.0  ;;  %v2615_v34 = vadd.f32 %v2614_v29, %v2613_v4  ;;  %v14286_v4 = vld [vmem:[#allocation39_spill] sm:$0xff] }
 0x32c   :  { %1734 = vbcast.lane.b32.xlu1 %v8932_v40, 264  ;;  %1730 = vbcast.lane.b32.xlu0 %v8932_v40, 256  ;;  %v2661_v48 = vsel %vm2511_vm1, %v2197_v59, 0.0  ;;  %v2558_v17 = vadd.f32 %v2557_v28, %v2556_v35  ;;  %v14284_v35 = vld [vmem:[#allocation15_spill] sm:$0xff]  ;;  %v123_v59 = vld [vmem:[%s14071_s0 + $0x330] sm:$0xff]  ;;  %v2152_v50 = vmul.f32 %v14286_v4, %v46_v25 }
 0x32d   :  { %v2725_v0 = vadd.f32 %v2724_v14, %v2723_v16  ;;  %v2198_v27 = vmul.f32 %v14284_v35, %v92_v33  ;;  %v47_v16 = vld [vmem:[%s14071_s0 + $0xd0] sm:$0xff]  ;;  %v2662_v41 = vadd.f32 %v2661_v48, %v2660_v3  ;;  %v14287_v33 = vld [vmem:[#allocation18_spill] sm:$0xff]  ;;  %v14288_v35 = vld [vmem:[#allocation49_spill] sm:$0xff]  ;;  %v2229_v3 = vmul.f32 %v14289_v62, %v123_v59 }
 0x32e   :  { %v8964_v31 = vpop.permute.xlu1 %1498  ;;  %v8975_v13 = vpop.permute.xlu0 %1494  ;;  %v2199_v14 = vmul.f32 %v14287_v33, %v93_v5  ;;  %v2560_v29 = vadd.f32 %v2559_v10, %v2558_v17  ;;  %v2178_v20 = vmul.f32 %v14288_v35, %v72_v51  ;;  %v14290_v48 = vld [vmem:[#allocation42_spill] sm:$0xff]  ;;  %v2617_v60 = vadd.f32 %v2616_v19, %v2615_v34  ;;  %v124_v51 = vld [vmem:[%s14071_s0 + $0x338] sm:$0xff] }
 0x32f   :  { %v2727_v28 = vadd.f32 %v2726_v6, %v2725_v0  ;;  %v2153_v15 = vmul.f32 %v14290_v48, %v47_v16  ;;  %v2663_v4 = vsel %vm2511_vm1, %v2198_v27, 0.0  ;;  %v94_v0 = vld [vmem:[%s14071_s0 + $0x248] sm:$0xff]  ;;  %v2728_v5 = vsel %vm2511_vm1, %v2228_v43, 0.0  ;;  %v48_v34 = vld [vmem:[%s14071_s0 + $0xd8] sm:$0xff]  ;;  %v95_v16 = vld [vmem:[%s14071_s0 + $0x250] sm:$0xff] }
 0x330   :  { %1742 = vbcast.lane.b32.xlu1 %v8932_v40, 280  ;;  %1738 = vbcast.lane.b32.xlu0 %v8932_v40, 272  ;;  %v2664_v17 = vadd.f32 %v2663_v4, %v2662_v41  ;;  %v2561_v6 = vsel %vm2511_vm1, %v2152_v50, 0.0  ;;  %v2665_v10 = vsel %vm2511_vm1, %v2199_v14, 0.0  ;;  %v2618_v59 = vsel %vm2511_vm1, %v2178_v20, 0.0  ;;  %v74_v43 = vld [vmem:[%s14071_s0 + $0x1a8] sm:$0xff] }
 0x331   :  { %v2729_v54 = vadd.f32 %v2728_v5, %v2727_v28  ;;  %v2562_v27 = vadd.f32 %v2561_v6, %v2560_v29  ;;  %v2730_v19 = vsel %vm2511_vm1, %v2229_v3, 0.0  ;;  %v2563_v41 = vsel %vm2511_vm1, %v2153_v15, 0.0  ;;  %v14293_v33 = vld [vmem:[#allocation17_spill] sm:$0xff]  ;;  %v125_v20 = vld [vmem:[%s14071_s0 + $0x340] sm:$0xff]  ;;  %v14294_v3 = vld [vmem:[#allocation28_spill] sm:$0xff] }
 0x332   :  { %v8988_v32 = vpop.permute.xlu1 %1506  ;;  %v8992_v57 = vpop.permute.xlu0 %1502  ;;  %v2619_v50 = vadd.f32 %v2618_v59, %v2617_v60  ;;  %v2200_v14 = vmul.f32 %v14293_v33, %v94_v0  ;;  %v49_v28 = vld [vmem:[%s14071_s0 + $0xe0] sm:$0xff]  ;;  %v2620_v29 = vsel %vm2511_vm1, %v2179_v63, 0.0  ;;  %v2666_v62 = vadd.f32 %v2665_v10, %v2664_v17  ;;  %v14295_v15 = vld [vmem:[#allocation41_spill] sm:$0xff]  ;;  %v75_v4 = vld [vmem:[%s14071_s0 + $0x1b0] sm:$0xff] }
 0x333   :  { %v2230_v48 = vmul.f32 %v14294_v3, %v124_v51  ;;  %v2154_v60 = vmul.f32 %v14295_v15, %v48_v34  ;;  %v14296_v0 = vld [vmem:[#allocation20_spill] sm:$0xff]  ;;  %v2731_v6 = vadd.f32 %v2730_v19, %v2729_v54  ;;  %v2564_v59 = vadd.f32 %v2563_v41, %v2562_v27  ;;  %v14297_v33 = vld [vmem:[#allocation51_spill] sm:$0xff]  ;;  %v96_v54 = vld [vmem:[%s14071_s0 + $0x258] sm:$0xff] }
 0x334   :  { %1750 = vbcast.lane.b32.xlu1 %v8932_v40, 296  ;;  %1746 = vbcast.lane.b32.xlu0 %v8932_v40, 288  ;;  %v2201_v5 = vmul.f32 %v14296_v0, %v95_v16  ;;  %v2180_v45 = vmul.f32 %v14297_v33, %v74_v43  ;;  %v14298_v63 = vld [vmem:[#allocation31_spill] sm:$0xff]  ;;  %v14299_v10 = vld [vmem:[#allocation44_spill] sm:$0xff]  ;;  %v2621_v3 = vadd.f32 %v2620_v29, %v2619_v50  ;;  %v2667_v15 = vsel %vm2511_vm1, %v2200_v14, 0.0 }
 0x335   :  { %v2231_v17 = vmul.f32 %v14298_v63, %v125_v20  ;;  %v2155_v51 = vmul.f32 %v14299_v10, %v49_v28  ;;  %v2668_v27 = vadd.f32 %v2667_v15, %v2666_v62  ;;  %v2732_v16 = vsel %vm2511_vm1, %v2230_v48, 0.0  ;;  %v126_v43 = vld [vmem:[%s14071_s0 + $0x348] sm:$0xff]  ;;  %v97_v28 = vld [vmem:[%s14071_s0 + $0x260] sm:$0xff]  ;;  %v76_v48 = vld [vmem:[%s14071_s0 + $0x1b8] sm:$0xff] }
 0x336   :  { %v9017_v2 = vpop.permute.xlu1 %1514  ;;  %v9027_v24 = vpop.permute.xlu0 %1510  ;;  %v2565_v19 = vsel %vm2511_vm1, %v2154_v60, 0.0  ;;  %v2669_v41 = vsel %vm2511_vm1, %v2201_v5, 0.0  ;;  %v2733_v50 = vadd.f32 %v2732_v16, %v2731_v6  ;;  %v2622_v20 = vsel %vm2511_vm1, %v2180_v45, 0.0  ;;  %v14302_v0 = vld [vmem:[#allocation19_spill] sm:$0xff]  ;;  %v127_v45 = vld [vmem:[%s14071_s0 + $0x350] sm:$0xff]  ;;  %v77_v15 = vld [vmem:[%s14071_s0 + $0x1c0] sm:$0xff] }
 0x337   :  { %v2566_v14 = vadd.f32 %v2565_v19, %v2564_v59  ;;  %v2734_v29 = vsel %vm2511_vm1, %v2231_v17, 0.0  ;;  %v2567_v62 = vsel %vm2511_vm1, %v2155_v51, 0.0  ;;  %v2623_v60 = vadd.f32 %v2622_v20, %v2621_v3  ;;  %v51_v6 = vld [vmem:[%s14071_s0 + $0xf0] sm:$0xff]  ;;  %v14304_v17 = vld [vmem:[#allocation30_spill] sm:$0xff]  ;;  %v14305_v51 = vld [vmem:[#allocation43_spill] sm:$0xff] }
 0x338   :  { %1758 = vbcast.lane.b32.xlu1 %v8932_v40, 312  ;;  %1754 = vbcast.lane.b32.xlu0 %v8932_v40, 304  ;;  %v2202_v5 = vmul.f32 %v14302_v0, %v96_v54  ;;  %v2670_v63 = vadd.f32 %v2669_v41, %v2668_v27  ;;  %v2232_v10 = vmul.f32 %v14304_v17, %v126_v43  ;;  %v14306_v54 = vld [vmem:[#allocation22_spill] sm:$0xff]  ;;  %v14307_v0 = vld [vmem:[#allocation53_spill] sm:$0xff] }
 0x339   :  { %v2203_v16 = vmul.f32 %v14306_v54, %v97_v28  ;;  %v2735_v19 = vadd.f32 %v2734_v29, %v2733_v50  ;;  %v2568_v20 = vadd.f32 %v2567_v62, %v2566_v14  ;;  %v14309_v41 = vld [vmem:[#allocation46_spill] sm:$0xff]  ;;  %v14311_v28 = vld [vmem:[#allocation56_spill] sm:$0xff] }
 0x33a   :  { %v9040_v25 = vpop.permute.xlu1 %1522  ;;  %v9044_v55 = vpop.permute.xlu0 %1518  ;;  %v2157_v43 = vmul.f32 %v14309_v41, %v51_v6  ;;  %v2183_v50 = vmul.f32 %v14311_v28, %v77_v15  ;;  %v2736_v62 = vsel %vm2511_vm1, %v2232_v10, 0.0 }
 0x33c   :  { %1766 = vbcast.lane.b32.xlu1 %v8932_v40, 328  ;;  %1762 = vbcast.lane.b32.xlu0 %v8932_v40, 320  ;;  %v2571_v10 = vsel %vm2511_vm1, %v2157_v43, 0.0  ;;  %v14316_v43 = vld [vmem:[#allocation45_spill] sm:$0xff] }
 0x33e   :  { %v9069_v11 = vpop.permute.xlu1 %1533  ;;  %v9079_v35 = vpop.permute.xlu0 %1529 }
 0x33f   :  { %14292 = vst [vmem:[#allocation10_spill] sm:$0xff] %v9069_v11  ;;  %v14300_v11 = vld [vmem:[#allocation54_spill] sm:$0xff] }
 0x340   :  { %1774 = vbcast.lane.b32.xlu1 %v8932_v40, 344  ;;  %1770 = vbcast.lane.b32.xlu0 %v8932_v40, 336  ;;  %v2181_v52 = vmul.f32 %v14300_v11, %v75_v4  ;;  %v50_v11 = vld [vmem:[%s14071_s0 + $0xe8] sm:$0xff] }
 0x341   :  { %v2156_v3 = vmul.f32 %v14305_v51, %v50_v11  ;;  %v9146_v11 = vrot.slane %v8739_v42, %v14273_v38  ;;  %v2673_v38 = vsel %vm2511_vm1, %v2203_v16, 0.0  ;;  %v14313_v16 = vld [vmem:[#allocation21_spill] sm:$0xff] }
 0x342   :  { %v9092_v34 = vpop.permute.xlu1 %1541  ;;  %v9096_v18 = vpop.permute.xlu0 %1537  ;;  %v2624_v59 = vsel %vm2511_vm1, %v2181_v52, 0.0  ;;  %v14308_v52 = vld [vmem:[#allocation33_spill] sm:$0xff] }
 0x343   :  { %v2233_v27 = vmul.f32 %v14308_v52, %v127_v45  ;;  %v2625_v17 = vadd.f32 %v2624_v59, %v2623_v60  ;;  %v128_v60 = vld [vmem:[%s14071_s0 + $0x358] sm:$0xff] }
 0x344   :  { %1782 = vbcast.lane.b32.xlu1 %v8932_v40, 360  ;;  %1778 = vbcast.lane.b32.xlu0 %v8932_v40, 352  ;;  %v52_v45 = vld [vmem:[%s14071_s0 + $0xf8] sm:$0xff] }
 0x345   :  { %v2158_v28 = vmul.f32 %v14316_v43, %v52_v45 }
 0x346   :  { %v9121_v4 = vpop.permute.xlu1 %1549  ;;  %v9131_v33 = vpop.permute.xlu0 %1545 }
 0x347   :  { %14301 = vst [vmem:[#allocation13_spill] sm:$0xff] %v9121_v4  ;;  %14303 = vst [vmem:[#allocation48_spill] sm:$0xff] %v9131_v33  ;;  %v2182_v4 = vmul.f32 %v14307_v0, %v76_v48  ;;  %v2671_v33 = vsel %vm2511_vm1, %v2202_v5, 0.0  ;;  %v2569_v48 = vsel %vm2511_vm1, %v2156_v3, 0.0  ;;  %v2737_v5 = vadd.f32 %v2736_v62, %v2735_v19  ;;  %v78_v3 = vld [vmem:[%s14071_s0 + $0x1c8] sm:$0xff] }
 0x348   :  { %1790 = vbcast.lane.b32.xlu1 %v8932_v40, 376  ;;  %1786 = vbcast.lane.b32.xlu0 %v8932_v40, 368  ;;  %v98_v40 = vld [vmem:[%s14071_s0 + $0x268] sm:$0xff]  ;;  %v2672_v29 = vadd.f32 %v2671_v33, %v2670_v63  ;;  %v2570_v6 = vadd.f32 %v2569_v48, %v2568_v20  ;;  %v99_v33 = vld [vmem:[%s14071_s0 + $0x270] sm:$0xff]  ;;  %v2738_v63 = vsel %vm2511_vm1, %v2233_v27, 0.0  ;;  %v2628_v20 = vsel %vm2511_vm1, %v2183_v50, 0.0 }
 0x349   :  { %v2626_v59 = vsel %vm2511_vm1, %v2182_v4, 0.0  ;;  %v2204_v19 = vmul.f32 %v14313_v16, %v98_v40  ;;  %v129_v4 = vld [vmem:[%s14071_s0 + $0x360] sm:$0xff]  ;;  %v14315_v27 = vld [vmem:[#allocation32_spill] sm:$0xff]  ;;  %v2739_v48 = vadd.f32 %v2738_v63, %v2737_v5  ;;  %v14318_v16 = vld [vmem:[#allocation55_spill] sm:$0xff]  ;;  %v2573_v63 = vsel %vm2511_vm1, %v2158_v28, 0.0 }
 0x34a   :  { %v9148_v51 = vpop.permute.xlu1 %1557  ;;  %v9152_v14 = vpop.permute.xlu0 %1553  ;;  %v2627_v15 = vadd.f32 %v2626_v59, %v2625_v17  ;;  %v2674_v52 = vadd.f32 %v2673_v38, %v2672_v29  ;;  %v2234_v41 = vmul.f32 %v14315_v27, %v128_v60  ;;  %v79_v17 = vld [vmem:[%s14071_s0 + $0x1d0] sm:$0xff]  ;;  %v2572_v59 = vadd.f32 %v2571_v10, %v2570_v6  ;;  %v14319_v50 = vld [vmem:[#allocation35_spill] sm:$0xff]  ;;  %v14321_v27 = vld [vmem:[#allocation58_spill] sm:$0xff] }
 0x34b   :  { %14310 = vst [vmem:[#allocation14_spill] sm:$0xff] %v9148_v51  ;;  %v14317_v40 = vld [vmem:[#allocation24_spill] sm:$0xff]  ;;  %v2235_v29 = vmul.f32 %v14319_v50, %v129_v4  ;;  %v2675_v45 = vsel %vm2511_vm1, %v2204_v19, 0.0  ;;  %v2185_v43 = vmul.f32 %v14321_v27, %v79_v17  ;;  %v100_v5 = vld [vmem:[%s14071_s0 + $0x278] sm:$0xff]  ;;  %v14356_v51 = vld [vmem:[#allocation11_spill] sm:$0xff] }
 0x34c   :  { %1801 = vbcast.lane.b32.xlu1 %v9146_v11, 264  ;;  %1797 = vbcast.lane.b32.xlu0 %v9146_v11, 256  ;;  %v2205_v62 = vmul.f32 %v14317_v40, %v99_v33  ;;  %v2629_v38 = vadd.f32 %v2628_v20, %v2627_v15  ;;  %v2676_v6 = vadd.f32 %v2675_v45, %v2674_v52  ;;  %v2740_v33 = vsel %vm2511_vm1, %v2234_v41, 0.0  ;;  %v101_v20 = vld [vmem:[%s14071_s0 + $0x280] sm:$0xff]  ;;  %v131_v41 = vld [vmem:[%s14071_s0 + $0x370] sm:$0xff]  ;;  %v80_v28 = vld [vmem:[%s14071_s0 + $0x1d8] sm:$0xff] }
 0x34d   :  { %v2741_v15 = vadd.f32 %v2740_v33, %v2739_v48  ;;  %v2574_v19 = vadd.f32 %v2573_v63, %v2572_v59  ;;  %v2742_v52 = vsel %vm2511_vm1, %v2235_v29, 0.0  ;;  %v2632_v48 = vsel %vm2511_vm1, %v2185_v43, 0.0  ;;  %v150_v59 = vld [vmem:[%s14071_s0 + $0x408] sm:$0xff]  ;;  %v14326_v45 = vld [vmem:[#allocation34_spill] sm:$0xff]  ;;  %v14328_v63 = vld [vmem:[#allocation37_spill] sm:$0xff] }
 0x34e   :  { %v9177_v54 = vpop.permute.xlu1 %1565  ;;  %v9184_v0 = vpop.permute.xlu0 %1561  ;;  %v2677_v10 = vsel %vm2511_vm1, %v2205_v62, 0.0 }
 0x34f   :  { %14312 = vst [vmem:[#allocation25_spill] sm:$0xff] %v9177_v54  ;;  %14314 = vst [vmem:[#allocation38_spill] sm:$0xff] %v9184_v0  ;;  %v2184_v54 = vmul.f32 %v14318_v16, %v78_v3  ;;  %v130_v3 = vld [vmem:[%s14071_s0 + $0x368] sm:$0xff]  ;;  %v149_v16 = vld [vmem:[%s14071_s0 + $0x400] sm:$0xff]  ;;  %v2678_v29 = vadd.f32 %v2677_v10, %v2676_v6  ;;  %v2743_v43 = vadd.f32 %v2742_v52, %v2741_v15 }
 0x350   :  { %1809 = vbcast.lane.b32.xlu1 %v9146_v11, 280  ;;  %1805 = vbcast.lane.b32.xlu0 %v9146_v11, 272  ;;  %v2236_v27 = vmul.f32 %v14326_v45, %v130_v3  ;;  %v151_v6 = vld [vmem:[%s14071_s0 + $0x410] sm:$0xff]  ;;  %v14330_v3 = vld [vmem:[#allocation95_spill] sm:$0xff] }
 0x351   :  { %v2630_v4 = vsel %vm2511_vm1, %v2184_v54, 0.0  ;;  %v14324_v54 = vld [vmem:[#allocation23_spill] sm:$0xff]  ;;  %v2256_v45 = vmul.f32 %v14330_v3, %v150_v59  ;;  %v14333_v52 = vld [vmem:[#allocation60_spill] sm:$0xff] }
 0x352   :  { %v9196_v60 = vpop.permute.xlu1 %1573  ;;  %v9200_v0 = vpop.permute.xlu0 %1569  ;;  %v2631_v17 = vadd.f32 %v2630_v4, %v2629_v38  ;;  %v2206_v62 = vmul.f32 %v14324_v54, %v100_v5  ;;  %v81_v38 = vld [vmem:[%s14071_s0 + $0x1e0] sm:$0xff]  ;;  %v14327_v5 = vld [vmem:[#allocation64_spill] sm:$0xff]  ;;  %v2237_v4 = vmul.f32 %v14328_v63, %v131_v41  ;;  %v2575_v54 = vrot.slane %v2574_v19, 4 }
 0x353   :  { %14320 = vst [vmem:[#allocation16_spill] sm:$0xff] %v9196_v60  ;;  %14322 = vst [vmem:[#allocation47_spill] sm:$0xff] %v9200_v0  ;;  %v2207_v33 = vmul.f32 %v14327_v5, %v101_v20  ;;  %v2187_v41 = vmul.f32 %v14333_v52, %v81_v38  ;;  %v2744_v5 = vsel %vm2511_vm1, %v2236_v27, 0.0  ;;  %v82_v27 = vld [vmem:[%s14071_s0 + $0x1e8] sm:$0xff]  ;;  %v152_v52 = vld [vmem:[%s14071_s0 + $0x418] sm:$0xff] }
 0x354   :  { %1817 = vbcast.lane.b32.xlu1 %v9146_v11, 296  ;;  %1813 = vbcast.lane.b32.xlu0 %v9146_v11, 288  ;;  %v2633_v10 = vadd.f32 %v2632_v48, %v2631_v17  ;;  %v2679_v15 = vsel %vm2511_vm1, %v2206_v62, 0.0  ;;  %v14335_v48 = vld [vmem:[#allocation98_spill] sm:$0xff]  ;;  %v132_v62 = vld [vmem:[%s14071_s0 + $0x378] sm:$0xff]  ;;  %v2576_v38 = vadd.f32 %v2575_v54, %v2574_v19 }
 0x355   :  { %v2680_v63 = vadd.f32 %v2679_v15, %v2678_v29  ;;  %v2681_v17 = vsel %vm2511_vm1, %v2207_v33, 0.0  ;;  %v2257_v59 = vmul.f32 %v14335_v48, %v151_v6  ;;  %v103_v29 = vld [vmem:[%s14071_s0 + $0x290] sm:$0xff]  ;;  %v14336_v6 = vld [vmem:[#allocation63_spill] sm:$0xff] }
 0x356   :  { %v9224_v40 = vpop.permute.xlu1 %1581  ;;  %v9234_v50 = vpop.permute.xlu0 %1577  ;;  %v14339_v48 = vld [vmem:[#allocation36_spill] sm:$0xff] }
 0x357   :  { %14323 = vst [vmem:[#allocation27_spill] sm:$0xff] %v9224_v40  ;;  %14325 = vst [vmem:[#allocation40_spill] sm:$0xff] %v9234_v50  ;;  %v14329_v40 = vld [vmem:[#allocation57_spill] sm:$0xff]  ;;  %v14331_v50 = vld [vmem:[#allocation96_spill] sm:$0xff]  ;;  %v2682_v54 = vadd.f32 %v2681_v17, %v2680_v63  ;;  %v2577_v63 = vrot.slane %v2576_v38, 2 }
 0x358   :  { %1825 = vbcast.lane.b32.xlu1 %v9146_v11, 312  ;;  %v2186_v60 = vmul.f32 %v14329_v40, %v80_v28  ;;  %1821 = vbcast.lane.b32.xlu0 %v9146_v11, 304  ;;  %v2255_v0 = vmul.f32 %v14331_v50, %v149_v16  ;;  %v102_v28 = vld [vmem:[%s14071_s0 + $0x288] sm:$0xff]  ;;  %v2745_v16 = vadd.f32 %v2744_v5, %v2743_v43  ;;  %v2746_v50 = vsel %vm2511_vm1, %v2237_v4, 0.0 }
 0x359   :  { %v2208_v15 = vmul.f32 %v14336_v6, %v102_v28  ;;  %v2789_v43 = vsel %vm2511_vm1, %v2256_v45, 0.0  ;;  %v14340_v45 = vld [vmem:[#allocation66_spill] sm:$0xff]  ;;  %v14341_v17 = vld [vmem:[#allocation59_spill] sm:$0xff] }
 0x35a   :  { %v9250_v20 = vpop.permute.xlu1 %1589  ;;  %v9257_v40 = vpop.permute.xlu0 %1585  ;;  %v2634_v3 = vsel %vm2511_vm1, %v2186_v60, 0.0  ;;  %v2788_v4 = vsel %vm2511_vm1, %v2255_v0, 0.0  ;;  %v2636_v60 = vsel %vm2511_vm1, %v2187_v41, 0.0  ;;  %v2209_v28 = vmul.f32 %v14340_v45, %v103_v29 }
 0x35b   :  { %14332 = vst [vmem:[#allocation50_spill] sm:$0xff] %v9250_v20  ;;  %14334 = vst [vmem:[#allocation15_spill] sm:$0xff] %v9257_v40  ;;  %v2635_v33 = vadd.f32 %v2634_v3, %v2633_v10  ;;  %v2238_v20 = vmul.f32 %v14339_v48, %v132_v62  ;;  %v83_v10 = vld [vmem:[%s14071_s0 + $0x1f0] sm:$0xff]  ;;  %v2791_v0 = vsel %vm2511_vm1, %v2257_v59, 0.0  ;;  %v2747_v41 = vadd.f32 %v2746_v50, %v2745_v16  ;;  %v153_v40 = vld [vmem:[%s14071_s0 + $0x420] sm:$0xff] }
 0x35c   :  { %1833 = vbcast.lane.b32.xlu1 %v9146_v11, 328  ;;  %1829 = vbcast.lane.b32.xlu0 %v9146_v11, 320  ;;  %v2188_v3 = vmul.f32 %v14341_v17, %v82_v27  ;;  %v2790_v6 = vadd.f32 %v2789_v43, %v2788_v4  ;;  %v2683_v48 = vsel %vm2511_vm1, %v2208_v15, 0.0  ;;  %v182_v59 = vld [vmem:[%s14071_s0 + $0x508] sm:$0xff]  ;;  %v84_v50 = vld [vmem:[%s14071_s0 + $0x1f8] sm:$0xff]  ;;  %v14344_v27 = vld [vmem:[#allocation62_spill] sm:$0xff] }
 0x35d   :  { %v2637_v62 = vadd.f32 %v2636_v60, %v2635_v33  ;;  %v2189_v43 = vmul.f32 %v14344_v27, %v83_v10  ;;  %v2684_v4 = vadd.f32 %v2683_v48, %v2682_v54  ;;  %v181_v33 = vld [vmem:[%s14071_s0 + $0x500] sm:$0xff]  ;;  %v2748_v60 = vsel %vm2511_vm1, %v2238_v20, 0.0  ;;  %v14346_v17 = vld [vmem:[#allocation100_spill] sm:$0xff]  ;;  %v154_v48 = vld [vmem:[%s14071_s0 + $0x428] sm:$0xff] }
 0x35e   :  { %v9278_v19 = vpop.permute.xlu1 %1600  ;;  %v9284_v5 = vpop.permute.xlu0 %1596  ;;  %v2792_v45 = vadd.f32 %v2791_v0, %v2790_v6  ;;  %v9321_v54 = vadd.f32 %v2577_v63, %v2576_v38  ;;  %v2638_v10 = vsel %vm2511_vm1, %v2188_v3, 0.0  ;;  %v9324_v0 = vadd.f32 %v2748_v60, %v2747_v41  ;;  %v183_v20 = vld [vmem:[%s14071_s0 + $0x510] sm:$0xff]  ;;  %v14348_v38 = vld [vmem:[#allocation61_spill] sm:$0xff] }
 0x35f   :  { %14337 = vst [vmem:[#allocation26_spill] sm:$0xff] %v9278_v19  ;;  %14338 = vst [vmem:[#allocation39_spill] sm:$0xff] %v9284_v5  ;;  %v14342_v5 = vld [vmem:[#allocation97_spill] sm:$0xff]  ;;  %v2288_v6 = vmul.f32 %v8510_v12, %v182_v59  ;;  %v9338_v63 = vmul.f32 %v14348_v38, %v84_v50  ;;  %v2639_v41 = vadd.f32 %v2638_v10, %v2637_v62  ;;  %v105_v12 = vld [vmem:[%s14071_s0 + $0x2a0] sm:$0xff] }
 0x360   :  { %1841 = vbcast.lane.b32.xlu1 %v9146_v11, 344  ;;  %1837 = vbcast.lane.b32.xlu0 %v9146_v11, 336  ;;  %v2258_v29 = vmul.f32 %v14342_v5, %v152_v52  ;;  %v104_v52 = vld [vmem:[%s14071_s0 + $0x298] sm:$0xff]  ;;  %v2685_v5 = vsel %vm2511_vm1, %v2209_v28, 0.0  ;;  %14347 = vst [vmem:[#allocation29_spill] sm:$0xff] %v9321_v54  ;;  %v214_v28 = vld [vmem:[%s14071_s0 + $0x608] sm:$0xff] }
 0x361   :  { %v14349_v59 = vld [vmem:[#allocation127_spill] sm:$0xff]  ;;  %v2686_v38 = vadd.f32 %v2685_v5, %v2684_v4  ;;  %v215_v10 = vld [vmem:[%s14071_s0 + $0x610] sm:$0xff] }
 0x362   :  { %v9303_v16 = vpop.permute.xlu1 %1608  ;;  %v9312_v15 = vpop.permute.xlu0 %1604  ;;  %v2793_v3 = vsel %vm2511_vm1, %v2258_v29, 0.0  ;;  %v2287_v27 = vmul.f32 %v14349_v59, %v181_v33  ;;  %v246_v29 = vld [vmem:[%s14071_s0 + $0x708] sm:$0xff]  ;;  %v245_v33 = vld [vmem:[%s14071_s0 + $0x700] sm:$0xff]  ;;  %v155_v4 = vld [vmem:[%s14071_s0 + $0x430] sm:$0xff] }
 0x363   :  { %14343 = vst [vmem:[#allocation18_spill] sm:$0xff] %v9303_v16  ;;  %14345 = vst [vmem:[#allocation49_spill] sm:$0xff] %v9312_v15  ;;  %v2259_v16 = vmul.f32 %v14346_v17, %v153_v40  ;;  %v213_v40 = vld [vmem:[%s14071_s0 + $0x600] sm:$0xff]  ;;  %v2640_v17 = vsel %vm2511_vm1, %v2189_v43, 0.0  ;;  %v14351_v15 = vld [vmem:[#allocation65_spill] sm:$0xff]  ;;  %v2794_v62 = vadd.f32 %v2793_v3, %v2792_v45 }
 0x364   :  { %1849 = vbcast.lane.b32.xlu1 %v9146_v11, 360  ;;  %1845 = vbcast.lane.b32.xlu0 %v9146_v11, 352  ;;  %v2210_v50 = vmul.f32 %v14351_v15, %v104_v52  ;;  %v14353_v45 = vld [vmem:[#allocation129_spill] sm:$0xff]  ;;  %v2320_v52 = vmul.f32 %v8591_v46, %v214_v28  ;;  %v2319_v5 = vmul.f32 %v8596_v37, %v213_v40  ;;  %v14354_v3 = vld [vmem:[#allocation68_spill] sm:$0xff]  ;;  %v14355_v19 = vld [vmem:[#allocation99_spill] sm:$0xff]  ;;  %v2857_v37 = vsel %vm2511_vm1, %v2287_v27, 0.0 }
 0x365   :  { %v2795_v43 = vsel %vm2511_vm1, %v2259_v16, 0.0  ;;  %v2289_v15 = vmul.f32 %v14353_v45, %v183_v20  ;;  %v2260_v54 = vmul.f32 %v14355_v19, %v154_v48  ;;  %v9376_v16 = vrot.slane %v8609_v21, %v14356_v51  ;;  %v247_v20 = vld [vmem:[%s14071_s0 + $0x710] sm:$0xff]  ;;  %v14357_v45 = vld [vmem:[#allocation102_spill] sm:$0xff] }
 0x366   :  { %v9348_v60 = vpop.permute.xlu1 %1616  ;;  %v9361_v59 = vpop.permute.xlu0 %1612  ;;  %v2321_v46 = vmul.f32 %v8605_v9, %v215_v10  ;;  %v2352_v28 = vmul.f32 %v8854_v1, %v246_v29  ;;  %v2351_v19 = vmul.f32 %v8864_v30, %v245_v33  ;;  %v2796_v48 = vadd.f32 %v2795_v43, %v2794_v62  ;;  %v106_v9 = vld [vmem:[%s14071_s0 + $0x2a8] sm:$0xff]  ;;  %v185_v33 = vld [vmem:[%s14071_s0 + $0x520] sm:$0xff]  ;;  %v216_v43 = vld [vmem:[%s14071_s0 + $0x618] sm:$0xff] }
 0x367   :  { %14350 = vst [vmem:[#allocation42_spill] sm:$0xff] %v9348_v60  ;;  %14352 = vst [vmem:[#allocation52_spill] sm:$0xff] %v9361_v59  ;;  %v2211_v60 = vmul.f32 %v14354_v3, %v105_v12  ;;  %v2858_v59 = vsel %vm2511_vm1, %v2288_v6, 0.0  ;;  %v9388_v6 = vadd.f32 %v2640_v17, %v2639_v41  ;;  %v2687_v12 = vsel %vm2511_vm1, %v2210_v50, 0.0 }
 0x368   :  { %1857 = vbcast.lane.b32.xlu1 %v9146_v11, 376  ;;  %1853 = vbcast.lane.b32.xlu0 %v9146_v11, 368  ;;  %v2261_v3 = vmul.f32 %v14357_v45, %v155_v4  ;;  %v184_v11 = vld [vmem:[%s14071_s0 + $0x518] sm:$0xff]  ;;  %v2860_v1 = vsel %vm2511_vm1, %v2289_v15, 0.0  ;;  %v2927_v30 = vsel %vm2511_vm1, %v2320_v52, 0.0  ;;  %v2926_v41 = vsel %vm2511_vm1, %v2319_v5, 0.0 }
 0x369   :  { %v2353_v17 = vmul.f32 %v8881_v7, %v247_v20  ;;  %v2688_v50 = vadd.f32 %v2687_v12, %v2686_v38  ;;  %v2689_v62 = vsel %vm2511_vm1, %v2211_v60, 0.0  ;;  %v2797_v10 = vsel %vm2511_vm1, %v2260_v54, 0.0  ;;  %v107_v7 = vld [vmem:[%s14071_s0 + $0x2b0] sm:$0xff]  ;;  %v14360_v52 = vld [vmem:[#allocation67_spill] sm:$0xff]  ;;  %v156_v20 = vld [vmem:[%s14071_s0 + $0x438] sm:$0xff] }
 0x36a   :  { %v9386_v40 = vpop.permute.xlu1 %1624  ;;  %v9395_v27 = vpop.permute.xlu0 %1620  ;;  %v2859_v29 = vadd.f32 %v2858_v59, %v2857_v37  ;;  %v14358_v38 = vld [vmem:[#allocation128_spill] sm:$0xff]  ;;  %v2929_v60 = vsel %vm2511_vm1, %v2321_v46, 0.0  ;;  %v2996_v54 = vsel %vm2511_vm1, %v2352_v28, 0.0  ;;  %v2995_v59 = vsel %vm2511_vm1, %v2351_v19, 0.0  ;;  %v248_v46 = vld [vmem:[%s14071_s0 + $0x718] sm:$0xff] }
 0x36b   :  { %v2290_v4 = vmul.f32 %v14358_v38, %v184_v11  ;;  %v2212_v5 = vmul.f32 %v14360_v52, %v106_v9  ;;  %v2798_v37 = vadd.f32 %v2797_v10, %v2796_v48  ;;  %v2928_v45 = vadd.f32 %v2927_v30, %v2926_v41  ;;  %v217_v11 = vld [vmem:[%s14071_s0 + $0x620] sm:$0xff]  ;;  %v14362_v38 = vld [vmem:[#allocation157_spill] sm:$0xff] }
 0x36c   :  { %1868 = vbcast.lane.b32.xlu1 %v9376_v16, 264  ;;  %1864 = vbcast.lane.b32.xlu0 %v9376_v16, 256  ;;  %v2861_v12 = vadd.f32 %v2860_v1, %v2859_v29  ;;  %v2799_v19 = vsel %vm2511_vm1, %v2261_v3, 0.0  ;;  %v2291_v9 = vmul.f32 %v8521_v49, %v185_v33  ;;  %v2322_v52 = vmul.f32 %v14362_v38, %v216_v43  ;;  %v14363_v30 = vld [vmem:[#allocation70_spill] sm:$0xff]  ;;  %v108_v49 = vld [vmem:[%s14071_s0 + $0x2b8] sm:$0xff]  ;;  %v14365_v33 = vld [vmem:[#allocation159_spill] sm:$0xff] }
 0x36d   :  { %v2998_v48 = vsel %vm2511_vm1, %v2353_v17, 0.0  ;;  %v2690_v1 = vadd.f32 %v2689_v62, %v2688_v50  ;;  %v2213_v41 = vmul.f32 %v14363_v30, %v107_v7  ;;  %v157_v10 = vld [vmem:[%s14071_s0 + $0x440] sm:$0xff]  ;;  %v2930_v29 = vadd.f32 %v2929_v60, %v2928_v45  ;;  %v14364_v17 = vld [vmem:[#allocation101_spill] sm:$0xff]  ;;  %v186_v45 = vld [vmem:[%s14071_s0 + $0x528] sm:$0xff] }
 0x36e   :  { %v9421_v15 = vpop.permute.xlu1 %1632  ;;  %v9433_v28 = vpop.permute.xlu0 %1628  ;;  %v249_v3 = vld [vmem:[%s14071_s0 + $0x720] sm:$0xff]  ;;  %v2262_v50 = vmul.f32 %v14364_v17, %v156_v20  ;;  %v2862_v62 = vsel %vm2511_vm1, %v2290_v4, 0.0  ;;  %v2323_v43 = vmul.f32 %v14365_v33, %v217_v11  ;;  %v2354_v7 = vmul.f32 %v8876_v58, %v248_v46  ;;  %v14366_v20 = vld [vmem:[#allocation104_spill] sm:$0xff]  ;;  %v250_v33 = vld [vmem:[%s14071_s0 + $0x728] sm:$0xff] }
 0x36f   :  { %14359 = vst [vmem:[#allocation17_spill] sm:$0xff] %v9421_v15  ;;  %14361 = vst [vmem:[#allocation28_spill] sm:$0xff] %v9433_v28  ;;  %v2997_v15 = vadd.f32 %v2996_v54, %v2995_v59  ;;  %v2691_v54 = vsel %vm2511_vm1, %v2212_v5, 0.0  ;;  %v2800_v59 = vadd.f32 %v2799_v19, %v2798_v37  ;;  %v2863_v38 = vadd.f32 %v2862_v62, %v2861_v12  ;;  %v14367_v5 = vld [vmem:[#allocation69_spill] sm:$0xff]  ;;  %v218_v12 = vld [vmem:[%s14071_s0 + $0x628] sm:$0xff] }
 0x370   :  { %1876 = vbcast.lane.b32.xlu1 %v9376_v16, 280  ;;  %1872 = vbcast.lane.b32.xlu0 %v9376_v16, 272  ;;  %v2263_v17 = vmul.f32 %v14366_v20, %v157_v10  ;;  %v2864_v4 = vsel %vm2511_vm1, %v2291_v9, 0.0  ;;  %v2931_v11 = vsel %vm2511_vm1, %v2322_v52, 0.0  ;;  %v2355_v58 = vmul.f32 %v8914_v56, %v249_v3  ;;  %v14368_v52 = vld [vmem:[#allocation130_spill] sm:$0xff] }
 0x371   :  { %v2999_v30 = vadd.f32 %v2998_v48, %v2997_v15  ;;  %v2214_v37 = vmul.f32 %v14367_v5, %v108_v49  ;;  %v2692_v46 = vadd.f32 %v2691_v54, %v2690_v1  ;;  %v2693_v19 = vsel %vm2511_vm1, %v2213_v41, 0.0  ;;  %v187_v15 = vld [vmem:[%s14071_s0 + $0x530] sm:$0xff]  ;;  %v158_v49 = vld [vmem:[%s14071_s0 + $0x448] sm:$0xff] }
 0x372   :  { %v9455_v60 = vpop.permute.xlu1 %1640  ;;  %v9461_v28 = vpop.permute.xlu0 %1636  ;;  %v2932_v9 = vadd.f32 %v2931_v11, %v2930_v29  ;;  %v2801_v56 = vsel %vm2511_vm1, %v2262_v50, 0.0  ;;  %v2292_v48 = vmul.f32 %v14368_v52, %v186_v45  ;;  %v2933_v10 = vsel %vm2511_vm1, %v2323_v43, 0.0  ;;  %v219_v50 = vld [vmem:[%s14071_s0 + $0x630] sm:$0xff] }
 0x373   :  { %v3000_v1 = vsel %vm2511_vm1, %v2354_v7, 0.0  ;;  %v2642_v3 = vsel %vm2511_vm1, %v9338_v63, 0.0  ;;  %v2802_v29 = vadd.f32 %v2801_v56, %v2800_v59  ;;  %v2865_v62 = vadd.f32 %v2864_v4, %v2863_v38  ;;  %v109_v63 = vld [vmem:[%s14071_s0 + $0x2c0] sm:$0xff]  ;;  %v14371_v45 = vld [vmem:[#allocation132_spill] sm:$0xff] }
 0x374   :  { %1884 = vbcast.lane.b32.xlu1 %v9376_v16, 296  ;;  %1880 = vbcast.lane.b32.xlu0 %v9376_v16, 288  ;;  %v3001_v43 = vadd.f32 %v3000_v1, %v2999_v30  ;;  %v2803_v54 = vsel %vm2511_vm1, %v2263_v17, 0.0  ;;  %v2293_v59 = vmul.f32 %v14371_v45, %v187_v15  ;;  %v14372_v38 = vld [vmem:[#allocation158_spill] sm:$0xff]  ;;  %v3002_v4 = vsel %vm2511_vm1, %v2355_v58, 0.0  ;;  %v159_v56 = vld [vmem:[%s14071_s0 + $0x450] sm:$0xff] }
 0x375   :  { %v2324_v20 = vmul.f32 %v14372_v38, %v218_v12  ;;  %v2643_v11 = vadd.f32 %v2642_v3, %v9388_v6  ;;  %v2695_v30 = vsel %vm2511_vm1, %v2214_v37, 0.0  ;;  %v2694_v5 = vadd.f32 %v2693_v19, %v2692_v46  ;;  %v251_v17 = vld [vmem:[%s14071_s0 + $0x730] sm:$0xff]  ;;  %v110_v58 = vld [vmem:[%s14071_s0 + $0x2c8] sm:$0xff]  ;;  %v14374_v46 = vld [vmem:[#allocation161_spill] sm:$0xff] }
 0x376   :  { %v9481_v41 = vpop.permute.xlu1 %1648  ;;  %v9494_v7 = vpop.permute.xlu0 %1644  ;;  %v2934_v52 = vadd.f32 %v2933_v10, %v2932_v9  ;;  %v14373_v15 = vld [vmem:[#allocation103_spill] sm:$0xff]  ;;  %v2866_v37 = vsel %vm2511_vm1, %v2292_v48, 0.0  ;;  %v2325_v19 = vmul.f32 %v14374_v46, %v219_v50  ;;  %v2356_v12 = vmul.f32 %v8904_v36, %v250_v33  ;;  %v14376_v9 = vld [vmem:[#allocation72_spill] sm:$0xff]  ;;  %v188_v45 = vld [vmem:[%s14071_s0 + $0x538] sm:$0xff] }
 0x377   :  { %14369 = vst [vmem:[#allocation41_spill] sm:$0xff] %v9481_v41  ;;  %14370 = vst [vmem:[#allocation20_spill] sm:$0xff] %v9494_v7  ;;  %v2264_v6 = vmul.f32 %v14373_v15, %v158_v49  ;;  %v2215_v10 = vmul.f32 %v14376_v9, %v109_v63  ;;  %v2804_v3 = vadd.f32 %v2803_v54, %v2802_v29  ;;  %v14378_v49 = vld [vmem:[#allocation106_spill] sm:$0xff]  ;;  %v2868_v48 = vsel %vm2511_vm1, %v2293_v59, 0.0  ;;  %v14379_v29 = vld [vmem:[#allocation71_spill] sm:$0xff] }
 0x378   :  { %1892 = vbcast.lane.b32.xlu1 %v9376_v16, 312  ;;  %1888 = vbcast.lane.b32.xlu0 %v9376_v16, 304  ;;  %v2867_v38 = vadd.f32 %v2866_v37, %v2865_v62  ;;  %v3003_v41 = vadd.f32 %v3002_v4, %v3001_v43  ;;  %v2265_v15 = vmul.f32 %v14378_v49, %v159_v56  ;;  %v2935_v50 = vsel %vm2511_vm1, %v2324_v20, 0.0  ;;  %v189_v62 = vld [vmem:[%s14071_s0 + $0x540] sm:$0xff]  ;;  %v220_v43 = vld [vmem:[%s14071_s0 + $0x638] sm:$0xff]  ;;  %v14380_v20 = vld [vmem:[#allocation131_spill] sm:$0xff] }
 0x379   :  { %v2357_v36 = vmul.f32 %v8939_v8, %v251_v17  ;;  %v2644_v33 = vrot.slane %v2643_v11, 4  ;;  %v2216_v63 = vmul.f32 %v14379_v29, %v110_v58  ;;  %v2696_v54 = vadd.f32 %v2695_v30, %v2694_v5  ;;  %v112_v8 = vld [vmem:[%s14071_s0 + $0x2d8] sm:$0xff] }
 0x37a   :  { %v9520_v1 = vpop.permute.xlu1 %1656  ;;  %v9526_v7 = vpop.permute.xlu0 %1652  ;;  %v2936_v4 = vadd.f32 %v2935_v50, %v2934_v52  ;;  %v2805_v59 = vsel %vm2511_vm1, %v2264_v6, 0.0  ;;  %v2294_v56 = vmul.f32 %v14380_v20, %v188_v45  ;;  %v2937_v30 = vsel %vm2511_vm1, %v2325_v19, 0.0  ;;  %v160_v52 = vld [vmem:[%s14071_s0 + $0x458] sm:$0xff]  ;;  %v221_v6 = vld [vmem:[%s14071_s0 + $0x640] sm:$0xff]  ;;  %v14384_v50 = vld [vmem:[#allocation160_spill] sm:$0xff] }
 0x37b   :  { %14375 = vst [vmem:[#allocation51_spill] sm:$0xff] %v9520_v1  ;;  %14377 = vst [vmem:[#allocation31_spill] sm:$0xff] %v9526_v7  ;;  %v3004_v5 = vsel %vm2511_vm1, %v2356_v12, 0.0  ;;  %v2697_v58 = vsel %vm2511_vm1, %v2215_v10, 0.0  ;;  %v2806_v37 = vadd.f32 %v2805_v59, %v2804_v3  ;;  %v2869_v46 = vadd.f32 %v2868_v48, %v2867_v38  ;;  %v252_v19 = vld [vmem:[%s14071_s0 + $0x738] sm:$0xff]  ;;  %v14383_v10 = vld [vmem:[#allocation134_spill] sm:$0xff] }
 0x37c   :  { %1900 = vbcast.lane.b32.xlu1 %v9376_v16, 328  ;;  %1896 = vbcast.lane.b32.xlu0 %v9376_v16, 320  ;;  %v3005_v9 = vadd.f32 %v3004_v5, %v3003_v41  ;;  %v2807_v45 = vsel %vm2511_vm1, %v2265_v15, 0.0  ;;  %v2295_v49 = vmul.f32 %v14383_v10, %v189_v62  ;;  %v2326_v29 = vmul.f32 %v14384_v50, %v220_v43  ;;  %v14385_v59 = vld [vmem:[#allocation73_spill] sm:$0xff]  ;;  %v161_v41 = vld [vmem:[%s14071_s0 + $0x460] sm:$0xff]  ;;  %v14387_v43 = vld [vmem:[#allocation163_spill] sm:$0xff] }
 0x37d   :  { %v3006_v3 = vsel %vm2511_vm1, %v2357_v36, 0.0  ;;  %v9567_v38 = vadd.f32 %v2644_v33, %v2643_v11  ;;  %v2699_v48 = vsel %vm2511_vm1, %v2216_v63, 0.0  ;;  %v2218_v20 = vmul.f32 %v14385_v59, %v112_v8  ;;  %v253_v15 = vld [vmem:[%s14071_s0 + $0x740] sm:$0xff]  ;;  %v111_v11 = vld [vmem:[%s14071_s0 + $0x2d0] sm:$0xff]  ;;  %v14386_v33 = vld [vmem:[#allocation105_spill] sm:$0xff] }
 0x37e   :  { %v9548_v17 = vpop.permute.xlu1 %1667  ;;  %v9560_v12 = vpop.permute.xlu0 %1663  ;;  %v2938_v5 = vadd.f32 %v2937_v30, %v2936_v4  ;;  %v133_v36 = vld [vmem:[%s14071_s0 + $0x380] sm:$0xff]  ;;  %v2266_v63 = vmul.f32 %v14386_v33, %v160_v52  ;;  %v2870_v62 = vsel %vm2511_vm1, %v2294_v56, 0.0  ;;  %v2327_v4 = vmul.f32 %v14387_v43, %v221_v6  ;;  %v190_v59 = vld [vmem:[%s14071_s0 + $0x548] sm:$0xff]  ;;  %v14388_v7 = vld [vmem:[#allocation108_spill] sm:$0xff] }
 0x37f   :  { %14381 = vst [vmem:[#allocation44_spill] sm:$0xff] %v9548_v17  ;;  %14382 = vst [vmem:[#allocation54_spill] sm:$0xff] %v9560_v12  ;;  %v2358_v8 = vmul.f32 %v8934_v39, %v252_v19  ;;  %v2698_v10 = vadd.f32 %v2697_v58, %v2696_v54  ;;  %v2808_v50 = vadd.f32 %v2807_v45, %v2806_v37  ;;  %v2872_v56 = vsel %vm2511_vm1, %v2295_v49, 0.0  ;;  %v14389_v58 = vld [vmem:[#allocation74_spill] sm:$0xff]  ;;  %v14390_v19 = vld [vmem:[#allocation80_spill] sm:$0xff] }
 0x380   :  { %1908 = vbcast.lane.b32.xlu1 %v9376_v16, 344  ;;  %1904 = vbcast.lane.b32.xlu0 %v9376_v16, 336  ;;  %v2871_v17 = vadd.f32 %v2870_v62, %v2869_v46  ;;  %v3007_v12 = vadd.f32 %v3006_v3, %v3005_v9  ;;  %v2267_v52 = vmul.f32 %v14388_v7, %v161_v41  ;;  %v2939_v6 = vsel %vm2511_vm1, %v2326_v29, 0.0  ;;  %v191_v9 = vld [vmem:[%s14071_s0 + $0x550] sm:$0xff]  ;;  %v222_v7 = vld [vmem:[%s14071_s0 + $0x648] sm:$0xff]  ;;  %v14391_v49 = vld [vmem:[#allocation133_spill] sm:$0xff] }
 0x381   :  { %v2359_v39 = vmul.f32 %v8975_v13, %v253_v15  ;;  %v9601_v54 = vsel %vm2511_vm1, %v2218_v20, 0.0  ;;  %v2217_v37 = vmul.f32 %v14389_v58, %v111_v11  ;;  %v2239_v46 = vmul.f32 %v14390_v19, %v133_v36  ;;  %v162_v11 = vld [vmem:[%s14071_s0 + $0x468] sm:$0xff]  ;;  %v255_v19 = vld [vmem:[%s14071_s0 + $0x750] sm:$0xff] }
 0x382   :  { %v9588_v30 = vpop.permute.xlu1 %1675  ;;  %v9593_v1 = vpop.permute.xlu0 %1671  ;;  %v2940_v45 = vadd.f32 %v2939_v6, %v2938_v5  ;;  %v2809_v13 = vsel %vm2511_vm1, %v2266_v63, 0.0  ;;  %v2296_v29 = vmul.f32 %v14391_v49, %v190_v59  ;;  %v2941_v3 = vsel %vm2511_vm1, %v2327_v4, 0.0  ;;  %v223_v5 = vld [vmem:[%s14071_s0 + $0x650] sm:$0xff]  ;;  %v254_v63 = vld [vmem:[%s14071_s0 + $0x748] sm:$0xff] }
 0x383   :  { %v3008_v20 = vsel %vm2511_vm1, %v2358_v8, 0.0  ;;  %v2700_v15 = vadd.f32 %v2699_v48, %v2698_v10  ;;  %v2810_v36 = vadd.f32 %v2809_v13, %v2808_v50  ;;  %v2873_v33 = vadd.f32 %v2872_v56, %v2871_v17  ;;  %v134_v48 = vld [vmem:[%s14071_s0 + $0x388] sm:$0xff]  ;;  %v14394_v8 = vld [vmem:[#allocation136_spill] sm:$0xff]  ;;  %v14395_v17 = vld [vmem:[#allocation162_spill] sm:$0xff] }
 0x384   :  { %1916 = vbcast.lane.b32.xlu1 %v9376_v16, 360  ;;  %1912 = vbcast.lane.b32.xlu0 %v9376_v16, 352  ;;  %v3009_v62 = vadd.f32 %v3008_v20, %v3007_v12  ;;  %v2811_v4 = vsel %vm2511_vm1, %v2267_v52, 0.0  ;;  %v2297_v10 = vmul.f32 %v14394_v8, %v191_v9  ;;  %v2328_v50 = vmul.f32 %v14395_v17, %v222_v7  ;;  %v163_v6 = vld [vmem:[%s14071_s0 + $0x470] sm:$0xff] }
 0x385   :  { %v3010_v59 = vsel %vm2511_vm1, %v2359_v39, 0.0  ;;  %v2701_v56 = vsel %vm2511_vm1, %v2217_v37, 0.0  ;;  %v2750_v12 = vsel %vm2511_vm1, %v2239_v46, 0.0  ;;  %v9644_v58 = vrot.slane %v8739_v42, %v14356_v51  ;;  %v135_v39 = vld [vmem:[%s14071_s0 + $0x390] sm:$0xff]  ;;  %v14396_v37 = vld [vmem:[#allocation107_spill] sm:$0xff] }
 0x386   :  { %v9616_v41 = vpop.permute.xlu1 %1683  ;;  %v9627_v43 = vpop.permute.xlu0 %1679  ;;  %v2942_v52 = vadd.f32 %v2941_v3, %v2940_v45  ;;  %v2268_v46 = vmul.f32 %v14396_v37, %v162_v11  ;;  %v2874_v9 = vsel %vm2511_vm1, %v2296_v29, 0.0  ;;  %v2329_v7 = vmul.f32 %v8664_v44, %v223_v5  ;;  %v14398_v45 = vld [vmem:[#allocation79_spill] sm:$0xff]  ;;  %v14400_v11 = vld [vmem:[#allocation110_spill] sm:$0xff] }
 0x387   :  { %14392 = vst [vmem:[#allocation19_spill] sm:$0xff] %v9616_v41  ;;  %14393 = vst [vmem:[#allocation30_spill] sm:$0xff] %v9627_v43  ;;  %v2360_v51 = vmul.f32 %v8964_v31, %v254_v63  ;;  %v2240_v49 = vmul.f32 %v14398_v45, %v134_v48  ;;  %v2812_v3 = vadd.f32 %v2811_v4, %v2810_v36  ;;  %v2876_v29 = vsel %vm2511_vm1, %v2297_v10, 0.0  ;;  %v14401_v63 = vld [vmem:[#allocation82_spill] sm:$0xff] }
 0x388   :  { %1924 = vbcast.lane.b32.xlu1 %v9376_v16, 376  ;;  %1920 = vbcast.lane.b32.xlu0 %v9376_v16, 368  ;;  %v192_v16 = vld [vmem:[%s14071_s0 + $0x558] sm:$0xff]  ;;  %v2875_v20 = vadd.f32 %v2874_v9, %v2873_v33  ;;  %v3011_v8 = vadd.f32 %v3010_v59, %v3009_v62  ;;  %v2269_v37 = vmul.f32 %v14400_v11, %v163_v6  ;;  %v2943_v44 = vsel %vm2511_vm1, %v2328_v50, 0.0  ;;  %v193_v33 = vld [vmem:[%s14071_s0 + $0x560] sm:$0xff]  ;;  %v14406_v11 = vld [vmem:[#allocation75_spill] sm:$0xff] }
 0x389   :  { %v2361_v31 = vmul.f32 %v8992_v57, %v255_v19  ;;  %v9670_v5 = vadd.f32 %v2701_v56, %v2700_v15  ;;  %v2751_v36 = vadd.f32 %v2750_v12, %v9324_v0  ;;  %v2241_v48 = vmul.f32 %v14401_v63, %v135_v39  ;;  %v224_v62 = vld [vmem:[%s14071_s0 + $0x658] sm:$0xff]  ;;  %v114_v57 = vld [vmem:[%s14071_s0 + $0x2e8] sm:$0xff]  ;;  %v225_v39 = vld [vmem:[%s14071_s0 + $0x660] sm:$0xff] }
 0x38a   :  { %v9657_v13 = vpop.permute.xlu1 %1691  ;;  %v9663_v17 = vpop.permute.xlu0 %1687  ;;  %v2944_v4 = vadd.f32 %v2943_v44, %v2942_v52  ;;  %v2813_v15 = vsel %vm2511_vm1, %v2268_v46, 0.0  ;;  %v14402_v0 = vld [vmem:[#allocation135_spill] sm:$0xff]  ;;  %v2945_v50 = vsel %vm2511_vm1, %v2329_v7, 0.0  ;;  %v3012_v59 = vsel %vm2511_vm1, %v2360_v51, 0.0  ;;  %v164_v6 = vld [vmem:[%s14071_s0 + $0x478] sm:$0xff]  ;;  %v165_v63 = vld [vmem:[%s14071_s0 + $0x480] sm:$0xff] }
 0x38b   :  { %14397 = vst [vmem:[#allocation43_spill] sm:$0xff] %v9657_v13  ;;  %14399 = vst [vmem:[#allocation22_spill] sm:$0xff] %v9663_v17  ;;  %v2298_v10 = vmul.f32 %v14402_v0, %v192_v16  ;;  %v2752_v12 = vsel %vm2511_vm1, %v2240_v49, 0.0  ;;  %v2814_v52 = vadd.f32 %v2813_v15, %v2812_v3  ;;  %v2877_v19 = vadd.f32 %v2876_v29, %v2875_v20  ;;  %v256_v46 = vld [vmem:[%s14071_s0 + $0x758] sm:$0xff]  ;;  %v14405_v49 = vld [vmem:[#allocation138_spill] sm:$0xff] }
 0x38c   :  { %1935 = vbcast.lane.b32.xlu1 %v9644_v58, 264  ;;  %1931 = vbcast.lane.b32.xlu0 %v9644_v58, 256  ;;  %v3013_v9 = vadd.f32 %v3012_v59, %v3011_v8  ;;  %v136_v51 = vld [vmem:[%s14071_s0 + $0x398] sm:$0xff]  ;;  %v2815_v45 = vsel %vm2511_vm1, %v2269_v37, 0.0  ;;  %v2299_v3 = vmul.f32 %v14405_v49, %v193_v33  ;;  %v2330_v16 = vmul.f32 %v8659_v47, %v224_v62  ;;  %v257_v37 = vld [vmem:[%s14071_s0 + $0x760] sm:$0xff] }
 0x38d   :  { %v3014_v20 = vsel %vm2511_vm1, %v2361_v31, 0.0  ;;  %v2220_v29 = vmul.f32 %v14406_v11, %v114_v57  ;;  %v2753_v44 = vadd.f32 %v2752_v12, %v2751_v36  ;;  %v2754_v8 = vsel %vm2511_vm1, %v2241_v48, 0.0  ;;  %v113_v47 = vld [vmem:[%s14071_s0 + $0x2e0] sm:$0xff]  ;;  %v14407_v36 = vld [vmem:[#allocation109_spill] sm:$0xff]  ;;  %v194_v12 = vld [vmem:[%s14071_s0 + $0x568] sm:$0xff] }
 0x38e   :  { %v9688_v56 = vpop.permute.xlu1 %1699  ;;  %v9700_v7 = vpop.permute.xlu0 %1695  ;;  %v2946_v15 = vadd.f32 %v2945_v50, %v2944_v4  ;;  %v137_v31 = vld [vmem:[%s14071_s0 + $0x3a0] sm:$0xff]  ;;  %v2270_v48 = vmul.f32 %v14407_v36, %v164_v6  ;;  %v2878_v33 = vsel %vm2511_vm1, %v2298_v10, 0.0  ;;  %v2331_v62 = vmul.f32 %v8681_v22, %v225_v39  ;;  %v14409_v0 = vld [vmem:[#allocation81_spill] sm:$0xff]  ;;  %v14411_v6 = vld [vmem:[#allocation112_spill] sm:$0xff] }
 0x38f   :  { %14403 = vst [vmem:[#allocation53_spill] sm:$0xff] %v9688_v56  ;;  %14404 = vst [vmem:[#allocation33_spill] sm:$0xff] %v9700_v7  ;;  %v2362_v4 = vmul.f32 %v8988_v32, %v256_v46  ;;  %v2242_v50 = vmul.f32 %v14409_v0, %v136_v51  ;;  %v2816_v59 = vadd.f32 %v2815_v45, %v2814_v52  ;;  %v2880_v10 = vsel %vm2511_vm1, %v2299_v3, 0.0  ;;  %v14412_v39 = vld [vmem:[#allocation76_spill] sm:$0xff]  ;;  %v138_v0 = vld [vmem:[%s14071_s0 + $0x3a8] sm:$0xff] }
 0x390   :  { %1943 = vbcast.lane.b32.xlu1 %v9644_v58, 280  ;;  %1939 = vbcast.lane.b32.xlu0 %v9644_v58, 272  ;;  %v2879_v49 = vadd.f32 %v2878_v33, %v2877_v19  ;;  %v3015_v11 = vadd.f32 %v3014_v20, %v3013_v9  ;;  %v2271_v36 = vmul.f32 %v14411_v6, %v165_v63  ;;  %v2947_v22 = vsel %vm2511_vm1, %v2330_v16, 0.0  ;;  %v14413_v51 = vld [vmem:[#allocation84_spill] sm:$0xff]  ;;  %v226_v9 = vld [vmem:[%s14071_s0 + $0x668] sm:$0xff]  ;;  %v14414_v16 = vld [vmem:[#allocation137_spill] sm:$0xff] }
 0x391   :  { %v2363_v32 = vmul.f32 %v9027_v24, %v257_v37  ;;  %v9743_v52 = vmul.f32 %v14412_v39, %v113_v47  ;;  %v2755_v46 = vadd.f32 %v2754_v8, %v2753_v44  ;;  %v2243_v45 = vmul.f32 %v14413_v51, %v137_v31  ;;  %v195_v19 = vld [vmem:[%s14071_s0 + $0x570] sm:$0xff]  ;;  %v166_v47 = vld [vmem:[%s14071_s0 + $0x488] sm:$0xff] }
 0x392   :  { %v9729_v57 = vpop.permute.xlu1 %1707  ;;  %v9735_v56 = vpop.permute.xlu0 %1703  ;;  %v2948_v3 = vadd.f32 %v2947_v22, %v2946_v15  ;;  %v2817_v24 = vsel %vm2511_vm1, %v2270_v48, 0.0  ;;  %v2300_v20 = vmul.f32 %v14414_v16, %v194_v12  ;;  %v2949_v63 = vsel %vm2511_vm1, %v2331_v62, 0.0  ;;  %v227_v48 = vld [vmem:[%s14071_s0 + $0x670] sm:$0xff]  ;;  %v258_v33 = vld [vmem:[%s14071_s0 + $0x768] sm:$0xff] }
 0x393   :  { %14408 = vst [vmem:[#allocation46_spill] sm:$0xff] %v9729_v57  ;;  %14410 = vst [vmem:[#allocation56_spill] sm:$0xff] %v9735_v56  ;;  %v3016_v44 = vsel %vm2511_vm1, %v2362_v4, 0.0  ;;  %v2756_v37 = vsel %vm2511_vm1, %v2242_v50, 0.0  ;;  %v2818_v31 = vadd.f32 %v2817_v24, %v2816_v59  ;;  %v2881_v15 = vadd.f32 %v2880_v10, %v2879_v49  ;;  %v14417_v12 = vld [vmem:[#allocation140_spill] sm:$0xff] }
 0x394   :  { %1951 = vbcast.lane.b32.xlu1 %v9644_v58, 296  ;;  %1947 = vbcast.lane.b32.xlu0 %v9644_v58, 288  ;;  %v3017_v62 = vadd.f32 %v3016_v44, %v3015_v11  ;;  %v2819_v50 = vsel %vm2511_vm1, %v2271_v36, 0.0  ;;  %v2301_v59 = vmul.f32 %v14417_v12, %v195_v19  ;;  %v2332_v49 = vmul.f32 %v8673_v26, %v226_v9  ;;  %v167_v39 = vld [vmem:[%s14071_s0 + $0x490] sm:$0xff] }
 0x395   :  { %v3018_v6 = vsel %vm2511_vm1, %v2363_v32, 0.0  ;;  %v9780_v10 = vsel %vm2511_vm1, %v2220_v29, 0.0  ;;  %v2757_v11 = vadd.f32 %v2756_v37, %v2755_v46  ;;  %v2758_v22 = vsel %vm2511_vm1, %v2243_v45, 0.0  ;;  %v259_v36 = vld [vmem:[%s14071_s0 + $0x770] sm:$0xff]  ;;  %v14418_v29 = vld [vmem:[#allocation111_spill] sm:$0xff] }
 0x396   :  { %v9757_v8 = vpop.permute.xlu1 %1715  ;;  %v9769_v4 = vpop.permute.xlu0 %1711  ;;  %v2950_v51 = vadd.f32 %v2949_v63, %v2948_v3  ;;  %v139_v26 = vld [vmem:[%s14071_s0 + $0x3b0] sm:$0xff]  ;;  %v2272_v32 = vmul.f32 %v14418_v29, %v166_v47  ;;  %v2882_v46 = vsel %vm2511_vm1, %v2300_v20, 0.0  ;;  %v2333_v45 = vmul.f32 %v8697_v61, %v227_v48  ;;  %v14420_v3 = vld [vmem:[#allocation83_spill] sm:$0xff]  ;;  %v196_v63 = vld [vmem:[%s14071_s0 + $0x578] sm:$0xff] }
 0x397   :  { %14415 = vst [vmem:[#allocation21_spill] sm:$0xff] %v9757_v8  ;;  %14416 = vst [vmem:[#allocation32_spill] sm:$0xff] %v9769_v4  ;;  %v2364_v19 = vmul.f32 %v9017_v2, %v258_v33  ;;  %v2244_v24 = vmul.f32 %v14420_v3, %v138_v0  ;;  %v2820_v16 = vadd.f32 %v2819_v50, %v2818_v31  ;;  %v14422_v47 = vld [vmem:[#allocation114_spill] sm:$0xff]  ;;  %v2884_v20 = vsel %vm2511_vm1, %v2301_v59, 0.0  ;;  %v14424_v59 = vld [vmem:[#allocation139_spill] sm:$0xff] }
 0x398   :  { %1959 = vbcast.lane.b32.xlu1 %v9644_v58, 312  ;;  %1955 = vbcast.lane.b32.xlu0 %v9644_v58, 304  ;;  %v2883_v44 = vadd.f32 %v2882_v46, %v2881_v15  ;;  %v3019_v37 = vadd.f32 %v3018_v6, %v3017_v62  ;;  %v2273_v29 = vmul.f32 %v14422_v47, %v167_v39  ;;  %v2951_v61 = vsel %vm2511_vm1, %v2332_v49, 0.0  ;;  %v14423_v33 = vld [vmem:[#allocation86_spill] sm:$0xff]  ;;  %v228_v62 = vld [vmem:[%s14071_s0 + $0x678] sm:$0xff] }
 0x399   :  { %v2365_v2 = vmul.f32 %v9044_v55, %v259_v36  ;;  %v2704_v31 = vadd.f32 %v9601_v54, %v9670_v5  ;;  %v2759_v48 = vadd.f32 %v2758_v22, %v2757_v11  ;;  %v2245_v0 = vmul.f32 %v14423_v33, %v139_v26  ;;  %v197_v15 = vld [vmem:[%s14071_s0 + $0x580] sm:$0xff]  ;;  %v168_v22 = vld [vmem:[%s14071_s0 + $0x498] sm:$0xff] }
 0x39a   :  { %v9797_v9 = vpop.permute.xlu1 %1723  ;;  %v9803_v12 = vpop.permute.xlu0 %1719  ;;  %v2952_v50 = vadd.f32 %v2951_v61, %v2950_v51  ;;  %v2821_v55 = vsel %vm2511_vm1, %v2272_v32, 0.0  ;;  %v2302_v49 = vmul.f32 %v14424_v59, %v196_v63  ;;  %v2953_v54 = vsel %vm2511_vm1, %v2333_v45, 0.0  ;;  %v229_v36 = vld [vmem:[%s14071_s0 + $0x680] sm:$0xff]  ;;  %v260_v26 = vld [vmem:[%s14071_s0 + $0x778] sm:$0xff]  ;;  %v198_v59 = vld [vmem:[%s14071_s0 + $0x588] sm:$0xff] }
 0x39b   :  { %14419 = vst [vmem:[#allocation45_spill] sm:$0xff] %v9797_v9  ;;  %14421 = vst [vmem:[#allocation24_spill] sm:$0xff] %v9803_v12  ;;  %v3020_v5 = vsel %vm2511_vm1, %v2364_v19, 0.0  ;;  %v2760_v11 = vsel %vm2511_vm1, %v2244_v24, 0.0  ;;  %v2822_v39 = vadd.f32 %v2821_v55, %v2820_v16  ;;  %v2885_v51 = vadd.f32 %v2884_v20, %v2883_v44  ;;  %v140_v45 = vld [vmem:[%s14071_s0 + $0x3b8] sm:$0xff]  ;;  %v14425_v3 = vld [vmem:[#allocation142_spill] sm:$0xff] }
 0x39c   :  { %1967 = vbcast.lane.b32.xlu1 %v9644_v58, 328  ;;  %1963 = vbcast.lane.b32.xlu0 %v9644_v58, 320  ;;  %v3021_v32 = vadd.f32 %v3020_v5, %v3019_v37  ;;  %v2823_v19 = vsel %vm2511_vm1, %v2273_v29, 0.0  ;;  %v2303_v24 = vmul.f32 %v14425_v3, %v197_v15  ;;  %v2334_v16 = vmul.f32 %v8692_v23, %v228_v62  ;;  %v169_v20 = vld [vmem:[%s14071_s0 + $0x4a0] sm:$0xff]  ;;  %v14427_v62 = vld [vmem:[#allocation85_spill] sm:$0xff] }
 0x39d   :  { %v3022_v63 = vsel %vm2511_vm1, %v2365_v2, 0.0  ;;  %v2705_v44 = vsel %vm2511_vm1, %v9743_v52, 0.0  ;;  %v2761_v37 = vadd.f32 %v2760_v11, %v2759_v48  ;;  %v2762_v47 = vsel %vm2511_vm1, %v2245_v0, 0.0  ;;  %v261_v29 = vld [vmem:[%s14071_s0 + $0x780] sm:$0xff]  ;;  %v14426_v2 = vld [vmem:[#allocation113_spill] sm:$0xff] }
 0x39e   :  { %v9824_v6 = vpop.permute.xlu1 %1734  ;;  %v9836_v46 = vpop.permute.xlu0 %1730  ;;  %v2954_v61 = vadd.f32 %v2953_v54, %v2952_v50  ;;  %v141_v23 = vld [vmem:[%s14071_s0 + $0x3c0] sm:$0xff]  ;;  %v2274_v52 = vmul.f32 %v14426_v2, %v168_v22  ;;  %v2886_v48 = vsel %vm2511_vm1, %v2302_v49, 0.0  ;;  %v2335_v33 = vmul.f32 %v8713_v53, %v229_v36  ;;  %v14428_v22 = vld [vmem:[#allocation116_spill] sm:$0xff] }
 0x39f   :  { %v2366_v0 = vmul.f32 %v9040_v25, %v260_v26  ;;  %v2246_v50 = vmul.f32 %v14427_v62, %v140_v45  ;;  %v2824_v55 = vadd.f32 %v2823_v19, %v2822_v39  ;;  %v2887_v54 = vadd.f32 %v2886_v48, %v2885_v51  ;;  %v14429_v26 = vld [vmem:[#allocation88_spill] sm:$0xff]  ;;  %v142_v48 = vld [vmem:[%s14071_s0 + $0x3c8] sm:$0xff] }
 0x3a0   :  { %1975 = vbcast.lane.b32.xlu1 %v9644_v58, 344  ;;  %1971 = vbcast.lane.b32.xlu0 %v9644_v58, 336  ;;  %v3023_v5 = vadd.f32 %v3022_v63, %v3021_v32  ;;  %v2275_v3 = vmul.f32 %v14428_v22, %v169_v20  ;;  %v2888_v49 = vsel %vm2511_vm1, %v2303_v24, 0.0  ;;  %v2955_v53 = vsel %vm2511_vm1, %v2334_v16, 0.0  ;;  %v199_v51 = vld [vmem:[%s14071_s0 + $0x590] sm:$0xff]  ;;  %v230_v32 = vld [vmem:[%s14071_s0 + $0x688] sm:$0xff] }
 0x3a1   :  { %v2367_v25 = vmul.f32 %v9079_v35, %v261_v29  ;;  %v9876_v36 = vadd.f32 %v2705_v44, %v2704_v31  ;;  %v2763_v39 = vadd.f32 %v2762_v47, %v2761_v37  ;;  %v2247_v45 = vmul.f32 %v14429_v26, %v141_v23  ;;  %v14430_v24 = vld [vmem:[#allocation141_spill] sm:$0xff]  ;;  %v170_v47 = vld [vmem:[%s14071_s0 + $0x4a8] sm:$0xff]  ;;  %v231_v29 = vld [vmem:[%s14071_s0 + $0x690] sm:$0xff] }
 0x3a2   :  { %v9863_v15 = vpop.permute.xlu1 %1742  ;;  %v9869_v11 = vpop.permute.xlu0 %1738  ;;  %v2956_v19 = vadd.f32 %v2955_v53, %v2954_v61  ;;  %v2825_v35 = vsel %vm2511_vm1, %v2274_v52, 0.0  ;;  %v2304_v16 = vmul.f32 %v14430_v24, %v198_v59  ;;  %v2957_v31 = vsel %vm2511_vm1, %v2335_v33, 0.0  ;;  %v262_v23 = vld [vmem:[%s14071_s0 + $0x788] sm:$0xff]  ;;  %v263_v26 = vld [vmem:[%s14071_s0 + $0x790] sm:$0xff] }
 0x3a3   :  { %v3024_v63 = vsel %vm2511_vm1, %v2366_v0, 0.0  ;;  %v2764_v37 = vsel %vm2511_vm1, %v2246_v50, 0.0  ;;  %v2826_v20 = vadd.f32 %v2825_v35, %v2824_v55  ;;  %v2889_v61 = vadd.f32 %v2888_v49, %v2887_v54  ;;  %v14431_v0 = vld [vmem:[#allocation144_spill] sm:$0xff]  ;;  %v14436_v35 = vld [vmem:[#allocation10_spill] sm:$0xff] }
 0x3a4   :  { %1983 = vbcast.lane.b32.xlu1 %v9644_v58, 360  ;;  %1979 = vbcast.lane.b32.xlu0 %v9644_v58, 352  ;;  %v3025_v2 = vadd.f32 %v3024_v63, %v3023_v5  ;;  %v2827_v33 = vsel %vm2511_vm1, %v2275_v3, 0.0  ;;  %v2305_v62 = vmul.f32 %v14431_v0, %v199_v51  ;;  %v14432_v50 = vld [vmem:[#allocation164_spill] sm:$0xff]  ;;  %v3026_v59 = vsel %vm2511_vm1, %v2367_v25, 0.0  ;;  %v116_v25 = vld [vmem:[%s14071_s0 + $0x2f8] sm:$0xff] }
 0x3a5   :  { %v2336_v55 = vmul.f32 %v14432_v50, %v230_v32  ;;  %v2765_v54 = vadd.f32 %v2764_v37, %v2763_v39  ;;  %v2766_v22 = vsel %vm2511_vm1, %v2247_v45, 0.0  ;;  %v171_v5 = vld [vmem:[%s14071_s0 + $0x4b0] sm:$0xff]  ;;  %v2958_v3 = vadd.f32 %v2957_v31, %v2956_v19  ;;  %v14434_v45 = vld [vmem:[#allocation115_spill] sm:$0xff]  ;;  %v14435_v32 = vld [vmem:[#allocation166_spill] sm:$0xff] }
 0x3a6   :  { %v9890_v44 = vpop.permute.xlu1 %1750  ;;  %v9902_v52 = vpop.permute.xlu0 %1746  ;;  %v14433_v49 = vld [vmem:[#allocation12_spill] sm:$0xff]  ;;  %v2276_v51 = vmul.f32 %v14434_v45, %v170_v47  ;;  %v2337_v19 = vmul.f32 %v14435_v32, %v231_v29  ;;  %v2368_v24 = vmul.f32 %v14436_v35, %v262_v23  ;;  %v14437_v63 = vld [vmem:[#allocation87_spill] sm:$0xff]  ;;  %v2828_v37 = vadd.f32 %v2827_v33, %v2826_v20  ;;  %v200_v0 = vld [vmem:[%s14071_s0 + $0x598] sm:$0xff] }
 0x3a7   :  { %v9918_v53 = vrot.slane %v8609_v21, %v14433_v49  ;;  %v143_v39 = vld [vmem:[%s14071_s0 + $0x3d0] sm:$0xff]  ;;  %v2890_v21 = vsel %vm2511_vm1, %v2304_v16, 0.0  ;;  %v3027_v9 = vadd.f32 %v3026_v59, %v3025_v2  ;;  %v14438_v47 = vld [vmem:[#allocation118_spill] sm:$0xff]  ;;  %v2892_v16 = vsel %vm2511_vm1, %v2305_v62, 0.0  ;;  %v232_v2 = vld [vmem:[%s14071_s0 + $0x698] sm:$0xff] }
 0x3a8   :  { %1991 = vbcast.lane.b32.xlu1 %v9644_v58, 376  ;;  %1987 = vbcast.lane.b32.xlu0 %v9644_v58, 368  ;;  %v2248_v58 = vmul.f32 %v14437_v63, %v142_v48  ;;  %v2891_v50 = vadd.f32 %v2890_v21, %v2889_v61  ;;  %v2277_v45 = vmul.f32 %v14438_v47, %v171_v5  ;;  %v2959_v29 = vsel %vm2511_vm1, %v2336_v55, 0.0  ;;  %v14439_v48 = vld [vmem:[#allocation77_spill] sm:$0xff]  ;;  %v14440_v32 = vld [vmem:[#allocation90_spill] sm:$0xff]  ;;  %v14441_v59 = vld [vmem:[#allocation143_spill] sm:$0xff] }
 0x3a9   :  { %v2369_v23 = vmul.f32 %v9096_v18, %v263_v26  ;;  %v2222_v20 = vmul.f32 %v14439_v48, %v116_v25  ;;  %v2767_v33 = vadd.f32 %v2766_v22, %v2765_v54  ;;  %v2249_v35 = vmul.f32 %v14440_v32, %v143_v39  ;;  %v201_v61 = vld [vmem:[%s14071_s0 + $0x5a0] sm:$0xff]  ;;  %v115_v18 = vld [vmem:[%s14071_s0 + $0x2f0] sm:$0xff] }
 0x3aa   :  { %v9934_v31 = vpop.permute.xlu1 %1758  ;;  %v9940_v12 = vpop.permute.xlu0 %1754  ;;  %v2960_v62 = vadd.f32 %v2959_v29, %v2958_v3  ;;  %v2829_v55 = vsel %vm2511_vm1, %v2276_v51, 0.0  ;;  %v2306_v54 = vmul.f32 %v14441_v59, %v200_v0  ;;  %v2961_v22 = vsel %vm2511_vm1, %v2337_v19, 0.0  ;;  %v172_v3 = vld [vmem:[%s14071_s0 + $0x4b8] sm:$0xff]  ;;  %v233_v51 = vld [vmem:[%s14071_s0 + $0x6a0] sm:$0xff] }
 0x3ab   :  { %v3028_v5 = vsel %vm2511_vm1, %v2368_v24, 0.0  ;;  %v2768_v25 = vsel %vm2511_vm1, %v2248_v58, 0.0  ;;  %v2830_v39 = vadd.f32 %v2829_v55, %v2828_v37  ;;  %v2893_v21 = vadd.f32 %v2892_v16, %v2891_v50  ;;  %v264_v19 = vld [vmem:[%s14071_s0 + $0x798] sm:$0xff]  ;;  %v14442_v47 = vld [vmem:[#allocation146_spill] sm:$0xff] }
 0x3ac   :  { %2002 = vbcast.lane.b32.xlu1 %v9918_v53, 264  ;;  %1998 = vbcast.lane.b32.xlu0 %v9918_v53, 256  ;;  %v3029_v63 = vadd.f32 %v3028_v5, %v3027_v9  ;;  %v144_v58 = vld [vmem:[%s14071_s0 + $0x3d8] sm:$0xff]  ;;  %v2831_v0 = vsel %vm2511_vm1, %v2277_v45, 0.0  ;;  %v2307_v37 = vmul.f32 %v14442_v47, %v201_v61  ;;  %v3030_v29 = vsel %vm2511_vm1, %v2369_v23, 0.0  ;;  %v14444_v48 = vld [vmem:[#allocation78_spill] sm:$0xff] }
 0x3ad   :  { %v14443_v50 = vld [vmem:[#allocation165_spill] sm:$0xff]  ;;  %v9986_v32 = vmul.f32 %v14444_v48, %v115_v18  ;;  %v2769_v9 = vadd.f32 %v2768_v25, %v2767_v33  ;;  %v2770_v55 = vsel %vm2511_vm1, %v2249_v35, 0.0  ;;  %v173_v59 = vld [vmem:[%s14071_s0 + $0x4c0] sm:$0xff]  ;;  %v2962_v5 = vadd.f32 %v2961_v22, %v2960_v62  ;;  %v14446_v35 = vld [vmem:[#allocation168_spill] sm:$0xff] }
 0x3ae   :  { %v9963_v26 = vpop.permute.xlu1 %1766  ;;  %v9975_v24 = vpop.permute.xlu0 %1762  ;;  %v2338_v16 = vmul.f32 %v14443_v50, %v232_v2  ;;  %v265_v45 = vld [vmem:[%s14071_s0 + $0x7a0] sm:$0xff]  ;;  %v14445_v61 = vld [vmem:[#allocation117_spill] sm:$0xff]  ;;  %v2894_v33 = vsel %vm2511_vm1, %v2306_v54, 0.0  ;;  %v2339_v18 = vmul.f32 %v14446_v35, %v233_v51  ;;  %v2370_v25 = vmul.f32 %v9092_v34, %v264_v19  ;;  %v202_v48 = vld [vmem:[%s14071_s0 + $0x5a8] sm:$0xff] }
 0x3af   :  { %v145_v23 = vld [vmem:[%s14071_s0 + $0x3e0] sm:$0xff]  ;;  %v2278_v2 = vmul.f32 %v14445_v61, %v172_v3  ;;  %v14447_v62 = vld [vmem:[#allocation89_spill] sm:$0xff]  ;;  %v2832_v50 = vadd.f32 %v2831_v0, %v2830_v39  ;;  %v2895_v8 = vadd.f32 %v2894_v33, %v2893_v21  ;;  %v3031_v4 = vadd.f32 %v3030_v29, %v3029_v63  ;;  %v14448_v3 = vld [vmem:[#allocation120_spill] sm:$0xff] }
 0x3b0   :  { %2010 = vbcast.lane.b32.xlu1 %v9918_v53, 280  ;;  %2006 = vbcast.lane.b32.xlu0 %v9918_v53, 272  ;;  %v2250_v22 = vmul.f32 %v14447_v62, %v144_v58  ;;  %v2279_v61 = vmul.f32 %v14448_v3, %v173_v59  ;;  %v2896_v54 = vsel %vm2511_vm1, %v2307_v37, 0.0  ;;  %v2963_v51 = vsel %vm2511_vm1, %v2338_v16, 0.0  ;;  %v14449_v34 = vld [vmem:[#allocation48_spill] sm:$0xff]  ;;  %v234_v63 = vld [vmem:[%s14071_s0 + $0x6a8] sm:$0xff] }
 0x3b1   :  { %v2371_v19 = vmul.f32 %v14449_v34, %v265_v45  ;;  %v10017_v39 = vsel %vm2511_vm1, %v2222_v20, 0.0  ;;  %v2771_v58 = vadd.f32 %v2770_v55, %v2769_v9  ;;  %v14450_v0 = vld [vmem:[#allocation92_spill] sm:$0xff]  ;;  %v2964_v37 = vadd.f32 %v2963_v51, %v2962_v5  ;;  %v14451_v29 = vld [vmem:[#allocation145_spill] sm:$0xff] }
 0x3b2   :  { %v10003_v47 = vpop.permute.xlu1 %1774  ;;  %v10009_v57 = vpop.permute.xlu0 %1770  ;;  %v2251_v35 = vmul.f32 %v14450_v0, %v145_v23  ;;  %v203_v21 = vld [vmem:[%s14071_s0 + $0x5b0] sm:$0xff]  ;;  %v2833_v16 = vsel %vm2511_vm1, %v2278_v2, 0.0  ;;  %v2308_v59 = vmul.f32 %v14451_v29, %v202_v48  ;;  %v2965_v20 = vsel %vm2511_vm1, %v2339_v18, 0.0  ;;  %v174_v23 = vld [vmem:[%s14071_s0 + $0x4c8] sm:$0xff] }
 0x3b3   :  { %v3032_v9 = vsel %vm2511_vm1, %v2370_v25, 0.0  ;;  %v2772_v45 = vsel %vm2511_vm1, %v2250_v22, 0.0  ;;  %v2834_v33 = vadd.f32 %v2833_v16, %v2832_v50  ;;  %v2897_v5 = vadd.f32 %v2896_v54, %v2895_v8  ;;  %v235_v2 = vld [vmem:[%s14071_s0 + $0x6b0] sm:$0xff]  ;;  %v266_v18 = vld [vmem:[%s14071_s0 + $0x7a8] sm:$0xff] }
 0x3b4   :  { %2018 = vbcast.lane.b32.xlu1 %v9918_v53, 296  ;;  %2014 = vbcast.lane.b32.xlu0 %v9918_v53, 288  ;;  %v3033_v62 = vadd.f32 %v3032_v9, %v3031_v4  ;;  %v146_v22 = vld [vmem:[%s14071_s0 + $0x3e8] sm:$0xff]  ;;  %v2835_v48 = vsel %vm2511_vm1, %v2279_v61, 0.0  ;;  %v14452_v3 = vld [vmem:[#allocation148_spill] sm:$0xff]  ;;  %v3034_v51 = vsel %vm2511_vm1, %v2371_v19, 0.0  ;;  %v2708_v34 = vadd.f32 %v9780_v10, %v9876_v36 }
 0x3b5   :  { %v2309_v50 = vmul.f32 %v14452_v3, %v203_v21  ;;  %v14453_v8 = vld [vmem:[#allocation167_spill] sm:$0xff]  ;;  %v2773_v4 = vadd.f32 %v2772_v45, %v2771_v58  ;;  %v2774_v0 = vsel %vm2511_vm1, %v2251_v35, 0.0  ;;  %v175_v16 = vld [vmem:[%s14071_s0 + $0x4d0] sm:$0xff]  ;;  %v2966_v29 = vadd.f32 %v2965_v20, %v2964_v37  ;;  %v14455_v58 = vld [vmem:[#allocation170_spill] sm:$0xff] }
 0x3b6   :  { %v10031_v55 = vpop.permute.xlu1 %1782  ;;  %v10043_v25 = vpop.permute.xlu0 %1778  ;;  %v2340_v54 = vmul.f32 %v14453_v8, %v234_v63  ;;  %v267_v61 = vld [vmem:[%s14071_s0 + $0x7b0] sm:$0xff]  ;;  %v14454_v21 = vld [vmem:[#allocation119_spill] sm:$0xff]  ;;  %v2898_v36 = vsel %vm2511_vm1, %v2308_v59, 0.0  ;;  %v2341_v35 = vmul.f32 %v14455_v58, %v235_v2  ;;  %v14456_v63 = vld [vmem:[#allocation13_spill] sm:$0xff]  ;;  %v2836_v3 = vadd.f32 %v2835_v48, %v2834_v33 }
 0x3b7   :  { %v147_v19 = vld [vmem:[%s14071_s0 + $0x3f0] sm:$0xff]  ;;  %v2280_v10 = vmul.f32 %v14454_v21, %v174_v23  ;;  %v2372_v9 = vmul.f32 %v14456_v63, %v266_v18  ;;  %v14457_v37 = vld [vmem:[#allocation91_spill] sm:$0xff]  ;;  %v204_v8 = vld [vmem:[%s14071_s0 + $0x5b8] sm:$0xff]  ;;  %v2899_v56 = vadd.f32 %v2898_v36, %v2897_v5  ;;  %v3035_v7 = vadd.f32 %v3034_v51, %v3033_v62 }
 0x3b8   :  { %2026 = vbcast.lane.b32.xlu1 %v9918_v53, 312  ;;  %2022 = vbcast.lane.b32.xlu0 %v9918_v53, 304  ;;  %v2252_v20 = vmul.f32 %v14457_v37, %v146_v22  ;;  %v14458_v23 = vld [vmem:[#allocation122_spill] sm:$0xff]  ;;  %v2900_v59 = vsel %vm2511_vm1, %v2309_v50, 0.0  ;;  %v2967_v2 = vsel %vm2511_vm1, %v2340_v54, 0.0  ;;  %v2373_v18 = vmul.f32 %v9152_v14, %v267_v61  ;;  %v236_v62 = vld [vmem:[%s14071_s0 + $0x6b8] sm:$0xff] }
 0x3b9   :  { %v2281_v21 = vmul.f32 %v14458_v23, %v175_v16  ;;  %v2709_v33 = vsel %vm2511_vm1, %v9986_v32, 0.0  ;;  %v2775_v22 = vadd.f32 %v2774_v0, %v2773_v4  ;;  %v14459_v48 = vld [vmem:[#allocation94_spill] sm:$0xff]  ;;  %v2968_v50 = vadd.f32 %v2967_v2, %v2966_v29  ;;  %v14460_v54 = vld [vmem:[#allocation147_spill] sm:$0xff]  ;;  %v176_v61 = vld [vmem:[%s14071_s0 + $0x4d8] sm:$0xff] }
 0x3ba   :  { %v10070_v45 = vpop.permute.xlu1 %1790  ;;  %v10076_v13 = vpop.permute.xlu0 %1786  ;;  %v2253_v58 = vmul.f32 %v14459_v48, %v147_v19  ;;  %v205_v5 = vld [vmem:[%s14071_s0 + $0x5c0] sm:$0xff]  ;;  %v2837_v14 = vsel %vm2511_vm1, %v2280_v10, 0.0  ;;  %v2310_v51 = vmul.f32 %v14460_v54, %v204_v8  ;;  %v2969_v32 = vsel %vm2511_vm1, %v2341_v35, 0.0  ;;  %v268_v36 = vld [vmem:[%s14071_s0 + $0x7b8] sm:$0xff]  ;;  %v14464_v54 = vld [vmem:[#allocation172_spill] sm:$0xff] }
 0x3bb   :  { %v3036_v4 = vsel %vm2511_vm1, %v2372_v9, 0.0  ;;  %v2776_v16 = vsel %vm2511_vm1, %v2252_v20, 0.0  ;;  %v2838_v19 = vadd.f32 %v2837_v14, %v2836_v3  ;;  %v2901_v29 = vadd.f32 %v2900_v59, %v2899_v56  ;;  %v237_v10 = vld [vmem:[%s14071_s0 + $0x6c0] sm:$0xff]  ;;  %v148_v9 = vld [vmem:[%s14071_s0 + $0x3f8] sm:$0xff] }
 0x3bc   :  { %2034 = vbcast.lane.b32.xlu1 %v9918_v53, 328  ;;  %2030 = vbcast.lane.b32.xlu0 %v9918_v53, 320  ;;  %v3037_v35 = vadd.f32 %v3036_v4, %v3035_v7  ;;  %v2839_v37 = vsel %vm2511_vm1, %v2281_v21, 0.0  ;;  %v14461_v20 = vld [vmem:[#allocation150_spill] sm:$0xff]  ;;  %v14462_v56 = vld [vmem:[#allocation169_spill] sm:$0xff]  ;;  %v3038_v23 = vsel %vm2511_vm1, %v2373_v18, 0.0  ;;  %v2710_v59 = vadd.f32 %v2709_v33, %v2708_v34 }
 0x3bd   :  { %v2311_v3 = vmul.f32 %v14461_v20, %v205_v5  ;;  %v2342_v8 = vmul.f32 %v14462_v56, %v236_v62  ;;  %v2777_v2 = vadd.f32 %v2776_v16, %v2775_v22  ;;  %v2778_v7 = vsel %vm2511_vm1, %v2253_v58, 0.0  ;;  %v177_v48 = vld [vmem:[%s14071_s0 + $0x4e0] sm:$0xff]  ;;  %v14463_v5 = vld [vmem:[#allocation121_spill] sm:$0xff] }
 0x3be   :  { %v10097_v0 = vpop.permute.xlu1 %1801  ;;  %v10109_v63 = vpop.permute.xlu0 %1797  ;;  %v2970_v14 = vadd.f32 %v2969_v32, %v2968_v50  ;;  %v269_v21 = vld [vmem:[%s14071_s0 + $0x7c0] sm:$0xff]  ;;  %v2282_v62 = vmul.f32 %v14463_v5, %v176_v61  ;;  %v2902_v18 = vsel %vm2511_vm1, %v2310_v51, 0.0  ;;  %v2343_v34 = vmul.f32 %v14464_v54, %v237_v10  ;;  %v14466_v4 = vld [vmem:[#allocation93_spill] sm:$0xff]  ;;  %v206_v50 = vld [vmem:[%s14071_s0 + $0x5c8] sm:$0xff] }
 0x3bf   :  { %v14465_v33 = vld [vmem:[#allocation14_spill] sm:$0xff]  ;;  %v2254_v16 = vmul.f32 %v14466_v4, %v148_v9  ;;  %v2840_v20 = vadd.f32 %v2839_v37, %v2838_v19  ;;  %v2903_v32 = vadd.f32 %v2902_v18, %v2901_v29  ;;  %v3039_v56 = vadd.f32 %v3038_v23, %v3037_v35  ;;  %v14467_v61 = vld [vmem:[#allocation124_spill] sm:$0xff]  ;;  %v238_v35 = vld [vmem:[%s14071_s0 + $0x6c8] sm:$0xff] }
 0x3c0   :  { %2042 = vbcast.lane.b32.xlu1 %v9918_v53, 344  ;;  %2038 = vbcast.lane.b32.xlu0 %v9918_v53, 336  ;;  %v2374_v22 = vmul.f32 %v14465_v33, %v268_v36  ;;  %v2283_v5 = vmul.f32 %v14467_v61, %v177_v48  ;;  %v2904_v51 = vsel %vm2511_vm1, %v2311_v3, 0.0  ;;  %v2971_v10 = vsel %vm2511_vm1, %v2342_v8, 0.0  ;;  %v14468_v36 = vld [vmem:[#allocation38_spill] sm:$0xff]  ;;  %v207_v29 = vld [vmem:[%s14071_s0 + $0x5d0] sm:$0xff] }
 0x3c1   :  { %v2375_v54 = vmul.f32 %v14468_v36, %v269_v21  ;;  %v2646_v19 = vrot.slane %v9567_v38, 2  ;;  %v2712_v9 = vadd.f32 %v10017_v39, %v2710_v59  ;;  %v2779_v37 = vadd.f32 %v2778_v7, %v2777_v2  ;;  %v14469_v23 = vld [vmem:[#allocation149_spill] sm:$0xff]  ;;  %v178_v7 = vld [vmem:[%s14071_s0 + $0x4e8] sm:$0xff]  ;;  %v179_v36 = vld [vmem:[%s14071_s0 + $0x4f0] sm:$0xff] }
 0x3c2   :  { %v10131_v58 = vpop.permute.xlu1 %1809  ;;  %v10137_v17 = vpop.permute.xlu0 %1805  ;;  %v2972_v3 = vadd.f32 %v2971_v10, %v2970_v14  ;;  %v2841_v8 = vsel %vm2511_vm1, %v2282_v62, 0.0  ;;  %v2312_v48 = vmul.f32 %v14469_v23, %v206_v50  ;;  %v2973_v21 = vsel %vm2511_vm1, %v2343_v34, 0.0  ;;  %v239_v62 = vld [vmem:[%s14071_s0 + $0x6d0] sm:$0xff]  ;;  %v270_v34 = vld [vmem:[%s14071_s0 + $0x7c8] sm:$0xff] }
 0x3c3   :  { %v3040_v39 = vsel %vm2511_vm1, %v2374_v22, 0.0  ;;  %v2780_v2 = vsel %vm2511_vm1, %v2254_v16, 0.0  ;;  %v2842_v18 = vadd.f32 %v2841_v8, %v2840_v20  ;;  %v2905_v14 = vadd.f32 %v2904_v51, %v2903_v32  ;;  %v14471_v16 = vld [vmem:[#allocation152_spill] sm:$0xff]  ;;  %v14472_v61 = vld [vmem:[#allocation171_spill] sm:$0xff] }
 0x3c4   :  { %2050 = vbcast.lane.b32.xlu1 %v9918_v53, 360  ;;  %2046 = vbcast.lane.b32.xlu0 %v9918_v53, 352  ;;  %v3041_v33 = vadd.f32 %v3040_v39, %v3039_v56  ;;  %v2843_v4 = vsel %vm2511_vm1, %v2283_v5, 0.0  ;;  %v2313_v50 = vmul.f32 %v14471_v16, %v207_v29  ;;  %v2344_v10 = vmul.f32 %v14472_v61, %v238_v35  ;;  %v271_v5 = vld [vmem:[%s14071_s0 + $0x7d0] sm:$0xff]  ;;  %v14475_v39 = vld [vmem:[#allocation25_spill] sm:$0xff] }
 0x3c5   :  { %v3042_v20 = vsel %vm2511_vm1, %v2375_v54, 0.0  ;;  %v2713_v32 = vrot.slane %v2712_v9, 4  ;;  %v2781_v51 = vadd.f32 %v2780_v2, %v2779_v37  ;;  %v10181_v56 = vrot.slane %v8739_v42, %v14433_v49  ;;  %v14473_v54 = vld [vmem:[#allocation123_spill] sm:$0xff]  ;;  %v14474_v37 = vld [vmem:[#allocation174_spill] sm:$0xff]  ;;  %v14477_v61 = vld [vmem:[#allocation29_spill] sm:$0xff] }
 0x3c6   :  { %v10157_v59 = vpop.permute.xlu1 %1817  ;;  %v10169_v22 = vpop.permute.xlu0 %1813  ;;  %v2974_v8 = vadd.f32 %v2973_v21, %v2972_v3  ;;  %v2284_v29 = vmul.f32 %v14473_v54, %v178_v7  ;;  %v2906_v35 = vsel %vm2511_vm1, %v2312_v48, 0.0  ;;  %v2345_v23 = vmul.f32 %v14474_v37, %v239_v62  ;;  %v208_v3 = vld [vmem:[%s14071_s0 + $0x5d8] sm:$0xff]  ;;  %v14479_v7 = vld [vmem:[#allocation126_spill] sm:$0xff]  ;;  %v14480_v37 = vld [vmem:[#allocation47_spill] sm:$0xff] }
 0x3c7   :  { %14470 = vst [vmem:[#allocation55_spill] sm:$0xff] %v10157_v59  ;;  %v2376_v2 = vmul.f32 %v14475_v39, %v270_v34  ;;  %v2579_v42 = vrot.slane %v14477_v61, 1  ;;  %v2844_v49 = vadd.f32 %v2843_v4, %v2842_v18  ;;  %v2907_v21 = vadd.f32 %v2906_v35, %v2905_v14  ;;  %v209_v62 = vld [vmem:[%s14071_s0 + $0x5e0] sm:$0xff] }
 0x3c8   :  { %2058 = vbcast.lane.b32.xlu1 %v9918_v53, 376  ;;  %2054 = vbcast.lane.b32.xlu0 %v9918_v53, 368  ;;  %v3043_v41 = vadd.f32 %v3042_v20, %v3041_v33  ;;  %v2285_v54 = vmul.f32 %v14479_v7, %v179_v36  ;;  %v2908_v48 = vsel %vm2511_vm1, %v2313_v50, 0.0  ;;  %v2975_v34 = vsel %vm2511_vm1, %v2344_v10, 0.0  ;;  %v240_v50 = vld [vmem:[%s14071_s0 + $0x6d8] sm:$0xff]  ;;  %v14483_v7 = vld [vmem:[#allocation154_spill] sm:$0xff] }
 0x3c9   :  { %v2377_v18 = vmul.f32 %v14480_v37, %v271_v5  ;;  %v10208_v4 = vadd.f32 %v2646_v19, %v9567_v38  ;;  %v10210_v14 = vadd.f32 %v2713_v32, %v2712_v9  ;;  %v2782_v33 = vrot.slane %v2781_v51, 4  ;;  %v180_v10 = vld [vmem:[%s14071_s0 + $0x4f8] sm:$0xff]  ;;  %v14481_v5 = vld [vmem:[#allocation151_spill] sm:$0xff]  ;;  %v241_v19 = vld [vmem:[%s14071_s0 + $0x6e0] sm:$0xff] }
 0x3ca   :  { %v10191_v16 = vpop.permute.xlu1 %1825  ;;  %v10197_v53 = vpop.permute.xlu0 %1821  ;;  %v2976_v20 = vadd.f32 %v2975_v34, %v2974_v8  ;;  %v2845_v36 = vsel %vm2511_vm1, %v2284_v29, 0.0  ;;  %v2314_v35 = vmul.f32 %v14481_v5, %v208_v3  ;;  %v2977_v38 = vsel %vm2511_vm1, %v2345_v23, 0.0  ;;  %v272_v34 = vld [vmem:[%s14071_s0 + $0x7d8] sm:$0xff] }
 0x3cb   :  { %14476 = vst [vmem:[#allocation35_spill] sm:$0xff] %v10191_v16  ;;  %14478 = vst [vmem:[#allocation58_spill] sm:$0xff] %v10197_v53  ;;  %v3044_v9 = vsel %vm2511_vm1, %v2376_v2, 0.0  ;;  %v2846_v8 = vadd.f32 %v2845_v36, %v2844_v49  ;;  %v2909_v39 = vadd.f32 %v2908_v48, %v2907_v21  ;;  %v2315_v29 = vmul.f32 %v14483_v7, %v209_v62  ;;  %v14485_v16 = vld [vmem:[#allocation173_spill] sm:$0xff]  ;;  %v14487_v36 = vld [vmem:[#allocation176_spill] sm:$0xff] }
 0x3cc   :  { %2069 = vbcast.lane.b32.xlu1 %v10181_v56, 264  ;;  %2065 = vbcast.lane.b32.xlu0 %v10181_v56, 256  ;;  %v3045_v37 = vadd.f32 %v3044_v9, %v3043_v41  ;;  %v10235_v23 = vadd.f32 %v2579_v42, %v14477_v61  ;;  %v2847_v5 = vsel %vm2511_vm1, %v2285_v54, 0.0  ;;  %v2346_v2 = vmul.f32 %v14485_v16, %v240_v50  ;;  %v14486_v21 = vld [vmem:[#allocation125_spill] sm:$0xff]  ;;  %v273_v61 = vld [vmem:[%s14071_s0 + $0x7e0] sm:$0xff]  ;;  %v310_v42 = vld [vmem:[%s14071_s0 + $0x908] sm:$0xff] }
 0x3cd   :  { %v2286_v48 = vmul.f32 %v14486_v21, %v180_v10  ;;  %v2978_v62 = vadd.f32 %v2977_v38, %v2976_v20  ;;  %v2347_v41 = vmul.f32 %v14487_v36, %v241_v19  ;;  %v309_v16 = vld [vmem:[%s14071_s0 + $0x900] sm:$0xff]  ;;  %v2910_v50 = vsel %vm2511_vm1, %v2314_v35, 0.0  ;;  %v210_v20 = vld [vmem:[%s14071_s0 + $0x5e8] sm:$0xff]  ;;  %v14488_v10 = vld [vmem:[#allocation16_spill] sm:$0xff] }
 0x3ce   :  { %v10226_v32 = vpop.permute.xlu1 %1833  ;;  %v10232_v3 = vpop.permute.xlu0 %1829  ;;  %v2378_v38 = vmul.f32 %v14488_v10, %v272_v34  ;;  %v2848_v9 = vadd.f32 %v2847_v5, %v2846_v8  ;;  %v2911_v7 = vadd.f32 %v2910_v50, %v2909_v39  ;;  %v2912_v21 = vsel %vm2511_vm1, %v2315_v29, 0.0  ;;  %v311_v35 = vld [vmem:[%s14071_s0 + $0x910] sm:$0xff]  ;;  %v14492_v10 = vld [vmem:[#allocation153_spill] sm:$0xff] }
 0x3cf   :  { %14482 = vst [vmem:[#allocation23_spill] sm:$0xff] %v10226_v32  ;;  %14484 = vst [vmem:[#allocation34_spill] sm:$0xff] %v10232_v3  ;;  %v3046_v32 = vsel %vm2511_vm1, %v2377_v18, 0.0  ;;  %v10255_v18 = vadd.f32 %v2782_v33, %v2781_v51  ;;  %v278_v51 = vld [vmem:[%s14071_s0 + $0x808] sm:$0xff]  ;;  %v277_v33 = vld [vmem:[%s14071_s0 + $0x800] sm:$0xff]  ;;  %v2979_v8 = vsel %vm2511_vm1, %v2346_v2, 0.0  ;;  %v2415_v5 = vmul.f32 %v9836_v46, %v309_v16 }
 0x3d0   :  { %2077 = vbcast.lane.b32.xlu1 %v10181_v56, 280  ;;  %2073 = vbcast.lane.b32.xlu0 %v10181_v56, 272  ;;  %v3047_v36 = vadd.f32 %v3046_v32, %v3045_v37  ;;  %v242_v32 = vld [vmem:[%s14071_s0 + $0x6e8] sm:$0xff]  ;;  %v14491_v39 = vld [vmem:[#allocation40_spill] sm:$0xff]  ;;  %v2416_v37 = vmul.f32 %v9824_v6, %v310_v42  ;;  %v2849_v50 = vsel %vm2511_vm1, %v2286_v48, 0.0  ;;  %v2316_v49 = vmul.f32 %v14492_v10, %v210_v20 }
 0x3d1   :  { %v2379_v29 = vmul.f32 %v14491_v39, %v273_v61  ;;  %v2980_v54 = vadd.f32 %v2979_v8, %v2978_v62  ;;  %v279_v2 = vld [vmem:[%s14071_s0 + $0x810] sm:$0xff]  ;;  %v3048_v48 = vsel %vm2511_vm1, %v2378_v38, 0.0  ;;  %v14493_v61 = vld [vmem:[#allocation26_spill] sm:$0xff]  ;;  %v14494_v42 = vld [vmem:[#allocation39_spill] sm:$0xff]  ;;  %v2417_v16 = vmul.f32 %v9869_v11, %v311_v35 }
 0x3d2   :  { %v10262_v19 = vpop.permute.xlu1 %1841  ;;  %v10274_v34 = vpop.permute.xlu0 %1837  ;;  %v211_v6 = vld [vmem:[%s14071_s0 + $0x5f0] sm:$0xff]  ;;  %v2384_v62 = vmul.f32 %v14493_v61, %v278_v51  ;;  %v10303_v8 = vadd.f32 %v2849_v50, %v2848_v9  ;;  %v2913_v39 = vadd.f32 %v2912_v21, %v2911_v7  ;;  %v14496_v10 = vld [vmem:[#allocation175_spill] sm:$0xff]  ;;  %v3049_v53 = vadd.f32 %v3048_v48, %v3047_v36  ;;  %v212_v38 = vld [vmem:[%s14071_s0 + $0x5f8] sm:$0xff] }
 0x3d3   :  { %14489 = vst [vmem:[#allocation64_spill] sm:$0xff] %v10262_v19  ;;  %14490 = vst [vmem:[#allocation37_spill] sm:$0xff] %v10274_v34  ;;  %v2981_v19 = vsel %vm2511_vm1, %v2347_v41, 0.0  ;;  %v243_v46 = vld [vmem:[%s14071_s0 + $0x6f0] sm:$0xff]  ;;  %v2383_v41 = vmul.f32 %v14494_v42, %v277_v33  ;;  %v2348_v34 = vmul.f32 %v14496_v10, %v242_v32  ;;  %v274_v3 = vld [vmem:[%s14071_s0 + $0x7e8] sm:$0xff]  ;;  %v3050_v11 = vsel %vm2511_vm1, %v2379_v29, 0.0 }
 0x3d4   :  { %2085 = vbcast.lane.b32.xlu1 %v10181_v56, 296  ;;  %2081 = vbcast.lane.b32.xlu0 %v10181_v56, 288  ;;  %v14498_v51 = vld [vmem:[#allocation49_spill] sm:$0xff]  ;;  %v3134_v9 = vsel %vm2511_vm1, %v2416_v37, 0.0  ;;  %v3133_v7 = vsel %vm2511_vm1, %v2415_v5, 0.0  ;;  %v2914_v21 = vsel %vm2511_vm1, %v2316_v49, 0.0  ;;  %v2982_v32 = vadd.f32 %v2981_v19, %v2980_v54 }
 0x3d5   :  { %v2385_v33 = vmul.f32 %v14498_v51, %v279_v2  ;;  %v14499_v35 = vld [vmem:[#allocation156_spill] sm:$0xff]  ;;  %v14500_v50 = vld [vmem:[#allocation178_spill] sm:$0xff]  ;;  %v312_v29 = vld [vmem:[%s14071_s0 + $0x918] sm:$0xff]  ;;  %v3065_v2 = vsel %vm2511_vm1, %v2384_v62, 0.0  ;;  %v3064_v49 = vsel %vm2511_vm1, %v2383_v41, 0.0  ;;  %v3136_v54 = vsel %vm2511_vm1, %v2417_v16, 0.0 }
 0x3d6   :  { %v10301_v20 = vpop.permute.xlu1 %1849  ;;  %v10309_v59 = vpop.permute.xlu0 %1845  ;;  %v2317_v36 = vmul.f32 %v14499_v35, %v211_v6  ;;  %v2349_v48 = vmul.f32 %v14500_v50, %v243_v46  ;;  %v275_v61 = vld [vmem:[%s14071_s0 + $0x7f0] sm:$0xff]  ;;  %v14501_v37 = vld [vmem:[#allocation27_spill] sm:$0xff]  ;;  %v2915_v42 = vadd.f32 %v2914_v21, %v2913_v39  ;;  %v3051_v10 = vadd.f32 %v3050_v11, %v3049_v53  ;;  %v280_v51 = vld [vmem:[%s14071_s0 + $0x818] sm:$0xff] }
 0x3d7   :  { %14495 = vst [vmem:[#allocation57_spill] sm:$0xff] %v10301_v20  ;;  %14497 = vst [vmem:[#allocation95_spill] sm:$0xff] %v10309_v59  ;;  %v2380_v5 = vmul.f32 %v14501_v37, %v274_v3  ;;  %v14503_v6 = vld [vmem:[#allocation155_spill] sm:$0xff]  ;;  %v3135_v35 = vadd.f32 %v3134_v9, %v3133_v7  ;;  %v313_v3 = vld [vmem:[%s14071_s0 + $0x920] sm:$0xff]  ;;  %v2983_v41 = vsel %vm2511_vm1, %v2348_v34, 0.0  ;;  %v3067_v53 = vsel %vm2511_vm1, %v2385_v33, 0.0 }
 0x3d8   :  { %2093 = vbcast.lane.b32.xlu1 %v10181_v56, 312  ;;  %2089 = vbcast.lane.b32.xlu0 %v10181_v56, 304  ;;  %v2318_v46 = vmul.f32 %v14503_v6, %v212_v38  ;;  %v244_v16 = vld [vmem:[%s14071_s0 + $0x6f8] sm:$0xff]  ;;  %v14505_v38 = vld [vmem:[#allocation15_spill] sm:$0xff]  ;;  %v2418_v11 = vmul.f32 %v9863_v15, %v312_v29  ;;  %v2916_v7 = vsel %vm2511_vm1, %v2317_v36, 0.0  ;;  %v2984_v21 = vadd.f32 %v2983_v41, %v2982_v32  ;;  %v281_v50 = vld [vmem:[%s14071_s0 + $0x820] sm:$0xff] }
 0x3d9   :  { %v2381_v39 = vmul.f32 %v14505_v38, %v275_v61  ;;  %v342_v9 = vld [vmem:[%s14071_s0 + $0xa08] sm:$0xff]  ;;  %v3066_v34 = vadd.f32 %v3065_v2, %v3064_v49  ;;  %v3137_v37 = vadd.f32 %v3136_v54, %v3135_v35  ;;  %v341_v15 = vld [vmem:[%s14071_s0 + $0xa00] sm:$0xff]  ;;  %v2985_v33 = vsel %vm2511_vm1, %v2349_v48, 0.0  ;;  %v276_v36 = vld [vmem:[%s14071_s0 + $0x7f8] sm:$0xff] }
 0x3da   :  { %v10333_v19 = vpop.permute.xlu1 %1857  ;;  %v10342_v62 = vpop.permute.xlu0 %1853  ;;  %v3052_v61 = vsel %vm2511_vm1, %v2380_v5, 0.0  ;;  %v14506_v32 = vld [vmem:[#allocation18_spill] sm:$0xff]  ;;  %v2419_v2 = vmul.f32 %v9902_v52, %v313_v3  ;;  %v14507_v54 = vld [vmem:[#allocation177_spill] sm:$0xff]  ;;  %v14508_v48 = vld [vmem:[#allocation52_spill] sm:$0xff]  ;;  %v3138_v5 = vsel %vm2511_vm1, %v2418_v11, 0.0  ;;  %v2917_v43 = vadd.f32 %v2916_v7, %v2915_v42 }
 0x3db   :  { %14502 = vst [vmem:[#allocation96_spill] sm:$0xff] %v10333_v19  ;;  %14504 = vst [vmem:[#allocation60_spill] sm:$0xff] %v10342_v62  ;;  %v2386_v29 = vmul.f32 %v14506_v32, %v280_v51  ;;  %v2350_v6 = vmul.f32 %v14507_v54, %v244_v16  ;;  %v3053_v35 = vadd.f32 %v3052_v61, %v3051_v10  ;;  %v3054_v62 = vsel %vm2511_vm1, %v2381_v39, 0.0  ;;  %v14509_v32 = vld [vmem:[#allocation50_spill] sm:$0xff]  ;;  %v314_v10 = vld [vmem:[%s14071_s0 + $0x928] sm:$0xff] }
 0x3dc   :  { %2101 = vbcast.lane.b32.xlu1 %v10181_v56, 328  ;;  %2097 = vbcast.lane.b32.xlu0 %v10181_v56, 320  ;;  %v3068_v41 = vadd.f32 %v3067_v53, %v3066_v34  ;;  %v2387_v20 = vmul.f32 %v14508_v48, %v281_v50  ;;  %v2986_v51 = vadd.f32 %v2985_v33, %v2984_v21  ;;  %v344_v16 = vld [vmem:[%s14071_s0 + $0xa18] sm:$0xff]  ;;  %v3140_v39 = vsel %vm2511_vm1, %v2419_v2, 0.0  ;;  %v282_v50 = vld [vmem:[%s14071_s0 + $0x828] sm:$0xff] }
 0x3dd   :  { %v2382_v52 = vmul.f32 %v14509_v32, %v276_v36  ;;  %v3139_v3 = vadd.f32 %v3138_v5, %v3137_v37  ;;  %v3069_v42 = vsel %vm2511_vm1, %v2386_v29, 0.0  ;;  %v2918_v7 = vsel %vm2511_vm1, %v2318_v46, 0.0 }
 0x3de   :  { %v1869_v49 = vpop.permute.xlu1 %1868  ;;  %v1865_v19 = vpop.permute.xlu0 %1864  ;;  %v2987_v21 = vsel %vm2511_vm1, %v2350_v6, 0.0  ;;  %v3055_v34 = vadd.f32 %v3054_v62, %v3053_v35  ;;  %v3070_v37 = vadd.f32 %v3069_v42, %v3068_v41  ;;  %v3071_v61 = vsel %vm2511_vm1, %v2387_v20, 0.0  ;;  %v346_v20 = vld [vmem:[%s14071_s0 + $0xa28] sm:$0xff]  ;;  %v345_v6 = vld [vmem:[%s14071_s0 + $0xa20] sm:$0xff] }
 0x3df   :  { %v2448_v38 = vmul.f32 %v1869_v49, %v342_v9  ;;  %v2447_v59 = vmul.f32 %v1865_v19, %v341_v15  ;;  %v343_v19 = vld [vmem:[%s14071_s0 + $0xa10] sm:$0xff]  ;;  %v2420_v46 = vmul.f32 %v9890_v44, %v314_v10  ;;  %v2919_v29 = vadd.f32 %v2918_v7, %v2917_v43  ;;  %v14510_v35 = vld [vmem:[#allocation42_spill] sm:$0xff] }
 0x3e0   :  { %2109 = vbcast.lane.b32.xlu1 %v10181_v56, 344  ;;  %2105 = vbcast.lane.b32.xlu0 %v10181_v56, 336  ;;  %v315_v15 = vld [vmem:[%s14071_s0 + $0x930] sm:$0xff]  ;;  %v2988_v2 = vadd.f32 %v2987_v21, %v2986_v51  ;;  %v3141_v49 = vadd.f32 %v3140_v39, %v3139_v3  ;;  %v3056_v44 = vsel %vm2511_vm1, %v2382_v52, 0.0  ;;  %v2388_v41 = vmul.f32 %v14510_v35, %v282_v50  ;;  %v285_v35 = vld [vmem:[%s14071_s0 + $0x840] sm:$0xff] }
 0x3e1   :  { %v3203_v53 = vsel %vm2511_vm1, %v2448_v38, 0.0  ;;  %v3202_v11 = vsel %vm2511_vm1, %v2447_v59, 0.0  ;;  %v283_v59 = vld [vmem:[%s14071_s0 + $0x830] sm:$0xff]  ;;  %v2421_v38 = vmul.f32 %v9940_v12, %v315_v15  ;;  %v3057_v5 = vadd.f32 %v3056_v44, %v3055_v34  ;;  %v348_v15 = vld [vmem:[%s14071_s0 + $0xa38] sm:$0xff] }
 0x3e2   :  { %v1877_v9 = vpop.permute.xlu1 %1876  ;;  %v1873_v33 = vpop.permute.xlu0 %1872  ;;  %v3204_v54 = vadd.f32 %v3203_v53, %v3202_v11  ;;  %v3072_v51 = vadd.f32 %v3071_v61, %v3070_v37  ;;  %v2389_v32 = vmul.f32 %v9395_v27, %v283_v59  ;;  %v2784_v52 = vrot.slane %v10255_v18, 2  ;;  %v316_v53 = vld [vmem:[%s14071_s0 + $0x938] sm:$0xff] }
 0x3e3   :  { %v2450_v36 = vmul.f32 %v1877_v9, %v344_v16  ;;  %v2449_v62 = vmul.f32 %v1873_v33, %v343_v19  ;;  %v3142_v16 = vsel %vm2511_vm1, %v2420_v46, 0.0  ;;  %v2851_v12 = vrot.slane %v10303_v8, 4  ;;  %v347_v9 = vld [vmem:[%s14071_s0 + $0xa30] sm:$0xff]  ;;  %v317_v46 = vld [vmem:[%s14071_s0 + $0x940] sm:$0xff] }
 0x3e4   :  { %2117 = vbcast.lane.b32.xlu1 %v10181_v56, 360  ;;  %2113 = vbcast.lane.b32.xlu0 %v10181_v56, 352  ;;  %v3143_v11 = vadd.f32 %v3142_v16, %v3141_v49  ;;  %v2920_v7 = vrot.slane %v2919_v29, 4  ;;  %v3073_v21 = vsel %vm2511_vm1, %v2388_v41, 0.0  ;;  %v3144_v34 = vsel %vm2511_vm1, %v2421_v38, 0.0 }
 0x3e5   :  { %v3205_v43 = vsel %vm2511_vm1, %v2449_v62, 0.0  ;;  %v3207_v19 = vsel %vm2511_vm1, %v2450_v36, 0.0  ;;  %v2989_v33 = vrot.slane %v2988_v2, 4  ;;  %v3058_v61 = vrot.slane %v3057_v5, 4 }
 0x3e6   :  { %v1885_v48 = vpop.permute.xlu1 %1884  ;;  %v3206_v10 = vadd.f32 %v3205_v43, %v3204_v54  ;;  %v1881_v3 = vpop.permute.xlu0 %1880  ;;  %v3074_v59 = vadd.f32 %v3073_v21, %v3072_v51  ;;  %v3075_v49 = vsel %vm2511_vm1, %v2389_v32, 0.0  ;;  %v2422_v54 = vmul.f32 %v9934_v31, %v316_v53 }
 0x3e7   :  { %v2452_v42 = vmul.f32 %v1885_v48, %v346_v20  ;;  %v2451_v39 = vmul.f32 %v1881_v3, %v345_v6  ;;  %v2852_v44 = vadd.f32 %v2851_v12, %v10303_v8  ;;  %v3145_v41 = vadd.f32 %v3144_v34, %v3143_v11  ;;  %v349_v48 = vld [vmem:[%s14071_s0 + $0xa40] sm:$0xff]  ;;  %v14512_v11 = vld [vmem:[#allocation28_spill] sm:$0xff] }
 0x3e8   :  { %2125 = vbcast.lane.b32.xlu1 %v10181_v56, 376  ;;  %v3208_v27 = vadd.f32 %v3207_v19, %v3206_v10  ;;  %2121 = vbcast.lane.b32.xlu0 %v10181_v56, 368  ;;  %v284_v56 = vld [vmem:[%s14071_s0 + $0x838] sm:$0xff]  ;;  %v2921_v51 = vadd.f32 %v2920_v7, %v2919_v29  ;;  %v2423_v32 = vmul.f32 %v9975_v24, %v317_v46  ;;  %v14511_v8 = vrot.slane %v10210_v14, 2  ;;  %v318_v7 = vld [vmem:[%s14071_s0 + $0x948] sm:$0xff] }
 0x3e9   :  { %v3209_v50 = vsel %vm2511_vm1, %v2451_v39, 0.0  ;;  %v3211_v20 = vsel %vm2511_vm1, %v2452_v42, 0.0  ;;  %v2390_v31 = vmul.f32 %v9386_v40, %v284_v56  ;;  %v2990_v19 = vadd.f32 %v2989_v33, %v2988_v2 }
 0x3ea   :  { %v1893_v37 = vpop.permute.xlu1 %1892  ;;  %v3210_v36 = vadd.f32 %v3209_v50, %v3208_v27  ;;  %v1889_v62 = vpop.permute.xlu0 %1888  ;;  %v2716_v16 = vadd.f32 %v14511_v8, %v10210_v14  ;;  %v3076_v42 = vadd.f32 %v3075_v49, %v3074_v59  ;;  %v3059_v53 = vadd.f32 %v3058_v61, %v3057_v5  ;;  %v350_v50 = vld [vmem:[%s14071_s0 + $0xa48] sm:$0xff]  ;;  %v319_v59 = vld [vmem:[%s14071_s0 + $0x950] sm:$0xff] }
 0x3eb   :  { %v2453_v6 = vmul.f32 %v1889_v62, %v347_v9  ;;  %v2454_v38 = vmul.f32 %v1893_v37, %v348_v15  ;;  %v2391_v27 = vmul.f32 %v14512_v11, %v285_v35  ;;  %v3146_v29 = vsel %vm2511_vm1, %v2422_v54, 0.0  ;;  %v286_v61 = vld [vmem:[%s14071_s0 + $0x848] sm:$0xff] }
 0x3ec   :  { %v3212_v43 = vadd.f32 %v3211_v20, %v3210_v36  ;;  %v2785_v40 = vadd.f32 %v2784_v52, %v10255_v18  ;;  %v2853_v24 = vrot.slane %v2852_v44, 2  ;;  %v3147_v21 = vadd.f32 %v3146_v29, %v3145_v41  ;;  %v351_v20 = vld [vmem:[%s14071_s0 + $0xa50] sm:$0xff] }
 0x3ed   :  { %v3213_v10 = vsel %vm2511_vm1, %v2453_v6, 0.0  ;;  %v3215_v14 = vsel %vm2511_vm1, %v2454_v38, 0.0  ;;  %v2922_v2 = vrot.slane %v2921_v51, 2  ;;  %v3077_v34 = vsel %vm2511_vm1, %v2390_v31, 0.0  ;;  %v287_v41 = vld [vmem:[%s14071_s0 + $0x850] sm:$0xff]  ;;  %v14514_v31 = vld [vmem:[#allocation17_spill] sm:$0xff] }
 0x3ee   :  { %v1901_v3 = vpop.permute.xlu1 %1900  ;;  %v3214_v39 = vadd.f32 %v3213_v10, %v3212_v43  ;;  %v1897_v12 = vpop.permute.xlu0 %1896  ;;  %v3148_v5 = vsel %vm2511_vm1, %v2423_v32, 0.0  ;;  %v14513_v52 = vrot.slane %v10208_v4, 1  ;;  %v2991_v33 = vrot.slane %v2990_v19, 2 }
 0x3ef   :  { %v2455_v9 = vmul.f32 %v1897_v12, %v349_v48  ;;  %v3078_v56 = vadd.f32 %v3077_v34, %v3076_v42  ;;  %v2717_v62 = vrot.slane %v2716_v16, 1  ;;  %v3060_v49 = vrot.slane %v3059_v53, 2 }
 0x3f0   :  { %v3216_v37 = vadd.f32 %v3215_v14, %v3214_v39  ;;  %v10471_v15 = vadd.f32 %v14513_v52, %v10208_v4  ;;  %v3079_v54 = vsel %vm2511_vm1, %v2391_v27, 0.0  ;;  %v2424_v4 = vmul.f32 %v9963_v26, %v318_v7 }
 0x3f1   :  { %v3217_v46 = vsel %vm2511_vm1, %v2455_v9, 0.0  ;;  %v2786_v6 = vrot.slane %v2785_v40, 1  ;;  %v2854_v35 = vadd.f32 %v2853_v24, %v2852_v44  ;;  %v3149_v38 = vadd.f32 %v3148_v5, %v3147_v21  ;;  %v321_v5 = vld [vmem:[%s14071_s0 + $0x960] sm:$0xff] }
 0x3f2   :  { %v1909_v18 = vpop.permute.xlu1 %1908  ;;  %v1905_v36 = vpop.permute.xlu0 %1904  ;;  %v2456_v43 = vmul.f32 %v1901_v3, %v350_v50  ;;  %v2923_v48 = vadd.f32 %v2922_v2, %v2921_v51  ;;  %v2392_v32 = vmul.f32 %v14514_v31, %v286_v61  ;;  %v2425_v10 = vmul.f32 %v10009_v57, %v319_v59  ;;  %v288_v2 = vld [vmem:[%s14071_s0 + $0x858] sm:$0xff] }
 0x3f3   :  { %v3218_v8 = vadd.f32 %v3217_v46, %v3216_v37  ;;  %v2992_v26 = vadd.f32 %v2991_v33, %v2990_v19  ;;  %v3080_v39 = vadd.f32 %v3079_v54, %v3078_v56  ;;  %v2457_v12 = vmul.f32 %v1905_v36, %v351_v20  ;;  %v320_v19 = vld [vmem:[%s14071_s0 + $0x958] sm:$0xff]  ;;  %v353_v56 = vld [vmem:[%s14071_s0 + $0xa60] sm:$0xff] }
 0x3f4   :  { %v3353_v44 = vsel %vm14096_vm2, %v10471_v15, %v10235_v23  ;;  %v10495_v27 = vadd.f32 %v2717_v62, %v2716_v16  ;;  %v2393_v3 = vmul.f32 %v9461_v28, %v287_v41  ;;  %v3150_v51 = vsel %vm2511_vm1, %v2424_v4, 0.0  ;;  %v352_v28 = vld [vmem:[%s14071_s0 + $0xa58] sm:$0xff]  ;;  %v289_v62 = vld [vmem:[%s14071_s0 + $0x860] sm:$0xff] }
 0x3f5   :  { %v3061_v29 = vadd.f32 %v3060_v49, %v3059_v53  ;;  %v10499_v9 = vadd.f32 %v2786_v6, %v2785_v40  ;;  %v2855_v57 = vrot.slane %v2854_v35, 1  ;;  %v3151_v24 = vadd.f32 %v3150_v51, %v3149_v38 }
 0x3f6   :  { %v10490_v42 = vpop.permute.xlu1 %1916  ;;  %v1913_v11 = vpop.permute.xlu0 %1912  ;;  %v3219_v7 = vsel %vm2511_vm1, %v2456_v43, 0.0  ;;  %v2924_v21 = vrot.slane %v2923_v48, 1  ;;  %v3081_v14 = vsel %vm2511_vm1, %v2392_v32, 0.0  ;;  %v3152_v16 = vsel %vm2511_vm1, %v2425_v10, 0.0 }
 0x3f7   :  { %v3220_v53 = vadd.f32 %v3219_v7, %v3218_v8  ;;  %v3082_v34 = vadd.f32 %v3081_v14, %v3080_v39  ;;  %v3221_v50 = vsel %vm2511_vm1, %v2457_v12, 0.0  ;;  %v2993_v52 = vrot.slane %v2992_v26, 1 }
 0x3f8   :  { %v3083_v33 = vsel %vm2511_vm1, %v2393_v3, 0.0  ;;  %v2426_v61 = vmul.f32 %v10003_v47, %v320_v19  ;;  %v3062_v59 = vrot.slane %v3061_v29, 1  ;;  %v3355_v46 = vsel %vm14095_vm3, %v10495_v27, %v3353_v44  ;;  %v354_v44 = vld [vmem:[%s14071_s0 + $0xa68] sm:$0xff] }
 0x3f9   :  { %v10526_v36 = vadd.f32 %v2855_v57, %v2854_v35  ;;  %v3153_v49 = vadd.f32 %v3152_v16, %v3151_v24  ;;  %v2458_v54 = vmul.f32 %v1909_v18, %v352_v28  ;;  %v3357_v4 = vsel %vm14094_vm4, %v10499_v9, %v3355_v46  ;;  %v14515_v18 = vld [vmem:[#allocation20_spill] sm:$0xff]  ;;  %v290_v57 = vld [vmem:[%s14071_s0 + $0x868] sm:$0xff] }
 0x3fa   :  { %v10510_v40 = vpop.permute.xlu1 %1924  ;;  %v1921_v37 = vpop.permute.xlu0 %1920  ;;  %v2394_v47 = vmul.f32 %v9455_v60, %v288_v2  ;;  %v2427_v20 = vmul.f32 %v10043_v25, %v321_v5  ;;  %v3222_v6 = vadd.f32 %v3221_v50, %v3220_v53  ;;  %v10537_v38 = vadd.f32 %v2924_v21, %v2923_v48  ;;  %v322_v60 = vld [vmem:[%s14071_s0 + $0x968] sm:$0xff]  ;;  %v323_v24 = vld [vmem:[%s14071_s0 + $0x970] sm:$0xff] }
 0x3fb   :  { %v3084_v35 = vadd.f32 %v3083_v33, %v3082_v34  ;;  %v2459_v43 = vmul.f32 %v1913_v11, %v353_v56  ;;  %v10541_v32 = vadd.f32 %v2993_v52, %v2992_v26  ;;  %v2395_v10 = vmul.f32 %v14515_v18, %v289_v62  ;;  %v355_v53 = vld [vmem:[%s14071_s0 + $0xa70] sm:$0xff]  ;;  %v14516_v52 = vld [vmem:[#allocation41_spill] sm:$0xff] }
 0x3fc   :  { %v3154_v8 = vsel %vm2511_vm1, %v2426_v61, 0.0  ;;  %v10545_v39 = vadd.f32 %v3062_v59, %v3061_v29  ;;  %v3223_v48 = vsel %vm2511_vm1, %v2458_v54, 0.0  ;;  %v3359_v12 = vsel %vm14093_vm5, %v10526_v36, %v3357_v4  ;;  %v291_v34 = vld [vmem:[%s14071_s0 + $0x870] sm:$0xff]  ;;  %v14517_v54 = vld [vmem:[#allocation31_spill] sm:$0xff] }
 0x3fd   :  { %v3155_v25 = vadd.f32 %v3154_v8, %v3153_v49  ;;  %v3085_v26 = vsel %vm2511_vm1, %v2394_v47, 0.0  ;;  %v3156_v11 = vsel %vm2511_vm1, %v2427_v20, 0.0  ;;  %v3224_v3 = vadd.f32 %v3223_v48, %v3222_v6 }
 0x3fe   :  { %v10535_v41 = vpop.permute.xlu1 %1935  ;;  %v10539_v31 = vpop.permute.xlu0 %1931  ;;  %v3361_v29 = vsel %vm14091_vm6, %v10537_v38, %v3359_v12  ;;  %v3086_v19 = vadd.f32 %v3085_v26, %v3084_v35  ;;  %v3225_v7 = vsel %vm2511_vm1, %v2459_v43, 0.0  ;;  %v3087_v16 = vsel %vm2511_vm1, %v2395_v10, 0.0  ;;  %v356_v35 = vld [vmem:[%s14071_s0 + $0xa78] sm:$0xff] }
 0x3ff   :  { %v3363_v14 = vsel %vm14090_vm7, %v10541_v32, %v3361_v29  ;;  %v2428_v28 = vmul.f32 %v10031_v55, %v322_v60  ;;  %v3157_v5 = vadd.f32 %v3156_v11, %v3155_v25  ;;  %v2460_v50 = vmul.f32 %v10490_v42, %v354_v44  ;;  %v324_v42 = vld [vmem:[%s14071_s0 + $0x978] sm:$0xff]  ;;  %v325_v60 = vld [vmem:[%s14071_s0 + $0x980] sm:$0xff] }
 0x400   :  { %v3365_v2 = vsel %vm14089_vm8, %v10545_v39, %v3363_v14  ;;  %v2396_v33 = vmul.f32 %v14516_v52, %v290_v57  ;;  %v2429_v61 = vmul.f32 %v10076_v13, %v323_v24  ;;  %v3226_v56 = vadd.f32 %v3225_v7, %v3224_v3  ;;  %v292_v10 = vld [vmem:[%s14071_s0 + $0x878] sm:$0xff]  ;;  %v357_v11 = vld [vmem:[%s14071_s0 + $0xa80] sm:$0xff]  ;;  %v14518_v57 = vld [vmem:[#allocation51_spill] sm:$0xff] }
 0x401   :  { %v3088_v59 = vadd.f32 %v3087_v16, %v3086_v19  ;;  %v2461_v46 = vmul.f32 %v1921_v37, %v355_v53  ;;  %v3371_v49 = vsel %vm2511_vm1, %v3365_v2, -inf  ;;  %v2397_v4 = vmul.f32 %v14517_v54, %v291_v34  ;;  %v293_v44 = vld [vmem:[%s14071_s0 + $0x880] sm:$0xff] }
 0x402   :  { %v10558_v51 = vpop.permute.xlu1 %1943  ;;  %v10569_v21 = vpop.permute.xlu0 %1939  ;;  %v3158_v47 = vsel %vm2511_vm1, %v2428_v28, 0.0  ;;  %v3227_v13 = vsel %vm2511_vm1, %v2460_v50, 0.0  ;;  %v3089_v6 = vsel %vm2511_vm1, %v2396_v33, 0.0  ;;  %v3160_v37 = vsel %vm2511_vm1, %v2429_v61, 0.0  ;;  %v14519_v53 = vld [vmem:[#allocation54_spill] sm:$0xff] }
 0x403   :  { %v3159_v20 = vadd.f32 %v3158_v47, %v3157_v5  ;;  %v3228_v43 = vadd.f32 %v3227_v13, %v3226_v56  ;;  %v3090_v8 = vadd.f32 %v3089_v6, %v3088_v59  ;;  %v3229_v25 = vsel %vm2511_vm1, %v2461_v46, 0.0  ;;  %v294_v56 = vld [vmem:[%s14071_s0 + $0x888] sm:$0xff]  ;;  %v327_v46 = vld [vmem:[%s14071_s0 + $0x990] sm:$0xff] }
 0x404   :  { %v3091_v12 = vsel %vm2511_vm1, %v2397_v4, 0.0  ;;  %v2430_v26 = vmul.f32 %v10070_v45, %v324_v42  ;;  %v2462_v29 = vmul.f32 %v10510_v40, %v356_v35  ;;  %v2398_v19 = vmul.f32 %v14518_v57, %v292_v10  ;;  %v326_v40 = vld [vmem:[%s14071_s0 + $0x988] sm:$0xff]  ;;  %v359_v42 = vld [vmem:[%s14071_s0 + $0xa90] sm:$0xff] }
 0x405   :  { %v3161_v3 = vadd.f32 %v3160_v37, %v3159_v20  ;;  %v2431_v24 = vmul.f32 %v10109_v63, %v325_v60  ;;  %v3230_v7 = vadd.f32 %v3229_v25, %v3228_v43  ;;  %v3092_v16 = vadd.f32 %v3091_v12, %v3090_v8  ;;  %v295_v20 = vld [vmem:[%s14071_s0 + $0x890] sm:$0xff] }
 0x406   :  { %v10586_v55 = vpop.permute.xlu1 %1951  ;;  %v10588_v62 = vpop.permute.xlu0 %1947  ;;  %v2463_v45 = vmul.f32 %v10539_v31, %v357_v11  ;;  %v2399_v2 = vmul.f32 %v14519_v53, %v293_v44  ;;  %v3162_v34 = vsel %vm2511_vm1, %v2430_v26, 0.0  ;;  %v3231_v50 = vsel %vm2511_vm1, %v2462_v29, 0.0  ;;  %v358_v31 = vld [vmem:[%s14071_s0 + $0xa88] sm:$0xff]  ;;  %v14520_v37 = vld [vmem:[#allocation44_spill] sm:$0xff] }
 0x407   :  { %3372 = vmax.xlane.f32.xlu0 %v3371_v49  ;;  %v3163_v5 = vadd.f32 %v3162_v34, %v3161_v3  ;;  %v3093_v63 = vsel %vm2511_vm1, %v2398_v19, 0.0  ;;  %v3164_v52 = vsel %vm2511_vm1, %v2431_v24, 0.0  ;;  %v3232_v33 = vadd.f32 %v3231_v50, %v3230_v7  ;;  %v296_v3 = vld [vmem:[%s14071_s0 + $0x898] sm:$0xff]  ;;  %v329_v24 = vld [vmem:[%s14071_s0 + $0x9a0] sm:$0xff]  ;;  %v374_v34 = vld [vmem:[%s14071_s0 + $0xb08] sm:$0xff] }
 0x408   :  { %v3094_v59 = vadd.f32 %v3093_v63, %v3092_v16  ;;  %v3233_v49 = vsel %vm2511_vm1, %v2463_v45, 0.0  ;;  %v3095_v4 = vsel %vm2511_vm1, %v2399_v2, 0.0  ;;  %v2432_v47 = vmul.f32 %v10097_v0, %v326_v40  ;;  %v361_v2 = vld [vmem:[%s14071_s0 + $0xaa0] sm:$0xff] }
 0x409   :  { %v3165_v13 = vadd.f32 %v3164_v52, %v3163_v5  ;;  %v2464_v6 = vmul.f32 %v10535_v41, %v358_v31  ;;  %v2400_v35 = vmul.f32 %v14520_v37, %v294_v56  ;;  %v2433_v43 = vmul.f32 %v10137_v17, %v327_v46  ;;  %v328_v41 = vld [vmem:[%s14071_s0 + $0x998] sm:$0xff]  ;;  %v297_v5 = vld [vmem:[%s14071_s0 + $0x8a0] sm:$0xff] }
 0x40a   :  { %v10602_v18 = vpop.permute.xlu1 %1959  ;;  %v10611_v48 = vpop.permute.xlu0 %1955  ;;  %v3234_v10 = vadd.f32 %v3233_v49, %v3232_v33  ;;  %v3096_v60 = vadd.f32 %v3095_v4, %v3094_v59  ;;  %v2465_v0 = vmul.f32 %v10569_v21, %v359_v42  ;;  %v2401_v12 = vmul.f32 %v9593_v1, %v295_v20  ;;  %v360_v1 = vld [vmem:[%s14071_s0 + $0xa98] sm:$0xff]  ;;  %v14521_v49 = vld [vmem:[#allocation30_spill] sm:$0xff]  ;;  %v330_v20 = vld [vmem:[%s14071_s0 + $0x9a8] sm:$0xff] }
 0x40b   :  { %v3166_v26 = vsel %vm2511_vm1, %v2432_v47, 0.0  ;;  %v3235_v44 = vsel %vm2511_vm1, %v2464_v6, 0.0  ;;  %v3097_v17 = vsel %vm2511_vm1, %v2400_v35, 0.0  ;;  %v3168_v21 = vsel %vm2511_vm1, %v2433_v43, 0.0  ;;  %v375_v6 = vld [vmem:[%s14071_s0 + $0xb10] sm:$0xff]  ;;  %v362_v35 = vld [vmem:[%s14071_s0 + $0xaa8] sm:$0xff] }
 0x40c   :  { %v3167_v11 = vadd.f32 %v3166_v26, %v3165_v13  ;;  %v3236_v29 = vadd.f32 %v3235_v44, %v3234_v10  ;;  %v3098_v19 = vadd.f32 %v3097_v17, %v3096_v60  ;;  %v3237_v7 = vsel %vm2511_vm1, %v2465_v0, 0.0 }
 0x40d   :  { %v3099_v45 = vsel %vm2511_vm1, %v2401_v12, 0.0  ;;  %v2434_v53 = vmul.f32 %v10131_v58, %v328_v41  ;;  %v2402_v40 = vmul.f32 %v9588_v30, %v296_v3  ;;  %v2466_v63 = vmul.f32 %v10558_v51, %v360_v1  ;;  %v373_v58 = vld [vmem:[%s14071_s0 + $0xb00] sm:$0xff]  ;;  %v298_v12 = vld [vmem:[%s14071_s0 + $0x8a8] sm:$0xff]  ;;  %v331_v41 = vld [vmem:[%s14071_s0 + $0x9b0] sm:$0xff] }
 0x40e   :  { %v10624_v14 = vpop.permute.xlu1 %1967  ;;  %v10627_v28 = vpop.permute.xlu0 %1963  ;;  %v3169_v50 = vadd.f32 %v3168_v21, %v3167_v11  ;;  %v2435_v52 = vmul.f32 %v10169_v22, %v329_v24  ;;  %v3238_v31 = vadd.f32 %v3237_v7, %v3236_v29  ;;  %v3100_v56 = vadd.f32 %v3099_v45, %v3098_v19  ;;  %v299_v3 = vld [vmem:[%s14071_s0 + $0x8b0] sm:$0xff]  ;;  %v14522_v21 = vld [vmem:[#allocation55_spill] sm:$0xff] }
 0x40f   :  { %v2467_v59 = vmul.f32 %v10588_v62, %v361_v2  ;;  %v2403_v4 = vmul.f32 %v14521_v49, %v297_v5  ;;  %v3170_v47 = vsel %vm2511_vm1, %v2434_v53, 0.0  ;;  %v3101_v51 = vsel %vm2511_vm1, %v2402_v40, 0.0  ;;  %v376_v62 = vld [vmem:[%s14071_s0 + $0xb18] sm:$0xff]  ;;  %v363_v29 = vld [vmem:[%s14071_s0 + $0xab0] sm:$0xff]  ;;  %v378_v2 = vld [vmem:[%s14071_s0 + $0xb28] sm:$0xff] }
 0x410   :  { %v3171_v13 = vadd.f32 %v3170_v47, %v3169_v50  ;;  %v3239_v22 = vsel %vm2511_vm1, %v2466_v63, 0.0  ;;  %v3172_v37 = vsel %vm2511_vm1, %v2435_v52, 0.0  ;;  %v3102_v26 = vadd.f32 %v3101_v51, %v3100_v56  ;;  %v14523_v40 = vld [vmem:[#allocation19_spill] sm:$0xff]  ;;  %v14524_v50 = vld [vmem:[#allocation58_spill] sm:$0xff]  ;;  %v332_v51 = vld [vmem:[%s14071_s0 + $0x9b8] sm:$0xff] }
 0x411   :  { %v3240_v43 = vadd.f32 %v3239_v22, %v3238_v31  ;;  %v3241_v11 = vsel %vm2511_vm1, %v2467_v59, 0.0  ;;  %v3103_v17 = vsel %vm2511_vm1, %v2403_v4, 0.0  ;;  %v2436_v1 = vmul.f32 %v14522_v21, %v330_v20  ;;  %v14525_v56 = vld [vmem:[#allocation22_spill] sm:$0xff]  ;;  %v14526_v21 = vld [vmem:[#allocation35_spill] sm:$0xff] }
 0x412   :  { %v10640_v61 = vpop.permute.xlu1 %1975  ;;  %v10649_v54 = vpop.permute.xlu0 %1971  ;;  %v3173_v7 = vadd.f32 %v3172_v37, %v3171_v13  ;;  %v2468_v45 = vmul.f32 %v10586_v55, %v362_v35  ;;  %v2404_v5 = vmul.f32 %v14523_v40, %v298_v12  ;;  %v2437_v63 = vmul.f32 %v14524_v50, %v331_v41  ;;  %v364_v35 = vld [vmem:[%s14071_s0 + $0xab8] sm:$0xff]  ;;  %v333_v41 = vld [vmem:[%s14071_s0 + $0x9c0] sm:$0xff] }
 0x413   :  { %v2405_v55 = vmul.f32 %v14525_v56, %v299_v3  ;;  %v2469_v59 = vmul.f32 %v10611_v48, %v363_v29  ;;  %v3174_v49 = vsel %vm2511_vm1, %v2436_v1, 0.0  ;;  %v380_v48 = vld [vmem:[%s14071_s0 + $0xb38] sm:$0xff]  ;;  %v301_v3 = vld [vmem:[%s14071_s0 + $0x8c0] sm:$0xff]  ;;  %v2438_v1 = vmul.f32 %v14526_v21, %v332_v51  ;;  %v334_v51 = vld [vmem:[%s14071_s0 + $0x9c8] sm:$0xff] }
 0x414   :  { %v3175_v20 = vadd.f32 %v3174_v49, %v3173_v7  ;;  %v3243_v13 = vsel %vm2511_vm1, %v2468_v45, 0.0  ;;  %v3176_v37 = vsel %vm2511_vm1, %v2437_v63, 0.0  ;;  %v365_v29 = vld [vmem:[%s14071_s0 + $0xac0] sm:$0xff] }
 0x415   :  { %v381_v40 = vld [vmem:[%s14071_s0 + $0xb40] sm:$0xff]  ;;  %v3178_v49 = vsel %vm2511_vm1, %v2438_v1, 0.0  ;;  %v367_v1 = vld [vmem:[%s14071_s0 + $0xad0] sm:$0xff] }
 0x416   :  { %v10662_v8 = vpop.permute.xlu1 %1983  ;;  %v10665_v25 = vpop.permute.xlu0 %1979  ;;  %v3177_v45 = vadd.f32 %v3176_v37, %v3175_v20  ;;  %v14528_v63 = vld [vmem:[#allocation34_spill] sm:$0xff]  ;;  %v366_v37 = vld [vmem:[%s14071_s0 + $0xac8] sm:$0xff] }
 0x418   :  { %v3179_v20 = vadd.f32 %v3178_v49, %v3177_v45  ;;  %v2472_v45 = vmul.f32 %v10624_v14, %v366_v37 }
 0x41a   :  { %v10681_v57 = vpop.permute.xlu1 %1991  ;;  %v10687_v16 = vpop.permute.xlu0 %1987 }
 0x41e   :  { %v2003_v33 = vpop.permute.xlu1 %2002  ;;  %v1999_v30 = vpop.permute.xlu0 %1998 }
 0x41f   :  { %v2480_v46 = vmul.f32 %v2003_v33, %v374_v34  ;;  %v2479_v42 = vmul.f32 %v1999_v30, %v373_v58  ;;  %v377_v34 = vld [vmem:[%s14071_s0 + $0xb20] sm:$0xff]  ;;  %v3242_v58 = vadd.f32 %v3241_v11, %v3240_v43  ;;  %v3104_v33 = vadd.f32 %v3103_v17, %v3102_v26 }
 0x420   :  { %v3107_v26 = vsel %vm2511_vm1, %v2405_v55, 0.0  ;;  %v3245_v11 = vsel %vm2511_vm1, %v2469_v59, 0.0  ;;  %v14529_v55 = vld [vmem:[#allocation33_spill] sm:$0xff]  ;;  %v2471_v59 = vmul.f32 %v10627_v28, %v365_v29 }
 0x421   :  { %v3272_v10 = vsel %vm2511_vm1, %v2480_v46, 0.0  ;;  %v3271_v60 = vsel %vm2511_vm1, %v2479_v42, 0.0  ;;  %v3244_v43 = vadd.f32 %v3243_v13, %v3242_v58  ;;  %v2439_v58 = vmul.f32 %v14528_v63, %v333_v41  ;;  %v384_v28 = vld [vmem:[%s14071_s0 + $0xb58] sm:$0xff] }
 0x422   :  { %v2011_v0 = vpop.permute.xlu1 %2010  ;;  %v2007_v44 = vpop.permute.xlu0 %2006  ;;  %v3273_v53 = vadd.f32 %v3272_v10, %v3271_v60  ;;  %v3249_v41 = vsel %vm2511_vm1, %v2471_v59, 0.0 }
 0x423   :  { %v2482_v19 = vmul.f32 %v2011_v0, %v376_v62  ;;  %v2481_v24 = vmul.f32 %v2007_v44, %v375_v6  ;;  %v379_v62 = vld [vmem:[%s14071_s0 + $0xb30] sm:$0xff]  ;;  %v3105_v6 = vsel %vm2511_vm1, %v2404_v5, 0.0  ;;  %v300_v0 = vld [vmem:[%s14071_s0 + $0x8b8] sm:$0xff]  ;;  %v14527_v5 = vld [vmem:[#allocation43_spill] sm:$0xff] }
 0x424   :  { %v3106_v12 = vadd.f32 %v3105_v6, %v3104_v33  ;;  %v2406_v50 = vmul.f32 %v14527_v5, %v300_v0  ;;  %v3180_v6 = vsel %vm2511_vm1, %v2439_v58, 0.0 }
 0x425   :  { %v3274_v52 = vsel %vm2511_vm1, %v2481_v24, 0.0  ;;  %v3276_v4 = vsel %vm2511_vm1, %v2482_v19, 0.0 }
 0x426   :  { %v2019_v31 = vpop.permute.xlu1 %2018  ;;  %v3275_v46 = vadd.f32 %v3274_v52, %v3273_v53  ;;  %v2015_v30 = vpop.permute.xlu0 %2014  ;;  %v2470_v53 = vmul.f32 %v10602_v18, %v364_v35  ;;  %v3246_v52 = vadd.f32 %v3245_v11, %v3244_v43  ;;  %v3108_v56 = vadd.f32 %v3107_v26, %v3106_v12  ;;  %v335_v26 = vld [vmem:[%s14071_s0 + $0x9d0] sm:$0xff] }
 0x427   :  { %v2484_v47 = vmul.f32 %v2019_v31, %v378_v2  ;;  %v2483_v42 = vmul.f32 %v2015_v30, %v377_v34  ;;  %v382_v34 = vld [vmem:[%s14071_s0 + $0xb48] sm:$0xff]  ;;  %v2407_v18 = vmul.f32 %v14529_v55, %v301_v3  ;;  %v2473_v55 = vmul.f32 %v10649_v54, %v367_v1  ;;  %v388_v54 = vld [vmem:[%s14071_s0 + $0xb78] sm:$0xff] }
 0x428   :  { %v3277_v22 = vadd.f32 %v3276_v4, %v3275_v46  ;;  %v3247_v13 = vsel %vm2511_vm1, %v2470_v53, 0.0  ;;  %v14530_v3 = vld [vmem:[#allocation23_spill] sm:$0xff] }
 0x429   :  { %v3278_v10 = vsel %vm2511_vm1, %v2483_v42, 0.0  ;;  %v3280_v19 = vsel %vm2511_vm1, %v2484_v47, 0.0  ;;  %v3248_v35 = vadd.f32 %v3247_v13, %v3246_v52  ;;  %v3111_v12 = vsel %vm2511_vm1, %v2407_v18, 0.0  ;;  %v387_v13 = vld [vmem:[%s14071_s0 + $0xb70] sm:$0xff] }
 0x42a   :  { %v2027_v60 = vpop.permute.xlu1 %2026  ;;  %v3279_v44 = vadd.f32 %v3278_v10, %v3277_v22  ;;  %v2023_v17 = vpop.permute.xlu0 %2022  ;;  %v2440_v21 = vmul.f32 %v14530_v3, %v334_v51  ;;  %v3251_v51 = vsel %vm2511_vm1, %v2472_v45, 0.0  ;;  %v389_v45 = vld [vmem:[%s14071_s0 + $0xb80] sm:$0xff] }
 0x42b   :  { %v2486_v24 = vmul.f32 %v2027_v60, %v380_v48  ;;  %v2485_v7 = vmul.f32 %v2023_v17, %v379_v62  ;;  %v383_v48 = vld [vmem:[%s14071_s0 + $0xb50] sm:$0xff]  ;;  %v3109_v62 = vsel %vm2511_vm1, %v2406_v50, 0.0  ;;  %v302_v60 = vld [vmem:[%s14071_s0 + $0x8c8] sm:$0xff]  ;;  %v14532_v50 = vld [vmem:[#allocation37_spill] sm:$0xff]  ;;  %v3250_v58 = vadd.f32 %v3249_v41, %v3248_v35 }
 0x42c   :  { %v3281_v2 = vadd.f32 %v3280_v19, %v3279_v44  ;;  %v3110_v0 = vadd.f32 %v3109_v62, %v3108_v56  ;;  %v303_v17 = vld [vmem:[%s14071_s0 + $0x8d0] sm:$0xff]  ;;  %v2441_v63 = vmul.f32 %v14532_v50, %v335_v26  ;;  %v304_v35 = vld [vmem:[%s14071_s0 + $0x8d8] sm:$0xff]  ;;  %v305_v41 = vld [vmem:[%s14071_s0 + $0x8e0] sm:$0xff] }
 0x42d   :  { %v3282_v31 = vsel %vm2511_vm1, %v2485_v7, 0.0  ;;  %v3284_v4 = vsel %vm2511_vm1, %v2486_v24, 0.0  ;;  %v3181_v7 = vadd.f32 %v3180_v6, %v3179_v20  ;;  %v14533_v56 = vld [vmem:[#allocation56_spill] sm:$0xff]  ;;  %v3252_v62 = vadd.f32 %v3251_v51, %v3250_v58 }
 0x42e   :  { %v2035_v33 = vpop.permute.xlu1 %2034  ;;  %v3283_v46 = vadd.f32 %v3282_v31, %v3281_v2  ;;  %v2031_v30 = vpop.permute.xlu0 %2030  ;;  %v386_v2 = vld [vmem:[%s14071_s0 + $0xb68] sm:$0xff]  ;;  %v2409_v14 = vmul.f32 %v14533_v56, %v303_v17  ;;  %v369_v17 = vld [vmem:[%s14071_s0 + $0xae0] sm:$0xff] }
 0x42f   :  { %v2488_v47 = vmul.f32 %v2035_v33, %v382_v34  ;;  %v2487_v42 = vmul.f32 %v2031_v30, %v381_v40  ;;  %v385_v34 = vld [vmem:[%s14071_s0 + $0xb60] sm:$0xff]  ;;  %v14531_v40 = vld [vmem:[#allocation53_spill] sm:$0xff]  ;;  %v3112_v33 = vadd.f32 %v3111_v12, %v3110_v0  ;;  %v3253_v0 = vsel %vm2511_vm1, %v2473_v55, 0.0 }
 0x430   :  { %v3285_v22 = vadd.f32 %v3284_v4, %v3283_v46  ;;  %v2408_v5 = vmul.f32 %v14531_v40, %v302_v60  ;;  %v3182_v46 = vsel %vm2511_vm1, %v2440_v21, 0.0  ;;  %v337_v60 = vld [vmem:[%s14071_s0 + $0x9e0] sm:$0xff] }
 0x431   :  { %v3286_v43 = vsel %vm2511_vm1, %v2487_v42, 0.0  ;;  %v3288_v29 = vsel %vm2511_vm1, %v2488_v47, 0.0  ;;  %v336_v47 = vld [vmem:[%s14071_s0 + $0x9d8] sm:$0xff]  ;;  %v3183_v42 = vadd.f32 %v3182_v46, %v3181_v7  ;;  %v390_v7 = vld [vmem:[%s14071_s0 + $0xb88] sm:$0xff] }
 0x432   :  { %v2043_v10 = vpop.permute.xlu1 %2042  ;;  %v3287_v11 = vadd.f32 %v3286_v43, %v3285_v22  ;;  %v2039_v44 = vpop.permute.xlu0 %2038  ;;  %v3113_v22 = vsel %vm2511_vm1, %v2408_v5, 0.0  ;;  %v3254_v5 = vadd.f32 %v3253_v0, %v3252_v62  ;;  %v338_v46 = vld [vmem:[%s14071_s0 + $0x9e8] sm:$0xff] }
 0x433   :  { %v2490_v19 = vmul.f32 %v2043_v10, %v384_v28  ;;  %v2489_v24 = vmul.f32 %v2039_v44, %v383_v48  ;;  %v3184_v28 = vsel %vm2511_vm1, %v2441_v63, 0.0  ;;  %v368_v48 = vld [vmem:[%s14071_s0 + $0xad8] sm:$0xff]  ;;  %v3114_v43 = vadd.f32 %v3113_v22, %v3112_v33 }
 0x434   :  { %v3289_v53 = vadd.f32 %v3288_v29, %v3287_v11  ;;  %v3115_v10 = vsel %vm2511_vm1, %v2409_v14, 0.0  ;;  %v14534_v11 = vld [vmem:[#allocation64_spill] sm:$0xff]  ;;  %v3185_v29 = vadd.f32 %v3184_v28, %v3183_v42  ;;  %v306_v28 = vld [vmem:[%s14071_s0 + $0x8e8] sm:$0xff] }
 0x435   :  { %v3290_v52 = vsel %vm2511_vm1, %v2489_v24, 0.0  ;;  %v3292_v30 = vsel %vm2511_vm1, %v2490_v19, 0.0  ;;  %v2442_v44 = vmul.f32 %v14534_v11, %v336_v47  ;;  %v2474_v19 = vmul.f32 %v10640_v61, %v368_v48  ;;  %v391_v47 = vld [vmem:[%s14071_s0 + $0xb90] sm:$0xff] }
 0x436   :  { %v2051_v31 = vpop.permute.xlu1 %2050  ;;  %v3291_v18 = vadd.f32 %v3290_v52, %v3289_v53  ;;  %v2047_v59 = vpop.permute.xlu0 %2046  ;;  %v14535_v53 = vld [vmem:[#allocation46_spill] sm:$0xff]  ;;  %v3116_v58 = vadd.f32 %v3115_v10, %v3114_v43  ;;  %v14537_v52 = vld [vmem:[#allocation32_spill] sm:$0xff] }
 0x437   :  { %v2492_v49 = vmul.f32 %v2051_v31, %v386_v2  ;;  %v2491_v4 = vmul.f32 %v2047_v59, %v385_v34  ;;  %v2410_v2 = vmul.f32 %v14535_v53, %v304_v35  ;;  %v14536_v34 = vld [vmem:[#allocation95_spill] sm:$0xff]  ;;  %v2411_v61 = vmul.f32 %v14537_v52, %v305_v41  ;;  %v307_v10 = vld [vmem:[%s14071_s0 + $0x8f0] sm:$0xff] }
 0x438   :  { %v3293_v20 = vadd.f32 %v3292_v30, %v3291_v18  ;;  %v2443_v40 = vmul.f32 %v14536_v34, %v337_v60  ;;  %v2475_v31 = vmul.f32 %v10665_v25, %v369_v17  ;;  %v3186_v14 = vsel %vm2511_vm1, %v2442_v44, 0.0  ;;  %v392_v25 = vld [vmem:[%s14071_s0 + $0xb98] sm:$0xff] }
 0x439   :  { %v3294_v6 = vsel %vm2511_vm1, %v2491_v4, 0.0  ;;  %v3296_v3 = vsel %vm2511_vm1, %v2492_v49, 0.0  ;;  %v3187_v30 = vadd.f32 %v3186_v14, %v3185_v29  ;;  %v3255_v49 = vsel %vm2511_vm1, %v2474_v19, 0.0  ;;  %v14538_v60 = vld [vmem:[#allocation57_spill] sm:$0xff] }
 0x43a   :  { %v2059_v37 = vpop.permute.xlu1 %2058  ;;  %v3295_v12 = vadd.f32 %v3294_v6, %v3293_v20  ;;  %v2055_v26 = vpop.permute.xlu0 %2054  ;;  %v3117_v42 = vsel %vm2511_vm1, %v2410_v2, 0.0  ;;  %v3188_v51 = vsel %vm2511_vm1, %v2443_v40, 0.0  ;;  %v370_v20 = vld [vmem:[%s14071_s0 + $0xae8] sm:$0xff]  ;;  %v3119_v62 = vsel %vm2511_vm1, %v2411_v61, 0.0  ;;  %v339_v6 = vld [vmem:[%s14071_s0 + $0x9f0] sm:$0xff]  ;;  %v14539_v29 = vld [vmem:[#allocation21_spill] sm:$0xff] }
 0x43b   :  { %v2494_v21 = vmul.f32 %v2059_v37, %v388_v54  ;;  %v2493_v1 = vmul.f32 %v2055_v26, %v387_v13  ;;  %v3256_v54 = vadd.f32 %v3255_v49, %v3254_v5  ;;  %v3118_v48 = vadd.f32 %v3117_v42, %v3116_v58  ;;  %v14541_v40 = vld [vmem:[#allocation24_spill] sm:$0xff] }
 0x43c   :  { %v3297_v24 = vadd.f32 %v3296_v3, %v3295_v12  ;;  %v3257_v37 = vsel %vm2511_vm1, %v2475_v31, 0.0  ;;  %v2444_v0 = vmul.f32 %v14538_v60, %v338_v46  ;;  %v371_v12 = vld [vmem:[%s14071_s0 + $0xaf0] sm:$0xff]  ;;  %v3189_v44 = vadd.f32 %v3188_v51, %v3187_v30  ;;  %v372_v30 = vld [vmem:[%s14071_s0 + $0xaf8] sm:$0xff]  ;;  %v397_v60 = vld [vmem:[%s14071_s0 + $0xbc0] sm:$0xff] }
 0x43d   :  { %v3298_v50 = vsel %vm2511_vm1, %v2493_v1, 0.0  ;;  %v3300_v55 = vsel %vm2511_vm1, %v2494_v21, 0.0  ;;  %v2476_v17 = vmul.f32 %v10662_v8, %v370_v20  ;;  %v394_v21 = vld [vmem:[%s14071_s0 + $0xba8] sm:$0xff]  ;;  %v393_v1 = vld [vmem:[%s14071_s0 + $0xba0] sm:$0xff]  ;;  %v2412_v19 = vmul.f32 %v14539_v29, %v306_v28 }
 0x43e   :  { %v2070_v63 = vpop.permute.xlu1 %2069  ;;  %v3299_v33 = vadd.f32 %v3298_v50, %v3297_v24  ;;  %v2066_v56 = vpop.permute.xlu0 %2065  ;;  %v14540_v24 = vld [vmem:[#allocation60_spill] sm:$0xff]  ;;  %v3120_v34 = vadd.f32 %v3119_v62, %v3118_v48  ;;  %v2413_v8 = vmul.f32 %v14541_v40, %v307_v10  ;;  %v2477_v5 = vmul.f32 %v10687_v16, %v371_v12  ;;  %v396_v16 = vld [vmem:[%s14071_s0 + $0xbb8] sm:$0xff]  ;;  %v398_v10 = vld [vmem:[%s14071_s0 + $0xbc8] sm:$0xff] }
 0x43f   :  { %v2496_v18 = vmul.f32 %v2070_v63, %v390_v7  ;;  %v2495_v59 = vmul.f32 %v2066_v56, %v389_v45  ;;  %v2445_v7 = vmul.f32 %v14540_v24, %v339_v6  ;;  %v3258_v45 = vadd.f32 %v3257_v37, %v3256_v54 }
 0x440   :  { %v3301_v4 = vadd.f32 %v3300_v55, %v3299_v33  ;;  %v3190_v58 = vsel %vm2511_vm1, %v2444_v0, 0.0  ;;  %v340_v33 = vld [vmem:[%s14071_s0 + $0x9f8] sm:$0xff]  ;;  %v3259_v14 = vsel %vm2511_vm1, %v2476_v17, 0.0  ;;  %v3123_v51 = vsel %vm2511_vm1, %v2413_v8, 0.0 }
 0x441   :  { %v3302_v13 = vsel %vm2511_vm1, %v2495_v59, 0.0  ;;  %v3304_v26 = vsel %vm2511_vm1, %v2496_v18, 0.0  ;;  %v3191_v56 = vadd.f32 %v3190_v58, %v3189_v44  ;;  %v395_v18 = vld [vmem:[%s14071_s0 + $0xbb0] sm:$0xff]  ;;  %v3121_v59 = vsel %vm2511_vm1, %v2412_v19, 0.0  ;;  %v14543_v0 = vld [vmem:[#allocation45_spill] sm:$0xff] }
 0x442   :  { %v2078_v22 = vpop.permute.xlu1 %2077  ;;  %v3303_v35 = vadd.f32 %v3302_v13, %v3301_v4  ;;  %v2074_v43 = vpop.permute.xlu0 %2073  ;;  %v3192_v46 = vsel %vm2511_vm1, %v2445_v7, 0.0  ;;  %v3260_v49 = vadd.f32 %v3259_v14, %v3258_v45  ;;  %v3122_v42 = vadd.f32 %v3121_v59, %v3120_v34  ;;  %v400_v45 = vld [vmem:[%s14071_s0 + $0xbd8] sm:$0xff]  ;;  %v401_v14 = vld [vmem:[%s14071_s0 + $0xbe0] sm:$0xff] }
 0x443   :  { %v2498_v41 = vmul.f32 %v2078_v22, %v392_v25  ;;  %v2497_v11 = vmul.f32 %v2074_v43, %v391_v47  ;;  %v308_v47 = vld [vmem:[%s14071_s0 + $0x8f8] sm:$0xff]  ;;  %v3261_v20 = vsel %vm2511_vm1, %v2477_v5, 0.0  ;;  %v14542_v22 = vld [vmem:[#allocation96_spill] sm:$0xff]  ;;  %v3193_v37 = vadd.f32 %v3192_v46, %v3191_v56  ;;  %v402_v56 = vld [vmem:[%s14071_s0 + $0xbe8] sm:$0xff] }
 0x444   :  { %v3305_v3 = vadd.f32 %v3304_v26, %v3303_v35  ;;  %v2446_v28 = vmul.f32 %v14542_v22, %v340_v33  ;;  %v2478_v35 = vmul.f32 %v10681_v57, %v372_v30  ;;  %v2414_v12 = vmul.f32 %v14543_v0, %v308_v47 }
 0x445   :  { %v3306_v53 = vsel %vm2511_vm1, %v2497_v11, 0.0  ;;  %v3308_v52 = vsel %vm2511_vm1, %v2498_v41, 0.0  ;;  %v3262_v26 = vadd.f32 %v3261_v20, %v3260_v49  ;;  %v3124_v44 = vadd.f32 %v3123_v51, %v3122_v42  ;;  %v404_v51 = vld [vmem:[%s14071_s0 + $0xbf8] sm:$0xff]  ;;  %v403_v20 = vld [vmem:[%s14071_s0 + $0xbf0] sm:$0xff] }
 0x446   :  { %v2086_v2 = vpop.permute.xlu1 %2085  ;;  %v3307_v50 = vadd.f32 %v3306_v53, %v3305_v3  ;;  %v2082_v63 = vpop.permute.xlu0 %2081  ;;  %v3194_v57 = vsel %vm2511_vm1, %v2446_v28, 0.0  ;;  %v3263_v24 = vsel %vm2511_vm1, %v2478_v35, 0.0  ;;  %v399_v53 = vld [vmem:[%s14071_s0 + $0xbd0] sm:$0xff] }
 0x447   :  { %v2500_v61 = vmul.f32 %v2086_v2, %v394_v21  ;;  %v2499_v31 = vmul.f32 %v2082_v63, %v393_v1  ;;  %v3195_v19 = vadd.f32 %v3194_v57, %v3193_v37  ;;  %v3125_v2 = vsel %vm2511_vm1, %v2414_v12, 0.0 }
 0x448   :  { %v3309_v55 = vadd.f32 %v3308_v52, %v3307_v50  ;;  %v3264_v34 = vadd.f32 %v3263_v24, %v3262_v26  ;;  %v3126_v5 = vadd.f32 %v3125_v2, %v3124_v44 }
 0x449   :  { %v3310_v4 = vsel %vm2511_vm1, %v2499_v31, 0.0  ;;  %v3312_v48 = vsel %vm2511_vm1, %v2500_v61, 0.0  ;;  %v3196_v31 = vrot.slane %v3195_v19, 4 }
 0x44a   :  { %v2094_v25 = vpop.permute.xlu1 %2093  ;;  %v3311_v54 = vadd.f32 %v3310_v4, %v3309_v55  ;;  %v2090_v13 = vpop.permute.xlu0 %2089  ;;  %v3265_v55 = vrot.slane %v3264_v34, 4  ;;  %v3127_v59 = vrot.slane %v3126_v5, 4 }
 0x44b   :  { %v2502_v62 = vmul.f32 %v2094_v25, %v396_v16  ;;  %v2501_v6 = vmul.f32 %v2090_v13, %v395_v18  ;;  %v3197_v47 = vadd.f32 %v3196_v31, %v3195_v19 }
 0x44c   :  { %v3313_v43 = vadd.f32 %v3312_v48, %v3311_v54  ;;  %v3266_v54 = vadd.f32 %v3265_v55, %v3264_v34  ;;  %v3128_v28 = vadd.f32 %v3127_v59, %v3126_v5 }
 0x44d   :  { %v3314_v41 = vsel %vm2511_vm1, %v2501_v6, 0.0  ;;  %v3316_v21 = vsel %vm2511_vm1, %v2502_v62, 0.0 }
 0x44e   :  { %v2102_v11 = vpop.permute.xlu1 %2101  ;;  %v3315_v17 = vadd.f32 %v3314_v41, %v3313_v43  ;;  %v2098_v3 = vpop.permute.xlu0 %2097  ;;  %v3198_v43 = vrot.slane %v3197_v47, 2  ;;  %v3129_v12 = vrot.slane %v3128_v28, 2 }
 0x44f   :  { %v2504_v1 = vmul.f32 %v2102_v11, %v398_v10  ;;  %v2503_v29 = vmul.f32 %v2098_v3, %v397_v60  ;;  %v3267_v60 = vrot.slane %v3266_v54, 2 }
 0x450   :  { %v3317_v7 = vadd.f32 %v3316_v21, %v3315_v17  ;;  %v3199_v11 = vadd.f32 %v3198_v43, %v3197_v47  ;;  %v3130_v3 = vadd.f32 %v3129_v12, %v3128_v28 }
 0x451   :  { %v3318_v40 = vsel %vm2511_vm1, %v2503_v29, 0.0  ;;  %v3320_v58 = vsel %vm2511_vm1, %v2504_v1, 0.0  ;;  %v3268_v17 = vadd.f32 %v3267_v60, %v3266_v54 }
 0x452   :  { %v2110_v8 = vpop.permute.xlu1 %2109  ;;  %v3319_v50 = vadd.f32 %v3318_v40, %v3317_v7  ;;  %v2106_v63 = vpop.permute.xlu0 %2105  ;;  %v3200_v21 = vrot.slane %v3199_v11, 1  ;;  %v3131_v19 = vrot.slane %v3130_v3, 1 }
 0x453   :  { %v2506_v52 = vmul.f32 %v2110_v8, %v400_v45  ;;  %v2505_v61 = vmul.f32 %v2106_v63, %v399_v53  ;;  %v3269_v29 = vrot.slane %v3268_v17, 1 }
 0x454   :  { %v3321_v33 = vadd.f32 %v3320_v58, %v3319_v50  ;;  %v11001_v7 = vadd.f32 %v3200_v21, %v3199_v11  ;;  %v11005_v2 = vadd.f32 %v3131_v19, %v3130_v3 }
 0x455   :  { %v3322_v16 = vsel %vm2511_vm1, %v2505_v61, 0.0  ;;  %v3324_v49 = vsel %vm2511_vm1, %v2506_v52, 0.0  ;;  %v11003_v53 = vadd.f32 %v3269_v29, %v3268_v17 }
 0x456   :  { %v2118_v18 = vpop.permute.xlu1 %2117  ;;  %v3323_v46 = vadd.f32 %v3322_v16, %v3321_v33  ;;  %v2114_v30 = vpop.permute.xlu0 %2113  ;;  %v3366_v8 = vsel %vm14096_vm2, %v11001_v7, %v11005_v2 }
 0x457   :  { %v2508_v4 = vmul.f32 %v2118_v18, %v402_v56  ;;  %v2507_v25 = vmul.f32 %v2114_v30, %v401_v14  ;;  %v3367_v5 = vsel %vm14095_vm3, %v11003_v53, %v3366_v8 }
 0x458   :  { %v3325_v42 = vadd.f32 %v3324_v49, %v3323_v46 }
 0x459   :  { %v3326_v13 = vsel %vm2511_vm1, %v2507_v25, 0.0  ;;  %v3328_v6 = vsel %vm2511_vm1, %v2508_v4, 0.0 }
 0x45a   :  { %v2126_v22 = vpop.permute.xlu1 %2125  ;;  %v3327_v48 = vadd.f32 %v3326_v13, %v3325_v42  ;;  %v2122_v62 = vpop.permute.xlu0 %2121 }
 0x45b   :  { %v2510_v37 = vmul.f32 %v2126_v22, %v404_v51  ;;  %v2509_v35 = vmul.f32 %v2122_v62, %v403_v20 }
 0x45c   :  { %v3329_v10 = vadd.f32 %v3328_v6, %v3327_v48 }
 0x45d   :  { %v3330_v0 = vsel %vm2511_vm1, %v2509_v35, 0.0  ;;  %v3332_v41 = vsel %vm2511_vm1, %v2510_v37, 0.0 }
 0x45e   :  { %v3331_v26 = vadd.f32 %v3330_v0, %v3329_v10 }
 0x460   :  { %v3333_v44 = vadd.f32 %v3332_v41, %v3331_v26 }
 0x462   :  { %v3334_v57 = vrot.slane %v3333_v44, 4 }
 0x464   :  { %v3335_v1 = vadd.f32 %v3334_v57, %v3333_v44 }
 0x466   :  { %v3336_v24 = vrot.slane %v3335_v1, 2 }
 0x468   :  { %v3337_v45 = vadd.f32 %v3336_v24, %v3335_v1 }
 0x46a   :  { %v3338_v34 = vrot.slane %v3337_v45, 1 }
 0x46c   :  { %v11007_v40 = vadd.f32 %v3338_v34, %v3337_v45 }
 0x46e   :  { %v3368_v50 = vsel %vm14094_vm4, %v11007_v40, %v3367_v5 }
 0x46f   :  { %v3375_v63 = vsel %vm14092_vm9, %v3368_v50, -inf }
 0x470   :  { %3376 = vmax.xlane.f32.xlu1 %v3375_v63 }
 0x494   :  { %v3373_v58 = vpop.xlane.xlu0 %3372 }
 0x495   :  { %v3380_v52 = vrot.slane %v3373_v58, 1  ;;  %v3381_v61 = vrot.slane %v3373_v58, 2  ;;  %v3382_v31 = vrot.slane %v3373_v58, 3  ;;  %v3383_v33 = vrot.slane %v3373_v58, 4 }
 0x496   :  { %v3384_v56 = vrot.slane %v3373_v58, 5  ;;  %v3402_v14 = vsub.f32 %v10235_v23, %v3373_v58  ;;  %v3385_v55 = vrot.slane %v3373_v58, 6  ;;  %v3386_v16 = vrot.slane %v3373_v58, 7 }
 0x497   :  { %v3403_v18 = vsub.f32 %v10471_v15, %v3380_v52  ;;  %v3404_v59 = vsub.f32 %v10495_v27, %v3381_v61  ;;  %v3405_v46 = vsub.f32 %v10499_v9, %v3382_v31  ;;  %v3406_v30 = vsub.f32 %v10526_v36, %v3383_v33 }
 0x498   :  { %v3414_v49 = vmul.f32 1.442695, %v3402_v14  ;;  %v3407_v4 = vsub.f32 %v10537_v38, %v3384_v56  ;;  %v3408_v25 = vsub.f32 %v10541_v32, %v3385_v55  ;;  %v3409_v23 = vsub.f32 %v10545_v39, %v3386_v16 }
 0x499   :  { %v3416_v47 = vmul.f32 1.442695, %v3403_v18  ;;  %v3418_v42 = vmul.f32 1.442695, %v3404_v59  ;;  %v3420_v51 = vmul.f32 1.442695, %v3405_v46 }
 0x49a   :  { %7551 = vpow2.f32 %v3414_v49  ;;  %v3422_v20 = vmul.f32 1.442695, %v3406_v30  ;;  %v3424_v15 = vmul.f32 1.442695, %v3407_v4  ;;  %v3426_v27 = vmul.f32 1.442695, %v3408_v25 }
 0x49b   :  { %7553 = vpow2.f32 %v3416_v47  ;;  %v3428_v9 = vmul.f32 1.442695, %v3409_v23  ;;  %v14544_v18 = vld [vmem:[#allocation9_spill] sm:$0xff]  ;;  %v7599_v46 = vld [vmem:[%s14071_s0 + $0x8] sm:$0xff]  ;;  %v7600_v49 = vld [vmem:[%s14071_s0] sm:$0xff] }
 0x49c   :  { %7555 = vpow2.f32 %v3418_v42  ;;  %v7601_v42 = vld [vmem:[%s14071_s0 + $0x18] sm:$0xff]  ;;  %v7602_v23 = vld [vmem:[%s14071_s0 + $0x10] sm:$0xff] }
 0x49d   :  { %7557 = vpow2.f32 %v3420_v51 }
 0x49e   :  { %7559 = vpow2.f32 %v3422_v20 }
 0x49f   :  { %7561 = vpow2.f32 %v3424_v15 }
 0x4a0   :  { %7563 = vpow2.f32 %v3426_v27 }
 0x4a1   :  { %7565 = vpow2.f32 %v3428_v9  ;;  %v7603_v9 = vld [vmem:[%s14071_s0 + $0x28] sm:$0xff] }
 0x4a4   :  { %v7552_v36 = vpop.eup %7551 }
 0x4a5   :  { %v11025_v38 = vpop.eup %7553 }
 0x4a6   :  { %v11027_v32 = vpop.eup %7555  ;;  %v3450_v54 = vrot.slane %v11025_v38, 7 }
 0x4a7   :  { %v11030_v39 = vpop.eup %7557  ;;  %v3452_v13 = vrot.slane %v11027_v32, 6 }
 0x4a8   :  { %v11033_v22 = vpop.eup %7559  ;;  %v3451_v28 = vsel %vm14096_vm2, %v3450_v54, %v7552_v36  ;;  %v3454_v48 = vrot.slane %v11030_v39, 5  ;;  %v7604_v54 = vld [vmem:[%s14071_s0 + $0x20] sm:$0xff] }
 0x4a9   :  { %v11037_v62 = vpop.eup %7561  ;;  %v3453_v6 = vsel %vm14095_vm3, %v3452_v13, %v3451_v28  ;;  %v3456_v37 = vrot.slane %v11033_v22, 4 }
 0x4aa   :  { %v11041_v35 = vpop.eup %7563  ;;  %v3455_v43 = vsel %vm14094_vm4, %v3454_v48, %v3453_v6  ;;  %v3458_v10 = vrot.slane %v11037_v62, 3  ;;  %v7605_v6 = vld [vmem:[%s14071_s0 + $0x38] sm:$0xff] }
 0x4ab   :  { %v11045_v60 = vpop.eup %7565  ;;  %v3457_v0 = vsel %vm14093_vm5, %v3456_v37, %v3455_v43  ;;  %v3460_v12 = vrot.slane %v11041_v35, 2  ;;  %v7606_v43 = vld [vmem:[%s14071_s0 + $0x30] sm:$0xff]  ;;  %vm14098_vm5 = vcmask 851712  }
 0x4ac   :  { %v3459_v26 = vsel %vm14091_vm6, %v3458_v10, %v3457_v0  ;;  %v3462_v41 = vrot.slane %v11045_v60, 1  ;;  %vm14100_vm6 = vcmask 720512  }
 0x4ad   :  { %v3461_v11 = vsel %vm14090_vm7, %v3460_v12, %v3459_v26  ;;  %v7607_v26 = vld [vmem:[%s14071_s0 + $0x48] sm:$0xff]  ;;  %vm5561_vm7 = vcmask 654912  }
 0x4ae   :  { %v3463_v44 = vsel %vm14089_vm8, %v3462_v41, %v3461_v11  ;;  %v7608_v11 = vld [vmem:[%s14071_s0 + $0x40] sm:$0xff]  ;;  %vm5554_vm8 = vcmask 589312  }
 0x4af   :  { %v3472_v17 = vsel %vm2511_vm1, %v3463_v44, 0.0 }
 0x4b0   :  { %3473 = vadd.xlane.f32.xlu0 %v3472_v17 }
 0x4fd   :  { %v3377_v3 = vpop.xlane.xlu1 %3376 }
 0x4fe   :  { %v3387_v57 = vrot.slane %v3377_v3, 1  ;;  %v3388_v21 = vrot.slane %v3377_v3, 2  ;;  %v3389_v1 = vrot.slane %v3377_v3, 3  ;;  %v3410_v29 = vsub.f32 %v11005_v2, %v3377_v3 }
 0x500   :  { %v3411_v19 = vsub.f32 %v11001_v7, %v3387_v57  ;;  %v3412_v24 = vsub.f32 %v11003_v53, %v3388_v21  ;;  %v3413_v45 = vsub.f32 %v11007_v40, %v3389_v1  ;;  %v3430_v34 = vmul.f32 1.442695, %v3410_v29  ;;  %v7609_v57 = vld [vmem:[%s14071_s0 + $0x58] sm:$0xff]  ;;  %v7610_v1 = vld [vmem:[%s14071_s0 + $0x50] sm:$0xff] }
 0x502   :  { %v3432_v8 = vmul.f32 1.442695, %v3411_v19  ;;  %v3434_v5 = vmul.f32 1.442695, %v3412_v24  ;;  %v3436_v50 = vmul.f32 1.442695, %v3413_v45  ;;  %7567 = vpow2.f32 %v3430_v34 }
 0x503   :  { %v7611_v45 = vld [vmem:[%s14071_s0 + $0x68] sm:$0xff] }
 0x504   :  { %7569 = vpow2.f32 %v3432_v8  ;;  %v7612_v8 = vld [vmem:[%s14071_s0 + $0x60] sm:$0xff] }
 0x505   :  { %7571 = vpow2.f32 %v3434_v5 }
 0x506   :  { %7573 = vpow2.f32 %v3436_v50 }
 0x50c   :  { %v11058_v63 = vpop.eup %7567 }
 0x50e   :  { %v11060_v58 = vpop.eup %7569 }
 0x50f   :  { %v11062_v52 = vpop.eup %7571  ;;  %v3464_v7 = vrot.slane %v11060_v58, 7 }
 0x510   :  { %v11065_v2 = vpop.eup %7573  ;;  %v3466_v53 = vrot.slane %v11062_v52, 6 }
 0x511   :  { %v3465_v40 = vsel %vm14096_vm2, %v3464_v7, %v11058_v63  ;;  %v3468_v61 = vrot.slane %v11065_v2, 5  ;;  %vm5603_vm2 = vcmask 1048512  }
 0x512   :  { %v3467_v31 = vsel %vm14095_vm3, %v3466_v53, %v3465_v40  ;;  %v7613_v53 = vld [vmem:[%s14071_s0 + $0x78] sm:$0xff]  ;;  %vm14101_vm3 = vcmask 982912  }
 0x513   :  { %v3469_v33 = vsel %vm14094_vm4, %v3468_v61, %v3467_v31  ;;  %v7614_v61 = vld [vmem:[%s14071_s0 + $0x70] sm:$0xff]  ;;  %vm14097_vm4 = vcmask 917312  }
 0x514   :  { %v3475_v56 = vsel %vm14092_vm9, %v3469_v33, 0.0  ;;  %vm14099_vm9 = vcmask 786112  }
 0x515   :  { %3476 = vadd.xlane.f32.xlu0 %v3475_v56 }
 0x53d   :  { %v11074_v14 = vpop.xlane.xlu0 %3473 }
 0x53e   :  { %7575 = vrcp.f32 %v11074_v14 }
 0x548   :  { %v7576_v55 = vpop.eup %7575 }
 0x549   :  { %v11077_v16 = vmul.f32 %v7576_v55, %v7552_v36  ;;  %v7615_v55 = vld [vmem:[%s14071_s0 + $0x88] sm:$0xff] }
 0x54b   :  { %v11081_v59 = vrot.slane %v11077_v16, %v14544_v18 }
 0x54d   :  { %v3575_v30 = vmul.f32 %v7599_v46, %v11081_v59  ;;  %v3574_v4 = vmul.f32 %v7600_v49, %v11081_v59  ;;  %v3577_v51 = vmul.f32 %v7601_v42, %v11081_v59  ;;  %v3576_v20 = vmul.f32 %v7602_v23, %v11081_v59 }
 0x54e   :  { %v3579_v36 = vmul.f32 %v7603_v9, %v11081_v59  ;;  %v3578_v13 = vmul.f32 %v7604_v54, %v11081_v59  ;;  %v3581_v37 = vmul.f32 %v7605_v6, %v11081_v59  ;;  %v3580_v10 = vmul.f32 %v7606_v43, %v11081_v59  ;;  %v7619_v9 = vld [vmem:[%s14071_s0 + $0xa8] sm:$0xff]  ;;  %v7620_v54 = vld [vmem:[%s14071_s0 + $0xa0] sm:$0xff]  ;;  %v7621_v6 = vld [vmem:[%s14071_s0 + $0xb8] sm:$0xff] }
 0x54f   :  { %v3961_v25 = vsel %vm2511_vm1, %v3575_v30, 0.0  ;;  %v3958_v47 = vsel %vm2511_vm1, %v3574_v4, 0.0  ;;  %v3967_v15 = vsel %vm2511_vm1, %v3577_v51, 0.0  ;;  %v3964_v27 = vsel %vm2511_vm1, %v3576_v20, 0.0  ;;  %v7616_v30 = vld [vmem:[%s14071_s0 + $0x80] sm:$0xff]  ;;  %v7618_v51 = vld [vmem:[%s14071_s0 + $0x90] sm:$0xff] }
 0x550   :  { %3962 = vadd.xlane.f32.xlu0 %v3961_v25  ;;  %3959 = vadd.xlane.f32.xlu1 %v3958_v47  ;;  %v3973_v28 = vsel %vm2511_vm1, %v3579_v36, 0.0  ;;  %v3970_v48 = vsel %vm2511_vm1, %v3578_v13, 0.0  ;;  %v3979_v0 = vsel %vm2511_vm1, %v3581_v37, 0.0  ;;  %v3976_v12 = vsel %vm2511_vm1, %v3580_v10, 0.0  ;;  %v7617_v47 = vld [vmem:[%s14071_s0 + $0x98] sm:$0xff]  ;;  %v7622_v43 = vld [vmem:[%s14071_s0 + $0xb0] sm:$0xff] }
 0x551   :  { %v3583_v41 = vmul.f32 %v7607_v26, %v11081_v59  ;;  %v3582_v44 = vmul.f32 %v7608_v11, %v11081_v59  ;;  %v3585_v21 = vmul.f32 %v7609_v57, %v11081_v59  ;;  %v3584_v29 = vmul.f32 %v7610_v1, %v11081_v59  ;;  %v7623_v26 = vld [vmem:[%s14071_s0 + $0xc8] sm:$0xff]  ;;  %v7624_v11 = vld [vmem:[%s14071_s0 + $0xc0] sm:$0xff] }
 0x552   :  { %v3587_v34 = vmul.f32 %v7611_v45, %v11081_v59  ;;  %v3586_v5 = vmul.f32 %v7612_v8, %v11081_v59  ;;  %v3589_v40 = vmul.f32 %v7613_v53, %v11081_v59  ;;  %v3588_v31 = vmul.f32 %v7614_v61, %v11081_v59  ;;  %v7627_v8 = vld [vmem:[%s14071_s0 + $0xe8] sm:$0xff]  ;;  %v7629_v61 = vld [vmem:[%s14071_s0 + $0xf8] sm:$0xff] }
 0x553   :  { %v3985_v17 = vsel %vm2511_vm1, %v3583_v41, 0.0  ;;  %v3982_v3 = vsel %vm2511_vm1, %v3582_v44, 0.0  ;;  %v3991_v19 = vsel %vm2511_vm1, %v3585_v21, 0.0  ;;  %v3988_v24 = vsel %vm2511_vm1, %v3584_v29, 0.0  ;;  %v7625_v21 = vld [vmem:[%s14071_s0 + $0xd8] sm:$0xff]  ;;  %v7626_v29 = vld [vmem:[%s14071_s0 + $0xd0] sm:$0xff] }
 0x554   :  { %3968 = vadd.xlane.f32.xlu0 %v3967_v15  ;;  %3965 = vadd.xlane.f32.xlu1 %v3964_v27  ;;  %v3997_v50 = vsel %vm2511_vm1, %v3587_v34, 0.0  ;;  %v3994_v7 = vsel %vm2511_vm1, %v3586_v5, 0.0  ;;  %v4003_v33 = vsel %vm2511_vm1, %v3589_v40, 0.0  ;;  %v4000_v56 = vsel %vm2511_vm1, %v3588_v31, 0.0 }
 0x555   :  { %v3591_v46 = vmul.f32 %v7615_v55, %v11081_v59  ;;  %v3590_v49 = vmul.f32 %v7616_v30, %v11081_v59  ;;  %v3593_v42 = vmul.f32 %v7617_v47, %v11081_v59  ;;  %v3592_v23 = vmul.f32 %v7618_v51, %v11081_v59  ;;  %v7631_v30 = vld [vmem:[%s14071_s0 + $0x108] sm:$0xff] }
 0x556   :  { %v3480_v20 = vrot.slane %v11074_v14, 1  ;;  %v3595_v36 = vmul.f32 %v7619_v9, %v11081_v59  ;;  %v3594_v13 = vmul.f32 %v7620_v54, %v11081_v59  ;;  %v3597_v37 = vmul.f32 %v7621_v6, %v11081_v59  ;;  %v7635_v9 = vld [vmem:[%s14071_s0 + $0x128] sm:$0xff]  ;;  %v7636_v54 = vld [vmem:[%s14071_s0 + $0x120] sm:$0xff]  ;;  %v7637_v6 = vld [vmem:[%s14071_s0 + $0x138] sm:$0xff] }
 0x557   :  { %v4009_v4 = vsel %vm2511_vm1, %v3591_v46, 0.0  ;;  %v4006_v25 = vsel %vm2511_vm1, %v3590_v49, 0.0  ;;  %v4015_v15 = vsel %vm2511_vm1, %v3593_v42, 0.0  ;;  %v4012_v27 = vsel %vm2511_vm1, %v3592_v23, 0.0  ;;  %v7633_v42 = vld [vmem:[%s14071_s0 + $0x118] sm:$0xff]  ;;  %v7634_v23 = vld [vmem:[%s14071_s0 + $0x110] sm:$0xff] }
 0x558   :  { %3974 = vadd.xlane.f32.xlu0 %v3973_v28  ;;  %3971 = vadd.xlane.f32.xlu1 %v3970_v48  ;;  %7577 = vrcp.f32 %v3480_v20  ;;  %v4021_v28 = vsel %vm2511_vm1, %v3595_v36, 0.0  ;;  %v4018_v48 = vsel %vm2511_vm1, %v3594_v13, 0.0  ;;  %v3596_v10 = vmul.f32 %v7622_v43, %v11081_v59  ;;  %v7638_v43 = vld [vmem:[%s14071_s0 + $0x130] sm:$0xff] }
 0x559   :  { %v3599_v41 = vmul.f32 %v7623_v26, %v11081_v59  ;;  %v3598_v44 = vmul.f32 %v7624_v11, %v11081_v59  ;;  %v3601_v1 = vmul.f32 %v7625_v21, %v11081_v59  ;;  %v3603_v5 = vmul.f32 %v7627_v8, %v11081_v59  ;;  %v7639_v26 = vld [vmem:[%s14071_s0 + $0x148] sm:$0xff]  ;;  %v7640_v11 = vld [vmem:[%s14071_s0 + $0x140] sm:$0xff] }
 0x55a   :  { %v3605_v31 = vmul.f32 %v7629_v61, %v11081_v59 }
 0x55b   :  { %v4030_v57 = vsel %vm2511_vm1, %v3598_v44, 0.0  ;;  %v4039_v45 = vsel %vm2511_vm1, %v3601_v1, 0.0  ;;  %v4045_v53 = vsel %vm2511_vm1, %v3603_v5, 0.0  ;;  %v7642_v1 = vld [vmem:[%s14071_s0 + $0x150] sm:$0xff]  ;;  %v7644_v5 = vld [vmem:[%s14071_s0 + $0x160] sm:$0xff] }
 0x55c   :  { %3980 = vadd.xlane.f32.xlu0 %v3979_v0  ;;  %3977 = vadd.xlane.f32.xlu1 %v3976_v12  ;;  %v4027_v0 = vsel %vm2511_vm1, %v3597_v37, 0.0  ;;  %v4024_v12 = vsel %vm2511_vm1, %v3596_v10, 0.0  ;;  %v4051_v55 = vsel %vm2511_vm1, %v3605_v31, 0.0  ;;  %v7646_v31 = vld [vmem:[%s14071_s0 + $0x170] sm:$0xff] }
 0x560   :  { %3986 = vadd.xlane.f32.xlu0 %v3985_v17  ;;  %3983 = vadd.xlane.f32.xlu1 %v3982_v3  ;;  %v4033_v3 = vsel %vm2511_vm1, %v3599_v41, 0.0 }
 0x562   :  { %v7578_v17 = vpop.eup %7577 }
 0x564   :  { %3992 = vadd.xlane.f32.xlu0 %v3991_v19  ;;  %3989 = vadd.xlane.f32.xlu1 %v3988_v24  ;;  %v3600_v19 = vmul.f32 %v7626_v29, %v11081_v59  ;;  %v11223_v24 = vmul.f32 %v7578_v17, %v11025_v38 }
 0x566   :  { %v4036_v34 = vsel %vm2511_vm1, %v3600_v19, 0.0  ;;  %v11237_v38 = vrot.slane %v11223_v24, %v14544_v18 }
 0x568   :  { %3998 = vadd.xlane.f32.xlu0 %v3997_v50  ;;  %3995 = vadd.xlane.f32.xlu1 %v3994_v7  ;;  %v7628_v50 = vld [vmem:[%s14071_s0 + $0xe0] sm:$0xff]  ;;  %v3607_v49 = vmul.f32 %v7631_v30, %v11237_v38  ;;  %v3609_v51 = vmul.f32 %v7633_v42, %v11237_v38  ;;  %v3608_v20 = vmul.f32 %v7634_v23, %v11237_v38 }
 0x569   :  { %v3602_v7 = vmul.f32 %v7628_v50, %v11081_v59  ;;  %v3611_v36 = vmul.f32 %v7635_v9, %v11237_v38  ;;  %v3610_v13 = vmul.f32 %v7636_v54, %v11237_v38  ;;  %v3613_v37 = vmul.f32 %v7637_v6, %v11237_v38  ;;  %v7651_v9 = vld [vmem:[%s14071_s0 + $0x1a8] sm:$0xff]  ;;  %v7652_v54 = vld [vmem:[%s14071_s0 + $0x1a0] sm:$0xff]  ;;  %v7653_v6 = vld [vmem:[%s14071_s0 + $0x1b8] sm:$0xff] }
 0x56a   :  { %v3612_v10 = vmul.f32 %v7638_v43, %v11237_v38  ;;  %v3615_v41 = vmul.f32 %v7639_v26, %v11237_v38  ;;  %v3614_v44 = vmul.f32 %v7640_v11, %v11237_v38  ;;  %v3616_v29 = vmul.f32 %v7642_v1, %v11237_v38  ;;  %v7654_v43 = vld [vmem:[%s14071_s0 + $0x1b0] sm:$0xff]  ;;  %v7655_v26 = vld [vmem:[%s14071_s0 + $0x1c8] sm:$0xff]  ;;  %v7656_v11 = vld [vmem:[%s14071_s0 + $0x1c0] sm:$0xff] }
 0x56b   :  { %v4042_v40 = vsel %vm2511_vm1, %v3602_v7, 0.0  ;;  %v3618_v50 = vmul.f32 %v7644_v5, %v11237_v38  ;;  %v7659_v5 = vld [vmem:[%s14071_s0 + $0x1e8] sm:$0xff] }
 0x56c   :  { %4004 = vadd.xlane.f32.xlu0 %v4003_v33  ;;  %4001 = vadd.xlane.f32.xlu1 %v4000_v56  ;;  %v7630_v33 = vld [vmem:[%s14071_s0 + $0xf0] sm:$0xff]  ;;  %v4081_v17 = vsel %vm2511_vm1, %v3615_v41, 0.0  ;;  %v3631_v41 = vmul.f32 %v7655_v26, %v11237_v38 }
 0x56d   :  { %v3604_v56 = vmul.f32 %v7630_v33, %v11081_v59  ;;  %v4057_v59 = vsel %vm2511_vm1, %v3607_v49, 0.0  ;;  %v3620_v33 = vmul.f32 %v7646_v31, %v11237_v38  ;;  %v7648_v49 = vld [vmem:[%s14071_s0 + $0x180] sm:$0xff]  ;;  %v7661_v31 = vld [vmem:[%s14071_s0 + $0x1f8] sm:$0xff] }
 0x56f   :  { %v4048_v46 = vsel %vm2511_vm1, %v3604_v56, 0.0 }
 0x570   :  { %4010 = vadd.xlane.f32.xlu0 %v4009_v4  ;;  %4007 = vadd.xlane.f32.xlu1 %v4006_v25  ;;  %v7632_v4 = vld [vmem:[%s14071_s0 + $0x100] sm:$0xff] }
 0x571   :  { %v3606_v25 = vmul.f32 %v7632_v4, %v11237_v38  ;;  %v3622_v4 = vmul.f32 %v7648_v49, %v11237_v38  ;;  %v7663_v49 = vld [vmem:[%s14071_s0 + $0x208] sm:$0xff] }
 0x573   :  { %v4054_v47 = vsel %vm2511_vm1, %v3606_v25, 0.0 }
 0x574   :  { %4016 = vadd.xlane.f32.xlu0 %v4015_v15  ;;  %4013 = vadd.xlane.f32.xlu1 %v4012_v27  ;;  %v4063_v15 = vsel %vm2511_vm1, %v3609_v51, 0.0  ;;  %v4060_v27 = vsel %vm2511_vm1, %v3608_v20, 0.0  ;;  %v7650_v51 = vld [vmem:[%s14071_s0 + $0x190] sm:$0xff]  ;;  %v3481_v20 = vrot.slane %v11074_v14, 2 }
 0x575   :  { %v3624_v23 = vmul.f32 %v7650_v51, %v11237_v38 }
 0x576   :  { %7579 = vrcp.f32 %v3481_v20 }
 0x578   :  { %4022 = vadd.xlane.f32.xlu0 %v4021_v28  ;;  %4019 = vadd.xlane.f32.xlu1 %v4018_v48  ;;  %v4069_v28 = vsel %vm2511_vm1, %v3611_v36, 0.0  ;;  %v4066_v48 = vsel %vm2511_vm1, %v3610_v13, 0.0  ;;  %v3627_v36 = vmul.f32 %v7651_v9, %v11237_v38  ;;  %v3626_v13 = vmul.f32 %v7652_v54, %v11237_v38  ;;  %v7667_v54 = vld [vmem:[%s14071_s0 + $0x228] sm:$0xff] }
 0x57c   :  { %4028 = vadd.xlane.f32.xlu0 %v4027_v0  ;;  %4025 = vadd.xlane.f32.xlu1 %v4024_v12  ;;  %v4075_v0 = vsel %vm2511_vm1, %v3613_v37, 0.0  ;;  %v4072_v12 = vsel %vm2511_vm1, %v3612_v10, 0.0  ;;  %v3629_v37 = vmul.f32 %v7653_v6, %v11237_v38  ;;  %v3628_v10 = vmul.f32 %v7654_v43, %v11237_v38 }
 0x580   :  { %4034 = vadd.xlane.f32.xlu0 %v4033_v3  ;;  %4031 = vadd.xlane.f32.xlu1 %v4030_v57  ;;  %v4078_v3 = vsel %vm2511_vm1, %v3614_v44, 0.0  ;;  %v7641_v57 = vld [vmem:[%s14071_s0 + $0x158] sm:$0xff]  ;;  %v3630_v44 = vmul.f32 %v7656_v11, %v11237_v38  ;;  %v14546_v11 = vld [vmem:[#allocation8_spill] sm:$0xff] }
 0x581   :  { %v3617_v21 = vmul.f32 %v7641_v57, %v11237_v38 }
 0x582   :  { %v4126_v57 = vsel %vm2511_vm1, %v3630_v44, 0.0 }
 0x583   :  { %v4087_v19 = vsel %vm2511_vm1, %v3617_v21, 0.0  ;;  %v7657_v21 = vld [vmem:[%s14071_s0 + $0x1d8] sm:$0xff] }
 0x584   :  { %4040 = vadd.xlane.f32.xlu0 %v4039_v45  ;;  %4037 = vadd.xlane.f32.xlu1 %v4036_v34  ;;  %v4084_v45 = vsel %vm2511_vm1, %v3616_v29, 0.0  ;;  %v7643_v34 = vld [vmem:[%s14071_s0 + $0x168] sm:$0xff]  ;;  %v3633_v1 = vmul.f32 %v7657_v21, %v11237_v38  ;;  %v7658_v29 = vld [vmem:[%s14071_s0 + $0x1d0] sm:$0xff] }
 0x585   :  { %v3619_v8 = vmul.f32 %v7643_v34, %v11237_v38 }
 0x586   :  { %v4135_v34 = vsel %vm2511_vm1, %v3633_v1, 0.0 }
 0x587   :  { %v4093_v7 = vsel %vm2511_vm1, %v3619_v8, 0.0 }
 0x588   :  { %4046 = vadd.xlane.f32.xlu0 %v4045_v53  ;;  %4043 = vadd.xlane.f32.xlu1 %v4042_v40  ;;  %v4090_v53 = vsel %vm2511_vm1, %v3618_v50, 0.0  ;;  %v7645_v40 = vld [vmem:[%s14071_s0 + $0x178] sm:$0xff]  ;;  %v3635_v50 = vmul.f32 %v7659_v5, %v11237_v38 }
 0x589   :  { %v3621_v61 = vmul.f32 %v7645_v40, %v11237_v38 }
 0x58a   :  { %v4141_v40 = vsel %vm2511_vm1, %v3635_v50, 0.0 }
 0x58b   :  { %v4099_v56 = vsel %vm2511_vm1, %v3621_v61, 0.0 }
 0x58c   :  { %4052 = vadd.xlane.f32.xlu0 %v4051_v55  ;;  %4049 = vadd.xlane.f32.xlu1 %v4048_v46  ;;  %v4096_v55 = vsel %vm2511_vm1, %v3620_v33, 0.0  ;;  %v7647_v46 = vld [vmem:[%s14071_s0 + $0x188] sm:$0xff]  ;;  %v3637_v33 = vmul.f32 %v7661_v31, %v11237_v38 }
 0x58d   :  { %v3623_v30 = vmul.f32 %v7647_v46, %v11237_v38 }
 0x58e   :  { %v4147_v46 = vsel %vm2511_vm1, %v3637_v33, 0.0 }
 0x58f   :  { %v4105_v25 = vsel %vm2511_vm1, %v3623_v30, 0.0 }
 0x590   :  { %4058 = vadd.xlane.f32.xlu0 %v4057_v59  ;;  %4055 = vadd.xlane.f32.xlu1 %v4054_v47  ;;  %v4102_v59 = vsel %vm2511_vm1, %v3622_v4, 0.0  ;;  %v7649_v47 = vld [vmem:[%s14071_s0 + $0x198] sm:$0xff] }
 0x591   :  { %v3625_v42 = vmul.f32 %v7649_v47, %v11237_v38 }
 0x594   :  { %4064 = vadd.xlane.f32.xlu0 %v4063_v15  ;;  %4061 = vadd.xlane.f32.xlu1 %v4060_v27  ;;  %v4111_v15 = vsel %vm2511_vm1, %v3625_v42, 0.0  ;;  %v4108_v27 = vsel %vm2511_vm1, %v3624_v23, 0.0  ;;  %v7665_v42 = vld [vmem:[%s14071_s0 + $0x218] sm:$0xff]  ;;  %v7666_v23 = vld [vmem:[%s14071_s0 + $0x210] sm:$0xff] }
 0x598   :  { %4070 = vadd.xlane.f32.xlu0 %v4069_v28  ;;  %4067 = vadd.xlane.f32.xlu1 %v4066_v48  ;;  %v4117_v28 = vsel %vm2511_vm1, %v3627_v36, 0.0  ;;  %v4114_v48 = vsel %vm2511_vm1, %v3626_v13, 0.0 }
 0x59c   :  { %4076 = vadd.xlane.f32.xlu0 %v4075_v0  ;;  %4073 = vadd.xlane.f32.xlu1 %v4072_v12  ;;  %v4123_v0 = vsel %vm2511_vm1, %v3629_v37, 0.0  ;;  %v4120_v12 = vsel %vm2511_vm1, %v3628_v10, 0.0  ;;  %v7669_v10 = vld [vmem:[%s14071_s0 + $0x238] sm:$0xff] }
 0x5a0   :  { %4082 = vadd.xlane.f32.xlu0 %v4081_v17  ;;  %4079 = vadd.xlane.f32.xlu1 %v4078_v3  ;;  %v7580_v17 = vpop.eup %7579  ;;  %v4129_v3 = vsel %vm2511_vm1, %v3631_v41, 0.0 }
 0x5a2   :  { %v11461_v41 = vpop.xlane.xlu0 %3476 }
 0x5a4   :  { %4088 = vadd.xlane.f32.xlu0 %v4087_v19  ;;  %4085 = vadd.xlane.f32.xlu1 %v4084_v45  ;;  %v3632_v19 = vmul.f32 %v7658_v29, %v11237_v38  ;;  %v11391_v45 = vmul.f32 %v7580_v17, %v11027_v32  ;;  %v7671_v29 = vld [vmem:[%s14071_s0 + $0x248] sm:$0xff] }
 0x5a6   :  { %v4132_v8 = vsel %vm2511_vm1, %v3632_v19, 0.0  ;;  %v11405_v32 = vrot.slane %v11391_v45, %v14544_v18 }
 0x5a8   :  { %4094 = vadd.xlane.f32.xlu0 %v4093_v7  ;;  %4091 = vadd.xlane.f32.xlu1 %v4090_v53  ;;  %v7660_v7 = vld [vmem:[%s14071_s0 + $0x1e0] sm:$0xff]  ;;  %v3639_v4 = vmul.f32 %v7663_v49, %v11405_v32  ;;  %v3641_v51 = vmul.f32 %v7665_v42, %v11405_v32  ;;  %v3640_v20 = vmul.f32 %v7666_v23, %v11405_v32  ;;  %v7674_v49 = vld [vmem:[%s14071_s0 + $0x250] sm:$0xff] }
 0x5a9   :  { %v3634_v53 = vmul.f32 %v7660_v7, %v11237_v38  ;;  %v3643_v13 = vmul.f32 %v7667_v54, %v11405_v32  ;;  %v3647_v19 = vmul.f32 %v7671_v29, %v11405_v32  ;;  %v7675_v54 = vld [vmem:[%s14071_s0 + $0x268] sm:$0xff] }
 0x5aa   :  { %v4159_v9 = vsel %vm2511_vm1, %v3641_v51, 0.0  ;;  %v4156_v36 = vsel %vm2511_vm1, %v3640_v20, 0.0 }
 0x5ab   :  { %v4138_v61 = vsel %vm2511_vm1, %v3634_v53, 0.0  ;;  %v4165_v37 = vsel %vm2511_vm1, %v3643_v13, 0.0  ;;  %v3651_v13 = vmul.f32 %v7675_v54, %v11405_v32 }
 0x5ac   :  { %4100 = vadd.xlane.f32.xlu0 %v4099_v56  ;;  %4097 = vadd.xlane.f32.xlu1 %v4096_v55  ;;  %v7662_v56 = vld [vmem:[%s14071_s0 + $0x1f0] sm:$0xff] }
 0x5ad   :  { %v3636_v55 = vmul.f32 %v7662_v56, %v11237_v38  ;;  %v4153_v38 = vsel %vm2511_vm1, %v3639_v4, 0.0  ;;  %v4177_v56 = vsel %vm2511_vm1, %v3647_v19, 0.0  ;;  %v3648_v4 = vmul.f32 %v7674_v49, %v11405_v32  ;;  %v7677_v19 = vld [vmem:[%s14071_s0 + $0x278] sm:$0xff] }
 0x5af   :  { %v4144_v30 = vsel %vm2511_vm1, %v3636_v55, 0.0 }
 0x5b0   :  { %4106 = vadd.xlane.f32.xlu0 %v4105_v25  ;;  %4103 = vadd.xlane.f32.xlu1 %v4102_v59  ;;  %v7664_v25 = vld [vmem:[%s14071_s0 + $0x200] sm:$0xff] }
 0x5b1   :  { %v3638_v59 = vmul.f32 %v7664_v25, %v11405_v32 }
 0x5b3   :  { %v4150_v47 = vsel %vm2511_vm1, %v3638_v59, 0.0 }
 0x5b4   :  { %4112 = vadd.xlane.f32.xlu0 %v4111_v15  ;;  %4109 = vadd.xlane.f32.xlu1 %v4108_v27  ;;  %v14545_v15 = vlaneseq }
 0x5b6   :  { %v11438_v27 = vand.u32 127, %v14545_v15 }
 0x5b8   :  { %4118 = vadd.xlane.f32.xlu0 %v4117_v28  ;;  %4115 = vadd.xlane.f32.xlu1 %v4114_v48  ;;  %v7668_v28 = vld [vmem:[%s14071_s0 + $0x220] sm:$0xff]  ;;  %v5500_v6 = vadd.s32 4294967288, %v11438_v27  ;;  %v11465_v44 = vsub.s32 %v11438_v27, %v14546_v11  ;;  %v5521_v7 = vadd.s32 4294967264, %v11438_v27  ;;  %v5528_v53 = vadd.s32 4294967256, %v11438_v27 }
 0x5b9   :  { %v3642_v48 = vmul.f32 %v7668_v28, %v11405_v32  ;;  %v5535_v20 = vadd.s32 4294967248, %v11438_v27  ;;  %v5542_v15 = vadd.s32 4294967240, %v11438_v27  ;;  %v7676_v28 = vld [vmem:[%s14071_s0 + $0x260] sm:$0xff]  ;;  %v5570_v49 = vadd.s32 4294967208, %v11438_v27 }
 0x5ba   :  { %v11468_v17 = vsub.s32 %v5500_v6, %v14546_v11  ;;  %v11507_v42 = vsub.s32 %v5528_v53, %v14546_v11  ;;  %v5577_v54 = vadd.s32 4294967200, %v11438_v27 }
 0x5bb   :  { %v4162_v43 = vsel %vm2511_vm1, %v3642_v48, 0.0  ;;  %v3650_v48 = vmul.f32 %v7676_v28, %v11405_v32 }
 0x5bc   :  { %4124 = vadd.xlane.f32.xlu0 %v4123_v0  ;;  %4121 = vadd.xlane.f32.xlu1 %v4120_v12  ;;  %v3645_v0 = vmul.f32 %v7669_v10, %v11405_v32  ;;  %v7670_v12 = vld [vmem:[%s14071_s0 + $0x230] sm:$0xff] }
 0x5bd   :  { %v3644_v26 = vmul.f32 %v7670_v12, %v11405_v32  ;;  %v5556_v12 = vadd.s32 4294967224, %v11438_v27  ;;  %v4186_v29 = vsel %vm2511_vm1, %v3650_v48, 0.0 }
 0x5be   :  { %v4171_v21 = vsel %vm2511_vm1, %v3645_v0, 0.0  ;;  %v5549_v0 = vadd.s32 4294967232, %v11438_v27 }
 0x5bf   :  { %v4168_v1 = vsel %vm2511_vm1, %v3644_v26, 0.0 }
 0x5c0   :  { %4130 = vadd.xlane.f32.xlu0 %v4129_v3  ;;  %4127 = vadd.xlane.f32.xlu1 %v4126_v57  ;;  %v5507_v3 = vadd.s32 4294967280, %v11438_v27  ;;  %v5514_v57 = vadd.s32 4294967272, %v11438_v27 }
 0x5c2   :  { %v11487_v31 = vsub.s32 %v5507_v3, %v14546_v11  ;;  %v11490_v33 = vsub.s32 %v5514_v57, %v14546_v11  ;;  %v11530_v57 = vsub.s32 %v5535_v20, %v14546_v11 }
 0x5c4   :  { %4136 = vadd.xlane.f32.xlu0 %v4135_v34  ;;  %4133 = vadd.xlane.f32.xlu1 %v4132_v8  ;;  %v7672_v34 = vld [vmem:[%s14071_s0 + $0x240] sm:$0xff] }
 0x5c5   :  { %v3646_v8 = vmul.f32 %v7672_v34, %v11405_v32  ;;  %v3653_v34 = vmul.f32 %v7677_v19, %v11405_v32 }
 0x5c7   :  { %v4174_v55 = vsel %vm2511_vm1, %v3646_v8, 0.0  ;;  %v7678_v8 = vld [vmem:[%s14071_s0 + $0x270] sm:$0xff] }
 0x5c8   :  { %4142 = vadd.xlane.f32.xlu0 %v4141_v40  ;;  %4139 = vadd.xlane.f32.xlu1 %v4138_v61 }
 0x5cc   :  { %4148 = vadd.xlane.f32.xlu0 %v4147_v46  ;;  %4145 = vadd.xlane.f32.xlu1 %v4144_v30  ;;  %v7673_v46 = vld [vmem:[%s14071_s0 + $0x258] sm:$0xff] }
 0x5cd   :  { %v3649_v30 = vmul.f32 %v7673_v46, %v11405_v32 }
 0x5d0   :  { %4154 = vadd.xlane.f32.xlu0 %v4153_v38  ;;  %4151 = vadd.xlane.f32.xlu1 %v4150_v47  ;;  %v11504_v47 = vsub.s32 %v5521_v7, %v14546_v11 }
 0x5d4   :  { %4160 = vadd.xlane.f32.xlu0 %v4159_v9  ;;  %4157 = vadd.xlane.f32.xlu1 %v4156_v36  ;;  %v4183_v9 = vsel %vm2511_vm1, %v3649_v30, 0.0  ;;  %v4180_v36 = vsel %vm2511_vm1, %v3648_v4, 0.0  ;;  %v5563_v30 = vadd.s32 4294967216, %v11438_v27  ;;  %v4195_v4 = vsel %vm2511_vm1, %v3653_v34, 0.0 }
 0x5d8   :  { %4166 = vadd.xlane.f32.xlu0 %v4165_v37  ;;  %4163 = vadd.xlane.f32.xlu1 %v4162_v43 }
 0x5dc   :  { %4172 = vadd.xlane.f32.xlu0 %v4171_v21  ;;  %4169 = vadd.xlane.f32.xlu1 %v4168_v1  ;;  %v11533_v21 = vsub.s32 %v5542_v15, %v14546_v11  ;;  %v4189_v1 = vsel %vm2511_vm1, %v3651_v13, 0.0  ;;  %v5584_v13 = vadd.s32 4294967192, %v11438_v27 }
 0x5dd   :  { %v3960_v5 = vpop.xlane.xlu1 %3959  ;;  %v3963_v50 = vpop.xlane.xlu0 %3962 }
 0x5de   :  { %v5499_v40 = vrot.slane %v3960_v5, %v11465_v44  ;;  %v5504_v61 = vrot.slane %v3963_v50, %v11468_v17  ;;  %v3652_v5 = vmul.f32 %v7678_v8, %v11405_v32 }
 0x5e0   :  { %v5506_v25 = vsel %vm5505_vm10, %v5504_v61, %v5499_v40  ;;  %4178 = vadd.xlane.f32.xlu0 %v4177_v56  ;;  %4175 = vadd.xlane.f32.xlu1 %v4174_v55  ;;  %v11548_v61 = vsub.s32 %v5549_v0, %v14546_v11  ;;  %v11551_v56 = vsub.s32 %v5556_v12, %v14546_v11  ;;  %v7681_v0 = vld [vmem:[%s14071_s0 + $0x298] sm:$0xff] }
 0x5e1   :  { %v3966_v59 = vpop.xlane.xlu1 %3965  ;;  %v3969_v38 = vpop.xlane.xlu0 %3968  ;;  %v3657_v12 = vmul.f32 %v7681_v0, %v11405_v32 }
 0x5e2   :  { %v5511_v51 = vrot.slane %v3966_v59, %v11487_v31  ;;  %v5518_v23 = vrot.slane %v3969_v38, %v11490_v33  ;;  %v7679_v59 = vld [vmem:[%s14071_s0 + $0x288] sm:$0xff] }
 0x5e3   :  { %v3655_v38 = vmul.f32 %v7679_v59, %v11405_v32 }
 0x5e4   :  { %v5513_v6 = vsel %vm5512_vm11, %v5511_v51, %v5506_v25  ;;  %4184 = vadd.xlane.f32.xlu0 %v4183_v9  ;;  %4181 = vadd.xlane.f32.xlu1 %v4180_v36  ;;  %v4192_v25 = vsel %vm2511_vm1, %v3652_v5, 0.0  ;;  %v7680_v51 = vld [vmem:[%s14071_s0 + $0x280] sm:$0xff]  ;;  %v11593_v5 = vsub.s32 %v5577_v54, %v14546_v11 }
 0x5e5   :  { %v5520_v37 = vsel %vm5519_vm12, %v5518_v23, %v5513_v6  ;;  %v3972_v43 = vpop.xlane.xlu1 %3971  ;;  %v3975_v10 = vpop.xlane.xlu0 %3974  ;;  %v3654_v23 = vmul.f32 %v7680_v51, %v11405_v32  ;;  %v11574_v6 = vsub.s32 %v5563_v30, %v14546_v11 }
 0x5e6   :  { %v5525_v26 = vrot.slane %v3972_v43, %v11504_v47  ;;  %v5532_v3 = vrot.slane %v3975_v10, %v11507_v42  ;;  %v4201_v43 = vsel %vm2511_vm1, %v3655_v38, 0.0 }
 0x5e7   :  { %v4198_v10 = vsel %vm2511_vm1, %v3654_v23, 0.0 }
 0x5e8   :  { %v5527_v50 = vsel %vm5526_vm13, %v5525_v26, %v5520_v37  ;;  %4190 = vadd.xlane.f32.xlu0 %v4189_v1  ;;  %4187 = vadd.xlane.f32.xlu1 %v4186_v29  ;;  %v11577_v37 = vsub.s32 %v5570_v49, %v14546_v11  ;;  %v7682_v26 = vld [vmem:[%s14071_s0 + $0x290] sm:$0xff]  ;;  %v3482_v1 = vrot.slane %v11074_v14, 3  ;;  %v7683_v49 = vld [vmem:[%s14071_s0 + $0x2a8] sm:$0xff] }
 0x5e9   :  { %v5534_v7 = vsel %vm5533_vm14, %v5532_v3, %v5527_v50  ;;  %v3978_v53 = vpop.xlane.xlu1 %3977  ;;  %v3981_v40 = vpop.xlane.xlu0 %3980  ;;  %v3656_v3 = vmul.f32 %v7682_v26, %v11405_v32  ;;  %v11596_v50 = vsub.s32 %v5584_v13, %v14546_v11 }
 0x5ea   :  { %v5539_v55 = vrot.slane %v3978_v53, %v11530_v57  ;;  %v5546_v46 = vrot.slane %v3981_v40, %v11533_v21  ;;  %v5591_v40 = vadd.s32 4294967184, %v11438_v27  ;;  %7581 = vrcp.f32 %v3482_v1 }
 0x5eb   :  { %v4204_v30 = vsel %vm2511_vm1, %v3656_v3, 0.0 }
 0x5ec   :  { %v5541_v20 = vsel %vm5540_vm15, %v5539_v55, %v5534_v7  ;;  %4196 = vadd.xlane.f32.xlu0 %v4195_v4  ;;  %4193 = vadd.xlane.f32.xlu1 %v4192_v25  ;;  %v5598_v55 = vadd.s32 4294967176, %v11438_v27  ;;  %v3659_v4 = vmul.f32 %v7683_v49, %v11405_v32  ;;  %v7684_v25 = vld [vmem:[%s14071_s0 + $0x2a0] sm:$0xff] }
 0x5ed   :  { %v5548_v15 = vsel %vm5547_vm0, %v5546_v46, %v5541_v20  ;;  %v3984_v9 = vpop.xlane.xlu1 %3983  ;;  %v3987_v36 = vpop.xlane.xlu0 %3986  ;;  %v4207_v46 = vsel %vm2511_vm1, %v3657_v12, 0.0  ;;  %v3658_v59 = vmul.f32 %v7684_v25, %v11405_v32 }
 0x5ee   :  { %v5553_v28 = vrot.slane %v3984_v9, %v11548_v61  ;;  %v5560_v48 = vrot.slane %v3987_v36, %v11551_v56  ;;  %v11617_v9 = vsub.s32 %v5591_v40, %v14546_v11  ;;  %v11620_v36 = vsub.s32 %v5598_v55, %v14546_v11 }
 0x5ef   :  { %v4213_v54 = vsel %vm2511_vm1, %v3659_v4, 0.0  ;;  %v4210_v13 = vsel %vm2511_vm1, %v3658_v59, 0.0 }
 0x5f0   :  { %v5555_v29 = vsel %vm5554_vm8, %v5553_v28, %v5548_v15  ;;  %4202 = vadd.xlane.f32.xlu0 %v4201_v43  ;;  %4199 = vadd.xlane.f32.xlu1 %v4198_v10  ;;  %v7685_v28 = vld [vmem:[%s14071_s0 + $0x2b8] sm:$0xff]  ;;  %v7686_v43 = vld [vmem:[%s14071_s0 + $0x2b0] sm:$0xff] }
 0x5f1   :  { %v5562_v19 = vsel %vm5561_vm7, %v5560_v48, %v5555_v29  ;;  %v3990_v34 = vpop.xlane.xlu1 %3989  ;;  %v3993_v8 = vpop.xlane.xlu0 %3992  ;;  %v3661_v48 = vmul.f32 %v7685_v28, %v11405_v32  ;;  %v3660_v10 = vmul.f32 %v7686_v43, %v11405_v32 }
 0x5f2   :  { %v5567_v7 = vrot.slane %v3990_v34, %v11574_v6  ;;  %v5574_v53 = vrot.slane %v3993_v8, %v11577_v37  ;;  %v7687_v34 = vld [vmem:[%s14071_s0 + $0x2c8] sm:$0xff] }
 0x5f3   :  { %v4219_v29 = vsel %vm2511_vm1, %v3661_v48, 0.0  ;;  %v3663_v8 = vmul.f32 %v7687_v34, %v11405_v32 }
 0x5f4   :  { %v5569_v38 = vsel %vm14100_vm6, %v5567_v7, %v5562_v19  ;;  %4208 = vadd.xlane.f32.xlu0 %v4207_v46  ;;  %4205 = vadd.xlane.f32.xlu1 %v4204_v30  ;;  %v4216_v19 = vsel %vm2511_vm1, %v3660_v10, 0.0  ;;  %v7688_v7 = vld [vmem:[%s14071_s0 + $0x2c0] sm:$0xff]  ;;  %v7582_v25 = vpop.eup %7581 }
 0x5f5   :  { %v5576_v27 = vsel %vm14099_vm9, %v5574_v53, %v5569_v38  ;;  %v3996_v51 = vpop.xlane.xlu1 %3995  ;;  %v3999_v23 = vpop.xlane.xlu0 %3998  ;;  %v3662_v53 = vmul.f32 %v7688_v7, %v11405_v32  ;;  %v4225_v59 = vsel %vm2511_vm1, %v3663_v8, 0.0  ;;  %v11664_v28 = vmul.f32 %v7582_v25, %v11030_v39 }
 0x5f6   :  { %v5581_v20 = vrot.slane %v3996_v51, %v11593_v5  ;;  %v5588_v15 = vrot.slane %v3999_v23, %v11596_v50  ;;  %v7690_v23 = vld [vmem:[%s14071_s0 + $0x2d0] sm:$0xff] }
 0x5f7   :  { %v4222_v38 = vsel %vm2511_vm1, %v3662_v53, 0.0  ;;  %v11682_v34 = vrot.slane %v11664_v28, %v14544_v18 }
 0x5f8   :  { %v5583_v0 = vsel %vm14098_vm5, %v5581_v20, %v5576_v27  ;;  %4214 = vadd.xlane.f32.xlu0 %v4213_v54  ;;  %4211 = vadd.xlane.f32.xlu1 %v4210_v13  ;;  %v7689_v27 = vld [vmem:[%s14071_s0 + $0x2d8] sm:$0xff]  ;;  %v3664_v20 = vmul.f32 %v7690_v23, %v11405_v32 }
 0x5f9   :  { %v5590_v11 = vsel %vm14097_vm4, %v5588_v15, %v5583_v0  ;;  %v4002_v12 = vpop.xlane.xlu1 %4001  ;;  %v4005_v26 = vpop.xlane.xlu0 %4004  ;;  %v3665_v51 = vmul.f32 %v7689_v27, %v11405_v32 }
 0x5fa   :  { %v5595_v3 = vrot.slane %v4002_v12, %v11617_v9  ;;  %v5602_v1 = vrot.slane %v4005_v26, %v11620_v36  ;;  %v4228_v0 = vsel %vm2511_vm1, %v3664_v20, 0.0  ;;  %v7692_v26 = vld [vmem:[%s14071_s0 + $0x2e0] sm:$0xff] }
 0x5fb   :  { %v4231_v10 = vsel %vm2511_vm1, %v3665_v51, 0.0  ;;  %v3666_v39 = vmul.f32 %v7692_v26, %v11405_v32 }
 0x5fc   :  { %v5597_v40 = vsel %vm14101_vm3, %v5595_v3, %v5590_v11  ;;  %4220 = vadd.xlane.f32.xlu0 %v4219_v29  ;;  %4217 = vadd.xlane.f32.xlu1 %v4216_v19  ;;  %v7691_v11 = vld [vmem:[%s14071_s0 + $0x2e8] sm:$0xff] }
 0x5fd   :  { %v11648_v55 = vsel %vm5603_vm2, %v5602_v1, %v5597_v40  ;;  %v4008_v46 = vpop.xlane.xlu1 %4007  ;;  %v4011_v30 = vpop.xlane.xlu0 %4010  ;;  %v3667_v12 = vmul.f32 %v7691_v11, %v11405_v32  ;;  %v4234_v40 = vsel %vm2511_vm1, %v3666_v39, 0.0 }
 0x5fe   :  { %v5608_v49 = vrot.slane %v4008_v46, %v11465_v44  ;;  %v5612_v4 = vrot.slane %v4011_v30, %v11468_v17  ;;  %v7693_v46 = vld [vmem:[%s14071_s0 + $0x2f8] sm:$0xff] }
 0x5ff   :  { %v4237_v53 = vsel %vm2511_vm1, %v3667_v12, 0.0  ;;  %v3669_v30 = vmul.f32 %v7693_v46, %v11405_v32 }
 0x600   :  { %v5613_v15 = vsel %vm5505_vm10, %v5612_v4, %v5608_v49  ;;  %4226 = vadd.xlane.f32.xlu0 %v4225_v59  ;;  %4223 = vadd.xlane.f32.xlu1 %v4222_v38  ;;  %v7694_v49 = vld [vmem:[%s14071_s0 + $0x2f0] sm:$0xff] }
 0x601   :  { %v4014_v54 = vpop.xlane.xlu1 %4013  ;;  %v4017_v13 = vpop.xlane.xlu0 %4016  ;;  %v3668_v4 = vmul.f32 %v7694_v49, %v11405_v32  ;;  %v4243_v20 = vsel %vm2511_vm1, %v3669_v30, 0.0  ;;  %v7695_v32 = vld [vmem:[%s14071_s0 + $0x300] sm:$0xff] }
 0x602   :  { %v5617_v48 = vrot.slane %v4014_v54, %v11487_v31  ;;  %v5622_v43 = vrot.slane %v4017_v13, %v11490_v33  ;;  %v3670_v54 = vmul.f32 %v7695_v32, %v11682_v34  ;;  %v7696_v13 = vld [vmem:[%s14071_s0 + $0x308] sm:$0xff] }
 0x604   :  { %v5618_v3 = vsel %vm5512_vm11, %v5617_v48, %v5613_v15  ;;  %4232 = vadd.xlane.f32.xlu0 %v4231_v10  ;;  %4229 = vadd.xlane.f32.xlu1 %v4228_v0  ;;  %v4240_v15 = vsel %vm2511_vm1, %v3668_v4, 0.0  ;;  %v3671_v48 = vmul.f32 %v7696_v13, %v11682_v34  ;;  %v4246_v39 = vsel %vm2511_vm1, %v3670_v54, 0.0 }
 0x605   :  { %v5623_v1 = vsel %vm5519_vm12, %v5622_v43, %v5618_v3  ;;  %v4020_v29 = vpop.xlane.xlu1 %4019  ;;  %v4023_v19 = vpop.xlane.xlu0 %4022 }
 0x606   :  { %v5627_v8 = vrot.slane %v4020_v29, %v11504_v47  ;;  %v5632_v7 = vrot.slane %v4023_v19, %v11507_v42  ;;  %v4249_v3 = vsel %vm2511_vm1, %v3671_v48, 0.0  ;;  %v7698_v19 = vld [vmem:[%s14071_s0 + $0x318] sm:$0xff] }
 0x608   :  { %v5628_v25 = vsel %vm5526_vm13, %v5627_v8, %v5623_v1  ;;  %4238 = vadd.xlane.f32.xlu0 %v4237_v53  ;;  %4235 = vadd.xlane.f32.xlu1 %v4234_v40  ;;  %v7697_v1 = vld [vmem:[%s14071_s0 + $0x310] sm:$0xff]  ;;  %v3673_v8 = vmul.f32 %v7698_v19, %v11682_v34 }
 0x609   :  { %v5633_v59 = vsel %vm5533_vm14, %v5632_v7, %v5628_v25  ;;  %v4026_v38 = vpop.xlane.xlu1 %4025  ;;  %v4029_v27 = vpop.xlane.xlu0 %4028  ;;  %v3672_v29 = vmul.f32 %v7697_v1, %v11682_v34 }
 0x60a   :  { %v5637_v51 = vrot.slane %v4026_v38, %v11530_v57  ;;  %v5642_v23 = vrot.slane %v4029_v27, %v11533_v21  ;;  %v4255_v25 = vsel %vm2511_vm1, %v3673_v8, 0.0  ;;  %v7700_v27 = vld [vmem:[%s14071_s0 + $0x328] sm:$0xff] }
 0x60b   :  { %v4252_v4 = vsel %vm2511_vm1, %v3672_v29, 0.0 }
 0x60c   :  { %v5638_v43 = vsel %vm5540_vm15, %v5637_v51, %v5633_v59  ;;  %4244 = vadd.xlane.f32.xlu0 %v4243_v20  ;;  %4241 = vadd.xlane.f32.xlu1 %v4240_v15  ;;  %v7699_v59 = vld [vmem:[%s14071_s0 + $0x320] sm:$0xff]  ;;  %v3675_v51 = vmul.f32 %v7700_v27, %v11682_v34 }
 0x60d   :  { %v5643_v10 = vsel %vm5547_vm0, %v5642_v23, %v5638_v43  ;;  %v4032_v0 = vpop.xlane.xlu1 %4031  ;;  %v4035_v11 = vpop.xlane.xlu0 %4034  ;;  %v3674_v38 = vmul.f32 %v7699_v59, %v11682_v34 }
 0x60e   :  { %v5647_v12 = vrot.slane %v4032_v0, %v11548_v61  ;;  %v5652_v26 = vrot.slane %v4035_v11, %v11551_v56  ;;  %v4261_v43 = vsel %vm2511_vm1, %v3675_v51, 0.0  ;;  %v7702_v11 = vld [vmem:[%s14071_s0 + $0x338] sm:$0xff] }
 0x60f   :  { %v4258_v48 = vsel %vm2511_vm1, %v3674_v38, 0.0 }
 0x610   :  { %v5648_v7 = vsel %vm5554_vm8, %v5647_v12, %v5643_v10  ;;  %4247 = vadd.xlane.f32.xlu1 %v4246_v39  ;;  %4250 = vadd.xlane.f32.xlu0 %v4249_v3  ;;  %v7701_v10 = vld [vmem:[%s14071_s0 + $0x330] sm:$0xff]  ;;  %v3677_v12 = vmul.f32 %v7702_v11, %v11682_v34 }
 0x611   :  { %v5653_v53 = vsel %vm5561_vm7, %v5652_v26, %v5648_v7  ;;  %v4038_v40 = vpop.xlane.xlu1 %4037  ;;  %v4041_v46 = vpop.xlane.xlu0 %4040  ;;  %v3676_v0 = vmul.f32 %v7701_v10, %v11682_v34  ;;  %v3485_v10 = vrot.slane %v11074_v14, 6 }
 0x612   :  { %v5657_v30 = vrot.slane %v4038_v40, %v11574_v6  ;;  %v5662_v49 = vrot.slane %v4041_v46, %v11577_v37  ;;  %v4267_v7 = vsel %vm2511_vm1, %v3677_v12, 0.0  ;;  %v7704_v46 = vld [vmem:[%s14071_s0 + $0x348] sm:$0xff]  ;;  %v3487_v12 = vrot.slane %v11461_v41, 1 }
 0x613   :  { %v4264_v8 = vsel %vm2511_vm1, %v3676_v0, 0.0 }
 0x614   :  { %v5658_v23 = vsel %vm14100_vm6, %v5657_v30, %v5653_v53  ;;  %4253 = vadd.xlane.f32.xlu1 %v4252_v4  ;;  %4256 = vadd.xlane.f32.xlu0 %v4255_v25  ;;  %v7703_v53 = vld [vmem:[%s14071_s0 + $0x340] sm:$0xff]  ;;  %v3679_v30 = vmul.f32 %v7704_v46, %v11682_v34  ;;  %v3483_v4 = vrot.slane %v11074_v14, 4 }
 0x615   :  { %v5663_v20 = vsel %vm14099_vm9, %v5662_v49, %v5658_v23  ;;  %v4044_v15 = vpop.xlane.xlu1 %4043  ;;  %v4047_v32 = vpop.xlane.xlu0 %4046  ;;  %v3678_v40 = vmul.f32 %v7703_v53, %v11682_v34 }
 0x616   :  { %v5667_v54 = vrot.slane %v4044_v15, %v11593_v5  ;;  %v5672_v13 = vrot.slane %v4047_v32, %v11596_v50  ;;  %v7705_v15 = vld [vmem:[%s14071_s0 + $0x350] sm:$0xff]  ;;  %7583 = vrcp.f32 %v3483_v4 }
 0x617   :  { %v4270_v23 = vsel %vm2511_vm1, %v3678_v40, 0.0  ;;  %v3680_v32 = vmul.f32 %v7705_v15, %v11682_v34  ;;  %v3486_v40 = vrot.slane %v11074_v14, 7  ;;  %v7710_v15 = vld [vmem:[%s14071_s0 + $0x378] sm:$0xff] }
 0x618   :  { %v5668_v26 = vsel %vm14098_vm5, %v5667_v54, %v5663_v20  ;;  %4259 = vadd.xlane.f32.xlu1 %v4258_v48  ;;  %4262 = vadd.xlane.f32.xlu0 %v4261_v43  ;;  %v4273_v20 = vsel %vm2511_vm1, %v3679_v30, 0.0  ;;  %v7706_v54 = vld [vmem:[%s14071_s0 + $0x358] sm:$0xff]  ;;  %v3484_v48 = vrot.slane %v11074_v14, 5 }
 0x619   :  { %v5673_v39 = vsel %vm14097_vm4, %v5672_v13, %v5668_v26  ;;  %v4050_v3 = vpop.xlane.xlu1 %4049  ;;  %v4053_v1 = vpop.xlane.xlu0 %4052  ;;  %v3681_v13 = vmul.f32 %v7706_v54, %v11682_v34 }
 0x61a   :  { %v5677_v29 = vrot.slane %v4050_v3, %v11617_v9  ;;  %v5682_v19 = vrot.slane %v4053_v1, %v11620_v36  ;;  %v7707_v3 = vld [vmem:[%s14071_s0 + $0x360] sm:$0xff]  ;;  %7585 = vrcp.f32 %v3484_v48 }
 0x61b   :  { %v3682_v1 = vmul.f32 %v7707_v3, %v11682_v34  ;;  %7587 = vrcp.f32 %v3485_v10 }
 0x61c   :  { %v5678_v49 = vsel %vm14101_vm3, %v5677_v29, %v5673_v39  ;;  %4265 = vadd.xlane.f32.xlu1 %v4264_v8  ;;  %4268 = vadd.xlane.f32.xlu0 %v4267_v7  ;;  %v3488_v29 = vrot.slane %v11461_v41, 2  ;;  %v4279_v8 = vsel %vm2511_vm1, %v3681_v13, 0.0  ;;  %v7708_v7 = vld [vmem:[%s14071_s0 + $0x368] sm:$0xff]  ;;  %7589 = vrcp.f32 %v3487_v12 }
 0x61d   :  { %v11769_v25 = vsel %vm5603_vm2, %v5682_v19, %v5678_v49  ;;  %v4056_v59 = vpop.xlane.xlu1 %4055  ;;  %v4059_v38 = vpop.xlane.xlu0 %4058  ;;  %v4276_v19 = vsel %vm2511_vm1, %v3680_v32, 0.0  ;;  %v3683_v53 = vmul.f32 %v7708_v7, %v11682_v34  ;;  %v3685_v32 = vmul.f32 %v7710_v15, %v11682_v34 }
 0x61e   :  { %v5687_v27 = vrot.slane %v4056_v59, %v11465_v44  ;;  %v5691_v51 = vrot.slane %v4059_v38, %v11468_v17  ;;  %v7709_v59 = vld [vmem:[%s14071_s0 + $0x370] sm:$0xff]  ;;  %7591 = vrcp.f32 %v3488_v29 }
 0x61f   :  { %v3684_v38 = vmul.f32 %v7709_v59, %v11682_v34  ;;  %7593 = vrcp.f32 %v3486_v40 }
 0x620   :  { %v5692_v43 = vsel %vm5505_vm10, %v5691_v51, %v5687_v27  ;;  %4271 = vadd.xlane.f32.xlu1 %v4270_v23  ;;  %4274 = vadd.xlane.f32.xlu0 %v4273_v20  ;;  %v3489_v27 = vrot.slane %v11461_v41, 3  ;;  %v4282_v23 = vsel %vm2511_vm1, %v3682_v1, 0.0  ;;  %v4285_v20 = vsel %vm2511_vm1, %v3683_v53, 0.0  ;;  %v7712_v1 = vld [vmem:[%s14071_s0 + $0x388] sm:$0xff] }
 0x621   :  { %v4062_v0 = vpop.xlane.xlu1 %4061  ;;  %v4065_v11 = vpop.xlane.xlu0 %4064  ;;  %v4288_v12 = vsel %vm2511_vm1, %v3684_v38, 0.0  ;;  %v3687_v29 = vmul.f32 %v7712_v1, %v11682_v34 }
 0x622   :  { %v5696_v26 = vrot.slane %v4062_v0, %v11487_v31  ;;  %v5701_v39 = vrot.slane %v4065_v11, %v11490_v33  ;;  %7595 = vrcp.f32 %v3489_v27  ;;  %v7584_v11 = vpop.eup %7583  ;;  %v7714_v27 = vld [vmem:[%s14071_s0 + $0x398] sm:$0xff] }
 0x623   :  { %7597 = vrcp.f32 %v11461_v41  ;;  %v4297_v59 = vsel %vm2511_vm1, %v3687_v29, 0.0  ;;  %v7713_v41 = vld [vmem:[%s14071_s0 + $0x390] sm:$0xff] }
 0x624   :  { %v5697_v46 = vsel %vm5512_vm11, %v5696_v26, %v5692_v43  ;;  %4277 = vadd.xlane.f32.xlu1 %v4276_v19  ;;  %4280 = vadd.xlane.f32.xlu0 %v4279_v8  ;;  %v4291_v26 = vsel %vm2511_vm1, %v3685_v32, 0.0  ;;  %v7586_v40 = vpop.eup %7585  ;;  %v3688_v38 = vmul.f32 %v7713_v41, %v11682_v34  ;;  %v7718_v41 = vld [vmem:[%s14071_s0 + $0x3b8] sm:$0xff] }
 0x625   :  { %v5702_v30 = vsel %vm5519_vm12, %v5701_v39, %v5697_v46  ;;  %v4068_v49 = vpop.xlane.xlu1 %4067  ;;  %v4071_v4 = vpop.xlane.xlu0 %4070  ;;  %v7711_v39 = vld [vmem:[%s14071_s0 + $0x380] sm:$0xff] }
 0x626   :  { %v5706_v14 = vrot.slane %v4068_v49, %v11504_v47  ;;  %v5711_v51 = vrot.slane %v4071_v4, %v11507_v42  ;;  %v3686_v3 = vmul.f32 %v7711_v39, %v11682_v34  ;;  %v7588_v49 = vpop.eup %7587  ;;  %v4300_v29 = vsel %vm2511_vm1, %v3688_v38, 0.0  ;;  %v7719_v38 = vld [vmem:[%s14071_s0 + $0x3c0] sm:$0xff] }
 0x628   :  { %v5707_v54 = vsel %vm5526_vm13, %v5706_v14, %v5702_v30  ;;  %4283 = vadd.xlane.f32.xlu1 %v4282_v23  ;;  %4286 = vadd.xlane.f32.xlu0 %v4285_v20  ;;  %v4294_v4 = vsel %vm2511_vm1, %v3686_v3, 0.0  ;;  %v3689_v14 = vmul.f32 %v7714_v27, %v11682_v34  ;;  %v3694_v27 = vmul.f32 %v7719_v38, %v11682_v34 }
 0x629   :  { %v5712_v13 = vsel %vm5533_vm14, %v5711_v51, %v5707_v54  ;;  %v4074_v48 = vpop.xlane.xlu1 %4073  ;;  %v4077_v43 = vpop.xlane.xlu0 %4076 }
 0x62a   :  { %v5716_v10 = vrot.slane %v4074_v48, %v11530_v57  ;;  %v5721_v0 = vrot.slane %v4077_v43, %v11533_v21  ;;  %v7590_v51 = vpop.eup %7589  ;;  %v7716_v43 = vld [vmem:[%s14071_s0 + $0x3a8] sm:$0xff] }
 0x62b   :  { %v7592_v20 = vpop.eup %7591  ;;  %v11864_v1 = vmul.f32 %v7590_v51, %v11060_v58 }
 0x62c   :  { %v5717_v19 = vsel %vm5540_vm15, %v5716_v10, %v5712_v13  ;;  %4289 = vadd.xlane.f32.xlu1 %v4288_v12  ;;  %4292 = vadd.xlane.f32.xlu0 %v4291_v26  ;;  %v7715_v13 = vld [vmem:[%s14071_s0 + $0x3a0] sm:$0xff]  ;;  %v3691_v10 = vmul.f32 %v7716_v43, %v11682_v34  ;;  %v11856_v12 = vmul.f32 %v7584_v11, %v11033_v22 }
 0x62d   :  { %v5722_v8 = vsel %vm5547_vm0, %v5721_v0, %v5717_v19  ;;  %v4080_v7 = vpop.xlane.xlu1 %4079  ;;  %v4083_v53 = vpop.xlane.xlu0 %4082  ;;  %v3690_v48 = vmul.f32 %v7715_v13, %v11682_v34  ;;  %v11859_v26 = vmul.f32 %v7586_v40, %v11037_v62  ;;  %v4303_v19 = vsel %vm2511_vm1, %v3689_v14, 0.0 }
 0x62e   :  { %v5726_v46 = vrot.slane %v4080_v7, %v11548_v61  ;;  %v5731_v30 = vrot.slane %v4083_v53, %v11551_v56  ;;  %v7594_v0 = vpop.eup %7593  ;;  %v11873_v62 = vmul.f32 %v7588_v49, %v11041_v35  ;;  %v11876_v7 = vmul.f32 %v7592_v20, %v11062_v52 }
 0x62f   :  { %v7596_v11 = vpop.eup %7595  ;;  %v11880_v53 = vmul.f32 %v7594_v0, %v11045_v60  ;;  %v3693_v60 = vmul.f32 %v7718_v41, %v11682_v34  ;;  %v7476_v20 = vrot.slane %v11864_v1, 7  ;;  %v7464_v13 = vrot.slane %v11391_v45, 6  ;;  %v7721_v0 = vld [vmem:[%s14071_s0 + $0x3d0] sm:$0xff] }
 0x630   :  { %v5727_v23 = vsel %vm5554_vm8, %v5726_v46, %v5722_v8  ;;  %4295 = vadd.xlane.f32.xlu1 %v4294_v4  ;;  %4298 = vadd.xlane.f32.xlu0 %v4297_v59  ;;  %v7717_v8 = vld [vmem:[%s14071_s0 + $0x3b0] sm:$0xff]  ;;  %v4306_v4 = vsel %vm2511_vm1, %v3690_v48, 0.0  ;;  %v4309_v59 = vsel %vm2511_vm1, %v3691_v10, 0.0  ;;  %v7598_v35 = vpop.eup %7597  ;;  %v11896_v14 = vmul.f32 %v7596_v11, %v11065_v2 }
 0x631   :  { %v5732_v15 = vsel %vm5561_vm7, %v5731_v30, %v5727_v23  ;;  %v4086_v32 = vpop.xlane.xlu1 %4085  ;;  %v4089_v54 = vpop.xlane.xlu0 %4088  ;;  %v3692_v22 = vmul.f32 %v7717_v8, %v11682_v34  ;;  %v7462_v23 = vrot.slane %v11223_v24, 7  ;;  %v7478_v2 = vrot.slane %v11876_v7, 6 }
 0x632   :  { %v5736_v39 = vrot.slane %v4086_v32, %v11574_v6  ;;  %v5741_v3 = vrot.slane %v4089_v54, %v11577_v37  ;;  %v7720_v32 = vld [vmem:[%s14071_s0 + $0x3c8] sm:$0xff]  ;;  %v11909_v48 = vmul.f32 %v7598_v35, %v11058_v63  ;;  %v7466_v8 = vrot.slane %v11664_v28, 5 }
 0x633   :  { %v4312_v51 = vsel %vm2511_vm1, %v3692_v22, 0.0  ;;  %v3695_v54 = vmul.f32 %v7720_v32, %v11682_v34  ;;  %v7468_v11 = vrot.slane %v11856_v12, 4 }
 0x634   :  { %v5737_v58 = vsel %vm14100_vm6, %v5736_v39, %v5732_v15  ;;  %4301 = vadd.xlane.f32.xlu1 %v4300_v29  ;;  %4304 = vadd.xlane.f32.xlu0 %v4303_v19  ;;  %v3696_v39 = vmul.f32 %v7721_v0, %v11682_v34  ;;  %v4315_v19 = vsel %vm2511_vm1, %v3693_v60, 0.0 }
 0x635   :  { %v5742_v40 = vsel %vm14099_vm9, %v5741_v3, %v5737_v58  ;;  %v4092_v46 = vpop.xlane.xlu1 %4091  ;;  %v4095_v30 = vpop.xlane.xlu0 %4094  ;;  %v7722_v3 = vld [vmem:[%s14071_s0 + $0x3d8] sm:$0xff]  ;;  %vm14549_vm9 = vcmask 1042434  }
 0x636   :  { %v5746_v49 = vrot.slane %v4092_v46, %v11593_v5  ;;  %v5751_v52 = vrot.slane %v4095_v30, %v11596_v50  ;;  %v3697_v45 = vmul.f32 %v7722_v3, %v11682_v34  ;;  %vm14550_vm6 = vmmov %vm14549_vm9 }
 0x638   :  { %v5747_v15 = vsel %vm14098_vm5, %v5746_v49, %v5742_v40  ;;  %4307 = vadd.xlane.f32.xlu1 %v4306_v4  ;;  %4310 = vadd.xlane.f32.xlu0 %v4309_v59  ;;  %v7480_v40 = vrot.slane %v11896_v14, 5  ;;  %v7470_v4 = vrot.slane %v11859_v26, 3  ;;  %v4327_v3 = vsel %vm2511_vm1, %v3697_v45, 0.0 }
 0x639   :  { %v5752_v24 = vsel %vm14097_vm4, %v5751_v52, %v5747_v15  ;;  %v4098_v43 = vpop.xlane.xlu1 %4097  ;;  %v4101_v10 = vpop.xlane.xlu0 %4100  ;;  %vm14547_vm4 = vcmask 1041409   ;;  %v7472_v52 = vrot.slane %v11873_v62, 2  ;;  %v4321_v15 = vsel %vm2511_vm1, %v3695_v54, 0.0 }
 0x63a   :  { %v5756_v29 = vrot.slane %v4098_v43, %v11617_v9  ;;  %v5761_v63 = vrot.slane %v4101_v10, %v11620_v36  ;;  %v7463_v22 = vsel %vm14547_vm4, %v7462_v23, %v11077_v16  ;;  %vm14548_vm5 = vmmov %vm14547_vm4  ;;  %vm14551_vm4 = vcmask 1043459  }
 0x63b   :  { %v7477_v58 = vsel %vm14548_vm5, %v7476_v20, %v11909_v48  ;;  %v7465_v30 = vsel %vm14549_vm9, %v7464_v13, %v7463_v22  ;;  %vm14552_vm5 = vmmov %vm14551_vm4  ;;  %vm14554_vm9 = vcmask 1044484   ;;  %v4318_v20 = vsel %vm2511_vm1, %v3694_v27, 0.0 }
 0x63c   :  { %v5757_v46 = vsel %vm14101_vm3, %v5756_v29, %v5752_v24  ;;  %4313 = vadd.xlane.f32.xlu1 %v4312_v51  ;;  %4316 = vadd.xlane.f32.xlu0 %v4315_v19  ;;  %v7479_v28 = vsel %vm14550_vm6, %v7478_v2, %v7477_v58  ;;  %v7467_v49 = vsel %vm14551_vm4, %v7466_v8, %v7465_v30  ;;  %vm14553_vm3 = vcmask 1041409   ;;  %v7723_v29 = vld [vmem:[%s14071_s0 + $0x3e0] sm:$0xff]  ;;  %v7724_v19 = vld [vmem:[%s14071_s0 + $0x3e8] sm:$0xff] }
 0x63d   :  { %v5762_v59 = vsel %vm5603_vm2, %v5761_v63, %v5757_v46  ;;  %v4104_v16 = vpop.xlane.xlu1 %4103  ;;  %v4107_v35 = vpop.xlane.xlu0 %4106  ;;  %v7481_v41 = vsel %vm14552_vm5, %v7480_v40, %v7479_v28  ;;  %v7469_v23 = vsel %vm14554_vm9, %v7468_v11, %v7467_v49  ;;  %vm14555_vm6 = vcmask 125952   ;;  %v7725_v28 = vld [vmem:[%s14071_s0 + $0x3f0] sm:$0xff] }
 0x63e   :  { %v11940_v60 = vsel %vm14553_vm3, %v5762_v59, %v11648_v55  ;;  %v5766_v38 = vrot.slane %v4104_v16, %v11465_v44  ;;  %v5770_v51 = vrot.slane %v4107_v35, %v11468_v17  ;;  %7485 = vst.msk [vmem:[#allocation4 + $0x8] sm:$0xf] %vm14555_vm6, %v7481_v41  ;;  %vm14556_vm4 = vcmask 1045509   ;;  %v7726_v16 = vld [vmem:[%s14071_s0 + $0x3f8] sm:$0xff] }
 0x63f   :  { %v7471_v32 = vsel %vm14556_vm4, %v7470_v4, %v7469_v23  ;;  %v7474_v13 = vrot.slane %v11880_v53, 1  ;;  %vm14557_vm3 = vcmask 1046534   ;;  %vm14558_vm5 = vcmask 1047559  }
 0x640   :  { %v5771_v2 = vsel %vm5505_vm10, %v5770_v51, %v5766_v38  ;;  %4319 = vadd.xlane.f32.xlu1 %v4318_v20  ;;  %4322 = vadd.xlane.f32.xlu0 %v4321_v15  ;;  %v7473_v55 = vsel %vm14557_vm3, %v7472_v52, %v7471_v32  ;;  %v4324_v54 = vsel %vm2511_vm1, %v3696_v39, 0.0  ;;  %v3698_v63 = vmul.f32 %v7723_v29, %v11682_v34  ;;  %v7728_v32 = vld [vmem:[%s14071_s0 + $0x408] sm:$0xff] }
 0x641   :  { %v4110_v24 = vpop.xlane.xlu1 %4109  ;;  %v4113_v43 = vpop.xlane.xlu0 %4112  ;;  %v7475_v10 = vsel %vm14558_vm5, %v7474_v13, %v7473_v55  ;;  %v3699_v8 = vmul.f32 %v7724_v19, %v11682_v34  ;;  %v11970_v58 = vrot.slane %v11856_v12, %v14544_v18  ;;  %v3700_v59 = vmul.f32 %v7725_v28, %v11682_v34 }
 0x642   :  { %v5775_v0 = vrot.slane %v4110_v24, %v11487_v31  ;;  %v5780_v27 = vrot.slane %v4113_v43, %v11490_v33  ;;  %7484 = vst.msk [vmem:[#allocation4] sm:$0xff] %vm2511_vm1, %v7475_v10  ;;  %v4330_v30 = vsel %vm2511_vm1, %v3698_v63, 0.0  ;;  %v3701_v12 = vmul.f32 %v7726_v16, %v11682_v34  ;;  %v7727_v34 = vld [vmem:[%s14071_s0 + $0x400] sm:$0xff]  ;;  %v7730_v63 = vld [vmem:[%s14071_s0 + $0x418] sm:$0xff] }
 0x643   :  { %v4333_v4 = vsel %vm2511_vm1, %v3699_v8, 0.0  ;;  %v4336_v23 = vsel %vm2511_vm1, %v3700_v59, 0.0  ;;  %v3702_v15 = vmul.f32 %v7727_v34, %v11970_v58  ;;  %v3703_v13 = vmul.f32 %v7728_v32, %v11970_v58  ;;  %v7732_v59 = vld [vmem:[%s14071_s0 + $0x428] sm:$0xff] }
 0x644   :  { %v5776_v22 = vsel %vm5512_vm11, %v5775_v0, %v5771_v2  ;;  %4325 = vadd.xlane.f32.xlu1 %v4324_v54  ;;  %4328 = vadd.xlane.f32.xlu0 %v4327_v3  ;;  %v4339_v20 = vsel %vm2511_vm1, %v3701_v12, 0.0  ;;  %v7729_v3 = vld [vmem:[%s14071_s0 + $0x410] sm:$0xff]  ;;  %v3705_v19 = vmul.f32 %v7730_v63, %v11970_v58  ;;  %v3707_v16 = vmul.f32 %v7732_v59, %v11970_v58  ;;  %v7738_v59 = vld [vmem:[%s14071_s0 + $0x458] sm:$0xff] }
 0x645   :  { %v5781_v39 = vsel %vm5519_vm12, %v5780_v27, %v5776_v22  ;;  %v4116_v11 = vpop.xlane.xlu1 %4115  ;;  %v4119_v45 = vpop.xlane.xlu0 %4118  ;;  %v4342_v27 = vsel %vm2511_vm1, %v3702_v15, 0.0  ;;  %v4345_v54 = vsel %vm2511_vm1, %v3703_v13, 0.0  ;;  %v3704_v29 = vmul.f32 %v7729_v3, %v11970_v58  ;;  %v7734_v15 = vld [vmem:[%s14071_s0 + $0x438] sm:$0xff] }
 0x646   :  { %v5785_v40 = vrot.slane %v4116_v11, %v11504_v47  ;;  %v5790_v46 = vrot.slane %v4119_v45, %v11507_v42  ;;  %vm14559_vm9 = vcmask 720512   ;;  %vm14560_vm6 = vcmask 786112  }
 0x647   :  { %v3709_v32 = vmul.f32 %v7734_v15, %v11970_v58  ;;  %vm14561_vm4 = vcmask 851712   ;;  %vm14562_vm3 = vcmask 917312   ;;  %vm14563_vm5 = vcmask 982912  }
 0x648   :  { %v5786_v35 = vsel %vm5526_vm13, %v5785_v40, %v5781_v39  ;;  %4331 = vadd.xlane.f32.xlu1 %v4330_v30  ;;  %4334 = vadd.xlane.f32.xlu0 %v4333_v4  ;;  %v4351_v30 = vsel %vm2511_vm1, %v3705_v19, 0.0  ;;  %v7731_v4 = vld [vmem:[%s14071_s0 + $0x420] sm:$0xff] }
 0x649   :  { %v5791_v49 = vsel %vm5533_vm14, %v5790_v46, %v5786_v35  ;;  %v4122_v52 = vpop.xlane.xlu1 %4121  ;;  %v4125_v41 = vpop.xlane.xlu0 %4124  ;;  %v4348_v46 = vsel %vm2511_vm1, %v3704_v29, 0.0  ;;  %v3706_v28 = vmul.f32 %v7731_v4, %v11970_v58  ;;  %v7736_v29 = vld [vmem:[%s14071_s0 + $0x448] sm:$0xff]  ;;  %v7737_v4 = vld [vmem:[%s14071_s0 + $0x450] sm:$0xff] }
 0x64a   :  { %v5795_v38 = vrot.slane %v4122_v52, %v11530_v57  ;;  %v5800_v51 = vrot.slane %v4125_v41, %v11533_v21  ;;  %v3711_v63 = vmul.f32 %v7736_v29, %v11970_v58 }
 0x64c   :  { %v5796_v2 = vsel %vm5540_vm15, %v5795_v38, %v5791_v49  ;;  %4337 = vadd.xlane.f32.xlu1 %v4336_v23  ;;  %4340 = vadd.xlane.f32.xlu0 %v4339_v20  ;;  %v4357_v23 = vsel %vm2511_vm1, %v3707_v16, 0.0  ;;  %v7733_v20 = vld [vmem:[%s14071_s0 + $0x430] sm:$0xff] }
 0x64d   :  { %v5801_v55 = vsel %vm5547_vm0, %v5800_v51, %v5796_v2  ;;  %v4128_v24 = vpop.xlane.xlu1 %4127  ;;  %v4131_v43 = vpop.xlane.xlu0 %4130  ;;  %v4354_v51 = vsel %vm2511_vm1, %v3706_v28, 0.0  ;;  %v3708_v34 = vmul.f32 %v7733_v20, %v11970_v58  ;;  %v3712_v28 = vmul.f32 %v7737_v4, %v11970_v58  ;;  %v7740_v20 = vld [vmem:[%s14071_s0 + $0x468] sm:$0xff] }
 0x64e   :  { %v5805_v10 = vrot.slane %v4128_v24, %v11548_v61  ;;  %v5810_v0 = vrot.slane %v4131_v43, %v11551_v56  ;;  %v7744_v4 = vld [vmem:[%s14071_s0 + $0x488] sm:$0xff] }
 0x650   :  { %v5806_v8 = vsel %vm5554_vm8, %v5805_v10, %v5801_v55  ;;  %4343 = vadd.xlane.f32.xlu1 %v4342_v27  ;;  %4346 = vadd.xlane.f32.xlu0 %v4345_v54  ;;  %v4363_v27 = vsel %vm2511_vm1, %v3709_v32, 0.0  ;;  %v7735_v54 = vld [vmem:[%s14071_s0 + $0x440] sm:$0xff] }
 0x651   :  { %v5811_v22 = vsel %vm5561_vm7, %v5810_v0, %v5806_v8  ;;  %v4134_v39 = vpop.xlane.xlu1 %4133  ;;  %v4137_v11 = vpop.xlane.xlu0 %4136  ;;  %v4360_v0 = vsel %vm2511_vm1, %v3708_v34, 0.0  ;;  %v3710_v3 = vmul.f32 %v7735_v54, %v11970_v58  ;;  %v3715_v34 = vmul.f32 %v7740_v20, %v11970_v58  ;;  %v7742_v54 = vld [vmem:[%s14071_s0 + $0x478] sm:$0xff] }
 0x652   :  { %v5815_v45 = vrot.slane %v4134_v39, %v11574_v6  ;;  %v5820_v40 = vrot.slane %v4137_v11, %v11577_v37 }
 0x654   :  { %v5816_v12 = vsel %vm14559_vm9, %v5815_v45, %v5811_v22  ;;  %4349 = vadd.xlane.f32.xlu1 %v4348_v46  ;;  %4352 = vadd.xlane.f32.xlu0 %v4351_v30  ;;  %vm14564_vm9 = vcmask 1041409   ;;  %v4366_v46 = vsel %vm2511_vm1, %v3710_v3, 0.0  ;;  %v4369_v30 = vsel %vm2511_vm1, %v3711_v63, 0.0 }
 0x655   :  { %v5821_v35 = vsel %vm14560_vm6, %v5820_v40, %v5816_v12  ;;  %v4140_v49 = vpop.xlane.xlu1 %4139  ;;  %v4143_v52 = vpop.xlane.xlu0 %4142  ;;  %v3717_v3 = vmul.f32 %v7742_v54, %v11970_v58  ;;  %vm14565_vm6 = vcmask 720512  }
 0x656   :  { %v5825_v41 = vrot.slane %v4140_v49, %v11593_v5  ;;  %v5830_v38 = vrot.slane %v4143_v52, %v11596_v50 }
 0x658   :  { %v5826_v13 = vsel %vm14561_vm4, %v5825_v41, %v5821_v35  ;;  %4355 = vadd.xlane.f32.xlu1 %v4354_v51  ;;  %4358 = vadd.xlane.f32.xlu0 %v4357_v23  ;;  %v4372_v41 = vsel %vm2511_vm1, %v3712_v28, 0.0  ;;  %v7739_v51 = vld [vmem:[%s14071_s0 + $0x460] sm:$0xff]  ;;  %v3719_v28 = vmul.f32 %v7744_v4, %v11970_v58  ;;  %vm14566_vm4 = vcmask 786112  }
 0x659   :  { %v5831_v2 = vsel %vm14562_vm3, %v5830_v38, %v5826_v13  ;;  %v4146_v55 = vpop.xlane.xlu1 %4145  ;;  %v4149_v24 = vpop.xlane.xlu0 %4148  ;;  %v3714_v23 = vmul.f32 %v7739_v51, %v11970_v58  ;;  %vm14567_vm3 = vcmask 851712  }
 0x65a   :  { %v5835_v43 = vrot.slane %v4146_v55, %v11617_v9  ;;  %v5840_v10 = vrot.slane %v4149_v24, %v11620_v36 }
 0x65c   :  { %v5836_v19 = vsel %vm14563_vm5, %v5835_v43, %v5831_v2  ;;  %4361 = vadd.xlane.f32.xlu1 %v4360_v0  ;;  %4364 = vadd.xlane.f32.xlu0 %v4363_v27  ;;  %v4378_v43 = vsel %vm2511_vm1, %v3714_v23, 0.0  ;;  %v7741_v0 = vld [vmem:[%s14071_s0 + $0x470] sm:$0xff]  ;;  %v7746_v23 = vld [vmem:[%s14071_s0 + $0x498] sm:$0xff]  ;;  %vm14568_vm5 = vcmask 917312  }
 0x65d   :  { %v5841_v8 = vsel %vm5603_vm2, %v5840_v10, %v5836_v19  ;;  %v4152_v22 = vpop.xlane.xlu1 %4151  ;;  %v4155_v39 = vpop.xlane.xlu0 %4154  ;;  %v4381_v10 = vsel %vm2511_vm1, %v3715_v34, 0.0  ;;  %v3716_v27 = vmul.f32 %v7741_v0, %v11970_v58  ;;  %v3721_v20 = vmul.f32 %v7746_v23, %v11970_v58 }
 0x65e   :  { %v12058_v11 = vsel %vm14564_vm9, %v5841_v8, %v11769_v25  ;;  %v5845_v45 = vrot.slane %v4152_v22, %v11465_v44  ;;  %v5849_v40 = vrot.slane %v4155_v39, %v11468_v17  ;;  %v3713_v25 = vmul.f32 %v7738_v59, %v11970_v58 }
 0x65f   :  { %vm14569_vm9 = vcmask 982912  }
 0x660   :  { %v5850_v16 = vsel %vm5505_vm10, %v5849_v40, %v5845_v45  ;;  %4367 = vadd.xlane.f32.xlu1 %v4366_v46  ;;  %4370 = vadd.xlane.f32.xlu0 %v4369_v30  ;;  %v4375_v38 = vsel %vm2511_vm1, %v3713_v25, 0.0  ;;  %v4384_v45 = vsel %vm2511_vm1, %v3716_v27, 0.0  ;;  %v4387_v40 = vsel %vm2511_vm1, %v3717_v3, 0.0  ;;  %v7743_v46 = vld [vmem:[%s14071_s0 + $0x480] sm:$0xff]  ;;  %v7748_v27 = vld [vmem:[%s14071_s0 + $0x4a8] sm:$0xff] }
 0x661   :  { %v4158_v12 = vpop.xlane.xlu1 %4157  ;;  %v4161_v35 = vpop.xlane.xlu0 %4160  ;;  %v3718_v30 = vmul.f32 %v7743_v46, %v11970_v58  ;;  %v3723_v54 = vmul.f32 %v7748_v27, %v11970_v58  ;;  %v7754_v27 = vld [vmem:[%s14071_s0 + $0x4d8] sm:$0xff] }
 0x662   :  { %v5854_v49 = vrot.slane %v4158_v12, %v11487_v31  ;;  %v5859_v52 = vrot.slane %v4161_v35, %v11490_v33 }
 0x664   :  { %v5855_v15 = vsel %vm5512_vm11, %v5854_v49, %v5850_v16  ;;  %4373 = vadd.xlane.f32.xlu1 %v4372_v41  ;;  %4376 = vadd.xlane.f32.xlu0 %v4375_v38  ;;  %v4393_v41 = vsel %vm2511_vm1, %v3719_v28, 0.0  ;;  %v7745_v38 = vld [vmem:[%s14071_s0 + $0x490] sm:$0xff] }
 0x665   :  { %v5860_v32 = vsel %vm5519_vm12, %v5859_v52, %v5855_v15  ;;  %v4164_v13 = vpop.xlane.xlu1 %4163  ;;  %v4167_v2 = vpop.xlane.xlu0 %4166  ;;  %v4390_v52 = vsel %vm2511_vm1, %v3718_v30, 0.0  ;;  %v3720_v51 = vmul.f32 %v7745_v38, %v11970_v58  ;;  %v7750_v30 = vld [vmem:[%s14071_s0 + $0x4b8] sm:$0xff] }
 0x666   :  { %v5864_v55 = vrot.slane %v4164_v13, %v11504_v47  ;;  %v5869_v24 = vrot.slane %v4167_v2, %v11507_v42  ;;  %v3725_v4 = vmul.f32 %v7750_v30, %v11970_v58 }
 0x668   :  { %v5865_v29 = vsel %vm5526_vm13, %v5864_v55, %v5860_v32  ;;  %4379 = vadd.xlane.f32.xlu1 %v4378_v43  ;;  %4382 = vadd.xlane.f32.xlu0 %v4381_v10  ;;  %v4399_v43 = vsel %vm2511_vm1, %v3721_v20, 0.0  ;;  %v7747_v10 = vld [vmem:[%s14071_s0 + $0x4a0] sm:$0xff] }
 0x669   :  { %v5870_v63 = vsel %vm5533_vm14, %v5869_v24, %v5865_v29  ;;  %v4170_v19 = vpop.xlane.xlu1 %4169  ;;  %v4173_v8 = vpop.xlane.xlu0 %4172  ;;  %v4396_v24 = vsel %vm2511_vm1, %v3720_v51, 0.0  ;;  %v3722_v0 = vmul.f32 %v7747_v10, %v11970_v58  ;;  %v7752_v51 = vld [vmem:[%s14071_s0 + $0x4c8] sm:$0xff]  ;;  %v7753_v10 = vld [vmem:[%s14071_s0 + $0x4d0] sm:$0xff] }
 0x66a   :  { %v5874_v22 = vrot.slane %v4170_v19, %v11530_v57  ;;  %v5879_v39 = vrot.slane %v4173_v8, %v11533_v21  ;;  %v3727_v23 = vmul.f32 %v7752_v51, %v11970_v58 }
 0x66c   :  { %v5875_v59 = vsel %vm5540_vm15, %v5874_v22, %v5870_v63  ;;  %4385 = vadd.xlane.f32.xlu1 %v4384_v45  ;;  %4388 = vadd.xlane.f32.xlu0 %v4387_v40  ;;  %v4405_v45 = vsel %vm2511_vm1, %v3723_v54, 0.0  ;;  %v7749_v40 = vld [vmem:[%s14071_s0 + $0x4b0] sm:$0xff] }
 0x66d   :  { %v5880_v25 = vsel %vm5547_vm0, %v5879_v39, %v5875_v59  ;;  %v4176_v16 = vpop.xlane.xlu1 %4175  ;;  %v4179_v12 = vpop.xlane.xlu0 %4178  ;;  %v4402_v39 = vsel %vm2511_vm1, %v3722_v0, 0.0  ;;  %v3724_v46 = vmul.f32 %v7749_v40, %v11970_v58  ;;  %v3728_v0 = vmul.f32 %v7753_v10, %v11970_v58  ;;  %v7756_v40 = vld [vmem:[%s14071_s0 + $0x4e8] sm:$0xff] }
 0x66e   :  { %v5884_v35 = vrot.slane %v4176_v16, %v11548_v61  ;;  %v5889_v49 = vrot.slane %v4179_v12, %v11551_v56 }
 0x670   :  { %v5885_v34 = vsel %vm5554_vm8, %v5884_v35, %v5880_v25  ;;  %4391 = vadd.xlane.f32.xlu1 %v4390_v52  ;;  %4394 = vadd.xlane.f32.xlu0 %v4393_v41  ;;  %v4411_v52 = vsel %vm2511_vm1, %v3725_v4, 0.0  ;;  %v7751_v41 = vld [vmem:[%s14071_s0 + $0x4c0] sm:$0xff] }
 0x671   :  { %v5890_v15 = vsel %vm5561_vm7, %v5889_v49, %v5885_v34  ;;  %v4182_v32 = vpop.xlane.xlu1 %4181  ;;  %v4185_v13 = vpop.xlane.xlu0 %4184  ;;  %v4408_v49 = vsel %vm2511_vm1, %v3724_v46, 0.0  ;;  %v3726_v38 = vmul.f32 %v7751_v41, %v11970_v58  ;;  %v3731_v46 = vmul.f32 %v7756_v40, %v11970_v58 }
 0x672   :  { %v5894_v2 = vrot.slane %v4182_v32, %v11574_v6  ;;  %v5899_v55 = vrot.slane %v4185_v13, %v11577_v37 }
 0x674   :  { %v5895_v3 = vsel %vm14565_vm6, %v5894_v2, %v5890_v15  ;;  %4397 = vadd.xlane.f32.xlu1 %v4396_v24  ;;  %4400 = vadd.xlane.f32.xlu0 %v4399_v43  ;;  %vm14570_vm6 = vcmask 1042434   ;;  %v4414_v24 = vsel %vm2511_vm1, %v3726_v38, 0.0  ;;  %v4417_v43 = vsel %vm2511_vm1, %v3727_v23, 0.0  ;;  %v7758_v38 = vld [vmem:[%s14071_s0 + $0x4f8] sm:$0xff] }
 0x675   :  { %v5900_v29 = vsel %vm14566_vm4, %v5899_v55, %v5895_v3  ;;  %v4188_v63 = vpop.xlane.xlu1 %4187  ;;  %v4191_v19 = vpop.xlane.xlu0 %4190  ;;  %vm14571_vm4 = vcmask 720512  }
 0x676   :  { %v5904_v8 = vrot.slane %v4188_v63, %v11593_v5  ;;  %v5909_v22 = vrot.slane %v4191_v19, %v11596_v50 }
 0x678   :  { %v5905_v28 = vsel %vm14567_vm3, %v5904_v8, %v5900_v29  ;;  %4403 = vadd.xlane.f32.xlu1 %v4402_v39  ;;  %4406 = vadd.xlane.f32.xlu0 %v4405_v45  ;;  %v4420_v8 = vsel %vm2511_vm1, %v3728_v0, 0.0  ;;  %v7755_v39 = vld [vmem:[%s14071_s0 + $0x4e0] sm:$0xff]  ;;  %vm14572_vm3 = vcmask 786112  }
 0x679   :  { %v5910_v59 = vsel %vm14568_vm5, %v5909_v22, %v5905_v28  ;;  %v4194_v25 = vpop.xlane.xlu1 %4193  ;;  %v4197_v16 = vpop.xlane.xlu0 %4196  ;;  %v3730_v45 = vmul.f32 %v7755_v39, %v11970_v58  ;;  %v7762_v39 = vld [vmem:[%s14071_s0 + $0x518] sm:$0xff]  ;;  %vm14573_vm5 = vcmask 851712  }
 0x67a   :  { %v5914_v12 = vrot.slane %v4194_v25, %v11617_v9  ;;  %v5919_v35 = vrot.slane %v4197_v16, %v11620_v36  ;;  %v12204_v25 = vrot.slane %v11859_v26, %v14544_v18  ;;  %v3733_v26 = vmul.f32 %v7758_v38, %v11970_v58 }
 0x67c   :  { %v5915_v20 = vsel %vm14569_vm9, %v5914_v12, %v5910_v59  ;;  %4409 = vadd.xlane.f32.xlu1 %v4408_v49  ;;  %4412 = vadd.xlane.f32.xlu0 %v4411_v52  ;;  %v4429_v49 = vsel %vm2511_vm1, %v3731_v46, 0.0  ;;  %v7757_v52 = vld [vmem:[%s14071_s0 + $0x4f0] sm:$0xff]  ;;  %vm14574_vm9 = vcmask 917312  }
 0x67d   :  { %v5920_v34 = vsel %vm5603_vm2, %v5919_v35, %v5915_v20  ;;  %v4200_v15 = vpop.xlane.xlu1 %4199  ;;  %v4203_v32 = vpop.xlane.xlu0 %4202  ;;  %v4426_v35 = vsel %vm2511_vm1, %v3730_v45, 0.0  ;;  %v3732_v41 = vmul.f32 %v7757_v52, %v11970_v58  ;;  %v3737_v45 = vmul.f32 %v7762_v39, %v12204_v25  ;;  %v7764_v52 = vld [vmem:[%s14071_s0 + $0x528] sm:$0xff] }
 0x67e   :  { %v12173_v13 = vsel %vm14570_vm6, %v5920_v34, %v11940_v60  ;;  %v5924_v2 = vrot.slane %v4200_v15, %v11465_v44  ;;  %v5928_v55 = vrot.slane %v4203_v32, %v11468_v17  ;;  %v3729_v60 = vmul.f32 %v7754_v27, %v11970_v58  ;;  %v7759_v58 = vld [vmem:[%s14071_s0 + $0x500] sm:$0xff] }
 0x67f   :  { %vm14575_vm6 = vcmask 982912  }
 0x680   :  { %v5929_v54 = vsel %vm5505_vm10, %v5928_v55, %v5924_v2  ;;  %4415 = vadd.xlane.f32.xlu1 %v4414_v24  ;;  %4418 = vadd.xlane.f32.xlu0 %v4417_v43  ;;  %v4423_v22 = vsel %vm2511_vm1, %v3729_v60, 0.0  ;;  %v4432_v2 = vsel %vm2511_vm1, %v3732_v41, 0.0  ;;  %v4435_v55 = vsel %vm2511_vm1, %v3733_v26, 0.0  ;;  %v7760_v43 = vld [vmem:[%s14071_s0 + $0x508] sm:$0xff] }
 0x681   :  { %v4206_v3 = vpop.xlane.xlu1 %4205  ;;  %v4209_v29 = vpop.xlane.xlu0 %4208  ;;  %v3734_v24 = vmul.f32 %v7759_v58, %v12204_v25  ;;  %v3735_v10 = vmul.f32 %v7760_v43, %v12204_v25  ;;  %v3739_v41 = vmul.f32 %v7764_v52, %v12204_v25  ;;  %v7766_v58 = vld [vmem:[%s14071_s0 + $0x538] sm:$0xff] }
 0x682   :  { %v5933_v63 = vrot.slane %v4206_v3, %v11487_v31  ;;  %v5938_v19 = vrot.slane %v4209_v29, %v11490_v33 }
 0x684   :  { %v5934_v30 = vsel %vm5512_vm11, %v5933_v63, %v5929_v54  ;;  %4421 = vadd.xlane.f32.xlu1 %v4420_v8  ;;  %4424 = vadd.xlane.f32.xlu0 %v4423_v22  ;;  %v4438_v63 = vsel %vm2511_vm1, %v3734_v24, 0.0  ;;  %v7761_v8 = vld [vmem:[%s14071_s0 + $0x510] sm:$0xff]  ;;  %v3741_v24 = vmul.f32 %v7766_v58, %v12204_v25 }
 0x685   :  { %v5939_v4 = vsel %vm5519_vm12, %v5938_v19, %v5934_v30  ;;  %v4212_v28 = vpop.xlane.xlu1 %4211  ;;  %v4215_v59 = vpop.xlane.xlu0 %4214  ;;  %v4441_v19 = vsel %vm2511_vm1, %v3735_v10, 0.0  ;;  %v3736_v22 = vmul.f32 %v7761_v8, %v12204_v25  ;;  %v7768_v8 = vld [vmem:[%s14071_s0 + $0x548] sm:$0xff] }
 0x686   :  { %v5943_v16 = vrot.slane %v4212_v28, %v11504_v47  ;;  %v5948_v12 = vrot.slane %v4215_v59, %v11507_v42 }
 0x688   :  { %v5944_v51 = vsel %vm5526_vm13, %v5943_v16, %v5939_v4  ;;  %4427 = vadd.xlane.f32.xlu1 %v4426_v35  ;;  %4430 = vadd.xlane.f32.xlu0 %v4429_v49  ;;  %v4444_v16 = vsel %vm2511_vm1, %v3736_v22, 0.0  ;;  %v7763_v35 = vld [vmem:[%s14071_s0 + $0x520] sm:$0xff]  ;;  %v3743_v22 = vmul.f32 %v7768_v8, %v12204_v25 }
 0x689   :  { %v5949_v23 = vsel %vm5533_vm14, %v5948_v12, %v5944_v51  ;;  %v4218_v20 = vpop.xlane.xlu1 %4217  ;;  %v4221_v34 = vpop.xlane.xlu0 %4220  ;;  %v4447_v12 = vsel %vm2511_vm1, %v3737_v45, 0.0  ;;  %v3738_v49 = vmul.f32 %v7763_v35, %v12204_v25 }
 0x68a   :  { %v5953_v15 = vrot.slane %v4218_v20, %v11530_v57  ;;  %v5958_v32 = vrot.slane %v4221_v34, %v11533_v21 }
 0x68c   :  { %v5954_v0 = vsel %vm5540_vm15, %v5953_v15, %v5949_v23  ;;  %4433 = vadd.xlane.f32.xlu1 %v4432_v2  ;;  %4436 = vadd.xlane.f32.xlu0 %v4435_v55  ;;  %v4450_v15 = vsel %vm2511_vm1, %v3738_v49, 0.0  ;;  %v7765_v2 = vld [vmem:[%s14071_s0 + $0x530] sm:$0xff]  ;;  %v7770_v49 = vld [vmem:[%s14071_s0 + $0x558] sm:$0xff] }
 0x68d   :  { %v5959_v27 = vsel %vm5547_vm0, %v5958_v32, %v5954_v0  ;;  %v4224_v60 = vpop.xlane.xlu1 %4223  ;;  %v4227_v54 = vpop.xlane.xlu0 %4226  ;;  %v4453_v32 = vsel %vm2511_vm1, %v3739_v41, 0.0  ;;  %v3740_v55 = vmul.f32 %v7765_v2, %v12204_v25 }
 0x68e   :  { %v5963_v3 = vrot.slane %v4224_v60, %v11548_v61  ;;  %v5968_v29 = vrot.slane %v4227_v54, %v11551_v56 }
 0x690   :  { %v5964_v40 = vsel %vm5554_vm8, %v5963_v3, %v5959_v27  ;;  %4439 = vadd.xlane.f32.xlu1 %v4438_v63  ;;  %4442 = vadd.xlane.f32.xlu0 %v4441_v19  ;;  %v4456_v3 = vsel %vm2511_vm1, %v3740_v55, 0.0  ;;  %v7767_v63 = vld [vmem:[%s14071_s0 + $0x540] sm:$0xff] }
 0x691   :  { %v5969_v46 = vsel %vm5561_vm7, %v5968_v29, %v5964_v40  ;;  %v4230_v30 = vpop.xlane.xlu1 %4229  ;;  %v4233_v4 = vpop.xlane.xlu0 %4232  ;;  %v4459_v29 = vsel %vm2511_vm1, %v3741_v24, 0.0  ;;  %v3742_v19 = vmul.f32 %v7767_v63, %v12204_v25 }
 0x692   :  { %v5973_v28 = vrot.slane %v4230_v30, %v11574_v6  ;;  %v5978_v59 = vrot.slane %v4233_v4, %v11577_v37 }
 0x694   :  { %v5974_v38 = vsel %vm14571_vm4, %v5973_v28, %v5969_v46  ;;  %4445 = vadd.xlane.f32.xlu1 %v4444_v16  ;;  %4448 = vadd.xlane.f32.xlu0 %v4447_v12  ;;  %vm14576_vm4 = vcmask 1042434   ;;  %v4465_v16 = vsel %vm2511_vm1, %v3743_v22, 0.0  ;;  %v7769_v12 = vld [vmem:[%s14071_s0 + $0x550] sm:$0xff] }
 0x695   :  { %v5979_v26 = vsel %vm14572_vm3, %v5978_v59, %v5974_v38  ;;  %v4236_v51 = vpop.xlane.xlu1 %4235  ;;  %v4239_v23 = vpop.xlane.xlu0 %4238  ;;  %v4462_v59 = vsel %vm2511_vm1, %v3742_v19, 0.0  ;;  %v3744_v35 = vmul.f32 %v7769_v12, %v12204_v25  ;;  %vm14577_vm3 = vcmask 720512  }
 0x696   :  { %v5983_v20 = vrot.slane %v4236_v51, %v11593_v5  ;;  %v5988_v34 = vrot.slane %v4239_v23, %v11596_v50 }
 0x697   :  { %v4468_v23 = vsel %vm2511_vm1, %v3744_v35, 0.0 }
 0x698   :  { %v5984_v43 = vsel %vm14573_vm5, %v5983_v20, %v5979_v26  ;;  %4451 = vadd.xlane.f32.xlu1 %v4450_v15  ;;  %4454 = vadd.xlane.f32.xlu0 %v4453_v32  ;;  %v7772_v32 = vld [vmem:[%s14071_s0 + $0x568] sm:$0xff]  ;;  %vm14578_vm5 = vcmask 786112  }
 0x699   :  { %v5989_v10 = vsel %vm14574_vm9, %v5988_v34, %v5984_v43  ;;  %v4242_v0 = vpop.xlane.xlu1 %4241  ;;  %v4245_v27 = vpop.xlane.xlu0 %4244  ;;  %v7771_v34 = vld [vmem:[%s14071_s0 + $0x560] sm:$0xff]  ;;  %v3747_v2 = vmul.f32 %v7772_v32, %v12204_v25  ;;  %vm14579_vm9 = vcmask 851712  }
 0x69a   :  { %v5993_v60 = vrot.slane %v4242_v0, %v11617_v9  ;;  %v5998_v54 = vrot.slane %v4245_v27, %v11620_v36  ;;  %v3746_v15 = vmul.f32 %v7771_v34, %v12204_v25  ;;  %v7778_v34 = vld [vmem:[%s14071_s0 + $0x598] sm:$0xff] }
 0x69c   :  { %v5994_v39 = vsel %vm14575_vm6, %v5993_v60, %v5989_v10  ;;  %4457 = vadd.xlane.f32.xlu1 %v4456_v3  ;;  %4460 = vadd.xlane.f32.xlu0 %v4459_v29  ;;  %v4474_v27 = vsel %vm2511_vm1, %v3746_v15, 0.0  ;;  %v4477_v60 = vsel %vm2511_vm1, %v3747_v2, 0.0  ;;  %v7774_v29 = vld [vmem:[%s14071_s0 + $0x578] sm:$0xff]  ;;  %v3753_v15 = vmul.f32 %v7778_v34, %v12204_v25 }
 0x69d   :  { %v5999_v45 = vsel %vm5603_vm2, %v5998_v54, %v5994_v39  ;;  %v4248_v40 = vpop.xlane.xlu1 %4247  ;;  %v4251_v46 = vpop.xlane.xlu0 %4250  ;;  %v7773_v54 = vld [vmem:[%s14071_s0 + $0x570] sm:$0xff]  ;;  %v3749_v63 = vmul.f32 %v7774_v29, %v12204_v25  ;;  %vm14580_vm6 = vcmask 917312  }
 0x69e   :  { %v12292_v30 = vsel %vm14576_vm4, %v5999_v45, %v12058_v11  ;;  %v6003_v4 = vrot.slane %v4248_v40, %v11465_v44  ;;  %v6007_v28 = vrot.slane %v4251_v46, %v11468_v17  ;;  %v3745_v11 = vmul.f32 %v7770_v49, %v12204_v25 }
 0x69f   :  { %v3748_v3 = vmul.f32 %v7773_v54, %v12204_v25  ;;  %v7780_v54 = vld [vmem:[%s14071_s0 + $0x5a8] sm:$0xff]  ;;  %vm14581_vm4 = vcmask 982912  }
 0x6a0   :  { %v6008_v52 = vsel %vm5505_vm10, %v6007_v28, %v6003_v4  ;;  %4463 = vadd.xlane.f32.xlu1 %v4462_v59  ;;  %4466 = vadd.xlane.f32.xlu0 %v4465_v16  ;;  %v4471_v20 = vsel %vm2511_vm1, %v3745_v11, 0.0  ;;  %v4483_v4 = vsel %vm2511_vm1, %v3749_v63, 0.0  ;;  %v7775_v28 = vld [vmem:[%s14071_s0 + $0x580] sm:$0xff]  ;;  %v7776_v16 = vld [vmem:[%s14071_s0 + $0x588] sm:$0xff] }
 0x6a1   :  { %v4254_v41 = vpop.xlane.xlu1 %4253  ;;  %v4257_v38 = vpop.xlane.xlu0 %4256  ;;  %v4480_v46 = vsel %vm2511_vm1, %v3748_v3, 0.0  ;;  %v3750_v59 = vmul.f32 %v7775_v28, %v12204_v25  ;;  %v3751_v12 = vmul.f32 %v7776_v16, %v12204_v25  ;;  %v3755_v3 = vmul.f32 %v7780_v54, %v12204_v25  ;;  %v7782_v28 = vld [vmem:[%s14071_s0 + $0x5b8] sm:$0xff] }
 0x6a2   :  { %v6012_v26 = vrot.slane %v4254_v41, %v11487_v31  ;;  %v6017_v51 = vrot.slane %v4257_v38, %v11490_v33 }
 0x6a4   :  { %v6013_v55 = vsel %vm5512_vm11, %v6012_v26, %v6008_v52  ;;  %4469 = vadd.xlane.f32.xlu1 %v4468_v23  ;;  %4472 = vadd.xlane.f32.xlu0 %v4471_v20  ;;  %v4486_v26 = vsel %vm2511_vm1, %v3750_v59, 0.0  ;;  %v7777_v23 = vld [vmem:[%s14071_s0 + $0x590] sm:$0xff]  ;;  %v3757_v59 = vmul.f32 %v7782_v28, %v12204_v25 }
 0x6a5   :  { %v6018_v58 = vsel %vm5519_vm12, %v6017_v51, %v6013_v55  ;;  %v4260_v24 = vpop.xlane.xlu1 %4259  ;;  %v4263_v43 = vpop.xlane.xlu0 %4262  ;;  %v4489_v51 = vsel %vm2511_vm1, %v3751_v12, 0.0  ;;  %v3752_v20 = vmul.f32 %v7777_v23, %v12204_v25  ;;  %v7784_v23 = vld [vmem:[%s14071_s0 + $0x5c8] sm:$0xff] }
 0x6a6   :  { %v6022_v10 = vrot.slane %v4260_v24, %v11504_v47  ;;  %v6027_v0 = vrot.slane %v4263_v43, %v11507_v42 }
 0x6a8   :  { %v6023_v19 = vsel %vm5526_vm13, %v6022_v10, %v6018_v58  ;;  %4475 = vadd.xlane.f32.xlu1 %v4474_v27  ;;  %4478 = vadd.xlane.f32.xlu0 %v4477_v60  ;;  %v4492_v10 = vsel %vm2511_vm1, %v3752_v20, 0.0  ;;  %v7779_v27 = vld [vmem:[%s14071_s0 + $0x5a0] sm:$0xff]  ;;  %v3759_v20 = vmul.f32 %v7784_v23, %v12204_v25 }
 0x6a9   :  { %v6028_v8 = vsel %vm5533_vm14, %v6027_v0, %v6023_v19  ;;  %v4266_v22 = vpop.xlane.xlu1 %4265  ;;  %v4269_v39 = vpop.xlane.xlu0 %4268  ;;  %v4495_v0 = vsel %vm2511_vm1, %v3753_v15, 0.0  ;;  %v3754_v60 = vmul.f32 %v7779_v27, %v12204_v25 }
 0x6aa   :  { %v6032_v45 = vrot.slane %v4266_v22, %v11530_v57  ;;  %v6037_v40 = vrot.slane %v4269_v39, %v11533_v21 }
 0x6ac   :  { %v6033_v35 = vsel %vm5540_vm15, %v6032_v45, %v6028_v8  ;;  %4481 = vadd.xlane.f32.xlu1 %v4480_v46  ;;  %4484 = vadd.xlane.f32.xlu0 %v4483_v4  ;;  %v4498_v45 = vsel %vm2511_vm1, %v3754_v60, 0.0  ;;  %v7781_v46 = vld [vmem:[%s14071_s0 + $0x5b0] sm:$0xff]  ;;  %v7786_v60 = vld [vmem:[%s14071_s0 + $0x5d8] sm:$0xff] }
 0x6ad   :  { %v6038_v49 = vsel %vm5547_vm0, %v6037_v40, %v6033_v35  ;;  %v4272_v11 = vpop.xlane.xlu1 %4271  ;;  %v4275_v52 = vpop.xlane.xlu0 %4274  ;;  %v4501_v40 = vsel %vm2511_vm1, %v3755_v3, 0.0  ;;  %v3756_v4 = vmul.f32 %v7781_v46, %v12204_v25 }
 0x6ae   :  { %v6042_v41 = vrot.slane %v4272_v11, %v11548_v61  ;;  %v6047_v38 = vrot.slane %v4275_v52, %v11551_v56 }
 0x6b0   :  { %v6043_v32 = vsel %vm5554_vm8, %v6042_v41, %v6038_v49  ;;  %4487 = vadd.xlane.f32.xlu1 %v4486_v26  ;;  %4490 = vadd.xlane.f32.xlu0 %v4489_v51  ;;  %v4504_v41 = vsel %vm2511_vm1, %v3756_v4, 0.0  ;;  %v7783_v26 = vld [vmem:[%s14071_s0 + $0x5c0] sm:$0xff] }
 0x6b1   :  { %v6048_v2 = vsel %vm5561_vm7, %v6047_v38, %v6043_v32  ;;  %v4278_v55 = vpop.xlane.xlu1 %4277  ;;  %v4281_v58 = vpop.xlane.xlu0 %4280  ;;  %v4507_v38 = vsel %vm2511_vm1, %v3757_v59, 0.0  ;;  %v3758_v51 = vmul.f32 %v7783_v26, %v12204_v25  ;;  %v7790_v26 = vld [vmem:[%s14071_s0 + $0x5f8] sm:$0xff] }
 0x6b2   :  { %v6052_v24 = vrot.slane %v4278_v55, %v11574_v6  ;;  %v6057_v43 = vrot.slane %v4281_v58, %v11577_v37 }
 0x6b4   :  { %v6053_v29 = vsel %vm14577_vm3, %v6052_v24, %v6048_v2  ;;  %4493 = vadd.xlane.f32.xlu1 %v4492_v10  ;;  %4496 = vadd.xlane.f32.xlu0 %v4495_v0  ;;  %vm14582_vm3 = vcmask 1043459   ;;  %v4513_v10 = vsel %vm2511_vm1, %v3759_v20, 0.0  ;;  %v7785_v0 = vld [vmem:[%s14071_s0 + $0x5d0] sm:$0xff] }
 0x6b5   :  { %v6058_v63 = vsel %vm14578_vm5, %v6057_v43, %v6053_v29  ;;  %v4284_v19 = vpop.xlane.xlu1 %4283  ;;  %v4287_v8 = vpop.xlane.xlu0 %4286  ;;  %v4510_v43 = vsel %vm2511_vm1, %v3758_v51, 0.0  ;;  %v3760_v27 = vmul.f32 %v7785_v0, %v12204_v25  ;;  %vm14583_vm5 = vcmask 720512  }
 0x6b6   :  { %v6062_v22 = vrot.slane %v4284_v19, %v11593_v5  ;;  %v6067_v39 = vrot.slane %v4287_v8, %v11596_v50 }
 0x6b7   :  { %v4516_v8 = vsel %vm2511_vm1, %v3760_v27, 0.0 }
 0x6b8   :  { %v6063_v16 = vsel %vm14579_vm9, %v6062_v22, %v6058_v63  ;;  %4499 = vadd.xlane.f32.xlu1 %v4498_v45  ;;  %4502 = vadd.xlane.f32.xlu0 %v4501_v40  ;;  %v7788_v40 = vld [vmem:[%s14071_s0 + $0x5e8] sm:$0xff]  ;;  %vm14584_vm9 = vcmask 786112  }
 0x6b9   :  { %v6068_v12 = vsel %vm14580_vm6, %v6067_v39, %v6063_v16  ;;  %v4290_v35 = vpop.xlane.xlu1 %4289  ;;  %v4293_v49 = vpop.xlane.xlu0 %4292  ;;  %v7787_v39 = vld [vmem:[%s14071_s0 + $0x5e0] sm:$0xff]  ;;  %v3763_v46 = vmul.f32 %v7788_v40, %v12204_v25  ;;  %vm14585_vm6 = vcmask 851712  }
 0x6ba   :  { %v6072_v11 = vrot.slane %v4290_v35, %v11617_v9  ;;  %v6077_v52 = vrot.slane %v4293_v49, %v11620_v36  ;;  %v3762_v45 = vmul.f32 %v7787_v39, %v12204_v25 }
 0x6bc   :  { %v6073_v34 = vsel %vm14581_vm4, %v6072_v11, %v6068_v12  ;;  %4505 = vadd.xlane.f32.xlu1 %v4504_v41  ;;  %4508 = vadd.xlane.f32.xlu0 %v4507_v38  ;;  %v12438_v12 = vrot.slane %v11873_v62, %v14544_v18  ;;  %v4522_v11 = vsel %vm2511_vm1, %v3762_v45, 0.0  ;;  %v7789_v41 = vld [vmem:[%s14071_s0 + $0x5f0] sm:$0xff]  ;;  %v3765_v62 = vmul.f32 %v7790_v26, %v12204_v25 }
 0x6bd   :  { %v6078_v15 = vsel %vm5603_vm2, %v6077_v52, %v6073_v34  ;;  %v4296_v32 = vpop.xlane.xlu1 %4295  ;;  %v4299_v2 = vpop.xlane.xlu0 %4298  ;;  %v4525_v52 = vsel %vm2511_vm1, %v3763_v46, 0.0  ;;  %v3764_v38 = vmul.f32 %v7789_v41, %v12204_v25  ;;  %vm14586_vm4 = vcmask 917312  }
 0x6be   :  { %v12407_v55 = vsel %vm14582_vm3, %v6078_v15, %v12173_v13  ;;  %v6082_v58 = vrot.slane %v4296_v32, %v11465_v44  ;;  %v6086_v24 = vrot.slane %v4299_v2, %v11468_v17  ;;  %v3761_v13 = vmul.f32 %v7786_v60, %v12204_v25  ;;  %v7791_v25 = vld [vmem:[%s14071_s0 + $0x600] sm:$0xff] }
 0x6bf   :  { %v4528_v2 = vsel %vm2511_vm1, %v3764_v38, 0.0  ;;  %vm14587_vm3 = vcmask 982912  }
 0x6c0   :  { %v6087_v54 = vsel %vm5505_vm10, %v6086_v24, %v6082_v58  ;;  %4511 = vadd.xlane.f32.xlu1 %v4510_v43  ;;  %4514 = vadd.xlane.f32.xlu0 %v4513_v10  ;;  %v4519_v22 = vsel %vm2511_vm1, %v3761_v13, 0.0  ;;  %v4531_v58 = vsel %vm2511_vm1, %v3765_v62, 0.0  ;;  %v3766_v24 = vmul.f32 %v7791_v25, %v12438_v12  ;;  %v7792_v43 = vld [vmem:[%s14071_s0 + $0x608] sm:$0xff] }
 0x6c1   :  { %v4302_v3 = vpop.xlane.xlu1 %4301  ;;  %v4305_v29 = vpop.xlane.xlu0 %4304  ;;  %v3767_v10 = vmul.f32 %v7792_v43, %v12438_v12 }
 0x6c2   :  { %v6091_v63 = vrot.slane %v4302_v3, %v11487_v31  ;;  %v6096_v19 = vrot.slane %v4305_v29, %v11490_v33  ;;  %v4534_v29 = vsel %vm2511_vm1, %v3766_v24, 0.0 }
 0x6c4   :  { %v6092_v4 = vsel %vm5512_vm11, %v6091_v63, %v6087_v54  ;;  %4517 = vadd.xlane.f32.xlu1 %v4516_v8  ;;  %4520 = vadd.xlane.f32.xlu0 %v4519_v22  ;;  %v4537_v63 = vsel %vm2511_vm1, %v3767_v10, 0.0  ;;  %v7794_v22 = vld [vmem:[%s14071_s0 + $0x618] sm:$0xff] }
 0x6c5   :  { %v6097_v28 = vsel %vm5519_vm12, %v6096_v19, %v6092_v4  ;;  %v4308_v59 = vpop.xlane.xlu1 %4307  ;;  %v4311_v16 = vpop.xlane.xlu0 %4310  ;;  %v7793_v19 = vld [vmem:[%s14071_s0 + $0x610] sm:$0xff]  ;;  %v3769_v39 = vmul.f32 %v7794_v22, %v12438_v12 }
 0x6c6   :  { %v6101_v35 = vrot.slane %v4308_v59, %v11504_v47  ;;  %v6106_v49 = vrot.slane %v4311_v16, %v11507_v42  ;;  %v3768_v8 = vmul.f32 %v7793_v19, %v12438_v12 }
 0x6c8   :  { %v6102_v51 = vsel %vm5526_vm13, %v6101_v35, %v6097_v28  ;;  %4523 = vadd.xlane.f32.xlu1 %v4522_v11  ;;  %4526 = vadd.xlane.f32.xlu0 %v4525_v52  ;;  %v4540_v16 = vsel %vm2511_vm1, %v3768_v8, 0.0  ;;  %v4543_v35 = vsel %vm2511_vm1, %v3769_v39, 0.0  ;;  %v7796_v52 = vld [vmem:[%s14071_s0 + $0x628] sm:$0xff] }
 0x6c9   :  { %v6107_v23 = vsel %vm5533_vm14, %v6106_v49, %v6102_v51  ;;  %v4314_v20 = vpop.xlane.xlu1 %4313  ;;  %v4317_v34 = vpop.xlane.xlu0 %4316  ;;  %v7795_v49 = vld [vmem:[%s14071_s0 + $0x620] sm:$0xff]  ;;  %v3771_v41 = vmul.f32 %v7796_v52, %v12438_v12 }
 0x6ca   :  { %v6111_v15 = vrot.slane %v4314_v20, %v11530_v57  ;;  %v6116_v32 = vrot.slane %v4317_v34, %v11533_v21  ;;  %v3770_v11 = vmul.f32 %v7795_v49, %v12438_v12  ;;  %v7802_v49 = vld [vmem:[%s14071_s0 + $0x658] sm:$0xff] }
 0x6cc   :  { %v6112_v0 = vsel %vm5540_vm15, %v6111_v15, %v6107_v23  ;;  %4529 = vadd.xlane.f32.xlu1 %v4528_v2  ;;  %4532 = vadd.xlane.f32.xlu0 %v4531_v58  ;;  %v4546_v34 = vsel %vm2511_vm1, %v3770_v11, 0.0  ;;  %v4549_v15 = vsel %vm2511_vm1, %v3771_v41, 0.0  ;;  %v7798_v58 = vld [vmem:[%s14071_s0 + $0x638] sm:$0xff] }
 0x6cd   :  { %v6117_v27 = vsel %vm5547_vm0, %v6116_v32, %v6112_v0  ;;  %v4320_v60 = vpop.xlane.xlu1 %4319  ;;  %v4323_v13 = vpop.xlane.xlu0 %4322  ;;  %v7797_v32 = vld [vmem:[%s14071_s0 + $0x630] sm:$0xff]  ;;  %v3773_v25 = vmul.f32 %v7798_v58, %v12438_v12 }
 0x6ce   :  { %v6121_v54 = vrot.slane %v4320_v60, %v11548_v61  ;;  %v6126_v3 = vrot.slane %v4323_v13, %v11551_v56  ;;  %v3772_v2 = vmul.f32 %v7797_v32, %v12438_v12 }
 0x6d0   :  { %v6122_v45 = vsel %vm5554_vm8, %v6121_v54, %v6117_v27  ;;  %4535 = vadd.xlane.f32.xlu1 %v4534_v29  ;;  %4538 = vadd.xlane.f32.xlu0 %v4537_v63  ;;  %v4552_v13 = vsel %vm2511_vm1, %v3772_v2, 0.0  ;;  %v4555_v54 = vsel %vm2511_vm1, %v3773_v25, 0.0  ;;  %v7800_v63 = vld [vmem:[%s14071_s0 + $0x648] sm:$0xff] }
 0x6d1   :  { %v6127_v40 = vsel %vm5561_vm7, %v6126_v3, %v6122_v45  ;;  %v4326_v46 = vpop.xlane.xlu1 %4325  ;;  %v4329_v4 = vpop.xlane.xlu0 %4328  ;;  %v7799_v3 = vld [vmem:[%s14071_s0 + $0x640] sm:$0xff]  ;;  %v3775_v19 = vmul.f32 %v7800_v63, %v12438_v12 }
 0x6d2   :  { %v6131_v28 = vrot.slane %v4326_v46, %v11574_v6  ;;  %v6136_v59 = vrot.slane %v4329_v4, %v11577_v37  ;;  %v3774_v29 = vmul.f32 %v7799_v3, %v12438_v12 }
 0x6d4   :  { %v6132_v38 = vsel %vm14583_vm5, %v6131_v28, %v6127_v40  ;;  %4541 = vadd.xlane.f32.xlu1 %v4540_v16  ;;  %4544 = vadd.xlane.f32.xlu0 %v4543_v35  ;;  %vm14588_vm5 = vcmask 1043459   ;;  %v4558_v28 = vsel %vm2511_vm1, %v3774_v29, 0.0  ;;  %v7801_v16 = vld [vmem:[%s14071_s0 + $0x650] sm:$0xff] }
 0x6d5   :  { %v6137_v26 = vsel %vm14584_vm9, %v6136_v59, %v6132_v38  ;;  %v4332_v62 = vpop.xlane.xlu1 %4331  ;;  %v4335_v51 = vpop.xlane.xlu0 %4334  ;;  %v4561_v59 = vsel %vm2511_vm1, %v3775_v19, 0.0  ;;  %v3776_v35 = vmul.f32 %v7801_v16, %v12438_v12  ;;  %vm14589_vm9 = vcmask 720512  }
 0x6d6   :  { %v6141_v23 = vrot.slane %v4332_v62, %v11593_v5  ;;  %v6146_v20 = vrot.slane %v4335_v51, %v11596_v50 }
 0x6d7   :  { %v4564_v62 = vsel %vm2511_vm1, %v3776_v35, 0.0 }
 0x6d8   :  { %v6142_v24 = vsel %vm14585_vm6, %v6141_v23, %v6137_v26  ;;  %4547 = vadd.xlane.f32.xlu1 %v4546_v34  ;;  %4550 = vadd.xlane.f32.xlu0 %v4549_v15  ;;  %v7803_v23 = vld [vmem:[%s14071_s0 + $0x660] sm:$0xff]  ;;  %v7804_v34 = vld [vmem:[%s14071_s0 + $0x668] sm:$0xff]  ;;  %vm14590_vm6 = vcmask 786112  }
 0x6d9   :  { %v6147_v43 = vsel %vm14586_vm4, %v6146_v20, %v6142_v24  ;;  %v4338_v10 = vpop.xlane.xlu1 %4337  ;;  %v4341_v0 = vpop.xlane.xlu0 %4340  ;;  %v3778_v20 = vmul.f32 %v7803_v23, %v12438_v12  ;;  %v3779_v15 = vmul.f32 %v7804_v34, %v12438_v12  ;;  %vm14591_vm4 = vcmask 851712  }
 0x6da   :  { %v6151_v27 = vrot.slane %v4338_v10, %v11617_v9  ;;  %v6156_v60 = vrot.slane %v4341_v0, %v11620_v36 }
 0x6db   :  { %v4570_v10 = vsel %vm2511_vm1, %v3778_v20, 0.0  ;;  %v4573_v0 = vsel %vm2511_vm1, %v3779_v15, 0.0 }
 0x6dc   :  { %v6152_v8 = vsel %vm14587_vm3, %v6151_v27, %v6147_v43  ;;  %4553 = vadd.xlane.f32.xlu1 %v4552_v13  ;;  %4556 = vadd.xlane.f32.xlu0 %v4555_v54  ;;  %v7805_v27 = vld [vmem:[%s14071_s0 + $0x670] sm:$0xff]  ;;  %v7806_v13 = vld [vmem:[%s14071_s0 + $0x678] sm:$0xff]  ;;  %vm14592_vm3 = vcmask 917312  }
 0x6dd   :  { %v6157_v22 = vsel %vm5603_vm2, %v6156_v60, %v6152_v8  ;;  %v4344_v39 = vpop.xlane.xlu1 %4343  ;;  %v4347_v45 = vpop.xlane.xlu0 %4346  ;;  %v3780_v60 = vmul.f32 %v7805_v27, %v12438_v12  ;;  %v3781_v54 = vmul.f32 %v7806_v13, %v12438_v12 }
 0x6de   :  { %v12526_v40 = vsel %vm14588_vm5, %v6157_v22, %v12292_v30  ;;  %v6161_v46 = vrot.slane %v4344_v39, %v11465_v44  ;;  %v6165_v4 = vrot.slane %v4347_v45, %v11468_v17  ;;  %v3777_v30 = vmul.f32 %v7802_v49, %v12438_v12 }
 0x6df   :  { %v4576_v39 = vsel %vm2511_vm1, %v3780_v60, 0.0  ;;  %v4579_v45 = vsel %vm2511_vm1, %v3781_v54, 0.0  ;;  %vm14593_vm5 = vcmask 982912  }
 0x6e0   :  { %v6166_v11 = vsel %vm5505_vm10, %v6165_v4, %v6161_v46  ;;  %4559 = vadd.xlane.f32.xlu1 %v4558_v28  ;;  %4562 = vadd.xlane.f32.xlu0 %v4561_v59  ;;  %v4567_v51 = vsel %vm2511_vm1, %v3777_v30, 0.0  ;;  %v7807_v46 = vld [vmem:[%s14071_s0 + $0x680] sm:$0xff]  ;;  %v7808_v28 = vld [vmem:[%s14071_s0 + $0x688] sm:$0xff] }
 0x6e1   :  { %v4350_v52 = vpop.xlane.xlu1 %4349  ;;  %v4353_v41 = vpop.xlane.xlu0 %4352  ;;  %v3782_v4 = vmul.f32 %v7807_v46, %v12438_v12  ;;  %v3783_v59 = vmul.f32 %v7808_v28, %v12438_v12 }
 0x6e2   :  { %v6170_v38 = vrot.slane %v4350_v52, %v11487_v31  ;;  %v6175_v26 = vrot.slane %v4353_v41, %v11490_v33 }
 0x6e3   :  { %v4582_v41 = vsel %vm2511_vm1, %v3782_v4, 0.0 }
 0x6e4   :  { %v6171_v32 = vsel %vm5512_vm11, %v6170_v38, %v6166_v11  ;;  %4565 = vadd.xlane.f32.xlu1 %v4564_v62  ;;  %4568 = vadd.xlane.f32.xlu0 %v4567_v51  ;;  %v4585_v38 = vsel %vm2511_vm1, %v3783_v59, 0.0  ;;  %v7810_v51 = vld [vmem:[%s14071_s0 + $0x698] sm:$0xff] }
 0x6e5   :  { %v6176_v2 = vsel %vm5519_vm12, %v6175_v26, %v6171_v32  ;;  %v4356_v58 = vpop.xlane.xlu1 %4355  ;;  %v4359_v25 = vpop.xlane.xlu0 %4358  ;;  %v7809_v26 = vld [vmem:[%s14071_s0 + $0x690] sm:$0xff]  ;;  %v3785_v23 = vmul.f32 %v7810_v51, %v12438_v12 }
 0x6e6   :  { %v6180_v24 = vrot.slane %v4356_v58, %v11504_v47  ;;  %v6185_v43 = vrot.slane %v4359_v25, %v11507_v42  ;;  %v3784_v62 = vmul.f32 %v7809_v26, %v12438_v12 }
 0x6e8   :  { %v6181_v3 = vsel %vm5526_vm13, %v6180_v24, %v6176_v2  ;;  %4571 = vadd.xlane.f32.xlu1 %v4570_v10  ;;  %4574 = vadd.xlane.f32.xlu0 %v4573_v0  ;;  %v4588_v25 = vsel %vm2511_vm1, %v3784_v62, 0.0  ;;  %v4591_v24 = vsel %vm2511_vm1, %v3785_v23, 0.0  ;;  %v7812_v0 = vld [vmem:[%s14071_s0 + $0x6a8] sm:$0xff] }
 0x6e9   :  { %v6186_v29 = vsel %vm5533_vm14, %v6185_v43, %v6181_v3  ;;  %v4362_v63 = vpop.xlane.xlu1 %4361  ;;  %v4365_v19 = vpop.xlane.xlu0 %4364  ;;  %v7811_v43 = vld [vmem:[%s14071_s0 + $0x6a0] sm:$0xff]  ;;  %v3787_v27 = vmul.f32 %v7812_v0, %v12438_v12 }
 0x6ea   :  { %v6190_v8 = vrot.slane %v4362_v63, %v11530_v57  ;;  %v6195_v22 = vrot.slane %v4365_v19, %v11533_v21  ;;  %v3786_v10 = vmul.f32 %v7811_v43, %v12438_v12  ;;  %v7818_v43 = vld [vmem:[%s14071_s0 + $0x6d8] sm:$0xff] }
 0x6ec   :  { %v6191_v16 = vsel %vm5540_vm15, %v6190_v8, %v6186_v29  ;;  %4577 = vadd.xlane.f32.xlu1 %v4576_v39  ;;  %4580 = vadd.xlane.f32.xlu0 %v4579_v45  ;;  %v4594_v19 = vsel %vm2511_vm1, %v3786_v10, 0.0  ;;  %v4597_v8 = vsel %vm2511_vm1, %v3787_v27, 0.0  ;;  %v7814_v45 = vld [vmem:[%s14071_s0 + $0x6b8] sm:$0xff] }
 0x6ed   :  { %v6196_v35 = vsel %vm5547_vm0, %v6195_v22, %v6191_v16  ;;  %v4368_v49 = vpop.xlane.xlu1 %4367  ;;  %v4371_v30 = vpop.xlane.xlu0 %4370  ;;  %v7813_v22 = vld [vmem:[%s14071_s0 + $0x6b0] sm:$0xff]  ;;  %v3789_v46 = vmul.f32 %v7814_v45, %v12438_v12 }
 0x6ee   :  { %v6200_v11 = vrot.slane %v4368_v49, %v11548_v61  ;;  %v6205_v52 = vrot.slane %v4371_v30, %v11551_v56  ;;  %v3788_v39 = vmul.f32 %v7813_v22, %v12438_v12 }
 0x6f0   :  { %v6201_v20 = vsel %vm5554_vm8, %v6200_v11, %v6196_v35  ;;  %4583 = vadd.xlane.f32.xlu1 %v4582_v41  ;;  %4586 = vadd.xlane.f32.xlu0 %v4585_v38  ;;  %v4600_v30 = vsel %vm2511_vm1, %v3788_v39, 0.0  ;;  %v4603_v11 = vsel %vm2511_vm1, %v3789_v46, 0.0  ;;  %v7816_v38 = vld [vmem:[%s14071_s0 + $0x6c8] sm:$0xff] }
 0x6f1   :  { %v6206_v34 = vsel %vm5561_vm7, %v6205_v52, %v6201_v20  ;;  %v4374_v15 = vpop.xlane.xlu1 %4373  ;;  %v4377_v32 = vpop.xlane.xlu0 %4376  ;;  %v7815_v52 = vld [vmem:[%s14071_s0 + $0x6c0] sm:$0xff]  ;;  %v3791_v26 = vmul.f32 %v7816_v38, %v12438_v12 }
 0x6f2   :  { %v6210_v2 = vrot.slane %v4374_v15, %v11574_v6  ;;  %v6215_v58 = vrot.slane %v4377_v32, %v11577_v37  ;;  %v3790_v41 = vmul.f32 %v7815_v52, %v12438_v12 }
 0x6f4   :  { %v6211_v60 = vsel %vm14589_vm9, %v6210_v2, %v6206_v34  ;;  %4589 = vadd.xlane.f32.xlu1 %v4588_v25  ;;  %4592 = vadd.xlane.f32.xlu0 %v4591_v24  ;;  %vm14594_vm9 = vcmask 1044484   ;;  %v4606_v2 = vsel %vm2511_vm1, %v3790_v41, 0.0  ;;  %v7817_v25 = vld [vmem:[%s14071_s0 + $0x6d0] sm:$0xff] }
 0x6f5   :  { %v6216_v13 = vsel %vm14590_vm6, %v6215_v58, %v6211_v60  ;;  %v4380_v54 = vpop.xlane.xlu1 %4379  ;;  %v4383_v3 = vpop.xlane.xlu0 %4382  ;;  %v4609_v58 = vsel %vm2511_vm1, %v3791_v26, 0.0  ;;  %v3792_v24 = vmul.f32 %v7817_v25, %v12438_v12  ;;  %vm14595_vm6 = vcmask 720512  }
 0x6f6   :  { %v6220_v29 = vrot.slane %v4380_v54, %v11593_v5  ;;  %v6225_v63 = vrot.slane %v4383_v3, %v11596_v50 }
 0x6f7   :  { %v4612_v54 = vsel %vm2511_vm1, %v3792_v24, 0.0 }
 0x6f8   :  { %v6221_v4 = vsel %vm14591_vm4, %v6220_v29, %v6216_v13  ;;  %4595 = vadd.xlane.f32.xlu1 %v4594_v19  ;;  %4598 = vadd.xlane.f32.xlu0 %v4597_v8  ;;  %v7819_v29 = vld [vmem:[%s14071_s0 + $0x6e0] sm:$0xff]  ;;  %v7820_v19 = vld [vmem:[%s14071_s0 + $0x6e8] sm:$0xff]  ;;  %vm14596_vm4 = vcmask 786112  }
 0x6f9   :  { %v6226_v28 = vsel %vm14592_vm3, %v6225_v63, %v6221_v4  ;;  %v4386_v59 = vpop.xlane.xlu1 %4385  ;;  %v4389_v16 = vpop.xlane.xlu0 %4388  ;;  %v3794_v63 = vmul.f32 %v7819_v29, %v12438_v12  ;;  %v3795_v8 = vmul.f32 %v7820_v19, %v12438_v12  ;;  %v12672_v4 = vrot.slane %v11880_v53, %v14544_v18 }
 0x6fa   :  { %v6230_v35 = vrot.slane %v4386_v59, %v11617_v9  ;;  %v6235_v49 = vrot.slane %v4389_v16, %v11620_v36  ;;  %vm14597_vm3 = vcmask 851712  }
 0x6fb   :  { %v4618_v16 = vsel %vm2511_vm1, %v3794_v63, 0.0 }
 0x6fc   :  { %v6231_v62 = vsel %vm14593_vm5, %v6230_v35, %v6226_v28  ;;  %4601 = vadd.xlane.f32.xlu1 %v4600_v30  ;;  %4604 = vadd.xlane.f32.xlu0 %v4603_v11  ;;  %v4621_v35 = vsel %vm2511_vm1, %v3795_v8, 0.0  ;;  %v7822_v11 = vld [vmem:[%s14071_s0 + $0x6f8] sm:$0xff]  ;;  %vm14598_vm5 = vcmask 917312  }
 0x6fd   :  { %v6236_v51 = vsel %vm5603_vm2, %v6235_v49, %v6231_v62  ;;  %v4392_v23 = vpop.xlane.xlu1 %4391  ;;  %v4395_v20 = vpop.xlane.xlu0 %4394  ;;  %v7821_v49 = vld [vmem:[%s14071_s0 + $0x6f0] sm:$0xff]  ;;  %v3797_v53 = vmul.f32 %v7822_v11, %v12438_v12 }
 0x6fe   :  { %v12641_v34 = vsel %vm14594_vm9, %v6236_v51, %v12407_v55  ;;  %v6240_v15 = vrot.slane %v4392_v23, %v11465_v44  ;;  %v6244_v32 = vrot.slane %v4395_v20, %v11468_v17  ;;  %v3793_v55 = vmul.f32 %v7818_v43, %v12438_v12 }
 0x6ff   :  { %v3796_v30 = vmul.f32 %v7821_v49, %v12438_v12  ;;  %v4627_v20 = vsel %vm2511_vm1, %v3797_v53, 0.0  ;;  %v7823_v12 = vld [vmem:[%s14071_s0 + $0x700] sm:$0xff]  ;;  %vm14599_vm9 = vcmask 982912  }
 0x700   :  { %v6245_v10 = vsel %vm5505_vm10, %v6244_v32, %v6240_v15  ;;  %4607 = vadd.xlane.f32.xlu1 %v4606_v2  ;;  %4610 = vadd.xlane.f32.xlu0 %v4609_v58  ;;  %v4615_v3 = vsel %vm2511_vm1, %v3793_v55, 0.0  ;;  %v3798_v15 = vmul.f32 %v7823_v12, %v12672_v4  ;;  %v7824_v32 = vld [vmem:[%s14071_s0 + $0x708] sm:$0xff] }
 0x701   :  { %v4398_v0 = vpop.xlane.xlu1 %4397  ;;  %v4401_v27 = vpop.xlane.xlu0 %4400  ;;  %v4624_v23 = vsel %vm2511_vm1, %v3796_v30, 0.0  ;;  %v3799_v2 = vmul.f32 %v7824_v32, %v12672_v4 }
 0x702   :  { %v6249_v60 = vrot.slane %v4398_v0, %v11487_v31  ;;  %v6254_v13 = vrot.slane %v4401_v27, %v11490_v33  ;;  %v4630_v0 = vsel %vm2511_vm1, %v3798_v15, 0.0 }
 0x703   :  { %v4633_v27 = vsel %vm2511_vm1, %v3799_v2, 0.0 }
 0x704   :  { %v6250_v22 = vsel %vm5512_vm11, %v6249_v60, %v6245_v10  ;;  %4613 = vadd.xlane.f32.xlu1 %v4612_v54  ;;  %4616 = vadd.xlane.f32.xlu0 %v4615_v3  ;;  %v7825_v60 = vld [vmem:[%s14071_s0 + $0x710] sm:$0xff]  ;;  %v7826_v54 = vld [vmem:[%s14071_s0 + $0x718] sm:$0xff] }
 0x705   :  { %v6255_v39 = vsel %vm5519_vm12, %v6254_v13, %v6250_v22  ;;  %v4404_v45 = vpop.xlane.xlu1 %4403  ;;  %v4407_v46 = vpop.xlane.xlu0 %4406  ;;  %v3800_v13 = vmul.f32 %v7825_v60, %v12672_v4  ;;  %v3801_v3 = vmul.f32 %v7826_v54, %v12672_v4 }
 0x706   :  { %v6259_v28 = vrot.slane %v4404_v45, %v11504_v47  ;;  %v6264_v59 = vrot.slane %v4407_v46, %v11507_v42 }
 0x707   :  { %v4636_v45 = vsel %vm2511_vm1, %v3800_v13, 0.0  ;;  %v4639_v46 = vsel %vm2511_vm1, %v3801_v3, 0.0 }
 0x708   :  { %v6260_v52 = vsel %vm5526_vm13, %v6259_v28, %v6255_v39  ;;  %4619 = vadd.xlane.f32.xlu1 %v4618_v16  ;;  %4622 = vadd.xlane.f32.xlu0 %v4621_v35  ;;  %v7827_v28 = vld [vmem:[%s14071_s0 + $0x720] sm:$0xff]  ;;  %v7828_v16 = vld [vmem:[%s14071_s0 + $0x728] sm:$0xff] }
 0x709   :  { %v6265_v41 = vsel %vm5533_vm14, %v6264_v59, %v6260_v52  ;;  %v4410_v38 = vpop.xlane.xlu1 %4409  ;;  %v4413_v26 = vpop.xlane.xlu0 %4412  ;;  %v3802_v59 = vmul.f32 %v7827_v28, %v12672_v4  ;;  %v3803_v35 = vmul.f32 %v7828_v16, %v12672_v4 }
 0x70a   :  { %v6269_v62 = vrot.slane %v4410_v38, %v11530_v57  ;;  %v6274_v51 = vrot.slane %v4413_v26, %v11533_v21 }
 0x70b   :  { %v4642_v38 = vsel %vm2511_vm1, %v3802_v59, 0.0  ;;  %v4645_v26 = vsel %vm2511_vm1, %v3803_v35, 0.0 }
 0x70c   :  { %v6270_v58 = vsel %vm5540_vm15, %v6269_v62, %v6265_v41  ;;  %4625 = vadd.xlane.f32.xlu1 %v4624_v23  ;;  %4628 = vadd.xlane.f32.xlu0 %v4627_v20  ;;  %v7829_v62 = vld [vmem:[%s14071_s0 + $0x730] sm:$0xff]  ;;  %v7830_v23 = vld [vmem:[%s14071_s0 + $0x738] sm:$0xff] }
 0x70d   :  { %v6275_v25 = vsel %vm5547_vm0, %v6274_v51, %v6270_v58  ;;  %v4416_v24 = vpop.xlane.xlu1 %4415  ;;  %v4419_v43 = vpop.xlane.xlu0 %4418  ;;  %v3804_v51 = vmul.f32 %v7829_v62, %v12672_v4  ;;  %v3805_v20 = vmul.f32 %v7830_v23, %v12672_v4 }
 0x70e   :  { %v6279_v55 = vrot.slane %v4416_v24, %v11548_v61  ;;  %v6284_v10 = vrot.slane %v4419_v43, %v11551_v56 }
 0x70f   :  { %v4648_v24 = vsel %vm2511_vm1, %v3804_v51, 0.0  ;;  %v4651_v43 = vsel %vm2511_vm1, %v3805_v20, 0.0 }
 0x710   :  { %v6280_v29 = vsel %vm5554_vm8, %v6279_v55, %v6275_v25  ;;  %4631 = vadd.xlane.f32.xlu1 %v4630_v0  ;;  %4634 = vadd.xlane.f32.xlu0 %v4633_v27  ;;  %v7831_v55 = vld [vmem:[%s14071_s0 + $0x740] sm:$0xff]  ;;  %v7832_v0 = vld [vmem:[%s14071_s0 + $0x748] sm:$0xff] }
 0x711   :  { %v6285_v63 = vsel %vm5561_vm7, %v6284_v10, %v6280_v29  ;;  %v4422_v19 = vpop.xlane.xlu1 %4421  ;;  %v4425_v8 = vpop.xlane.xlu0 %4424  ;;  %v3806_v10 = vmul.f32 %v7831_v55, %v12672_v4  ;;  %v3807_v27 = vmul.f32 %v7832_v0, %v12672_v4 }
 0x712   :  { %v6289_v22 = vrot.slane %v4422_v19, %v11574_v6  ;;  %v6294_v39 = vrot.slane %v4425_v8, %v11577_v37 }
 0x713   :  { %v4654_v8 = vsel %vm2511_vm1, %v3806_v10, 0.0 }
 0x714   :  { %v6290_v49 = vsel %vm14595_vm6, %v6289_v22, %v6285_v63  ;;  %4637 = vadd.xlane.f32.xlu1 %v4636_v45  ;;  %4640 = vadd.xlane.f32.xlu0 %v4639_v46  ;;  %vm14600_vm6 = vcmask 1044484   ;;  %v4657_v22 = vsel %vm2511_vm1, %v3807_v27, 0.0  ;;  %v7834_v46 = vld [vmem:[%s14071_s0 + $0x758] sm:$0xff] }
 0x715   :  { %v6295_v30 = vsel %vm14596_vm4, %v6294_v39, %v6290_v49  ;;  %v4428_v11 = vpop.xlane.xlu1 %4427  ;;  %v4431_v53 = vpop.xlane.xlu0 %4430  ;;  %v7833_v39 = vld [vmem:[%s14071_s0 + $0x750] sm:$0xff]  ;;  %vm14601_vm4 = vcmask 720512  }
 0x716   :  { %v6299_v52 = vrot.slane %v4428_v11, %v11593_v5  ;;  %v6304_v41 = vrot.slane %v4431_v53, %v11596_v50  ;;  %v3808_v45 = vmul.f32 %v7833_v39, %v12672_v4  ;;  %v7835_v53 = vld [vmem:[%s14071_s0 + $0x760] sm:$0xff] }
 0x718   :  { %v6300_v12 = vsel %vm14597_vm3, %v6299_v52, %v6295_v30  ;;  %4643 = vadd.xlane.f32.xlu1 %v4642_v38  ;;  %4646 = vadd.xlane.f32.xlu0 %v4645_v26  ;;  %v4660_v30 = vsel %vm2511_vm1, %v3808_v45, 0.0  ;;  %v3810_v52 = vmul.f32 %v7835_v53, %v12672_v4  ;;  %vm14602_vm3 = vcmask 786112  }
 0x719   :  { %v6305_v15 = vsel %vm14598_vm5, %v6304_v41, %v6300_v12  ;;  %v4434_v32 = vpop.xlane.xlu1 %4433  ;;  %v4437_v2 = vpop.xlane.xlu0 %4436  ;;  %v7836_v41 = vld [vmem:[%s14071_s0 + $0x768] sm:$0xff]  ;;  %vm14603_vm5 = vcmask 851712  }
 0x71a   :  { %v6309_v58 = vrot.slane %v4434_v32, %v11617_v9  ;;  %v6314_v25 = vrot.slane %v4437_v2, %v11620_v36  ;;  %v3811_v38 = vmul.f32 %v7836_v41, %v12672_v4  ;;  %v7837_v2 = vld [vmem:[%s14071_s0 + $0x770] sm:$0xff] }
 0x71c   :  { %v6310_v60 = vsel %vm14599_vm9, %v6309_v58, %v6305_v15  ;;  %4649 = vadd.xlane.f32.xlu1 %v4648_v24  ;;  %4652 = vadd.xlane.f32.xlu0 %v4651_v43  ;;  %v4666_v15 = vsel %vm2511_vm1, %v3810_v52, 0.0  ;;  %v4669_v32 = vsel %vm2511_vm1, %v3811_v38, 0.0  ;;  %v3812_v58 = vmul.f32 %v7837_v2, %v12672_v4 }
 0x71d   :  { %v6315_v13 = vsel %vm5603_vm2, %v6314_v25, %v6310_v60  ;;  %v4440_v54 = vpop.xlane.xlu1 %4439  ;;  %v4443_v3 = vpop.xlane.xlu0 %4442  ;;  %v7838_v25 = vld [vmem:[%s14071_s0 + $0x778] sm:$0xff]  ;;  %vm14604_vm9 = vcmask 917312  }
 0x71e   :  { %v12760_v29 = vsel %vm14600_vm6, %v6315_v13, %v12526_v40  ;;  %v6319_v63 = vrot.slane %v4440_v54, %v11465_v44  ;;  %v6323_v19 = vrot.slane %v4443_v3, %v11468_v17  ;;  %v3809_v40 = vmul.f32 %v7834_v46, %v12672_v4  ;;  %v7839_v3 = vld [vmem:[%s14071_s0 + $0x780] sm:$0xff] }
 0x71f   :  { %v3813_v24 = vmul.f32 %v7838_v25, %v12672_v4  ;;  %v4672_v13 = vsel %vm2511_vm1, %v3812_v58, 0.0  ;;  %vm14605_vm6 = vcmask 982912  }
 0x720   :  { %v6324_v28 = vsel %vm5505_vm10, %v6323_v19, %v6319_v63  ;;  %4655 = vadd.xlane.f32.xlu1 %v4654_v8  ;;  %4658 = vadd.xlane.f32.xlu0 %v4657_v22  ;;  %v4663_v11 = vsel %vm2511_vm1, %v3809_v40, 0.0  ;;  %v3814_v63 = vmul.f32 %v7839_v3, %v12672_v4  ;;  %v7840_v19 = vld [vmem:[%s14071_s0 + $0x788] sm:$0xff] }
 0x721   :  { %v4446_v59 = vpop.xlane.xlu1 %4445  ;;  %v4449_v16 = vpop.xlane.xlu0 %4448  ;;  %v4675_v54 = vsel %vm2511_vm1, %v3813_v24, 0.0  ;;  %v3815_v8 = vmul.f32 %v7840_v19, %v12672_v4 }
 0x722   :  { %v6328_v35 = vrot.slane %v4446_v59, %v11487_v31  ;;  %v6333_v49 = vrot.slane %v4449_v16, %v11490_v33  ;;  %v4678_v59 = vsel %vm2511_vm1, %v3814_v63, 0.0 }
 0x723   :  { %v4681_v16 = vsel %vm2511_vm1, %v3815_v8, 0.0 }
 0x724   :  { %v6329_v26 = vsel %vm5512_vm11, %v6328_v35, %v6324_v28  ;;  %4661 = vadd.xlane.f32.xlu1 %v4660_v30  ;;  %4664 = vadd.xlane.f32.xlu0 %v4663_v11  ;;  %v7841_v35 = vld [vmem:[%s14071_s0 + $0x790] sm:$0xff]  ;;  %v7842_v30 = vld [vmem:[%s14071_s0 + $0x798] sm:$0xff] }
 0x725   :  { %v6334_v62 = vsel %vm5519_vm12, %v6333_v49, %v6329_v26  ;;  %v4452_v51 = vpop.xlane.xlu1 %4451  ;;  %v4455_v23 = vpop.xlane.xlu0 %4454  ;;  %v3816_v49 = vmul.f32 %v7841_v35, %v12672_v4  ;;  %v3817_v11 = vmul.f32 %v7842_v30, %v12672_v4 }
 0x726   :  { %v6338_v20 = vrot.slane %v4452_v51, %v11504_v47  ;;  %v6343_v12 = vrot.slane %v4455_v23, %v11507_v42 }
 0x727   :  { %v4684_v51 = vsel %vm2511_vm1, %v3816_v49, 0.0  ;;  %v4687_v23 = vsel %vm2511_vm1, %v3817_v11, 0.0 }
 0x728   :  { %v6339_v43 = vsel %vm5526_vm13, %v6338_v20, %v6334_v62  ;;  %4667 = vadd.xlane.f32.xlu1 %v4666_v15  ;;  %4670 = vadd.xlane.f32.xlu0 %v4669_v32  ;;  %v7843_v20 = vld [vmem:[%s14071_s0 + $0x7a0] sm:$0xff]  ;;  %v7844_v15 = vld [vmem:[%s14071_s0 + $0x7a8] sm:$0xff] }
 0x729   :  { %v6344_v55 = vsel %vm5533_vm14, %v6343_v12, %v6339_v43  ;;  %v4458_v10 = vpop.xlane.xlu1 %4457  ;;  %v4461_v0 = vpop.xlane.xlu0 %4460  ;;  %v3818_v12 = vmul.f32 %v7843_v20, %v12672_v4  ;;  %v3819_v32 = vmul.f32 %v7844_v15, %v12672_v4 }
 0x72a   :  { %v6348_v27 = vrot.slane %v4458_v10, %v11530_v57  ;;  %v6353_v60 = vrot.slane %v4461_v0, %v11533_v21 }
 0x72b   :  { %v4690_v10 = vsel %vm2511_vm1, %v3818_v12, 0.0  ;;  %v4693_v0 = vsel %vm2511_vm1, %v3819_v32, 0.0 }
 0x72c   :  { %v6349_v22 = vsel %vm5540_vm15, %v6348_v27, %v6344_v55  ;;  %4673 = vadd.xlane.f32.xlu1 %v4672_v13  ;;  %4676 = vadd.xlane.f32.xlu0 %v4675_v54  ;;  %v7845_v27 = vld [vmem:[%s14071_s0 + $0x7b0] sm:$0xff]  ;;  %v7846_v13 = vld [vmem:[%s14071_s0 + $0x7b8] sm:$0xff] }
 0x72d   :  { %v6354_v39 = vsel %vm5547_vm0, %v6353_v60, %v6349_v22  ;;  %v4464_v45 = vpop.xlane.xlu1 %4463  ;;  %v4467_v46 = vpop.xlane.xlu0 %4466  ;;  %v3820_v60 = vmul.f32 %v7845_v27, %v12672_v4  ;;  %v3821_v54 = vmul.f32 %v7846_v13, %v12672_v4 }
 0x72e   :  { %v6358_v40 = vrot.slane %v4464_v45, %v11548_v61  ;;  %v6363_v28 = vrot.slane %v4467_v46, %v11551_v56 }
 0x72f   :  { %v4696_v45 = vsel %vm2511_vm1, %v3820_v60, 0.0  ;;  %v4699_v46 = vsel %vm2511_vm1, %v3821_v54, 0.0  ;;  %v12906_v54 = vrot.slane %v11909_v48, %v14544_v18 }
 0x730   :  { %v6359_v53 = vsel %vm5554_vm8, %v6358_v40, %v6354_v39  ;;  %4679 = vadd.xlane.f32.xlu1 %v4678_v59  ;;  %4682 = vadd.xlane.f32.xlu0 %v4681_v16  ;;  %v7847_v40 = vld [vmem:[%s14071_s0 + $0x7c0] sm:$0xff]  ;;  %v7848_v59 = vld [vmem:[%s14071_s0 + $0x7c8] sm:$0xff] }
 0x731   :  { %v6364_v52 = vsel %vm5561_vm7, %v6363_v28, %v6359_v53  ;;  %v4470_v41 = vpop.xlane.xlu1 %4469  ;;  %v4473_v38 = vpop.xlane.xlu0 %4472  ;;  %v3822_v28 = vmul.f32 %v7847_v40, %v12672_v4  ;;  %v3823_v16 = vmul.f32 %v7848_v59, %v12672_v4 }
 0x732   :  { %v6368_v26 = vrot.slane %v4470_v41, %v11574_v6  ;;  %v6373_v62 = vrot.slane %v4473_v38, %v11577_v37 }
 0x733   :  { %v4702_v38 = vsel %vm2511_vm1, %v3822_v28, 0.0 }
 0x734   :  { %v6369_v2 = vsel %vm14601_vm4, %v6368_v26, %v6364_v52  ;;  %4685 = vadd.xlane.f32.xlu1 %v4684_v51  ;;  %4688 = vadd.xlane.f32.xlu0 %v4687_v23  ;;  %vm14606_vm4 = vcmask 1045509   ;;  %v4705_v26 = vsel %vm2511_vm1, %v3823_v16, 0.0  ;;  %v7850_v23 = vld [vmem:[%s14071_s0 + $0x7d8] sm:$0xff] }
 0x735   :  { %v6374_v58 = vsel %vm14602_vm3, %v6373_v62, %v6369_v2  ;;  %v4476_v25 = vpop.xlane.xlu1 %4475  ;;  %v4479_v24 = vpop.xlane.xlu0 %4478  ;;  %v7849_v62 = vld [vmem:[%s14071_s0 + $0x7d0] sm:$0xff]  ;;  %vm14607_vm3 = vcmask 720512  }
 0x736   :  { %v6378_v43 = vrot.slane %v4476_v25, %v11593_v5  ;;  %v6383_v55 = vrot.slane %v4479_v24, %v11596_v50  ;;  %v3824_v51 = vmul.f32 %v7849_v62, %v12672_v4  ;;  %v7851_v24 = vld [vmem:[%s14071_s0 + $0x7e0] sm:$0xff] }
 0x738   :  { %v6379_v3 = vsel %vm14603_vm5, %v6378_v43, %v6374_v58  ;;  %4691 = vadd.xlane.f32.xlu1 %v4690_v10  ;;  %4694 = vadd.xlane.f32.xlu0 %v4693_v0  ;;  %v4708_v58 = vsel %vm2511_vm1, %v3824_v51, 0.0  ;;  %v3826_v43 = vmul.f32 %v7851_v24, %v12672_v4  ;;  %vm14608_vm5 = vcmask 786112  }
 0x739   :  { %v6384_v63 = vsel %vm14604_vm9, %v6383_v55, %v6379_v3  ;;  %v4482_v19 = vpop.xlane.xlu1 %4481  ;;  %v4485_v8 = vpop.xlane.xlu0 %4484  ;;  %v7852_v55 = vld [vmem:[%s14071_s0 + $0x7e8] sm:$0xff]  ;;  %vm14609_vm9 = vcmask 851712  }
 0x73a   :  { %v6388_v22 = vrot.slane %v4482_v19, %v11617_v9  ;;  %v6393_v39 = vrot.slane %v4485_v8, %v11620_v36  ;;  %v3827_v10 = vmul.f32 %v7852_v55, %v12672_v4  ;;  %v4714_v19 = vsel %vm2511_vm1, %v3826_v43, 0.0 }
 0x73c   :  { %v6389_v35 = vsel %vm14605_vm6, %v6388_v22, %v6384_v63  ;;  %4697 = vadd.xlane.f32.xlu1 %v4696_v45  ;;  %4700 = vadd.xlane.f32.xlu0 %v4699_v46  ;;  %v4717_v8 = vsel %vm2511_vm1, %v3827_v10, 0.0  ;;  %v7853_v22 = vld [vmem:[%s14071_s0 + $0x7f0] sm:$0xff]  ;;  %v7854_v45 = vld [vmem:[%s14071_s0 + $0x7f8] sm:$0xff]  ;;  %vm14610_vm6 = vcmask 917312  }
 0x73d   :  { %v6394_v49 = vsel %vm5603_vm2, %v6393_v39, %v6389_v35  ;;  %v4488_v30 = vpop.xlane.xlu1 %4487  ;;  %v4491_v11 = vpop.xlane.xlu0 %4490  ;;  %v3828_v39 = vmul.f32 %v7853_v22, %v12672_v4  ;;  %v3829_v48 = vmul.f32 %v7854_v45, %v12672_v4 }
 0x73e   :  { %v12875_v53 = vsel %vm14606_vm4, %v6394_v49, %v12641_v34  ;;  %v6398_v52 = vrot.slane %v4488_v30, %v11465_v44  ;;  %v6402_v41 = vrot.slane %v4491_v11, %v11468_v17  ;;  %v3825_v34 = vmul.f32 %v7850_v23, %v12672_v4  ;;  %v7855_v4 = vld [vmem:[%s14071_s0 + $0x800] sm:$0xff] }
 0x73f   :  { %v4720_v49 = vsel %vm2511_vm1, %v3828_v39, 0.0  ;;  %v4723_v30 = vsel %vm2511_vm1, %v3829_v48, 0.0  ;;  %v3830_v11 = vmul.f32 %v7855_v4, %v12906_v54  ;;  %vm14611_vm4 = vcmask 982912  }
 0x740   :  { %v6403_v20 = vsel %vm5505_vm10, %v6402_v41, %v6398_v52  ;;  %4703 = vadd.xlane.f32.xlu1 %v4702_v38  ;;  %4706 = vadd.xlane.f32.xlu0 %v4705_v26  ;;  %v4711_v25 = vsel %vm2511_vm1, %v3825_v34, 0.0  ;;  %v7856_v52 = vld [vmem:[%s14071_s0 + $0x808] sm:$0xff] }
 0x741   :  { %v4494_v12 = vpop.xlane.xlu1 %4493  ;;  %v4497_v15 = vpop.xlane.xlu0 %4496  ;;  %v3831_v41 = vmul.f32 %v7856_v52, %v12906_v54 }
 0x742   :  { %v6407_v32 = vrot.slane %v4494_v12, %v11487_v31  ;;  %v6412_v2 = vrot.slane %v4497_v15, %v11490_v33  ;;  %v7857_v15 = vld [vmem:[%s14071_s0 + $0x810] sm:$0xff] }
 0x743   :  { %v4729_v12 = vsel %vm2511_vm1, %v3831_v41, 0.0 }
 0x744   :  { %v6408_v0 = vsel %vm5512_vm11, %v6407_v32, %v6403_v20  ;;  %4709 = vadd.xlane.f32.xlu1 %v4708_v58  ;;  %4712 = vadd.xlane.f32.xlu0 %v4711_v25  ;;  %v4726_v20 = vsel %vm2511_vm1, %v3830_v11, 0.0  ;;  %v3832_v32 = vmul.f32 %v7857_v15, %v12906_v54 }
 0x745   :  { %v6413_v27 = vsel %vm5519_vm12, %v6412_v2, %v6408_v0  ;;  %v4500_v60 = vpop.xlane.xlu1 %4499  ;;  %v4503_v13 = vpop.xlane.xlu0 %4502  ;;  %v7858_v2 = vld [vmem:[%s14071_s0 + $0x818] sm:$0xff] }
 0x746   :  { %v6417_v3 = vrot.slane %v4500_v60, %v11504_v47  ;;  %v6422_v63 = vrot.slane %v4503_v13, %v11507_v42  ;;  %v3833_v58 = vmul.f32 %v7858_v2, %v12906_v54  ;;  %v7859_v13 = vld [vmem:[%s14071_s0 + $0x820] sm:$0xff] }
 0x748   :  { %v6418_v46 = vsel %vm5526_vm13, %v6417_v3, %v6413_v27  ;;  %4715 = vadd.xlane.f32.xlu1 %v4714_v19  ;;  %4718 = vadd.xlane.f32.xlu0 %v4717_v8  ;;  %v4732_v27 = vsel %vm2511_vm1, %v3832_v32, 0.0  ;;  %v4735_v60 = vsel %vm2511_vm1, %v3833_v58, 0.0  ;;  %v3834_v3 = vmul.f32 %v7859_v13, %v12906_v54 }
 0x749   :  { %v6423_v40 = vsel %vm5533_vm14, %v6422_v63, %v6418_v46  ;;  %v4506_v28 = vpop.xlane.xlu1 %4505  ;;  %v4509_v59 = vpop.xlane.xlu0 %4508  ;;  %v7860_v63 = vld [vmem:[%s14071_s0 + $0x828] sm:$0xff] }
 0x74a   :  { %v6427_v16 = vrot.slane %v4506_v28, %v11530_v57  ;;  %v6432_v35 = vrot.slane %v4509_v59, %v11533_v21  ;;  %v3835_v19 = vmul.f32 %v7860_v63, %v12906_v54  ;;  %v7861_v59 = vld [vmem:[%s14071_s0 + $0x830] sm:$0xff] }
 0x74c   :  { %v6428_v38 = vsel %vm5540_vm15, %v6427_v16, %v6423_v40  ;;  %4721 = vadd.xlane.f32.xlu1 %v4720_v49  ;;  %4724 = vadd.xlane.f32.xlu0 %v4723_v30  ;;  %v4738_v40 = vsel %vm2511_vm1, %v3834_v3, 0.0  ;;  %v4741_v28 = vsel %vm2511_vm1, %v3835_v19, 0.0  ;;  %v3836_v16 = vmul.f32 %v7861_v59, %v12906_v54 }
 0x74d   :  { %v6433_v26 = vsel %vm5547_vm0, %v6432_v35, %v6428_v38  ;;  %v4512_v62 = vpop.xlane.xlu1 %4511  ;;  %v4515_v51 = vpop.xlane.xlu0 %4514  ;;  %v7862_v35 = vld [vmem:[%s14071_s0 + $0x838] sm:$0xff] }
 0x74e   :  { %v6437_v23 = vrot.slane %v4512_v62, %v11548_v61  ;;  %v6442_v34 = vrot.slane %v4515_v51, %v11551_v56  ;;  %v3837_v49 = vmul.f32 %v7862_v35, %v12906_v54  ;;  %v7863_v51 = vld [vmem:[%s14071_s0 + $0x840] sm:$0xff] }
 0x750   :  { %v6438_v25 = vsel %vm5554_vm8, %v6437_v23, %v6433_v26  ;;  %4727 = vadd.xlane.f32.xlu1 %v4726_v20  ;;  %4730 = vadd.xlane.f32.xlu0 %v4729_v12  ;;  %v4744_v26 = vsel %vm2511_vm1, %v3836_v16, 0.0  ;;  %v4747_v62 = vsel %vm2511_vm1, %v3837_v49, 0.0  ;;  %v3838_v23 = vmul.f32 %v7863_v51, %v12906_v54 }
 0x751   :  { %v6443_v24 = vsel %vm5561_vm7, %v6442_v34, %v6438_v25  ;;  %v4518_v43 = vpop.xlane.xlu1 %4517  ;;  %v4521_v55 = vpop.xlane.xlu0 %4520  ;;  %v7864_v34 = vld [vmem:[%s14071_s0 + $0x848] sm:$0xff] }
 0x752   :  { %v6447_v10 = vrot.slane %v4518_v43, %v11574_v6  ;;  %v6452_v0 = vrot.slane %v4521_v55, %v11577_v37  ;;  %v3839_v20 = vmul.f32 %v7864_v34, %v12906_v54  ;;  %v4750_v43 = vsel %vm2511_vm1, %v3838_v23, 0.0 }
 0x754   :  { %v6448_v8 = vsel %vm14607_vm3, %v6447_v10, %v6443_v24  ;;  %4733 = vadd.xlane.f32.xlu1 %v4732_v27  ;;  %4736 = vadd.xlane.f32.xlu0 %v4735_v60  ;;  %vm14612_vm3 = vcmask 1045509   ;;  %v4753_v55 = vsel %vm2511_vm1, %v3839_v20, 0.0  ;;  %v7865_v10 = vld [vmem:[%s14071_s0 + $0x850] sm:$0xff]  ;;  %v7866_v27 = vld [vmem:[%s14071_s0 + $0x858] sm:$0xff] }
 0x755   :  { %v6453_v22 = vsel %vm14608_vm5, %v6452_v0, %v6448_v8  ;;  %v4524_v39 = vpop.xlane.xlu1 %4523  ;;  %v4527_v45 = vpop.xlane.xlu0 %4526  ;;  %v3840_v0 = vmul.f32 %v7865_v10, %v12906_v54  ;;  %vm14613_vm5 = vcmask 720512  }
 0x756   :  { %v6457_v48 = vrot.slane %v4524_v39, %v11593_v5  ;;  %v6462_v46 = vrot.slane %v4527_v45, %v11596_v50  ;;  %v7867_v39 = vld [vmem:[%s14071_s0 + $0x860] sm:$0xff] }
 0x757   :  { %v4756_v8 = vsel %vm2511_vm1, %v3840_v0, 0.0  ;;  %v3842_v45 = vmul.f32 %v7867_v39, %v12906_v54 }
 0x758   :  { %v6458_v30 = vsel %vm14609_vm9, %v6457_v48, %v6453_v22  ;;  %4739 = vadd.xlane.f32.xlu1 %v4738_v40  ;;  %4742 = vadd.xlane.f32.xlu0 %v4741_v28  ;;  %v7868_v48 = vld [vmem:[%s14071_s0 + $0x868] sm:$0xff]  ;;  %vm14614_vm9 = vcmask 786112  }
 0x759   :  { %v6463_v4 = vsel %vm14610_vm6, %v6462_v46, %v6458_v30  ;;  %v4530_v11 = vpop.xlane.xlu1 %4529  ;;  %v4533_v52 = vpop.xlane.xlu0 %4532  ;;  %v3843_v46 = vmul.f32 %v7868_v48, %v12906_v54  ;;  %v4762_v30 = vsel %vm2511_vm1, %v3842_v45, 0.0  ;;  %vm14615_vm6 = vcmask 851712  }
 0x75a   :  { %v6467_v41 = vrot.slane %v4530_v11, %v11617_v9  ;;  %v6472_v38 = vrot.slane %v4533_v52, %v11620_v36  ;;  %v7869_v11 = vld [vmem:[%s14071_s0 + $0x870] sm:$0xff] }
 0x75b   :  { %v3844_v52 = vmul.f32 %v7869_v11, %v12906_v54 }
 0x75c   :  { %v6468_v12 = vsel %vm14611_vm4, %v6467_v41, %v6463_v4  ;;  %4745 = vadd.xlane.f32.xlu1 %v4744_v26  ;;  %4748 = vadd.xlane.f32.xlu0 %v4747_v62  ;;  %v4765_v4 = vsel %vm2511_vm1, %v3843_v46, 0.0  ;;  %v7870_v41 = vld [vmem:[%s14071_s0 + $0x878] sm:$0xff]  ;;  %vm14616_vm4 = vcmask 917312  }
 0x75d   :  { %v6473_v15 = vsel %vm5603_vm2, %v6472_v38, %v6468_v12  ;;  %v4536_v32 = vpop.xlane.xlu1 %4535  ;;  %v4539_v2 = vpop.xlane.xlu0 %4538  ;;  %v3845_v38 = vmul.f32 %v7870_v41, %v12906_v54  ;;  %v4768_v12 = vsel %vm2511_vm1, %v3844_v52, 0.0 }
 0x75e   :  { %v12994_v58 = vsel %vm14612_vm3, %v6473_v15, %v12760_v29  ;;  %v6477_v25 = vrot.slane %v4536_v32, %v11465_v44  ;;  %v6481_v24 = vrot.slane %v4539_v2, %v11468_v17  ;;  %v3841_v29 = vmul.f32 %v7866_v27, %v12906_v54  ;;  %v7871_v32 = vld [vmem:[%s14071_s0 + $0x880] sm:$0xff] }
 0x75f   :  { %v4771_v15 = vsel %vm2511_vm1, %v3845_v38, 0.0  ;;  %v3846_v2 = vmul.f32 %v7871_v32, %v12906_v54  ;;  %vm14617_vm3 = vcmask 982912  }
 0x760   :  { %v6482_v60 = vsel %vm5505_vm10, %v6481_v24, %v6477_v25  ;;  %4751 = vadd.xlane.f32.xlu1 %v4750_v43  ;;  %4754 = vadd.xlane.f32.xlu0 %v4753_v55  ;;  %v4759_v22 = vsel %vm2511_vm1, %v3841_v29, 0.0  ;;  %v7872_v25 = vld [vmem:[%s14071_s0 + $0x888] sm:$0xff] }
 0x761   :  { %v4542_v13 = vpop.xlane.xlu1 %4541  ;;  %v4545_v3 = vpop.xlane.xlu0 %4544  ;;  %v3847_v24 = vmul.f32 %v7872_v25, %v12906_v54 }
 0x762   :  { %v6486_v63 = vrot.slane %v4542_v13, %v11487_v31  ;;  %v6491_v19 = vrot.slane %v4545_v3, %v11490_v33  ;;  %v7873_v3 = vld [vmem:[%s14071_s0 + $0x890] sm:$0xff] }
 0x763   :  { %v4777_v13 = vsel %vm2511_vm1, %v3847_v24, 0.0 }
 0x764   :  { %v6487_v40 = vsel %vm5512_vm11, %v6486_v63, %v6482_v60  ;;  %4757 = vadd.xlane.f32.xlu1 %v4756_v8  ;;  %4760 = vadd.xlane.f32.xlu0 %v4759_v22  ;;  %v4774_v60 = vsel %vm2511_vm1, %v3846_v2, 0.0  ;;  %v3848_v63 = vmul.f32 %v7873_v3, %v12906_v54 }
 0x765   :  { %v6492_v28 = vsel %vm5519_vm12, %v6491_v19, %v6487_v40  ;;  %v4548_v59 = vpop.xlane.xlu1 %4547  ;;  %v4551_v16 = vpop.xlane.xlu0 %4550  ;;  %v7874_v19 = vld [vmem:[%s14071_s0 + $0x898] sm:$0xff] }
 0x766   :  { %v6496_v35 = vrot.slane %v4548_v59, %v11504_v47  ;;  %v6501_v49 = vrot.slane %v4551_v16, %v11507_v42  ;;  %v3849_v8 = vmul.f32 %v7874_v19, %v12906_v54  ;;  %v7875_v16 = vld [vmem:[%s14071_s0 + $0x8a0] sm:$0xff] }
 0x768   :  { %v6497_v26 = vsel %vm5526_vm13, %v6496_v35, %v6492_v28  ;;  %4763 = vadd.xlane.f32.xlu1 %v4762_v30  ;;  %4766 = vadd.xlane.f32.xlu0 %v4765_v4  ;;  %v4780_v28 = vsel %vm2511_vm1, %v3848_v63, 0.0  ;;  %v4783_v59 = vsel %vm2511_vm1, %v3849_v8, 0.0  ;;  %v3850_v35 = vmul.f32 %v7875_v16, %v12906_v54 }
 0x769   :  { %v6502_v62 = vsel %vm5533_vm14, %v6501_v49, %v6497_v26  ;;  %v4554_v51 = vpop.xlane.xlu1 %4553  ;;  %v4557_v23 = vpop.xlane.xlu0 %4556  ;;  %v7876_v49 = vld [vmem:[%s14071_s0 + $0x8a8] sm:$0xff] }
 0x76a   :  { %v6506_v34 = vrot.slane %v4554_v51, %v11530_v57  ;;  %v6511_v20 = vrot.slane %v4557_v23, %v11533_v21  ;;  %v3851_v30 = vmul.f32 %v7876_v49, %v12906_v54  ;;  %v7877_v23 = vld [vmem:[%s14071_s0 + $0x8b0] sm:$0xff] }
 0x76c   :  { %v6507_v43 = vsel %vm5540_vm15, %v6506_v34, %v6502_v62  ;;  %4769 = vadd.xlane.f32.xlu1 %v4768_v12  ;;  %4772 = vadd.xlane.f32.xlu0 %v4771_v15  ;;  %v4786_v62 = vsel %vm2511_vm1, %v3850_v35, 0.0  ;;  %v4789_v51 = vsel %vm2511_vm1, %v3851_v30, 0.0  ;;  %v3852_v34 = vmul.f32 %v7877_v23, %v12906_v54 }
 0x76d   :  { %v6512_v55 = vsel %vm5547_vm0, %v6511_v20, %v6507_v43  ;;  %v4560_v10 = vpop.xlane.xlu1 %4559  ;;  %v4563_v0 = vpop.xlane.xlu0 %4562  ;;  %v7878_v20 = vld [vmem:[%s14071_s0 + $0x8b8] sm:$0xff] }
 0x76e   :  { %v6516_v27 = vrot.slane %v4560_v10, %v11548_v61  ;;  %v6521_v29 = vrot.slane %v4563_v0, %v11551_v56  ;;  %v3853_v12 = vmul.f32 %v7878_v20, %v12906_v54  ;;  %v7879_v0 = vld [vmem:[%s14071_s0 + $0x8c0] sm:$0xff]  ;;  %v13140_v20 = vrot.slane %v11864_v1, %v14544_v18 }
 0x770   :  { %v6517_v22 = vsel %vm5554_vm8, %v6516_v27, %v6512_v55  ;;  %4775 = vadd.xlane.f32.xlu1 %v4774_v60  ;;  %4778 = vadd.xlane.f32.xlu0 %v4777_v13  ;;  %v4792_v55 = vsel %vm2511_vm1, %v3852_v34, 0.0  ;;  %v4795_v10 = vsel %vm2511_vm1, %v3853_v12, 0.0  ;;  %v3854_v27 = vmul.f32 %v7879_v0, %v12906_v54 }
 0x771   :  { %v6522_v39 = vsel %vm5561_vm7, %v6521_v29, %v6517_v22  ;;  %v4566_v45 = vpop.xlane.xlu1 %4565  ;;  %v4569_v48 = vpop.xlane.xlu0 %4568  ;;  %v7880_v29 = vld [vmem:[%s14071_s0 + $0x8c8] sm:$0xff] }
 0x772   :  { %v6526_v46 = vrot.slane %v4566_v45, %v11574_v6  ;;  %v6531_v40 = vrot.slane %v4569_v48, %v11577_v37  ;;  %v3855_v60 = vmul.f32 %v7880_v29, %v12906_v54  ;;  %v4798_v45 = vsel %vm2511_vm1, %v3854_v27, 0.0 }
 0x774   :  { %v6527_v4 = vsel %vm14613_vm5, %v6526_v46, %v6522_v39  ;;  %4781 = vadd.xlane.f32.xlu1 %v4780_v28  ;;  %4784 = vadd.xlane.f32.xlu0 %v4783_v59  ;;  %vm14618_vm5 = vcmask 1046534   ;;  %v4801_v48 = vsel %vm2511_vm1, %v3855_v60, 0.0  ;;  %v7881_v46 = vld [vmem:[%s14071_s0 + $0x8d0] sm:$0xff]  ;;  %v7882_v28 = vld [vmem:[%s14071_s0 + $0x8d8] sm:$0xff] }
 0x775   :  { %v6532_v11 = vsel %vm14614_vm9, %v6531_v40, %v6527_v4  ;;  %v4572_v52 = vpop.xlane.xlu1 %4571  ;;  %v4575_v41 = vpop.xlane.xlu0 %4574  ;;  %v3856_v40 = vmul.f32 %v7881_v46, %v12906_v54  ;;  %vm14619_vm9 = vcmask 720512  }
 0x776   :  { %v6536_v38 = vrot.slane %v4572_v52, %v11593_v5  ;;  %v6541_v26 = vrot.slane %v4575_v41, %v11596_v50  ;;  %v7883_v52 = vld [vmem:[%s14071_s0 + $0x8e0] sm:$0xff] }
 0x777   :  { %v4804_v4 = vsel %vm2511_vm1, %v3856_v40, 0.0  ;;  %v3858_v41 = vmul.f32 %v7883_v52, %v12906_v54 }
 0x778   :  { %v6537_v15 = vsel %vm14615_vm6, %v6536_v38, %v6532_v11  ;;  %4787 = vadd.xlane.f32.xlu1 %v4786_v62  ;;  %4790 = vadd.xlane.f32.xlu0 %v4789_v51  ;;  %v7884_v38 = vld [vmem:[%s14071_s0 + $0x8e8] sm:$0xff]  ;;  %vm14620_vm6 = vcmask 786112  }
 0x779   :  { %v6542_v32 = vsel %vm14616_vm4, %v6541_v26, %v6537_v15  ;;  %v4578_v2 = vpop.xlane.xlu1 %4577  ;;  %v4581_v25 = vpop.xlane.xlu0 %4580  ;;  %v3859_v26 = vmul.f32 %v7884_v38, %v12906_v54  ;;  %vm14621_vm4 = vcmask 851712  }
 0x77a   :  { %v6546_v24 = vrot.slane %v4578_v2, %v11617_v9  ;;  %v6551_v43 = vrot.slane %v4581_v25, %v11620_v36  ;;  %v7885_v25 = vld [vmem:[%s14071_s0 + $0x8f0] sm:$0xff] }
 0x77b   :  { %v4813_v2 = vsel %vm2511_vm1, %v3859_v26, 0.0 }
 0x77c   :  { %v6547_v13 = vsel %vm14617_vm3, %v6546_v24, %v6542_v32  ;;  %4793 = vadd.xlane.f32.xlu1 %v4792_v55  ;;  %4796 = vadd.xlane.f32.xlu0 %v4795_v10  ;;  %v4810_v32 = vsel %vm2511_vm1, %v3858_v41, 0.0  ;;  %v3860_v24 = vmul.f32 %v7885_v25, %v12906_v54  ;;  %vm14622_vm3 = vcmask 917312  }
 0x77d   :  { %v6552_v3 = vsel %vm5603_vm2, %v6551_v43, %v6547_v13  ;;  %v4584_v63 = vpop.xlane.xlu1 %4583  ;;  %v4587_v19 = vpop.xlane.xlu0 %4586  ;;  %v7886_v43 = vld [vmem:[%s14071_s0 + $0x8f8] sm:$0xff] }
 0x77e   :  { %v13109_v8 = vsel %vm14618_vm5, %v6552_v3, %v12875_v53  ;;  %v6556_v22 = vrot.slane %v4584_v63, %v11465_v44  ;;  %v6560_v39 = vrot.slane %v4587_v19, %v11468_v17  ;;  %v3857_v53 = vmul.f32 %v7882_v28, %v12906_v54  ;;  %v7888_v19 = vld [vmem:[%s14071_s0 + $0x908] sm:$0xff] }
 0x77f   :  { %v3861_v1 = vmul.f32 %v7886_v43, %v12906_v54  ;;  %v4816_v13 = vsel %vm2511_vm1, %v3860_v24, 0.0  ;;  %v7887_v54 = vld [vmem:[%s14071_s0 + $0x900] sm:$0xff]  ;;  %vm14623_vm5 = vcmask 982912  }
 0x780   :  { %v6561_v59 = vsel %vm5505_vm10, %v6560_v39, %v6556_v22  ;;  %4799 = vadd.xlane.f32.xlu1 %v4798_v45  ;;  %4802 = vadd.xlane.f32.xlu0 %v4801_v48  ;;  %v4807_v11 = vsel %vm2511_vm1, %v3857_v53, 0.0  ;;  %v3862_v63 = vmul.f32 %v7887_v54, %v13140_v20  ;;  %v3863_v22 = vmul.f32 %v7888_v19, %v13140_v20 }
 0x781   :  { %v4590_v16 = vpop.xlane.xlu1 %4589  ;;  %v4593_v35 = vpop.xlane.xlu0 %4592  ;;  %v4819_v3 = vsel %vm2511_vm1, %v3861_v1, 0.0 }
 0x782   :  { %v6565_v49 = vrot.slane %v4590_v16, %v11487_v31  ;;  %v6570_v30 = vrot.slane %v4593_v35, %v11490_v33  ;;  %v4822_v53 = vsel %vm2511_vm1, %v3862_v63, 0.0  ;;  %v7889_v16 = vld [vmem:[%s14071_s0 + $0x910] sm:$0xff] }
 0x783   :  { %v3864_v35 = vmul.f32 %v7889_v16, %v13140_v20 }
 0x784   :  { %v6566_v62 = vsel %vm5512_vm11, %v6565_v49, %v6561_v59  ;;  %4805 = vadd.xlane.f32.xlu1 %v4804_v4  ;;  %4808 = vadd.xlane.f32.xlu0 %v4807_v11  ;;  %v4825_v59 = vsel %vm2511_vm1, %v3863_v22, 0.0  ;;  %v7890_v49 = vld [vmem:[%s14071_s0 + $0x918] sm:$0xff] }
 0x785   :  { %v6571_v51 = vsel %vm5519_vm12, %v6570_v30, %v6566_v62  ;;  %v4596_v23 = vpop.xlane.xlu1 %4595  ;;  %v4599_v34 = vpop.xlane.xlu0 %4598  ;;  %v3865_v30 = vmul.f32 %v7890_v49, %v13140_v20  ;;  %v4828_v62 = vsel %vm2511_vm1, %v3864_v35, 0.0 }
 0x786   :  { %v6575_v12 = vrot.slane %v4596_v23, %v11504_v47  ;;  %v6580_v15 = vrot.slane %v4599_v34, %v11507_v42  ;;  %v7891_v23 = vld [vmem:[%s14071_s0 + $0x920] sm:$0xff] }
 0x787   :  { %v3866_v34 = vmul.f32 %v7891_v23, %v13140_v20 }
 0x788   :  { %v6576_v55 = vsel %vm5526_vm13, %v6575_v12, %v6571_v51  ;;  %4811 = vadd.xlane.f32.xlu1 %v4810_v32  ;;  %4814 = vadd.xlane.f32.xlu0 %v4813_v2  ;;  %v4831_v51 = vsel %vm2511_vm1, %v3865_v30, 0.0  ;;  %v7892_v12 = vld [vmem:[%s14071_s0 + $0x928] sm:$0xff] }
 0x789   :  { %v6581_v10 = vsel %vm5533_vm14, %v6580_v15, %v6576_v55  ;;  %v4602_v0 = vpop.xlane.xlu1 %4601  ;;  %v4605_v27 = vpop.xlane.xlu0 %4604  ;;  %v3867_v15 = vmul.f32 %v7892_v12, %v13140_v20  ;;  %v4834_v55 = vsel %vm2511_vm1, %v3866_v34, 0.0  ;;  %v7899_v12 = vld [vmem:[%s14071_s0 + $0x960] sm:$0xff] }
 0x78a   :  { %v6585_v29 = vrot.slane %v4602_v0, %v11530_v57  ;;  %v6590_v60 = vrot.slane %v4605_v27, %v11533_v21  ;;  %v7893_v0 = vld [vmem:[%s14071_s0 + $0x930] sm:$0xff] }
 0x78b   :  { %v3868_v27 = vmul.f32 %v7893_v0, %v13140_v20 }
 0x78c   :  { %v6586_v39 = vsel %vm5540_vm15, %v6585_v29, %v6581_v10  ;;  %4817 = vadd.xlane.f32.xlu1 %v4816_v13  ;;  %4820 = vadd.xlane.f32.xlu0 %v4819_v3  ;;  %v4837_v10 = vsel %vm2511_vm1, %v3867_v15, 0.0  ;;  %v7894_v29 = vld [vmem:[%s14071_s0 + $0x938] sm:$0xff]  ;;  %v3874_v15 = vmul.f32 %v7899_v12, %v13140_v20 }
 0x78d   :  { %v6591_v45 = vsel %vm5547_vm0, %v6590_v60, %v6586_v39  ;;  %v4608_v48 = vpop.xlane.xlu1 %4607  ;;  %v4611_v46 = vpop.xlane.xlu0 %4610  ;;  %v3869_v60 = vmul.f32 %v7894_v29, %v13140_v20  ;;  %v7895_v39 = vld [vmem:[%s14071_s0 + $0x940] sm:$0xff] }
 0x78e   :  { %v6595_v40 = vrot.slane %v4608_v48, %v11548_v61  ;;  %v6600_v28 = vrot.slane %v4611_v46, %v11551_v56  ;;  %v4840_v48 = vsel %vm2511_vm1, %v3868_v27, 0.0  ;;  %v7901_v27 = vld [vmem:[%s14071_s0 + $0x970] sm:$0xff] }
 0x78f   :  { %v4843_v46 = vsel %vm2511_vm1, %v3869_v60, 0.0  ;;  %v3876_v29 = vmul.f32 %v7901_v27, %v13140_v20  ;;  %v7902_v60 = vld [vmem:[%s14071_s0 + $0x978] sm:$0xff] }
 0x790   :  { %v6596_v4 = vsel %vm5554_vm8, %v6595_v40, %v6591_v45  ;;  %4823 = vadd.xlane.f32.xlu1 %v4822_v53  ;;  %4826 = vadd.xlane.f32.xlu0 %v4825_v59  ;;  %v3870_v45 = vmul.f32 %v7895_v39, %v13140_v20  ;;  %v7896_v40 = vld [vmem:[%s14071_s0 + $0x948] sm:$0xff] }
 0x791   :  { %v6601_v11 = vsel %vm5561_vm7, %v6600_v28, %v6596_v4  ;;  %v4614_v52 = vpop.xlane.xlu1 %4613  ;;  %v4617_v41 = vpop.xlane.xlu0 %4616  ;;  %v3871_v28 = vmul.f32 %v7896_v40, %v13140_v20  ;;  %v7897_v4 = vld [vmem:[%s14071_s0 + $0x950] sm:$0xff]  ;;  %v7903_v40 = vld [vmem:[%s14071_s0 + $0x980] sm:$0xff] }
 0x792   :  { %v6605_v38 = vrot.slane %v4614_v52, %v11574_v6  ;;  %v6610_v26 = vrot.slane %v4617_v41, %v11577_v37  ;;  %v4846_v30 = vsel %vm2511_vm1, %v3870_v45, 0.0 }
 0x794   :  { %v6606_v32 = vsel %vm14619_vm9, %v6605_v38, %v6601_v11  ;;  %4829 = vadd.xlane.f32.xlu1 %v4828_v62  ;;  %4832 = vadd.xlane.f32.xlu0 %v4831_v51  ;;  %vm14624_vm9 = vcmask 1046534   ;;  %v3872_v11 = vmul.f32 %v7897_v4, %v13140_v20  ;;  %v4849_v38 = vsel %vm2511_vm1, %v3871_v28, 0.0 }
 0x795   :  { %v6611_v2 = vsel %vm14620_vm6, %v6610_v26, %v6606_v32  ;;  %v4620_v25 = vpop.xlane.xlu1 %4619  ;;  %v4623_v24 = vpop.xlane.xlu0 %4622  ;;  %v7898_v26 = vld [vmem:[%s14071_s0 + $0x958] sm:$0xff]  ;;  %v3878_v28 = vmul.f32 %v7903_v40, %v13140_v20  ;;  %vm14625_vm6 = vcmask 720512  }
 0x796   :  { %v6615_v43 = vrot.slane %v4620_v25, %v11593_v5  ;;  %v6620_v1 = vrot.slane %v4623_v24, %v11596_v50  ;;  %v4852_v34 = vsel %vm2511_vm1, %v3872_v11, 0.0  ;;  %v7900_v24 = vld [vmem:[%s14071_s0 + $0x968] sm:$0xff] }
 0x798   :  { %v6616_v13 = vsel %vm14621_vm4, %v6615_v43, %v6611_v2  ;;  %4835 = vadd.xlane.f32.xlu1 %v4834_v55  ;;  %4838 = vadd.xlane.f32.xlu0 %v4837_v10  ;;  %v3875_v43 = vmul.f32 %v7900_v24, %v13140_v20  ;;  %v7907_v24 = vld [vmem:[%s14071_s0 + $0x9a0] sm:$0xff]  ;;  %vm14626_vm4 = vcmask 786112  }
 0x799   :  { %v6621_v3 = vsel %vm14622_vm3, %v6620_v1, %v6616_v13  ;;  %v4626_v54 = vpop.xlane.xlu1 %4625  ;;  %v4629_v63 = vpop.xlane.xlu0 %4628  ;;  %v3877_v13 = vmul.f32 %v7902_v60, %v13140_v20  ;;  %vm14627_vm3 = vcmask 851712  }
 0x79a   :  { %v6625_v19 = vrot.slane %v4626_v54, %v11617_v9  ;;  %v6630_v22 = vrot.slane %v4629_v63, %v11620_v36  ;;  %v4858_v63 = vsel %vm2511_vm1, %v3874_v15, 0.0 }
 0x79c   :  { %v6626_v53 = vsel %vm14623_vm5, %v6625_v19, %v6621_v3  ;;  %4841 = vadd.xlane.f32.xlu1 %v4840_v48  ;;  %4844 = vadd.xlane.f32.xlu0 %v4843_v46  ;;  %v4861_v19 = vsel %vm2511_vm1, %v3875_v43, 0.0  ;;  %v4864_v46 = vsel %vm2511_vm1, %v3876_v29, 0.0  ;;  %v3882_v43 = vmul.f32 %v7907_v24, %v13140_v20 }
 0x79d   :  { %v6631_v59 = vsel %vm5603_vm2, %v6630_v22, %v6626_v53  ;;  %v4632_v16 = vpop.xlane.xlu1 %4631  ;;  %v4635_v35 = vpop.xlane.xlu0 %4634  ;;  %vm14628_vm5 = vcmask 917312  }
 0x79e   :  { %v13228_v49 = vsel %vm14624_vm9, %v6631_v59, %v12994_v58  ;;  %v6635_v52 = vrot.slane %v4632_v16, %v11465_v44  ;;  %v6639_v41 = vrot.slane %v4635_v35, %v11468_v17  ;;  %v3873_v58 = vmul.f32 %v7898_v26, %v13140_v20  ;;  %v7904_v35 = vld [vmem:[%s14071_s0 + $0x988] sm:$0xff]  ;;  %v7905_v26 = vld [vmem:[%s14071_s0 + $0x990] sm:$0xff] }
 0x79f   :  { %v4867_v16 = vsel %vm2511_vm1, %v3877_v13, 0.0  ;;  %vm14629_vm9 = vcmask 982912  }
 0x7a0   :  { %4847 = vadd.xlane.f32.xlu1 %v4846_v30  ;;  %4850 = vadd.xlane.f32.xlu0 %v4849_v38  ;;  %v6640_v32 = vsel %vm5505_vm10, %v6639_v41, %v6635_v52  ;;  %v4855_v25 = vsel %vm2511_vm1, %v3873_v58, 0.0  ;;  %v3879_v30 = vmul.f32 %v7904_v35, %v13140_v20  ;;  %v4870_v38 = vsel %vm2511_vm1, %v3878_v28, 0.0 }
 0x7a1   :  { %v4638_v62 = vpop.xlane.xlu1 %4637  ;;  %v4641_v51 = vpop.xlane.xlu0 %4640  ;;  %v3880_v58 = vmul.f32 %v7905_v26, %v13140_v20 }
 0x7a2   :  { %v6644_v23 = vrot.slane %v4638_v62, %v11487_v31  ;;  %v6649_v2 = vrot.slane %v4641_v51, %v11490_v33 }
 0x7a3   :  { %v4876_v27 = vsel %vm2511_vm1, %v3880_v58, 0.0 }
 0x7a4   :  { %v6645_v1 = vsel %vm5512_vm11, %v6644_v23, %v6640_v32  ;;  %4853 = vadd.xlane.f32.xlu1 %v4852_v34  ;;  %4856 = vadd.xlane.f32.xlu0 %v4855_v25  ;;  %v4873_v23 = vsel %vm2511_vm1, %v3879_v30, 0.0  ;;  %v7906_v34 = vld [vmem:[%s14071_s0 + $0x998] sm:$0xff] }
 0x7a5   :  { %v4644_v55 = vpop.xlane.xlu1 %4643  ;;  %v4647_v10 = vpop.xlane.xlu0 %4646  ;;  %v6650_v3 = vsel %vm5519_vm12, %v6649_v2, %v6645_v1  ;;  %v3881_v12 = vmul.f32 %v7906_v34, %v13140_v20  ;;  %v7908_v1 = vld [vmem:[%s14071_s0 + $0x9a8] sm:$0xff] }
 0x7a6   :  { %v6654_v0 = vrot.slane %v4644_v55, %v11504_v47  ;;  %v6659_v54 = vrot.slane %v4647_v10, %v11507_v42  ;;  %v3883_v55 = vmul.f32 %v7908_v1, %v13140_v20 }
 0x7a7   :  { %v4879_v29 = vsel %vm2511_vm1, %v3881_v12, 0.0  ;;  %v7913_v12 = vld [vmem:[%s14071_s0 + $0x9d0] sm:$0xff] }
 0x7a8   :  { %v6655_v22 = vsel %vm5526_vm13, %v6654_v0, %v6650_v3  ;;  %4859 = vadd.xlane.f32.xlu1 %v4858_v63  ;;  %4862 = vadd.xlane.f32.xlu0 %v4861_v19  ;;  %v4882_v63 = vsel %vm2511_vm1, %v3882_v43, 0.0  ;;  %v7909_v19 = vld [vmem:[%s14071_s0 + $0x9b0] sm:$0xff] }
 0x7a9   :  { %v4650_v39 = vpop.xlane.xlu1 %4649  ;;  %v4653_v45 = vpop.xlane.xlu0 %4652  ;;  %v6660_v53 = vsel %vm5533_vm14, %v6659_v54, %v6655_v22  ;;  %v3884_v22 = vmul.f32 %v7909_v19, %v13140_v20 }
 0x7aa   :  { %v6664_v48 = vrot.slane %v4650_v39, %v11530_v57  ;;  %v6669_v59 = vrot.slane %v4653_v45, %v11533_v21 }
 0x7ab   :  { %v4888_v30 = vsel %vm2511_vm1, %v3884_v22, 0.0 }
 0x7ac   :  { %v6665_v4 = vsel %vm5540_vm15, %v6664_v48, %v6660_v53  ;;  %4865 = vadd.xlane.f32.xlu1 %v4864_v46  ;;  %4868 = vadd.xlane.f32.xlu0 %v4867_v16  ;;  %v4885_v48 = vsel %vm2511_vm1, %v3883_v55, 0.0  ;;  %v7910_v46 = vld [vmem:[%s14071_s0 + $0x9b8] sm:$0xff] }
 0x7ad   :  { %v4656_v11 = vpop.xlane.xlu1 %4655  ;;  %v4659_v52 = vpop.xlane.xlu0 %4658  ;;  %v6670_v62 = vsel %vm5547_vm0, %v6669_v59, %v6665_v4  ;;  %v3885_v40 = vmul.f32 %v7910_v46, %v13140_v20  ;;  %v7917_v46 = vld [vmem:[%s14071_s0 + $0x9f0] sm:$0xff] }
 0x7ae   :  { %v6674_v41 = vrot.slane %v4656_v11, %v11548_v61  ;;  %v6679_v51 = vrot.slane %v4659_v52, %v11551_v56  ;;  %v7911_v52 = vld [vmem:[%s14071_s0 + $0x9c0] sm:$0xff] }
 0x7af   :  { %v4891_v11 = vsel %vm2511_vm1, %v3885_v40, 0.0  ;;  %v3892_v40 = vmul.f32 %v7917_v46, %v13140_v20 }
 0x7b0   :  { %v6675_v15 = vsel %vm5554_vm8, %v6674_v41, %v6670_v62  ;;  %4871 = vadd.xlane.f32.xlu1 %v4870_v38  ;;  %4874 = vadd.xlane.f32.xlu0 %v4873_v23  ;;  %v3886_v41 = vmul.f32 %v7911_v52, %v13140_v20  ;;  %v7912_v38 = vld [vmem:[%s14071_s0 + $0x9c8] sm:$0xff] }
 0x7b1   :  { %v4662_v32 = vpop.xlane.xlu1 %4661  ;;  %v4665_v2 = vpop.xlane.xlu0 %4664  ;;  %v6680_v10 = vsel %vm5561_vm7, %v6679_v51, %v6675_v15  ;;  %v3887_v26 = vmul.f32 %v7912_v38, %v13140_v20  ;;  %v3888_v15 = vmul.f32 %v7913_v12, %v13140_v20  ;;  %v7920_v38 = vld [vmem:[%s14071_s0 + $0xa08] sm:$0xff] }
 0x7b2   :  { %v6684_v25 = vrot.slane %v4662_v32, %v11574_v6  ;;  %v6689_v0 = vrot.slane %v4665_v2, %v11577_v37  ;;  %v7914_v32 = vld [vmem:[%s14071_s0 + $0x9d8] sm:$0xff]  ;;  %v4894_v43 = vsel %vm2511_vm1, %v3886_v41, 0.0 }
 0x7b3   :  { %v3889_v2 = vmul.f32 %v7914_v32, %v13140_v20 }
 0x7b4   :  { %v6685_v60 = vsel %vm14625_vm6, %v6684_v25, %v6680_v10  ;;  %4877 = vadd.xlane.f32.xlu1 %v4876_v27  ;;  %4880 = vadd.xlane.f32.xlu0 %v4879_v29  ;;  %vm14630_vm6 = vcmask 1047559  }
 0x7b5   :  { %v4668_v13 = vpop.xlane.xlu1 %4667  ;;  %v4671_v3 = vpop.xlane.xlu0 %4670  ;;  %v6690_v39 = vsel %vm14626_vm4, %v6689_v0, %v6685_v60  ;;  %v4900_v0 = vsel %vm2511_vm1, %v3888_v15, 0.0  ;;  %v4903_v27 = vsel %vm2511_vm1, %v3889_v2, 0.0  ;;  %vm14631_vm4 = vcmask 720512  }
 0x7b6   :  { %v6694_v54 = vrot.slane %v4668_v13, %v11593_v5  ;;  %v6699_v45 = vrot.slane %v4671_v3, %v11596_v50  ;;  %v7915_v13 = vld [vmem:[%s14071_s0 + $0x9e0] sm:$0xff] }
 0x7b7   :  { %v3890_v3 = vmul.f32 %v7915_v13, %v13140_v20  ;;  %v7923_v13 = vld [vmem:[%s14071_s0 + $0xa20] sm:$0xff] }
 0x7b8   :  { %v6695_v28 = vsel %vm14627_vm3, %v6694_v54, %v6690_v39  ;;  %4883 = vadd.xlane.f32.xlu1 %v4882_v63  ;;  %4886 = vadd.xlane.f32.xlu0 %v4885_v48  ;;  %v7916_v54 = vld [vmem:[%s14071_s0 + $0x9e8] sm:$0xff]  ;;  %vm14632_vm3 = vcmask 786112  }
 0x7b9   :  { %v4674_v53 = vpop.xlane.xlu1 %4673  ;;  %v4677_v59 = vpop.xlane.xlu0 %4676  ;;  %v6700_v4 = vsel %vm14628_vm5, %v6699_v45, %v6695_v28  ;;  %v3891_v63 = vmul.f32 %v7916_v54, %v13140_v20  ;;  %v13371_v45 = vrot.slane %v11876_v7, %v14544_v18  ;;  %v7918_v28 = vld [vmem:[%s14071_s0 + $0x9f8] sm:$0xff]  ;;  %v4906_v7 = vsel %vm2511_vm1, %v3890_v3, 0.0  ;;  %v7924_v54 = vld [vmem:[%s14071_s0 + $0xa28] sm:$0xff] }
 0x7ba   :  { %v6704_v16 = vrot.slane %v4674_v53, %v11617_v9  ;;  %v6709_v35 = vrot.slane %v4677_v59, %v11620_v36  ;;  %v3893_v53 = vmul.f32 %v7918_v28, %v13140_v20  ;;  %v7919_v20 = vld [vmem:[%s14071_s0 + $0xa00] sm:$0xff]  ;;  %vm14633_vm5 = vcmask 851712  }
 0x7bb   :  { %v3894_v41 = vmul.f32 %v7919_v20, %v13371_v45  ;;  %v3898_v3 = vmul.f32 %v7923_v13, %v13371_v45 }
 0x7bc   :  { %v6705_v58 = vsel %vm14629_vm9, %v6704_v16, %v6700_v4  ;;  %4889 = vadd.xlane.f32.xlu1 %v4888_v30  ;;  %4892 = vadd.xlane.f32.xlu0 %v4891_v11  ;;  %vm14634_vm9 = vcmask 917312  }
 0x7bd   :  { %v6710_v62 = vsel %vm5603_vm2, %v6709_v35, %v6705_v58  ;;  %v4680_v51 = vpop.xlane.xlu1 %4679  ;;  %v4683_v23 = vpop.xlane.xlu0 %4682  ;;  %v4909_v35 = vsel %vm2511_vm1, %v3891_v63, 0.0  ;;  %v4918_v2 = vsel %vm2511_vm1, %v3894_v41, 0.0  ;;  %v3899_v63 = vmul.f32 %v7924_v54, %v13371_v45 }
 0x7be   :  { %v7428_v34 = vsel %vm14630_vm6, %v6710_v62, %v13109_v8  ;;  %v6714_v25 = vrot.slane %v4680_v51, %v11465_v44  ;;  %v6718_v24 = vrot.slane %v4683_v23, %v11468_v17  ;;  %v4897_v8 = vsel %vm2511_vm1, %v3887_v26, 0.0 }
 0x7bf   :  { %7446 = vst [vmem:[#allocation2] sm:$0xff] %v7428_v34  ;;  %v3895_v26 = vmul.f32 %v7920_v38, %v13371_v45  ;;  %v4912_v51 = vsel %vm2511_vm1, %v3892_v40, 0.0  ;;  %v4915_v23 = vsel %vm2511_vm1, %v3893_v53, 0.0  ;;  %vm14635_vm6 = vcmask 982912  }
 0x7c0   :  { %4895 = vadd.xlane.f32.xlu1 %v4894_v43  ;;  %4898 = vadd.xlane.f32.xlu0 %v4897_v8  ;;  %v6719_v29 = vsel %vm5505_vm10, %v6718_v24, %v6714_v25  ;;  %v7921_v8 = vld [vmem:[%s14071_s0 + $0xa10] sm:$0xff] }
 0x7c1   :  { %v4686_v1 = vpop.xlane.xlu1 %4685  ;;  %v4689_v55 = vpop.xlane.xlu0 %4688  ;;  %v4921_v25 = vsel %vm2511_vm1, %v3895_v26, 0.0 }
 0x7c2   :  { %v6723_v10 = vrot.slane %v4686_v1, %v11487_v31  ;;  %v6728_v60 = vrot.slane %v4689_v55, %v11490_v33  ;;  %v3896_v1 = vmul.f32 %v7921_v8, %v13371_v45  ;;  %v7922_v55 = vld [vmem:[%s14071_s0 + $0xa18] sm:$0xff] }
 0x7c4   :  { %v6724_v19 = vsel %vm5512_vm11, %v6723_v10, %v6719_v29  ;;  %4901 = vadd.xlane.f32.xlu1 %v4900_v0  ;;  %4904 = vadd.xlane.f32.xlu0 %v4903_v27  ;;  %v3897_v10 = vmul.f32 %v7922_v55, %v13371_v45 }
 0x7c5   :  { %v4692_v22 = vpop.xlane.xlu1 %4691  ;;  %v4695_v39 = vpop.xlane.xlu0 %4694  ;;  %v6729_v59 = vsel %vm5519_vm12, %v6728_v60, %v6724_v19 }
 0x7c6   :  { %v6733_v48 = vrot.slane %v4692_v22, %v11504_v47  ;;  %v6738_v16 = vrot.slane %v4695_v39, %v11507_v42  ;;  %v4924_v39 = vsel %vm2511_vm1, %v3896_v1, 0.0 }
 0x7c8   :  { %v6734_v30 = vsel %vm5526_vm13, %v6733_v48, %v6729_v59  ;;  %4907 = vadd.xlane.f32.xlu1 %v4906_v7  ;;  %4910 = vadd.xlane.f32.xlu0 %v4909_v35  ;;  %v4927_v48 = vsel %vm2511_vm1, %v3897_v10, 0.0  ;;  %v4930_v59 = vsel %vm2511_vm1, %v3898_v3, 0.0 }
 0x7c9   :  { %v4698_v4 = vpop.xlane.xlu1 %4697  ;;  %v4701_v11 = vpop.xlane.xlu0 %4700  ;;  %v6739_v58 = vsel %vm5533_vm14, %v6738_v16, %v6734_v30  ;;  %v7925_v16 = vld [vmem:[%s14071_s0 + $0xa30] sm:$0xff] }
 0x7ca   :  { %v6743_v52 = vrot.slane %v4698_v4, %v11530_v57  ;;  %v6748_v62 = vrot.slane %v4701_v11, %v11533_v21  ;;  %v3900_v7 = vmul.f32 %v7925_v16, %v13371_v45  ;;  %v4933_v4 = vsel %vm2511_vm1, %v3899_v63, 0.0  ;;  %v7926_v11 = vld [vmem:[%s14071_s0 + $0xa38] sm:$0xff] }
 0x7cc   :  { %v6744_v34 = vsel %vm5540_vm15, %v6743_v52, %v6739_v58  ;;  %4913 = vadd.xlane.f32.xlu1 %v4912_v51  ;;  %4916 = vadd.xlane.f32.xlu0 %v4915_v23  ;;  %v3901_v52 = vmul.f32 %v7926_v11, %v13371_v45 }
 0x7cd   :  { %v4704_v12 = vpop.xlane.xlu1 %4703  ;;  %v4707_v15 = vpop.xlane.xlu0 %4706  ;;  %v6749_v24 = vsel %vm5547_vm0, %v6748_v62, %v6744_v34  ;;  %v4936_v62 = vsel %vm2511_vm1, %v3900_v7, 0.0  ;;  %v7927_v34 = vld [vmem:[%s14071_s0 + $0xa40] sm:$0xff] }
 0x7ce   :  { %v6753_v32 = vrot.slane %v4704_v12, %v11548_v61  ;;  %v6758_v43 = vrot.slane %v4707_v15, %v11551_v56  ;;  %v4939_v23 = vsel %vm2511_vm1, %v3901_v52, 0.0  ;;  %v3902_v12 = vmul.f32 %v7927_v34, %v13371_v45  ;;  %v7928_v15 = vld [vmem:[%s14071_s0 + $0xa48] sm:$0xff]  ;;  %v7933_v52 = vld [vmem:[%s14071_s0 + $0xa70] sm:$0xff] }
 0x7d0   :  { %v6754_v0 = vsel %vm5554_vm8, %v6753_v32, %v6749_v24  ;;  %4919 = vadd.xlane.f32.xlu1 %v4918_v2  ;;  %4922 = vadd.xlane.f32.xlu0 %v4921_v25  ;;  %v3903_v32 = vmul.f32 %v7928_v15, %v13371_v45  ;;  %v4942_v10 = vsel %vm2511_vm1, %v3902_v12, 0.0 }
 0x7d1   :  { %v4710_v27 = vpop.xlane.xlu1 %4709  ;;  %v4713_v29 = vpop.xlane.xlu0 %4712  ;;  %v6759_v19 = vsel %vm5561_vm7, %v6758_v43, %v6754_v0 }
 0x7d2   :  { %v6763_v60 = vrot.slane %v4710_v27, %v11574_v6  ;;  %v6768_v22 = vrot.slane %v4713_v29, %v11577_v37  ;;  %v4945_v0 = vsel %vm2511_vm1, %v3903_v32, 0.0  ;;  %v7929_v27 = vld [vmem:[%s14071_s0 + $0xa50] sm:$0xff] }
 0x7d3   :  { %v3904_v29 = vmul.f32 %v7929_v27, %v13371_v45 }
 0x7d4   :  { %v6764_v46 = vsel %vm14631_vm4, %v6763_v60, %v6759_v19  ;;  %4925 = vadd.xlane.f32.xlu1 %v4924_v39  ;;  %4928 = vadd.xlane.f32.xlu0 %v4927_v48  ;;  %vm14636_vm4 = vcmask 1047559   ;;  %v7930_v60 = vld [vmem:[%s14071_s0 + $0xa58] sm:$0xff]  ;;  %v7931_v48 = vld [vmem:[%s14071_s0 + $0xa60] sm:$0xff] }
 0x7d5   :  { %v4716_v40 = vpop.xlane.xlu1 %4715  ;;  %v4719_v28 = vpop.xlane.xlu0 %4718  ;;  %v6769_v35 = vsel %vm14632_vm3, %v6768_v22, %v6764_v46  ;;  %v4948_v22 = vsel %vm2511_vm1, %v3904_v29, 0.0  ;;  %v3906_v46 = vmul.f32 %v7931_v48, %v13371_v45  ;;  %v7937_v29 = vld [vmem:[%s14071_s0 + $0xa90] sm:$0xff]  ;;  %vm14637_vm3 = vcmask 720512  }
 0x7d6   :  { %v6773_v53 = vrot.slane %v4716_v40, %v11593_v5  ;;  %v6778_v30 = vrot.slane %v4719_v28, %v11596_v50  ;;  %v7932_v40 = vld [vmem:[%s14071_s0 + $0xa68] sm:$0xff] }
 0x7d7   :  { %v3907_v28 = vmul.f32 %v7932_v40, %v13371_v45  ;;  %v7939_v40 = vld [vmem:[%s14071_s0 + $0xb08] sm:$0xff] }
 0x7d8   :  { %v6774_v20 = vsel %vm14633_vm5, %v6773_v53, %v6769_v35  ;;  %4931 = vadd.xlane.f32.xlu1 %v4930_v59  ;;  %4934 = vadd.xlane.f32.xlu0 %v4933_v4  ;;  %v4954_v4 = vsel %vm2511_vm1, %v3906_v46, 0.0  ;;  %vm14638_vm5 = vcmask 786112  }
 0x7d9   :  { %v4722_v41 = vpop.xlane.xlu1 %4721  ;;  %v4725_v38 = vpop.xlane.xlu0 %4724  ;;  %v6779_v51 = vsel %vm14634_vm9, %v6778_v30, %v6774_v20  ;;  %v4957_v11 = vsel %vm2511_vm1, %v3907_v28, 0.0  ;;  %v3908_v20 = vmul.f32 %v7933_v52, %v13371_v45  ;;  %vm14639_vm9 = vcmask 851712  }
 0x7da   :  { %v6783_v26 = vrot.slane %v4722_v41, %v11617_v9  ;;  %v6788_v58 = vrot.slane %v4725_v38, %v11620_v36  ;;  %v7934_v41 = vld [vmem:[%s14071_s0 + $0xa78] sm:$0xff] }
 0x7db   :  { %v3909_v38 = vmul.f32 %v7934_v41, %v13371_v45  ;;  %v4960_v15 = vsel %vm2511_vm1, %v3908_v20, 0.0  ;;  %v7941_v41 = vld [vmem:[%s14071_s0 + $0xb88] sm:$0xff] }
 0x7dc   :  { %v6784_v2 = vsel %vm14635_vm6, %v6783_v26, %v6779_v51  ;;  %4937 = vadd.xlane.f32.xlu1 %v4936_v62  ;;  %4940 = vadd.xlane.f32.xlu0 %v4939_v23  ;;  %v13503_v23 = vrot.slane %v11896_v14, %v14544_v18  ;;  %vm14640_vm6 = vcmask 917312  }
 0x7dd   :  { %v6789_v25 = vsel %vm5603_vm2, %v6788_v58, %v6784_v2  ;;  %v4728_v24 = vpop.xlane.xlu1 %4727  ;;  %v4731_v43 = vpop.xlane.xlu0 %4730  ;;  %v4963_v32 = vsel %vm2511_vm1, %v3909_v38, 0.0  ;;  %v7935_v2 = vld [vmem:[%s14071_s0 + $0xa80] sm:$0xff] }
 0x7de   :  { %v7435_v8 = vsel %vm14636_vm4, %v6789_v25, %v13228_v49  ;;  %v6793_v1 = vrot.slane %v4728_v24, %v11465_v44  ;;  %v6797_v55 = vrot.slane %v4731_v43, %v11468_v17  ;;  %v3905_v49 = vmul.f32 %v7930_v60, %v13371_v45  ;;  %v7936_v24 = vld [vmem:[%s14071_s0 + $0xa88] sm:$0xff] }
 0x7df   :  { %7447 = vst [vmem:[#allocation2 + $0x8] sm:$0xff] %v7435_v8  ;;  %v3910_v25 = vmul.f32 %v7935_v2, %v13371_v45  ;;  %v3911_v18 = vmul.f32 %v7936_v24, %v13371_v45  ;;  %v3912_v60 = vmul.f32 %v7937_v29, %v13371_v45  ;;  %v3927_v28 = vmul.f32 %v7939_v40, %v13503_v23  ;;  %v7943_v24 = vld [vmem:[%s14071_s0 + $0xb10] sm:$0xff] }
 0x7e0   :  { %v6798_v13 = vsel %vm5505_vm10, %v6797_v55, %v6793_v1  ;;  %4943 = vadd.xlane.f32.xlu1 %v4942_v10  ;;  %4946 = vadd.xlane.f32.xlu0 %v4945_v0  ;;  %v4951_v39 = vsel %vm2511_vm1, %v3905_v49, 0.0  ;;  %v7938_v49 = vld [vmem:[%s14071_s0 + $0xb00] sm:$0xff]  ;;  %v3943_v38 = vmul.f32 %v7941_v41, %v13503_v23  ;;  %vm14641_vm4 = vcmask 982912  }
 0x7e1   :  { %v4734_v3 = vpop.xlane.xlu1 %4733  ;;  %v4737_v54 = vpop.xlane.xlu0 %4736  ;;  %v4966_v0 = vsel %vm2511_vm1, %v3910_v25, 0.0  ;;  %v4969_v27 = vsel %vm2511_vm1, %v3911_v18, 0.0  ;;  %v4972_v48 = vsel %vm2511_vm1, %v3912_v60, 0.0  ;;  %v5017_v52 = vsel %vm2511_vm1, %v3927_v28, 0.0  ;;  %v7947_v28 = vld [vmem:[%s14071_s0 + $0xb98] sm:$0xff] }
 0x7e2   :  { %v6802_v63 = vrot.slane %v4734_v3, %v11487_v31  ;;  %v6807_v19 = vrot.slane %v4737_v54, %v11490_v33  ;;  %v5065_v2 = vsel %vm2511_vm1, %v3943_v38, 0.0  ;;  %v3928_v18 = vmul.f32 %v7943_v24, %v13503_v23  ;;  %v7949_v38 = vld [vmem:[%s14071_s0 + $0xb20] sm:$0xff] }
 0x7e4   :  { %v6803_v53 = vsel %vm5512_vm11, %v6802_v63, %v6798_v13  ;;  %4949 = vadd.xlane.f32.xlu1 %v4948_v22  ;;  %4952 = vadd.xlane.f32.xlu0 %v4951_v39  ;;  %v3926_v13 = vmul.f32 %v7938_v49, %v13503_v23  ;;  %v5020_v29 = vsel %vm2511_vm1, %v3928_v18, 0.0  ;;  %v7945_v49 = vld [vmem:[%s14071_s0 + $0xaa0] sm:$0xff]  ;;  %v7951_v18 = vld [vmem:[%s14071_s0 + $0xab0] sm:$0xff] }
 0x7e5   :  { %v6808_v59 = vsel %vm5519_vm12, %v6807_v19, %v6803_v53  ;;  %v4740_v16 = vpop.xlane.xlu1 %4739  ;;  %v4743_v7 = vpop.xlane.xlu0 %4742  ;;  %v7940_v53 = vld [vmem:[%s14071_s0 + $0xb80] sm:$0xff] }
 0x7e6   :  { %v6812_v35 = vrot.slane %v4740_v16, %v11504_v47  ;;  %v6817_v30 = vrot.slane %v4743_v7, %v11507_v42  ;;  %v5014_v46 = vsel %vm2511_vm1, %v3926_v13, 0.0  ;;  %v3914_v13 = vmul.f32 %v7945_v49, %v13371_v45 }
 0x7e8   :  { %v6813_v26 = vsel %vm5526_vm13, %v6812_v35, %v6808_v59  ;;  %4955 = vadd.xlane.f32.xlu1 %v4954_v4  ;;  %4958 = vadd.xlane.f32.xlu0 %v4957_v11  ;;  %v3942_v59 = vmul.f32 %v7940_v53, %v13503_v23  ;;  %v3945_v53 = vmul.f32 %v7947_v28, %v13503_v23 }
 0x7e9   :  { %v6818_v58 = vsel %vm5533_vm14, %v6817_v30, %v6813_v26  ;;  %v4746_v62 = vpop.xlane.xlu1 %4745  ;;  %v4749_v51 = vpop.xlane.xlu0 %4748  ;;  %v7942_v26 = vld [vmem:[%s14071_s0 + $0xa98] sm:$0xff] }
 0x7ea   :  { %v6822_v34 = vrot.slane %v4746_v62, %v11530_v57  ;;  %v6827_v12 = vrot.slane %v4749_v51, %v11533_v21  ;;  %v5062_v20 = vsel %vm2511_vm1, %v3942_v59, 0.0  ;;  %v7948_v59 = vld [vmem:[%s14071_s0 + $0xaa8] sm:$0xff] }
 0x7ec   :  { %v6823_v14 = vsel %vm5540_vm15, %v6822_v34, %v6818_v58  ;;  %4961 = vadd.xlane.f32.xlu1 %v4960_v15  ;;  %4964 = vadd.xlane.f32.xlu0 %v4963_v32  ;;  %v3913_v58 = vmul.f32 %v7942_v26, %v13371_v45  ;;  %v3930_v26 = vmul.f32 %v7949_v38, %v13503_v23 }
 0x7ed   :  { %v6828_v43 = vsel %vm5547_vm0, %v6827_v12, %v6823_v14  ;;  %v4752_v8 = vpop.xlane.xlu1 %4751  ;;  %v4755_v1 = vpop.xlane.xlu0 %4754  ;;  %v7944_v14 = vld [vmem:[%s14071_s0 + $0xb90] sm:$0xff] }
 0x7ee   :  { %v6832_v55 = vrot.slane %v4752_v8, %v11548_v61  ;;  %v6837_v10 = vrot.slane %v4755_v1, %v11551_v56  ;;  %v4975_v25 = vsel %vm2511_vm1, %v3913_v58, 0.0  ;;  %v7950_v58 = vld [vmem:[%s14071_s0 + $0xba0] sm:$0xff] }
 0x7f0   :  { %v6833_v3 = vsel %vm5554_vm8, %v6832_v55, %v6828_v43  ;;  %4967 = vadd.xlane.f32.xlu1 %v4966_v0  ;;  %4970 = vadd.xlane.f32.xlu0 %v4969_v27  ;;  %v3944_v43 = vmul.f32 %v7944_v14, %v13503_v23  ;;  %v3916_v14 = vmul.f32 %v7951_v18, %v13371_v45 }
 0x7f1   :  { %v6838_v54 = vsel %vm5561_vm7, %v6837_v10, %v6833_v3  ;;  %v4758_v63 = vpop.xlane.xlu1 %4757  ;;  %v4761_v19 = vpop.xlane.xlu0 %4760  ;;  %v7946_v3 = vld [vmem:[%s14071_s0 + $0xb18] sm:$0xff] }
 0x7f2   :  { %v6842_v22 = vrot.slane %v4758_v63, %v11574_v6  ;;  %v6847_v39 = vrot.slane %v4761_v19, %v11577_v37  ;;  %v5068_v60 = vsel %vm2511_vm1, %v3944_v43, 0.0  ;;  %v7952_v43 = vld [vmem:[%s14071_s0 + $0xb28] sm:$0xff]  ;;  %v4984_v49 = vsel %vm2511_vm1, %v3916_v14, 0.0 }
 0x7f4   :  { %v6843_v16 = vsel %vm14637_vm3, %v6842_v22, %v6838_v54  ;;  %4973 = vadd.xlane.f32.xlu1 %v4972_v48  ;;  %5015 = vadd.xlane.f32.xlu0 %v5014_v46  ;;  %v3929_v54 = vmul.f32 %v7946_v3, %v13503_v23  ;;  %v4978_v46 = vsel %vm2511_vm1, %v3914_v13, 0.0  ;;  %v7953_v3 = vld [vmem:[%s14071_s0 + $0xba8] sm:$0xff] }
 0x7f5   :  { %v6848_v7 = vsel %vm14638_vm5, %v6847_v39, %v6843_v16  ;;  %v4764_v35 = vpop.xlane.xlu1 %4763  ;;  %v4767_v30 = vpop.xlane.xlu0 %4766  ;;  %v3915_v16 = vmul.f32 %v7948_v59, %v13371_v45 }
 0x7f6   :  { %v6852_v4 = vrot.slane %v4764_v35, %v11593_v5  ;;  %v6857_v11 = vrot.slane %v4767_v30, %v11596_v50  ;;  %v5023_v40 = vsel %vm2511_vm1, %v3929_v54, 0.0  ;;  %v3947_v54 = vmul.f32 %v7953_v3, %v13503_v23 }
 0x7f7   :  { %v4981_v41 = vsel %vm2511_vm1, %v3915_v16, 0.0  ;;  %v7955_v16 = vld [vmem:[%s14071_s0 + $0xb30] sm:$0xff] }
 0x7f8   :  { %v6853_v62 = vsel %vm14639_vm9, %v6852_v4, %v6848_v7  ;;  %5018 = vadd.xlane.f32.xlu1 %v5017_v52  ;;  %5063 = vadd.xlane.f32.xlu0 %v5062_v20  ;;  %v5071_v20 = vsel %vm2511_vm1, %v3945_v53, 0.0  ;;  %v5077_v53 = vsel %vm2511_vm1, %v3947_v54, 0.0 }
 0x7f9   :  { %v6858_v51 = vsel %vm14640_vm6, %v6857_v11, %v6853_v62  ;;  %v4770_v34 = vpop.xlane.xlu1 %4769  ;;  %v4773_v12 = vpop.xlane.xlu0 %4772  ;;  %v3946_v62 = vmul.f32 %v7950_v58, %v13503_v23 }
 0x7fa   :  { %v6862_v15 = vrot.slane %v4770_v34, %v11617_v9  ;;  %v6867_v32 = vrot.slane %v4773_v12, %v11620_v36 }
 0x7fb   :  { %v5074_v24 = vsel %vm2511_vm1, %v3946_v62, 0.0  ;;  %v7957_v62 = vld [vmem:[%s14071_s0 + $0xac0] sm:$0xff] }
 0x7fc   :  { %v6863_v8 = vsel %vm14641_vm4, %v6862_v15, %v6858_v51  ;;  %5066 = vadd.xlane.f32.xlu1 %v5065_v2  ;;  %4976 = vadd.xlane.f32.xlu0 %v4975_v25  ;;  %v5026_v25 = vsel %vm2511_vm1, %v3930_v26, 0.0 }
 0x7fd   :  { %v13575_v1 = vsel %vm5603_vm2, %v6867_v32, %v6863_v8  ;;  %v4776_v55 = vpop.xlane.xlu1 %4775  ;;  %v4779_v10 = vpop.xlane.xlu0 %4778  ;;  %v3931_v8 = vmul.f32 %v7952_v43, %v13503_v23 }
 0x7fe   :  { %v6872_v0 = vrot.slane %v4776_v55, %v11465_v44  ;;  %v6876_v27 = vrot.slane %v4779_v10, %v11468_v17 }
 0x7ff   :  { %v5029_v13 = vsel %vm2511_vm1, %v3931_v8, 0.0  ;;  %v7959_v8 = vld [vmem:[%s14071_s0 + $0xbb8] sm:$0xff] }
 0x800   :  { %v6877_v63 = vsel %vm5505_vm10, %v6876_v27, %v6872_v0  ;;  %5021 = vadd.xlane.f32.xlu1 %v5020_v29  ;;  %5069 = vadd.xlane.f32.xlu0 %v5068_v60 }
 0x801   :  { %v4782_v19 = vpop.xlane.xlu1 %4781  ;;  %v4785_v22 = vpop.xlane.xlu0 %4784 }
 0x802   :  { %v6881_v39 = vrot.slane %v4782_v19, %v11487_v31  ;;  %v6886_v48 = vrot.slane %v4785_v22, %v11490_v33 }
 0x804   :  { %v6882_v7 = vsel %vm5512_vm11, %v6881_v39, %v6877_v63  ;;  %4979 = vadd.xlane.f32.xlu1 %v4978_v46  ;;  %5024 = vadd.xlane.f32.xlu0 %v5023_v40  ;;  %v7954_v63 = vld [vmem:[%s14071_s0 + $0xab8] sm:$0xff] }
 0x805   :  { %v6887_v35 = vsel %vm5519_vm12, %v6886_v48, %v6882_v7  ;;  %v4788_v30 = vpop.xlane.xlu1 %4787  ;;  %v4791_v4 = vpop.xlane.xlu0 %4790  ;;  %v3917_v19 = vmul.f32 %v7954_v63, %v13371_v45  ;;  %v3932_v7 = vmul.f32 %v7955_v16, %v13503_v23 }
 0x806   :  { %v6891_v11 = vrot.slane %v4788_v30, %v11504_v47  ;;  %v6896_v52 = vrot.slane %v4791_v4, %v11507_v42 }
 0x807   :  { %v4987_v59 = vsel %vm2511_vm1, %v3917_v19, 0.0  ;;  %v5032_v26 = vsel %vm2511_vm1, %v3932_v7, 0.0  ;;  %v7961_v19 = vld [vmem:[%s14071_s0 + $0xb40] sm:$0xff] }
 0x808   :  { %v6892_v51 = vsel %vm5526_vm13, %v6891_v11, %v6887_v35  ;;  %5072 = vadd.xlane.f32.xlu1 %v5071_v20  ;;  %4982 = vadd.xlane.f32.xlu0 %v4981_v41  ;;  %v7956_v35 = vld [vmem:[%s14071_s0 + $0xbb0] sm:$0xff] }
 0x809   :  { %v6897_v34 = vsel %vm5533_vm14, %v6896_v52, %v6892_v51  ;;  %v4794_v12 = vpop.xlane.xlu1 %4793  ;;  %v4797_v15 = vpop.xlane.xlu0 %4796  ;;  %v3948_v30 = vmul.f32 %v7956_v35, %v13503_v23  ;;  %v3918_v51 = vmul.f32 %v7957_v62, %v13371_v45  ;;  %v7963_v35 = vld [vmem:[%s14071_s0 + $0xad0] sm:$0xff] }
 0x80a   :  { %v6901_v32 = vrot.slane %v4794_v12, %v11530_v57  ;;  %v6906_v2 = vrot.slane %v4797_v15, %v11533_v21 }
 0x80b   :  { %v5080_v58 = vsel %vm2511_vm1, %v3948_v30, 0.0  ;;  %v4990_v14 = vsel %vm2511_vm1, %v3918_v51, 0.0  ;;  %v3920_v30 = vmul.f32 %v7963_v35, %v13371_v45 }
 0x80c   :  { %v6902_v55 = vsel %vm5540_vm15, %v6901_v32, %v6897_v34  ;;  %5027 = vadd.xlane.f32.xlu1 %v5026_v25  ;;  %5075 = vadd.xlane.f32.xlu0 %v5074_v24  ;;  %v7958_v34 = vld [vmem:[%s14071_s0 + $0xb38] sm:$0xff] }
 0x80d   :  { %v6907_v10 = vsel %vm5547_vm0, %v6906_v2, %v6902_v55  ;;  %v4800_v0 = vpop.xlane.xlu1 %4799  ;;  %v4803_v27 = vpop.xlane.xlu0 %4802  ;;  %v3933_v12 = vmul.f32 %v7958_v34, %v13503_v23  ;;  %v3949_v55 = vmul.f32 %v7959_v8, %v13503_v23  ;;  %v4996_v62 = vsel %vm2511_vm1, %v3920_v30, 0.0  ;;  %v7965_v34 = vld [vmem:[%s14071_s0 + $0xbc8] sm:$0xff] }
 0x80e   :  { %v6911_v29 = vrot.slane %v4800_v0, %v11548_v61  ;;  %v6916_v60 = vrot.slane %v4803_v27, %v11551_v56 }
 0x80f   :  { %v5035_v43 = vsel %vm2511_vm1, %v3933_v12, 0.0  ;;  %v5083_v54 = vsel %vm2511_vm1, %v3949_v55, 0.0  ;;  %v3951_v12 = vmul.f32 %v7965_v34, %v13503_v23 }
 0x810   :  { %v6912_v22 = vsel %vm5554_vm8, %v6911_v29, %v6907_v10  ;;  %4985 = vadd.xlane.f32.xlu1 %v4984_v49  ;;  %5030 = vadd.xlane.f32.xlu0 %v5029_v13  ;;  %v7960_v10 = vld [vmem:[%s14071_s0 + $0xac8] sm:$0xff] }
 0x811   :  { %v6917_v39 = vsel %vm5561_vm7, %v6916_v60, %v6912_v22  ;;  %v4806_v48 = vpop.xlane.xlu1 %4805  ;;  %v4809_v46 = vpop.xlane.xlu0 %4808  ;;  %v3919_v0 = vmul.f32 %v7960_v10, %v13371_v45  ;;  %v3934_v22 = vmul.f32 %v7961_v19, %v13503_v23  ;;  %v5089_v8 = vsel %vm2511_vm1, %v3951_v12, 0.0  ;;  %v7967_v10 = vld [vmem:[%s14071_s0 + $0xb50] sm:$0xff] }
 0x812   :  { %v6921_v40 = vrot.slane %v4806_v48, %v11574_v6  ;;  %v6926_v28 = vrot.slane %v4809_v46, %v11577_v37 }
 0x813   :  { %v4993_v63 = vsel %vm2511_vm1, %v3919_v0, 0.0  ;;  %v5038_v16 = vsel %vm2511_vm1, %v3934_v22, 0.0  ;;  %v3936_v0 = vmul.f32 %v7967_v10, %v13503_v23 }
 0x814   :  { %v6922_v4 = vsel %vm14637_vm3, %v6921_v40, %v6917_v39  ;;  %5078 = vadd.xlane.f32.xlu1 %v5077_v53  ;;  %4988 = vadd.xlane.f32.xlu0 %v4987_v59  ;;  %v7962_v39 = vld [vmem:[%s14071_s0 + $0xbc0] sm:$0xff] }
 0x815   :  { %v6927_v11 = vsel %vm14638_vm5, %v6926_v28, %v6922_v4  ;;  %v4812_v52 = vpop.xlane.xlu1 %4811  ;;  %v4815_v20 = vpop.xlane.xlu0 %4814  ;;  %v3950_v48 = vmul.f32 %v7962_v39, %v13503_v23  ;;  %v7964_v4 = vld [vmem:[%s14071_s0 + $0xb48] sm:$0xff]  ;;  %v5044_v22 = vsel %vm2511_vm1, %v3936_v0, 0.0 }
 0x816   :  { %v6931_v41 = vrot.slane %v4812_v52, %v11593_v5  ;;  %v6936_v38 = vrot.slane %v4815_v20, %v11596_v50 }
 0x817   :  { %v5086_v7 = vsel %vm2511_vm1, %v3950_v48, 0.0  ;;  %v7969_v48 = vld [vmem:[%s14071_s0 + $0xae0] sm:$0xff] }
 0x818   :  { %v6932_v15 = vsel %vm14639_vm9, %v6931_v41, %v6927_v11  ;;  %5033 = vadd.xlane.f32.xlu1 %v5032_v26  ;;  %5081 = vadd.xlane.f32.xlu0 %v5080_v58  ;;  %v3935_v11 = vmul.f32 %v7964_v4, %v13503_v23 }
 0x819   :  { %v6937_v32 = vsel %vm14640_vm6, %v6936_v38, %v6932_v15  ;;  %v4818_v2 = vpop.xlane.xlu1 %4817  ;;  %v4821_v25 = vpop.xlane.xlu0 %4820  ;;  %v7966_v15 = vld [vmem:[%s14071_s0 + $0xad8] sm:$0xff] }
 0x81a   :  { %v6941_v24 = vrot.slane %v4818_v2, %v11617_v9  ;;  %v6946_v18 = vrot.slane %v4821_v25, %v11620_v36  ;;  %v5041_v51 = vsel %vm2511_vm1, %v3935_v11, 0.0 }
 0x81c   :  { %v6942_v27 = vsel %vm14641_vm4, %v6941_v24, %v6937_v32  ;;  %4991 = vadd.xlane.f32.xlu1 %v4990_v14  ;;  %5036 = vadd.xlane.f32.xlu0 %v5035_v43  ;;  %v3921_v32 = vmul.f32 %v7966_v15, %v13371_v45 }
 0x81d   :  { %v13688_v29 = vsel %vm5603_vm2, %v6946_v18, %v6942_v27  ;;  %v4824_v60 = vpop.xlane.xlu1 %4823  ;;  %v4827_v49 = vpop.xlane.xlu0 %4826  ;;  %v7968_v27 = vld [vmem:[%s14071_s0 + $0xbd0] sm:$0xff] }
 0x81e   :  { %v6951_v13 = vrot.slane %v4824_v60, %v11465_v44  ;;  %v6955_v3 = vrot.slane %v4827_v49, %v11468_v17  ;;  %v4999_v55 = vsel %vm2511_vm1, %v3921_v32, 0.0  ;;  %v3952_v60 = vmul.f32 %v7968_v27, %v13503_v23 }
 0x820   :  { %v6956_v46 = vsel %vm5505_vm10, %v6955_v3, %v6951_v13  ;;  %5084 = vadd.xlane.f32.xlu1 %v5083_v54  ;;  %4994 = vadd.xlane.f32.xlu0 %v4993_v63  ;;  %v5092_v39 = vsel %vm2511_vm1, %v3952_v60, 0.0 }
 0x821   :  { %v4830_v40 = vpop.xlane.xlu1 %4829  ;;  %v4833_v28 = vpop.xlane.xlu0 %4832 }
 0x822   :  { %v6960_v53 = vrot.slane %v4830_v40, %v11487_v31  ;;  %v6965_v59 = vrot.slane %v4833_v28, %v11490_v33  ;;  %v7970_v40 = vld [vmem:[%s14071_s0 + $0xb58] sm:$0xff] }
 0x823   :  { %v3937_v28 = vmul.f32 %v7970_v40, %v13503_v23 }
 0x824   :  { %v6961_v52 = vsel %vm5512_vm11, %v6960_v53, %v6956_v46  ;;  %5039 = vadd.xlane.f32.xlu1 %v5038_v16  ;;  %5087 = vadd.xlane.f32.xlu0 %v5086_v7  ;;  %v3922_v46 = vmul.f32 %v7969_v48, %v13371_v45 }
 0x825   :  { %v6966_v20 = vsel %vm5519_vm12, %v6965_v59, %v6961_v52  ;;  %v4836_v41 = vpop.xlane.xlu1 %4835  ;;  %v4839_v38 = vpop.xlane.xlu0 %4838  ;;  %v5047_v11 = vsel %vm2511_vm1, %v3937_v28, 0.0  ;;  %v7971_v52 = vld [vmem:[%s14071_s0 + $0xbd8] sm:$0xff] }
 0x826   :  { %v6970_v26 = vrot.slane %v4836_v41, %v11504_v47  ;;  %v6975_v58 = vrot.slane %v4839_v38, %v11507_v42  ;;  %v5002_v4 = vsel %vm2511_vm1, %v3922_v46, 0.0  ;;  %v7972_v41 = vld [vmem:[%s14071_s0 + $0xae8] sm:$0xff] }
 0x827   :  { %v3923_v38 = vmul.f32 %v7972_v41, %v13371_v45 }
 0x828   :  { %v6971_v2 = vsel %vm5526_vm13, %v6970_v26, %v6966_v20  ;;  %4997 = vadd.xlane.f32.xlu1 %v4996_v62  ;;  %5042 = vadd.xlane.f32.xlu0 %v5041_v51  ;;  %v3953_v20 = vmul.f32 %v7971_v52, %v13503_v23 }
 0x829   :  { %v6976_v25 = vsel %vm5533_vm14, %v6975_v58, %v6971_v2  ;;  %v4842_v24 = vpop.xlane.xlu1 %4841  ;;  %v4845_v18 = vpop.xlane.xlu0 %4844  ;;  %v5005_v32 = vsel %vm2511_vm1, %v3923_v38, 0.0  ;;  %v7973_v2 = vld [vmem:[%s14071_s0 + $0xb60] sm:$0xff]  ;;  %v7979_v38 = vld [vmem:[%s14071_s0 + $0xb70] sm:$0xff] }
 0x82a   :  { %v6980_v14 = vrot.slane %v4842_v24, %v11530_v57  ;;  %v6985_v43 = vrot.slane %v4845_v18, %v11533_v21  ;;  %v5095_v15 = vsel %vm2511_vm1, %v3953_v20, 0.0  ;;  %v7974_v24 = vld [vmem:[%s14071_s0 + $0xbe0] sm:$0xff] }
 0x82b   :  { %v3954_v18 = vmul.f32 %v7974_v24, %v13503_v23  ;;  %v7981_v24 = vld [vmem:[%s14071_s0 + $0xb78] sm:$0xff] }
 0x82c   :  { %v6981_v49 = vsel %vm5540_vm15, %v6980_v14, %v6976_v25  ;;  %5090 = vadd.xlane.f32.xlu1 %v5089_v8  ;;  %5000 = vadd.xlane.f32.xlu0 %v4999_v55  ;;  %v3938_v25 = vmul.f32 %v7973_v2, %v13503_v23 }
 0x82d   :  { %v6986_v13 = vsel %vm5547_vm0, %v6985_v43, %v6981_v49  ;;  %v4848_v3 = vpop.xlane.xlu1 %4847  ;;  %v4851_v54 = vpop.xlane.xlu0 %4850  ;;  %v5098_v60 = vsel %vm2511_vm1, %v3954_v18, 0.0  ;;  %v7975_v49 = vld [vmem:[%s14071_s0 + $0xaf0] sm:$0xff]  ;;  %v3941_v18 = vmul.f32 %v7981_v24, %v13503_v23 }
 0x82e   :  { %v6990_v63 = vrot.slane %v4848_v3, %v11548_v61  ;;  %v6995_v19 = vrot.slane %v4851_v54, %v11551_v56  ;;  %v5050_v27 = vsel %vm2511_vm1, %v3938_v25, 0.0  ;;  %v7976_v3 = vld [vmem:[%s14071_s0 + $0xb68] sm:$0xff] }
 0x82f   :  { %v3939_v54 = vmul.f32 %v7976_v3, %v13503_v23 }
 0x830   :  { %v6991_v53 = vsel %vm5554_vm8, %v6990_v63, %v6986_v13  ;;  %5045 = vadd.xlane.f32.xlu1 %v5044_v22  ;;  %5093 = vadd.xlane.f32.xlu0 %v5092_v39  ;;  %v3924_v13 = vmul.f32 %v7975_v49, %v13371_v45  ;;  %v5059_v49 = vsel %vm2511_vm1, %v3941_v18, 0.0 }
 0x831   :  { %v6996_v59 = vsel %vm5561_vm7, %v6995_v19, %v6991_v53  ;;  %v4854_v16 = vpop.xlane.xlu1 %4853  ;;  %v4857_v7 = vpop.xlane.xlu0 %4856  ;;  %v5053_v53 = vsel %vm2511_vm1, %v3939_v54, 0.0 }
 0x832   :  { %v7000_v35 = vrot.slane %v4854_v16, %v11574_v6  ;;  %v7005_v30 = vrot.slane %v4857_v7, %v11577_v37  ;;  %v5008_v28 = vsel %vm2511_vm1, %v3924_v13, 0.0  ;;  %v7978_v7 = vld [vmem:[%s14071_s0 + $0xaf8] sm:$0xff] }
 0x834   :  { %v7001_v26 = vsel %vm14637_vm3, %v7000_v35, %v6996_v59  ;;  %5003 = vadd.xlane.f32.xlu1 %v5002_v4  ;;  %5048 = vadd.xlane.f32.xlu0 %v5047_v11  ;;  %vm14642_vm3 = vcmask 1041409   ;;  %v7977_v59 = vld [vmem:[%s14071_s0 + $0xbe8] sm:$0xff] }
 0x835   :  { %v7006_v58 = vsel %vm14638_vm5, %v7005_v30, %v7001_v26  ;;  %v4860_v62 = vpop.xlane.xlu1 %4859  ;;  %v4863_v51 = vpop.xlane.xlu0 %4862  ;;  %v3955_v16 = vmul.f32 %v7977_v59, %v13503_v23  ;;  %v7980_v26 = vld [vmem:[%s14071_s0 + $0xbf0] sm:$0xff] }
 0x836   :  { %v7010_v34 = vrot.slane %v4860_v62, %v11593_v5  ;;  %v7015_v12 = vrot.slane %v4863_v51, %v11596_v50 }
 0x837   :  { %v5101_v20 = vsel %vm2511_vm1, %v3955_v16, 0.0 }
 0x838   :  { %v7011_v14 = vsel %vm14639_vm9, %v7010_v34, %v7006_v58  ;;  %5096 = vadd.xlane.f32.xlu1 %v5095_v15  ;;  %5006 = vadd.xlane.f32.xlu0 %v5005_v32  ;;  %v3956_v58 = vmul.f32 %v7980_v26, %v13503_v23 }
 0x839   :  { %v7016_v43 = vsel %vm14640_vm6, %v7015_v12, %v7011_v14  ;;  %v4866_v8 = vpop.xlane.xlu1 %4865  ;;  %v4869_v55 = vpop.xlane.xlu0 %4868  ;;  %v7982_v14 = vld [vmem:[%s14071_s0 + $0xbf8] sm:$0xff]  ;;  %s8032_s0 = smov [#allocation4]  }
 0x83a   :  { %v7020_v10 = vrot.slane %v4866_v8, %v11617_v9  ;;  %v7025_v0 = vrot.slane %v4869_v55, %v11620_v36  ;;  %v5104_v25 = vsel %vm2511_vm1, %v3956_v58, 0.0  ;;  %s7503_s2 = sshll.u32 %s8032_s0, 4  ;;  %s7504_s2 = int_to_ptr.vmem [resolvable:$true] %s7503_s2 }
 0x83b   :  { %s7983_s27 = scalar_lea.vmem %s7504_s2, 256  ;;  %p7988_p1 = scmp.lt.s32.totalorder %s7504_s2, %s7504_s2 }
 0x83c   :  { %v7021_v63 = vsel %vm14641_vm4, %v7020_v10, %v7016_v43  ;;  %5051 = vadd.xlane.f32.xlu1 %v5050_v27  ;;  %5099 = vadd.xlane.f32.xlu0 %v5098_v60  ;;  %v3957_v43 = vmul.f32 %v7982_v14, %v13503_v23  ;;  %p7984_p0 = scmp.ne.s32.totalorder %s7504_s2, %s7983_s27  ;;  %p7989_p2 = scmp.lt.s32.totalorder %s7983_s27, %s7983_s27 }
 0x83d   :  { %v7026_v19 = vsel %vm5603_vm2, %v7025_v0, %v7021_v63  ;;  %v4872_v22 = vpop.xlane.xlu1 %4871  ;;  %v4875_v39 = vpop.xlane.xlu0 %4874 }
 0x83e   :  { %v13803_v48 = vsel %vm14642_vm3, %v7026_v19, %v13575_v1  ;;  %v7030_v46 = vrot.slane %v4872_v22, %v11465_v44  ;;  %v7034_v40 = vrot.slane %v4875_v39, %v11468_v17  ;;  %v3925_v1 = vmul.f32 %v7978_v7, %v13371_v45  ;;  %p7990_p3 = por %p7989_p2, %p7988_p1 }
 0x83f   :  { %v3940_v45 = vmul.f32 %v7979_v38, %v13503_v23  ;;  %v5107_v13 = vsel %vm2511_vm1, %v3957_v43, 0.0 }
 0x840   :  { %v7035_v35 = vsel %vm5505_vm10, %v7034_v40, %v7030_v46  ;;  %5009 = vadd.xlane.f32.xlu1 %v5008_v28  ;;  %5054 = vadd.xlane.f32.xlu0 %v5053_v53  ;;  %v5011_v41 = vsel %vm2511_vm1, %v3925_v1, 0.0  ;;  %p7991_p4 = pnand %p7990_p3, %p7984_p0 }
 0x841   :  { %v4878_v30 = vpop.xlane.xlu1 %4877  ;;  %v4881_v4 = vpop.xlane.xlu0 %4880  ;;  %v5056_v2 = vsel %vm2511_vm1, %v3940_v45, 0.0  ;;  %vm14643_vm1 = vcmask 720512  }
 0x842   :  { %v7039_v11 = vrot.slane %v4878_v30, %v11487_v31  ;;  %v7044_v52 = vrot.slane %v4881_v4, %v11490_v33 }
 0x844   :  { %v7040_v62 = vsel %vm5512_vm11, %v7039_v11, %v7035_v35  ;;  %5102 = vadd.xlane.f32.xlu1 %v5101_v20  ;;  %5012 = vadd.xlane.f32.xlu0 %v5011_v41 }
 0x845   :  { %v7045_v51 = vsel %vm5519_vm12, %v7044_v52, %v7040_v62  ;;  %v4884_v34 = vpop.xlane.xlu1 %4883  ;;  %v4887_v12 = vpop.xlane.xlu0 %4886 }
 0x846   :  { %v7049_v15 = vrot.slane %v4884_v34, %v11504_v47  ;;  %v7054_v32 = vrot.slane %v4887_v12, %v11507_v42 }
 0x848   :  { %v7050_v8 = vsel %vm5526_vm13, %v7049_v15, %v7045_v51  ;;  %5057 = vadd.xlane.f32.xlu1 %v5056_v2  ;;  %5105 = vadd.xlane.f32.xlu0 %v5104_v25 }
 0x849   :  { %v7055_v55 = vsel %vm5533_vm14, %v7054_v32, %v7050_v8  ;;  %v4890_v10 = vpop.xlane.xlu1 %4889  ;;  %v4893_v0 = vpop.xlane.xlu0 %4892 }
 0x84a   :  { %v7059_v27 = vrot.slane %v4890_v10, %v11530_v57  ;;  %v7064_v60 = vrot.slane %v4893_v0, %v11533_v21 }
 0x84c   :  { %v7060_v3 = vsel %vm5540_vm15, %v7059_v27, %v7055_v55  ;;  %5060 = vadd.xlane.f32.xlu1 %v5059_v49  ;;  %5108 = vadd.xlane.f32.xlu0 %v5107_v13 }
 0x84d   :  { %v7065_v23 = vsel %vm5547_vm0, %v7064_v60, %v7060_v3  ;;  %v4896_v54 = vpop.xlane.xlu1 %4895  ;;  %v4899_v63 = vpop.xlane.xlu0 %4898 }
 0x84e   :  { %v7069_v19 = vrot.slane %v4896_v54, %v11548_v61  ;;  %v7074_v22 = vrot.slane %v4899_v63, %v11551_v56 }
 0x850   :  { %v7070_v39 = vsel %vm5554_vm8, %v7069_v19, %v7065_v23 }
 0x851   :  { %v7075_v46 = vsel %vm5561_vm7, %v7074_v22, %v7070_v39  ;;  %v4902_v40 = vpop.xlane.xlu1 %4901  ;;  %v4905_v28 = vpop.xlane.xlu0 %4904 }
 0x852   :  { %v7079_v53 = vrot.slane %v4902_v40, %v11574_v6  ;;  %v7084_v59 = vrot.slane %v4905_v28, %v11577_v37 }
 0x854   :  { %v7080_v16 = vsel %vm14643_vm1, %v7079_v53, %v7075_v46 }
 0x855   :  { %v7085_v7 = vsel %vm14638_vm5, %v7084_v59, %v7080_v16  ;;  %v4908_v1 = vpop.xlane.xlu1 %4907  ;;  %v4911_v35 = vpop.xlane.xlu0 %4910 }
 0x856   :  { %v7089_v30 = vrot.slane %v4908_v1, %v11593_v5  ;;  %v7094_v4 = vrot.slane %v4911_v35, %v11596_v50 }
 0x858   :  { %v7090_v11 = vsel %vm14639_vm9, %v7089_v30, %v7085_v7 }
 0x859   :  { %v7095_v52 = vsel %vm14640_vm6, %v7094_v4, %v7090_v11  ;;  %v4914_v20 = vpop.xlane.xlu1 %4913  ;;  %v4917_v41 = vpop.xlane.xlu0 %4916 }
 0x85a   :  { %v7099_v38 = vrot.slane %v4914_v20, %v11617_v9  ;;  %v7104_v45 = vrot.slane %v4917_v41, %v11620_v36 }
 0x85c   :  { %v7100_v26 = vsel %vm14641_vm4, %v7099_v38, %v7095_v52 }
 0x85d   :  { %v7105_v58 = vsel %vm5603_vm2, %v7104_v45, %v7100_v26  ;;  %v4920_v62 = vpop.xlane.xlu1 %4919  ;;  %v4923_v51 = vpop.xlane.xlu0 %4922 }
 0x85e   :  { %v13870_v34 = vsel %vm14642_vm3, %v7105_v58, %v13688_v29  ;;  %v7109_v12 = vrot.slane %v4920_v62, %v11465_v44  ;;  %v7113_v15 = vrot.slane %v4923_v51, %v11468_v17 }
 0x860   :  { %v7114_v32 = vsel %vm5505_vm10, %v7113_v15, %v7109_v12 }
 0x861   :  { %v4926_v2 = vpop.xlane.xlu1 %4925  ;;  %v4929_v25 = vpop.xlane.xlu0 %4928 }
 0x862   :  { %v7118_v24 = vrot.slane %v4926_v2, %v11487_v31  ;;  %v7123_v18 = vrot.slane %v4929_v25, %v11490_v33 }
 0x863   :  { %7994 = shalt.err (!%p7991_p4)
}
 0x864   :  { %s7995_s1 = scalar_lea.hbm %s14076_s5, 256 }
 0x865   :  { %p7996_p5 = scmp.ne.s32.totalorder %s14076_s5, %s7995_s1  ;;  %p7999_p6 = scmp.lt.u32.totalorder %s7995_s1, %s14076_s5 }
 0x867   :  { %p8001_p7 = pnand %p7999_p6, %p7996_p5 }
 0x869   :  { %8004 = shalt.err (!%p8001_p7)
}
 0x86a   :  { %s8033_s8 = smov 128   ;;  %s8034_s9 = smov 8   ;;  %v7119_v29 = vsel %vm5512_vm11, %v7118_v24, %v7114_v32  ;;  %v4932_v43 = vpop.xlane.xlu1 %4931  ;;  %v4935_v8 = vpop.xlane.xlu0 %4934  ;;  %vm14644_vm3 = vcmask 1042434  }
 0x86b   :  { %7509 = dma.vmem_to_hbm [thread:$0]  %s7504_s2, 256, %s14076_s5, [#allocation5], %s8033_s8, %s8033_s8, %s8034_s9   ;;  %v7124_v14 = vsel %vm5519_vm12, %v7123_v18, %v7119_v29  ;;  %v7128_v55 = vrot.slane %v4932_v43, %v11504_v47  ;;  %v7133_v10 = vrot.slane %v4935_v8, %v11507_v42 }
 0x86c   :  { %s8035_s5 = smov [#allocation2]  }
 0x86d   :  { %v7129_v0 = vsel %vm5526_vm13, %v7128_v55, %v7124_v14  ;;  %s7491_s12 = sshll.u32 %s8035_s5, 4  ;;  %s7492_s12 = int_to_ptr.vmem [resolvable:$true] %s7491_s12 }
 0x86e   :  { %v7134_v27 = vsel %vm5533_vm14, %v7133_v10, %v7129_v0  ;;  %v4938_v60 = vpop.xlane.xlu1 %4937  ;;  %v4941_v49 = vpop.xlane.xlu0 %4940  ;;  %s8005_s13 = scalar_lea.vmem %s7492_s12, 512  ;;  %p8010_p9 = scmp.lt.s32.totalorder %s7492_s12, %s7492_s12 }
 0x86f   :  { %v7138_v13 = vrot.slane %v4938_v60, %v11530_v57  ;;  %v7143_v3 = vrot.slane %v4941_v49, %v11533_v21  ;;  %p8006_p8 = scmp.ne.s32.totalorder %s7492_s12, %s8005_s13  ;;  %p8011_p10 = scmp.lt.s32.totalorder %s8005_s13, %s8005_s13 }
 0x871   :  { %v7139_v23 = vsel %vm5540_vm15, %v7138_v13, %v7134_v27  ;;  %p8012_p11 = por %p8011_p10, %p8010_p9 }
 0x872   :  { %v7144_v54 = vsel %vm5547_vm0, %v7143_v3, %v7139_v23  ;;  %v4944_v63 = vpop.xlane.xlu1 %4943  ;;  %v4947_v19 = vpop.xlane.xlu0 %4946 }
 0x873   :  { %v7148_v22 = vrot.slane %v4944_v63, %v11548_v61  ;;  %v7153_v39 = vrot.slane %v4947_v19, %v11551_v56  ;;  %p8013_p12 = pnand %p8012_p11, %p8006_p8 }
 0x875   :  { %v7149_v46 = vsel %vm5554_vm8, %v7148_v22, %v7144_v54 }
 0x876   :  { %v7154_v40 = vsel %vm5561_vm7, %v7153_v39, %v7149_v46  ;;  %v4950_v28 = vpop.xlane.xlu1 %4949  ;;  %v4953_v53 = vpop.xlane.xlu0 %4952 }
 0x877   :  { %v7158_v59 = vrot.slane %v4950_v28, %v11574_v6  ;;  %v7163_v16 = vrot.slane %v4953_v53, %v11577_v37 }
 0x879   :  { %v7159_v7 = vsel %vm14643_vm1, %v7158_v59, %v7154_v40 }
 0x87a   :  { %v7164_v1 = vsel %vm14638_vm5, %v7163_v16, %v7159_v7  ;;  %v4956_v35 = vpop.xlane.xlu1 %4955  ;;  %v4959_v30 = vpop.xlane.xlu0 %4958 }
 0x87b   :  { %v7168_v4 = vrot.slane %v4956_v35, %v11593_v5  ;;  %v7173_v11 = vrot.slane %v4959_v30, %v11596_v50 }
 0x87d   :  { %v7169_v52 = vsel %vm14639_vm9, %v7168_v4, %v7164_v1 }
 0x87e   :  { %v7174_v20 = vsel %vm14640_vm6, %v7173_v11, %v7169_v52  ;;  %v4962_v41 = vpop.xlane.xlu1 %4961  ;;  %v4965_v38 = vpop.xlane.xlu0 %4964 }
 0x87f   :  { %v7178_v45 = vrot.slane %v4962_v41, %v11617_v9  ;;  %v7183_v26 = vrot.slane %v4965_v38, %v11620_v36 }
 0x881   :  { %v7179_v58 = vsel %vm14641_vm4, %v7178_v45, %v7174_v20 }
 0x882   :  { %v7184_v62 = vsel %vm5603_vm2, %v7183_v26, %v7179_v58  ;;  %v4968_v51 = vpop.xlane.xlu1 %4967  ;;  %v4971_v12 = vpop.xlane.xlu0 %4970 }
 0x883   :  { %v13917_v15 = vsel %vm14644_vm3, %v7184_v62, %v13803_v48  ;;  %v7188_v32 = vrot.slane %v4968_v51, %v11465_v44  ;;  %v7192_v2 = vrot.slane %v4971_v12, %v11468_v17 }
 0x885   :  { %v7193_v25 = vsel %vm5505_vm10, %v7192_v2, %v7188_v32 }
 0x886   :  { %v4974_v24 = vpop.xlane.xlu1 %4973  ;;  %v5016_v18 = vpop.xlane.xlu0 %5015 }
 0x887   :  { %v7197_v29 = vrot.slane %v4974_v24, %v11487_v31  ;;  %v7267_v55 = vrot.slane %v5016_v18, %v11465_v44 }
 0x889   :  { %v7198_v14 = vsel %vm5512_vm11, %v7197_v29, %v7193_v25 }
 0x88a   :  { %v5019_v43 = vpop.xlane.xlu1 %5018  ;;  %v5064_v8 = vpop.xlane.xlu0 %5063 }
 0x88b   :  { %v7271_v10 = vrot.slane %v5019_v43, %v11468_v17  ;;  %v7346_v60 = vrot.slane %v5064_v8, %v11465_v44 }
 0x88d   :  { %v7272_v48 = vsel %vm5505_vm10, %v7271_v10, %v7267_v55 }
 0x88e   :  { %v5067_v0 = vpop.xlane.xlu1 %5066  ;;  %v4977_v27 = vpop.xlane.xlu0 %4976 }
 0x88f   :  { %v7350_v49 = vrot.slane %v5067_v0, %v11468_v17  ;;  %v7202_v13 = vrot.slane %v4977_v27, %v11490_v33 }
 0x891   :  { %v7351_v3 = vsel %vm5505_vm10, %v7350_v49, %v7346_v60  ;;  %v7203_v23 = vsel %vm5519_vm12, %v7202_v13, %v7198_v14  ;;  %vm14645_vm10 = vmmov %vm14643_vm1 }
 0x892   :  { %v5022_v54 = vpop.xlane.xlu1 %5021  ;;  %v5070_v63 = vpop.xlane.xlu0 %5069 }
 0x893   :  { %v7276_v12 = vrot.slane %v5022_v54, %v11487_v31  ;;  %v7355_v32 = vrot.slane %v5070_v63, %v11487_v31 }
 0x895   :  { %v7277_v8 = vsel %vm5512_vm11, %v7276_v12, %v7272_v48  ;;  %v7356_v10 = vsel %vm5512_vm11, %v7355_v32, %v7351_v3  ;;  %vm14646_vm11 = vmmov %vm14638_vm5 }
 0x896   :  { %v4980_v19 = vpop.xlane.xlu1 %4979  ;;  %v5025_v22 = vpop.xlane.xlu0 %5024 }
 0x897   :  { %v7207_v2 = vrot.slane %v4980_v19, %v11504_v47  ;;  %v7281_v25 = vrot.slane %v5025_v22, %v11490_v33 }
 0x899   :  { %v7208_v31 = vsel %vm5526_vm13, %v7207_v2, %v7203_v23  ;;  %v7282_v0 = vsel %vm5519_vm12, %v7281_v25, %v7277_v8 }
 0x89a   :  { %v5073_v39 = vpop.xlane.xlu1 %5072  ;;  %v4983_v46 = vpop.xlane.xlu0 %4982 }
 0x89b   :  { %v7212_v29 = vrot.slane %v4983_v46, %v11507_v42  ;;  %v7360_v14 = vrot.slane %v5073_v39, %v11490_v33 }
 0x89d   :  { %v7213_v33 = vsel %vm5533_vm14, %v7212_v29, %v7208_v31  ;;  %v7361_v3 = vsel %vm5519_vm12, %v7360_v14, %v7356_v10  ;;  %vm14647_vm12 = vmmov %vm14639_vm9 }
 0x89e   :  { %v5028_v40 = vpop.xlane.xlu1 %5027  ;;  %v5076_v28 = vpop.xlane.xlu0 %5075 }
 0x89f   :  { %v7286_v13 = vrot.slane %v5028_v40, %v11504_v47  ;;  %v7365_v48 = vrot.slane %v5076_v28, %v11504_v47 }
 0x8a2   :  { %v4986_v53 = vpop.xlane.xlu1 %4985  ;;  %v5031_v59 = vpop.xlane.xlu0 %5030 }
 0x8a3   :  { %v7217_v43 = vrot.slane %v4986_v53, %v11530_v57  ;;  %v7291_v63 = vrot.slane %v5031_v59, %v11507_v42 }
 0x8a5   :  { %v7218_v23 = vsel %vm5540_vm15, %v7217_v43, %v7213_v33 }
 0x8a6   :  { %v13932_v16 = vpop.xlane.xlu1 %5078  ;;  %v4989_v44 = vpop.xlane.xlu0 %4988 }
 0x8a7   :  { %v7222_v55 = vrot.slane %v4989_v44, %v11533_v21  ;;  %v7370_v22 = vrot.slane %v13932_v16, %v11507_v42  ;;  %v7287_v42 = vsel %vm5526_vm13, %v7286_v13, %v7282_v0  ;;  %v7366_v16 = vsel %vm5526_vm13, %v7365_v48, %v7361_v3  ;;  %vm14648_vm13 = vmmov %vm14640_vm6 }
 0x8a8   :  { %vm14655_vm6 = vmmov %vm14639_vm9 }
 0x8a9   :  { %v7223_v39 = vsel %vm5547_vm0, %v7222_v55, %v7218_v23 }
 0x8aa   :  { %v5034_v17 = vpop.xlane.xlu1 %5033  ;;  %v13934_v7 = vpop.xlane.xlu0 %5081 }
 0x8ab   :  { %v7296_v46 = vrot.slane %v5034_v17, %v11530_v57  ;;  %v7375_v47 = vrot.slane %v13934_v7, %v11530_v57 }
 0x8ae   :  { %v4992_v1 = vpop.xlane.xlu1 %4991  ;;  %v13936_v35 = vpop.xlane.xlu0 %5036 }
 0x8af   :  { %v7227_v27 = vrot.slane %v4992_v1, %v11548_v61  ;;  %v7301_v53 = vrot.slane %v13936_v35, %v11533_v21 }
 0x8b1   :  { %v7228_v28 = vsel %vm5554_vm8, %v7227_v27, %v7223_v39 }
 0x8b2   :  { %v13938_v30 = vpop.xlane.xlu1 %5084  ;;  %v4995_v4 = vpop.xlane.xlu0 %4994 }
 0x8b3   :  { %v7232_v54 = vrot.slane %v4995_v4, %v11551_v56  ;;  %v7380_v57 = vrot.slane %v13938_v30, %v11533_v21 }
 0x8b5   :  { %v7233_v17 = vsel %vm5561_vm7, %v7232_v54, %v7228_v28 }
 0x8b6   :  { %v13940_v11 = vpop.xlane.xlu1 %5039  ;;  %v13942_v52 = vpop.xlane.xlu0 %5087 }
 0x8b7   :  { %v7306_v12 = vrot.slane %v13940_v11, %v11548_v61  ;;  %v7385_v21 = vrot.slane %v13942_v52, %v11548_v61 }
 0x8ba   :  { %v4998_v20 = vpop.xlane.xlu1 %4997  ;;  %v13944_v41 = vpop.xlane.xlu0 %5042 }
 0x8bb   :  { %v7237_v19 = vrot.slane %v4998_v20, %v11574_v6  ;;  %v7292_v20 = vsel %vm5533_vm14, %v7291_v63, %v7287_v42  ;;  %v7311_v14 = vrot.slane %v13944_v41, %v11551_v56 }
 0x8bd   :  { %v7238_v7 = vsel %vm14645_vm10, %v7237_v19, %v7233_v17 }
 0x8be   :  { %v13946_v38 = vpop.xlane.xlu1 %5090  ;;  %v5001_v45 = vpop.xlane.xlu0 %5000 }
 0x8bf   :  { %v7242_v40 = vrot.slane %v5001_v45, %v11577_v37  ;;  %v7371_v45 = vsel %vm5533_vm14, %v7370_v22, %v7366_v16  ;;  %v7390_v43 = vrot.slane %v13946_v38, %v11551_v56  ;;  %vm14649_vm14 = vmmov %vm14641_vm4 }
 0x8c0   :  { %v7376_v2 = vsel %vm5540_vm15, %v7375_v47, %v7371_v45 }
 0x8c1   :  { %v7243_v32 = vsel %vm14646_vm11, %v7242_v40, %v7238_v7  ;;  %v7381_v55 = vsel %vm5547_vm0, %v7380_v57, %v7376_v2  ;;  %vm14660_vm11 = vcmask 1043459  }
 0x8c2   :  { %v13948_v26 = vpop.xlane.xlu1 %5045  ;;  %v13950_v58 = vpop.xlane.xlu0 %5093  ;;  %v7386_v0 = vsel %vm5554_vm8, %v7385_v21, %v7381_v55 }
 0x8c3   :  { %v7316_v10 = vrot.slane %v13948_v26, %v11574_v6  ;;  %v7395_v61 = vrot.slane %v13950_v58, %v11574_v6  ;;  %v7391_v13 = vsel %vm5561_vm7, %v7390_v43, %v7386_v0 }
 0x8c6   :  { %v5004_v62 = vpop.xlane.xlu1 %5003  ;;  %v13952_v51 = vpop.xlane.xlu0 %5048 }
 0x8c7   :  { %v7247_v59 = vrot.slane %v5004_v62, %v11593_v5  ;;  %v7297_v62 = vsel %vm5540_vm15, %v7296_v46, %v7292_v20  ;;  %v7321_v41 = vrot.slane %v13952_v51, %v11577_v37  ;;  %vm14650_vm15 = vmmov %vm14644_vm3 }
 0x8c8   :  { %v7302_v25 = vsel %vm5547_vm0, %v7301_v53, %v7297_v62  ;;  %vm14652_vm0 = vmmov %vm14643_vm1 }
 0x8c9   :  { %v7248_v30 = vsel %vm14647_vm12, %v7247_v59, %v7243_v32  ;;  %v7307_v31 = vsel %vm5554_vm8, %v7306_v12, %v7302_v25  ;;  %vm14651_vm8 = vmmov %vm14643_vm1 }
 0x8ca   :  { %v13958_v24 = vpop.xlane.xlu1 %5096  ;;  %v5007_v18 = vpop.xlane.xlu0 %5006  ;;  %v7312_v51 = vsel %vm5561_vm7, %v7311_v14, %v7307_v31  ;;  %vm14653_vm1 = vmmov %vm14638_vm5 }
 0x8cb   :  { %v7252_v4 = vrot.slane %v5007_v18, %v11596_v50  ;;  %v7400_v56 = vrot.slane %v13958_v24, %v11577_v37  ;;  %v7317_v48 = vsel %vm14651_vm8, %v7316_v10, %v7312_v51  ;;  %vm14654_vm5 = vmmov %vm14653_vm1 }
 0x8cc   :  { %vm14656_vm7 = vmmov %vm14648_vm13 }
 0x8cd   :  { %v7253_v11 = vsel %vm14648_vm13, %v7252_v4, %v7248_v30  ;;  %vm14657_vm4 = vmmov %vm14656_vm7 }
 0x8ce   :  { %v13969_v60 = vpop.xlane.xlu1 %5051  ;;  %v13971_v49 = vpop.xlane.xlu0 %5099  ;;  %vm14658_vm3 = vmmov %vm14649_vm14 }
 0x8cf   :  { %v7326_v26 = vrot.slane %v13969_v60, %v11593_v5  ;;  %v7405_v6 = vrot.slane %v13971_v49, %v11593_v5  ;;  %v7396_v60 = vsel %vm14652_vm0, %v7395_v61, %v7391_v13  ;;  %vm14659_vm10 = vmmov %vm14658_vm3 }
 0x8d0   :  { %v7401_v49 = vsel %vm14654_vm5, %v7400_v56, %v7396_v60  ;;  %vm14661_vm12 = vmmov %vm14660_vm11 }
 0x8d1   :  { %v7406_v23 = vsel %vm14655_vm6, %v7405_v6, %v7401_v49 }
 0x8d2   :  { %v5010_v44 = vpop.xlane.xlu1 %5009  ;;  %v5055_v1 = vpop.xlane.xlu0 %5054 }
 0x8d3   :  { %v7257_v35 = vrot.slane %v5010_v44, %v11617_v9  ;;  %v7331_v37 = vrot.slane %v5055_v1, %v11596_v50 }
 0x8d5   :  { %v7258_v52 = vsel %vm14649_vm14, %v7257_v35, %v7253_v11 }
 0x8d6   :  { %v5103_v18 = vpop.xlane.xlu1 %5102  ;;  %v5013_v29 = vpop.xlane.xlu0 %5012 }
 0x8d7   :  { %v7262_v8 = vrot.slane %v5013_v29, %v11620_v36  ;;  %v7410_v24 = vrot.slane %v5103_v18, %v11596_v50 }
 0x8d9   :  { %v7263_v38 = vsel %vm5603_vm2, %v7262_v8, %v7258_v52  ;;  %v7411_v22 = vsel %vm14657_vm4, %v7410_v24, %v7406_v23 }
 0x8da   :  { %v7440_v58 = vsel %vm14650_vm15, %v7263_v38, %v13870_v34  ;;  %v5058_v27 = vpop.xlane.xlu1 %5057  ;;  %v5106_v33 = vpop.xlane.xlu0 %5105  ;;  %v7322_v34 = vsel %vm14653_vm1, %v7321_v41, %v7317_v48 }
 0x8db   :  { %v7336_v54 = vrot.slane %v5058_v27, %v11617_v9  ;;  %v7415_v5 = vrot.slane %v5106_v33, %v11617_v9  ;;  %v7327_v3 = vsel %vm14639_vm9, %v7326_v26, %v7322_v34 }
 0x8dc   :  { %v7332_v50 = vsel %vm14656_vm7, %v7331_v37, %v7327_v3 }
 0x8dd   :  { %v7337_v46 = vsel %vm14658_vm3, %v7336_v54, %v7332_v50  ;;  %v7416_v40 = vsel %vm14659_vm10, %v7415_v5, %v7411_v22 }
 0x8de   :  { %v5061_v63 = vpop.xlane.xlu1 %5060  ;;  %v5109_v19 = vpop.xlane.xlu0 %5108 }
 0x8df   :  { %v7341_v39 = vrot.slane %v5061_v63, %v11620_v36  ;;  %v7420_v9 = vrot.slane %v5109_v19, %v11620_v36 }
 0x8e1   :  { %v7342_v47 = vsel %vm5603_vm2, %v7341_v39, %v7337_v46  ;;  %v7421_v28 = vsel %vm5603_vm2, %v7420_v9, %v7416_v40 }
 0x8e2   :  { %v7438_v53 = vsel %vm14660_vm11, %v7342_v47, %v13917_v15  ;;  %v7441_v59 = vsel %vm14661_vm12, %v7421_v28, %v7440_v58 }
 0x8e3   :  { %7448 = vst [vmem:[#allocation2 + $0x10] sm:$0xf] %v7438_v53  ;;  %7449 = vst [vmem:[#allocation2 + $0x18] sm:$0xf] %v7441_v59 }
 0x8e4   :  { %8016 = shalt.err (!%p8013_p12)
}
 0x8e5   :  { %s8017_s16 = scalar_lea.hbm %s14075_s4, 512 }
 0x8e6   :  { %p8018_p13 = scmp.ne.s32.totalorder %s14075_s4, %s8017_s16  ;;  %p8021_p0 = scmp.lt.u32.totalorder %s8017_s16, %s14075_s4 }
 0x8e8   :  { %p8023_p1 = pnand %p8021_p0, %p8018_p13 }
 0x8ea   :  { %8026 = shalt.err (!%p8023_p1)
}
 0x8eb   :  { %s8036_s21 = smov 256   ;;  %s8037_s22 = smov 16  }
 0x8ec   :  { %7497 = dma.vmem_to_hbm [thread:$0]  %s7492_s12, 512, %s14075_s4, [#allocation3], %s8036_s21, %s8036_s21, %s8037_s22  }
 0x8ed   :  { %8027 = dma.done.wait [#allocation3], 512  }
 0x8ee   :  { %8028 = vsyncadd [#allocation3], 4294966784 }
 0x8ef   :  { %8029 = dma.done.wait [#allocation5], 256  }
 0x8f0   :  { %8030 = vsyncadd [#allocation5], 4294967040 }
 0x8f1   :  { %7516 = vsyncpa [#allocation3], 1 }
 0x8f2   :  { %7517 = vsyncpa [#allocation5], 1 }

</bundles_post_ra>
